<compile_context>
chip_gen: v5e
topology: v5e:2x2
jax: 0.10.0
libtpu: 0.0.40
codegen_flags: <defaults>
</compile_context>

<pallas_src>
import functools

import jax
import jax.numpy as jnp
from jax.experimental import pallas as pl
from jax.experimental.pallas import tpu as pltpu

IN_FEATURES = 28 * 28   # 784
HIDDEN = 256


def _round_up(x, m):
    return ((x + m - 1) // m) * m


# --------------------------------------------------------------------------- kernel
def autoencoder_kernel(x_ref, w1t_ref, b1_ref, w2t_ref, b2_ref, out_ref):
    """Fused forward: sigmoid(relu(x @ W1^T + b1) @ W2^T + b2).

    x_ref   : (TB, 784)  VMEM f32   (cast to bf16 in-kernel for the MXU)
    w1t_ref : (784, 256) VMEM bf16  (encoder weight, pre-transposed)
    b1_ref  : (1, 256)   VMEM f32
    w2t_ref : (256, 784) VMEM bf16  (decoder weight, pre-transposed)
    b2_ref  : (1, 784)   VMEM f32
    out_ref : (TB, 784)  VMEM bf16
    """
    # encoder: Linear(784 -> 256) + ReLU   (bf16 MXU inputs, f32 accumulation)
    x = x_ref[...].astype(jnp.bfloat16)
    h = jnp.dot(x, w1t_ref[...], preferred_element_type=jnp.float32)
    h = jnp.maximum(h + b1_ref[...], 0.0)
    # decoder: Linear(256 -> 784) + Sigmoid
    y = jnp.dot(h.astype(jnp.bfloat16), w2t_ref[...],
                preferred_element_type=jnp.float32)
    y = y + b2_ref[...]
    # sigmoid(y) == 0.5 * (tanh(0.5*y) + 1): single EUP transcendental, no divide.
    out_ref[...] = (0.5 * (jnp.tanh(0.5 * y) + 1.0)).astype(out_ref.dtype)


# ------------------------------------------------------------------------- wrappers
def prepare_params(w1, b1, w2, b2):
    """One-time weight prep (hoisted out of the per-call forward path).

    w1: (256, 784), b1: (256,), w2: (784, 256), b2: (784,)  — nn.Linear layout.
    """
    w1t = jnp.asarray(w1, jnp.float32).T.astype(jnp.bfloat16)          # (784, 256)
    w2t = jnp.asarray(w2, jnp.float32).T.astype(jnp.bfloat16)          # (256, 784)
    b1_2d = jnp.asarray(b1, jnp.float32).reshape(1, HIDDEN)
    b2_2d = jnp.asarray(b2, jnp.float32).reshape(1, IN_FEATURES)
    return w1t, b1_2d, w2t, b2_2d


def _choose_tile(n, batch_tile):
    # Keep the grid at >= 2 steps when possible so both v7x TensorCores get work
    # under the "parallel" batch axis; align to 16 rows (bf16 sublane packing).
    half = _round_up(max(pl.cdiv(n, 2), 1), 16)
    return max(min(_round_up(batch_tile, 16), half), 16)


def _vmem_limit_bytes(tb):
    x_bytes = tb * IN_FEATURES * 4            # f32 input tile
    out_bytes = tb * IN_FEATURES * 2          # bf16 output tile
    stream = 2 * (x_bytes + out_bytes)        # double-buffered by the pipeline
    weights = 2 * (2 * IN_FEATURES * HIDDEN * 2)   # two bf16 weights, double-buffered
    biases = 2 * (HIDDEN + IN_FEATURES) * 4
    interm = 2 * tb * (HIDDEN + IN_FEATURES) * 4   # h / y f32 live values + slack
    need = stream + weights + biases + interm + (4 << 20)
    try:
        phys = getattr(pltpu.get_tpu_info(), "vmem_capacity_bytes", 64 << 20)
    except Exception:
        phys = 64 << 20                       # v7x worst case
    cap = (phys * 7) // 8
    return int(min(max(need, 16 << 20), cap))


@functools.partial(jax.jit, static_argnames=("batch_tile",))
def autoencoder_forward(x, params, *, batch_tile=1024):
    """x: (N, 784) float; params: output of prepare_params(). Returns (N, 784) bf16."""
    w1t, b1_2d, w2t, b2_2d = params
    n, d_in = x.shape
    assert d_in == IN_FEATURES

    tb = _choose_tile(n, batch_tile)
    n_pad = _round_up(n, tb)

    x_p = x.astype(jnp.float32)
    if n_pad != n:
        x_p = jnp.pad(x_p, ((0, n_pad - n), (0, 0)))

    grid = (n_pad // tb,)
    out = pl.pallas_call(
        autoencoder_kernel,
        out_shape=jax.ShapeDtypeStruct((n_pad, IN_FEATURES), jnp.bfloat16),
        grid_spec=pltpu.PrefetchScalarGridSpec(
            num_scalar_prefetch=0,
            grid=grid,
            in_specs=[
                pl.BlockSpec((tb, IN_FEATURES), lambda i: (i, 0)),        # x tile (f32)
                pl.BlockSpec((IN_FEATURES, HIDDEN), lambda i: (0, 0)),    # W1^T (grid-invariant)
                pl.BlockSpec((1, HIDDEN), lambda i: (0, 0)),              # b1
                pl.BlockSpec((HIDDEN, IN_FEATURES), lambda i: (0, 0)),    # W2^T (grid-invariant)
                pl.BlockSpec((1, IN_FEATURES), lambda i: (0, 0)),         # b2
            ],
            out_specs=pl.BlockSpec((tb, IN_FEATURES), lambda i: (i, 0)),
        ),
        compiler_params=pltpu.CompilerParams(
            dimension_semantics=("parallel",),   # batch axis shards across v7x's 2 TCs
            vmem_limit_bytes=_vmem_limit_bytes(tb),
        ),
    )(x_p, w1t, b1_2d, w2t, b2_2d)

    return out[:n] if n_pad != n else out


def reference_forward(x, w1, b1, w2, b2):
    h = jnp.maximum(x @ w1.T + b1, 0.0)
    return jax.nn.sigmoid(h @ w2.T + b2)


# ----------------------------------------------------------------------------- main
if __name__ == "__main__":
    key = jax.random.PRNGKey(0)
    k_x, k_w1, k_w2 = jax.random.split(key, 3)

    # 512 rows -> tile 256, 2 grid steps (exercises both v7x TensorCores).
    batch = 512
    x = jax.random.normal(k_x, (batch, IN_FEATURES), dtype=jnp.float32)

    # Deterministic parameter init mirroring ManualLinear.__init__:
    #   weight = randn(out, in) * 0.01 ; bias = zeros(out)
    w1 = jax.random.normal(k_w1, (HIDDEN, IN_FEATURES), dtype=jnp.float32) * 0.01
    b1 = jnp.zeros((HIDDEN,), dtype=jnp.float32)
    w2 = jax.random.normal(k_w2, (IN_FEATURES, HIDDEN), dtype=jnp.float32) * 0.01
    b2 = jnp.zeros((IN_FEATURES,), dtype=jnp.float32)

    params = prepare_params(w1, b1, w2, b2)   # one-time weight transpose/cast
    out = autoencoder_forward(x, params)
    out = jax.block_until_ready(out)

    ref = reference_forward(x, w1, b1, w2, b2)
    assert out.shape == (batch, IN_FEATURES)
    assert out.dtype == jnp.bfloat16
    # bf16 MXU inputs + bf16 output store -> relaxed tolerance vs the f32 reference.
    assert jnp.allclose(out.astype(jnp.float32), ref, atol=2e-2, rtol=2e-2), \
        "mismatch vs reference"

    print("KERNEL_OK")
</pallas_src>

<mosaic_0001>
module attributes {stable_mosaic.version = 11 : i64} {
  func.func @autoencoder_kernel(%arg0: i32, %arg1: memref<256x784xf32, #tpu.memory_space<vmem>>, %arg2: memref<784x256xbf16, #tpu.memory_space<vmem>>, %arg3: memref<1x256xf32, #tpu.memory_space<vmem>>, %arg4: memref<256x784xbf16, #tpu.memory_space<vmem>>, %arg5: memref<1x784xf32, #tpu.memory_space<vmem>>, %arg6: memref<256x784xbf16, #tpu.memory_space<vmem>>) attributes {dimension_semantics = [#tpu.dimension_semantics<parallel>], iteration_bounds = array<i64: 2>, scalar_prefetch = 0 : i64, scratch_operands = 0 : i64, tpu.core_type = #tpu.core_type<tc>, window_params = [{transform_indices = @transform_0, window_bounds = array<i64: 256, 784>}, {pipeline_mode = #tpu.pipeline_mode<synchronous>, transform_indices = @transform_1, window_bounds = array<i64: 784, 256>}, {pipeline_mode = #tpu.pipeline_mode<synchronous>, transform_indices = @transform_2, window_bounds = array<i64: 1, 256>}, {pipeline_mode = #tpu.pipeline_mode<synchronous>, transform_indices = @transform_3, window_bounds = array<i64: 256, 784>}, {pipeline_mode = #tpu.pipeline_mode<synchronous>, transform_indices = @transform_4, window_bounds = array<i64: 1, 784>}, {transform_indices = @transform_5, window_bounds = array<i64: 256, 784>}]} {
    %c0 = arith.constant 0 : index
    %c0_0 = arith.constant 0 : index
    %0 = vector.load %arg1[%c0, %c0_0] : memref<256x784xf32, #tpu.memory_space<vmem>>, vector<256x784xf32>
    %1 = arith.truncf %0 : vector<256x784xf32> to vector<256x784xbf16>
    %c0_1 = arith.constant 0 : index
    %c0_2 = arith.constant 0 : index
    %2 = vector.load %arg2[%c0_1, %c0_2] : memref<784x256xbf16, #tpu.memory_space<vmem>>, vector<784x256xbf16>
    %cst = arith.constant dense<0.000000e+00> : vector<256x256xf32>
    %3 = tpu.matmul %1, %2, %cst {dimension_numbers = #tpu.dot_dimension_numbers<[1], [0], [0], [1], [0, 0, 1, 1], [], []>} : vector<256x784xbf16>, vector<784x256xbf16>, vector<256x256xf32> -> vector<256x256xf32>
    %c0_3 = arith.constant 0 : index
    %c0_4 = arith.constant 0 : index
    %4 = vector.load %arg3[%c0_3, %c0_4] : memref<1x256xf32, #tpu.memory_space<vmem>>, vector<1x256xf32>
    %5 = vector.broadcast %4 : vector<1x256xf32> to vector<256x256xf32>
    %6 = arith.addf %3, %5 : vector<256x256xf32>
    %cst_5 = arith.constant 0.000000e+00 : f32
    %7 = vector.broadcast %cst_5 : f32 to vector<256x256xf32>
    %8 = arith.maximumf %6, %7 : vector<256x256xf32>
    %9 = arith.truncf %8 : vector<256x256xf32> to vector<256x256xbf16>
    %c0_6 = arith.constant 0 : index
    %c0_7 = arith.constant 0 : index
    %10 = vector.load %arg4[%c0_6, %c0_7] : memref<256x784xbf16, #tpu.memory_space<vmem>>, vector<256x784xbf16>
    %cst_8 = arith.constant dense<0.000000e+00> : vector<256x784xf32>
    %11 = tpu.matmul %9, %10, %cst_8 {dimension_numbers = #tpu.dot_dimension_numbers<[1], [0], [0], [1], [0, 0, 1, 1], [], []>} : vector<256x256xbf16>, vector<256x784xbf16>, vector<256x784xf32> -> vector<256x784xf32>
    %c0_9 = arith.constant 0 : index
    %c0_10 = arith.constant 0 : index
    %12 = vector.load %arg5[%c0_9, %c0_10] : memref<1x784xf32, #tpu.memory_space<vmem>>, vector<1x784xf32>
    %13 = vector.broadcast %12 : vector<1x784xf32> to vector<256x784xf32>
    %14 = arith.addf %11, %13 : vector<256x784xf32>
    %cst_11 = arith.constant 5.000000e-01 : f32
    %15 = vector.broadcast %cst_11 : f32 to vector<256x784xf32>
    %16 = arith.mulf %15, %14 : vector<256x784xf32>
    %17 = math.tanh %16 : vector<256x784xf32>
    %cst_12 = arith.constant 1.000000e+00 : f32
    %18 = vector.broadcast %cst_12 : f32 to vector<256x784xf32>
    %19 = arith.addf %17, %18 : vector<256x784xf32>
    %cst_13 = arith.constant 5.000000e-01 : f32
    %20 = vector.broadcast %cst_13 : f32 to vector<256x784xf32>
    %21 = arith.mulf %20, %19 : vector<256x784xf32>
    %22 = arith.truncf %21 : vector<256x784xf32> to vector<256x784xbf16>
    %c0_14 = arith.constant 0 : index
    %c0_15 = arith.constant 0 : index
    %23 = vector.load %arg6[%c0_14, %c0_15] : memref<256x784xbf16, #tpu.memory_space<vmem>>, vector<256x784xbf16>
    tpu.vector_store %arg6[%c0_14, %c0_15], %22 {strides = array<i32>} : memref<256x784xbf16, #tpu.memory_space<vmem>>, vector<256x784xbf16>,
    return
  }
  func.func @transform_0(%arg0: i32) -> (i32, i32) {
    %c0_i32 = arith.constant 0 : i32
    %c0_i32_0 = arith.constant 0 : i32
    return %arg0, %c0_i32 : i32, i32
  }
  func.func @transform_1(%arg0: i32) -> (i32, i32) {
    %c0_i32 = arith.constant 0 : i32
    %c0_i32_0 = arith.constant 0 : i32
    %c0_i32_1 = arith.constant 0 : i32
    return %c0_i32, %c0_i32_0 : i32, i32
  }
  func.func @transform_2(%arg0: i32) -> (i32, i32) {
    %c0_i32 = arith.constant 0 : i32
    %c0_i32_0 = arith.constant 0 : i32
    %c0_i32_1 = arith.constant 0 : i32
    return %c0_i32, %c0_i32_0 : i32, i32
  }
  func.func @transform_3(%arg0: i32) -> (i32, i32) {
    %c0_i32 = arith.constant 0 : i32
    %c0_i32_0 = arith.constant 0 : i32
    %c0_i32_1 = arith.constant 0 : i32
    return %c0_i32, %c0_i32_0 : i32, i32
  }
  func.func @transform_4(%arg0: i32) -> (i32, i32) {
    %c0_i32 = arith.constant 0 : i32
    %c0_i32_0 = arith.constant 0 : i32
    %c0_i32_1 = arith.constant 0 : i32
    return %c0_i32, %c0_i32_0 : i32, i32
  }
  func.func @transform_5(%arg0: i32) -> (i32, i32) {
    %c0_i32 = arith.constant 0 : i32
    %c0_i32_0 = arith.constant 0 : i32
    return %arg0, %c0_i32 : i32, i32
  }
}

</mosaic_0001>

<bundles_post_ra>
// kernel: autoencoder_forward.1
= control target key start
LH: loop header
LB: loop body
LE: loop exit
PB: predicated region body
PF: predicated region fallthrough
CT: control target
= control target key end

     0   :  { %s7325_s18 = smov 0   ;;  %s11051_s0 = inlined_call_operand.vmem [shape: f32[512,784], index: 0, kind: input, shape index: {}]   ;;  %s11052_s1 = inlined_call_operand.vmem [shape: bf16[784,256], index: 1, kind: input, shape index: {}]   ;;  %s11053_s2 = inlined_call_operand.vmem [shape: f32[1,256], index: 2, kind: input, shape index: {}]   ;;  %s11054_s3 = inlined_call_operand.vmem [shape: bf16[256,784], index: 3, kind: input, shape index: {}]   ;;  %s11055_s4 = inlined_call_operand.vmem [shape: f32[1,784], index: 4, kind: input, shape index: {}]   ;;  %s11056_s5 = inlined_call_operand.vmem [shape: bf16[512,784], index: 5, kind: output, shape index: {}]  }
   0x1 LB: > { %s5732_s19 = sadd.s32 4294967295, %s7293_s18   ;;  %p5736_p0 = scmp.ge.s32.totalorder %s7293_s18, 1  ;;  %s7293_s18 = sphi %s7325_s18, %s15_s18  }
   0x2   : > { %p189_p1 = scmp.lt.s32.totalorder %s7293_s18, 3 }
   0x4   : > { %p190_p2 = pnand %p5736_p0, %p189_p1 }
   0x6   : > { %193 = sbr.rel (%p190_p2) target bundleno = 2121 (0x849), region = 40 }
   0xb   : > { %v5799_v0 = vld [vmem:[%s11052_s1 + $0x70] sm:$0xf]  ;;  %v6630_v1 = vld [vmem:[%s11052_s1 + $0x74] sm:$0xf0]  ;;  %v5791_v11 = vld [vmem:[%s11052_s1 + $0x60] sm:$0xf] }
   0xc   : > { %v5863_v2 = vld [vmem:[%s11052_s1 + $0xf0] sm:$0xf]  ;;  %v5800_v3 = vor.u32 %v6630_v1, %v5799_v0  ;;  %v6646_v4 = vld [vmem:[%s11052_s1 + $0xf4] sm:$0xf0]  ;;  %v6628_v13 = vld [vmem:[%s11052_s1 + $0x64] sm:$0xf0] }
   0xd   : > { %v5927_v5 = vld [vmem:[%s11052_s1 + $0x170] sm:$0xf]  ;;  %v6662_v6 = vld [vmem:[%s11052_s1 + $0x174] sm:$0xf0]  ;;  %v5864_v7 = vor.u32 %v6646_v4, %v5863_v2  ;;  %v5855_v14 = vld [vmem:[%s11052_s1 + $0xe0] sm:$0xf]  ;;  %v5792_v16 = vor.u32 %v6628_v13, %v5791_v11 }
   0xe   : > { %v5928_v8 = vor.u32 %v6662_v6, %v5927_v5  ;;  %v5991_v9 = vld [vmem:[%s11052_s1 + $0x1f0] sm:$0xf]  ;;  %v6678_v10 = vld [vmem:[%s11052_s1 + $0x1f4] sm:$0xf0]  ;;  %1213 = vmatpush.bf16.msra.mxu0 %v5800_v3  ;;  %v6644_v15 = vld [vmem:[%s11052_s1 + $0xe4] sm:$0xf0] }
   0xf   : > { %v5992_v12 = vor.u32 %v6678_v10, %v5991_v9  ;;  %1302 = vmatpush.bf16.msra.mxu1 %v5864_v7  ;;  %v5856_v17 = vor.u32 %v6644_v15, %v5855_v14  ;;  %v5919_v18 = vld [vmem:[%s11052_s1 + $0x160] sm:$0xf]  ;;  %v6660_v19 = vld [vmem:[%s11052_s1 + $0x164] sm:$0xf0]  ;;  %v5783_v23 = vld [vmem:[%s11052_s1 + $0x50] sm:$0xf] }
  0x10   : > { %1391 = vmatpush.bf16.msra.mxu2 %v5928_v8  ;;  %v5983_v20 = vld [vmem:[%s11052_s1 + $0x1e0] sm:$0xf]  ;;  %v5920_v21 = vor.u32 %v6660_v19, %v5919_v18  ;;  %v6676_v22 = vld [vmem:[%s11052_s1 + $0x1e4] sm:$0xf0]  ;;  %v6626_v24 = vld [vmem:[%s11052_s1 + $0x54] sm:$0xf0] }
  0x11   : > { %1480 = vmatpush.bf16.msra.mxu3 %v5992_v12  ;;  %v5984_v25 = vor.u32 %v6676_v22, %v5983_v20  ;;  %v5847_v26 = vld [vmem:[%s11052_s1 + $0xd0] sm:$0xf]  ;;  %v6642_v27 = vld [vmem:[%s11052_s1 + $0xd4] sm:$0xf0]  ;;  %v5784_v29 = vor.u32 %v6626_v24, %v5783_v23  ;;  %v5775_v35 = vld [vmem:[%s11052_s1 + $0x40] sm:$0xf] }
  0x12   : > { %v5911_v28 = vld [vmem:[%s11052_s1 + $0x150] sm:$0xf]  ;;  %1214 = vmatpush.bf16.msra.mxu0 %v5792_v16  ;;  %v6658_v30 = vld [vmem:[%s11052_s1 + $0x154] sm:$0xf0]  ;;  %v5848_v33 = vor.u32 %v6642_v27, %v5847_v26  ;;  %v6624_v36 = vld [vmem:[%s11052_s1 + $0x44] sm:$0xf0] }
  0x13   : > { %v5975_v31 = vld [vmem:[%s11052_s1 + $0x1d0] sm:$0xf]  ;;  %v6674_v32 = vld [vmem:[%s11052_s1 + $0x1d4] sm:$0xf0]  ;;  %1303 = vmatpush.bf16.msra.mxu1 %v5856_v17  ;;  %v5912_v34 = vor.u32 %v6658_v30, %v5911_v28  ;;  %v5839_v37 = vld [vmem:[%s11052_s1 + $0xc0] sm:$0xf]  ;;  %v5776_v44 = vor.u32 %v6624_v36, %v5775_v35 }
  0x14   : > { %1392 = vmatpush.bf16.msra.mxu2 %v5920_v21  ;;  %v5976_v38 = vor.u32 %v6674_v32, %v5975_v31  ;;  %v6640_v39 = vld [vmem:[%s11052_s1 + $0xc4] sm:$0xf0]  ;;  %v5903_v40 = vld [vmem:[%s11052_s1 + $0x140] sm:$0xf]  ;;  %v5767_v47 = vld [vmem:[%s11052_s1 + $0x30] sm:$0xf] }
  0x15   : > { %1481 = vmatpush.bf16.msra.mxu3 %v5984_v25  ;;  %v6656_v41 = vld [vmem:[%s11052_s1 + $0x144] sm:$0xf0]  ;;  %v5967_v42 = vld [vmem:[%s11052_s1 + $0x1c0] sm:$0xf]  ;;  %v5840_v45 = vor.u32 %v6640_v39, %v5839_v37  ;;  %v6622_v48 = vld [vmem:[%s11052_s1 + $0x34] sm:$0xf0] }
  0x16   : > { %v6672_v43 = vld [vmem:[%s11052_s1 + $0x1c4] sm:$0xf0]  ;;  %1215 = vmatpush.bf16.msra.mxu0 %v5784_v29  ;;  %v5904_v46 = vor.u32 %v6656_v41, %v5903_v40  ;;  %v5831_v49 = vld [vmem:[%s11052_s1 + $0xb0] sm:$0xf]  ;;  %v6638_v51 = vld [vmem:[%s11052_s1 + $0xb4] sm:$0xf0]  ;;  %v5768_v56 = vor.u32 %v6622_v48, %v5767_v47 }
  0x17   : > { %1304 = vmatpush.bf16.msra.mxu1 %v5848_v33  ;;  %v5968_v50 = vor.u32 %v6672_v43, %v5967_v42  ;;  %v5895_v52 = vld [vmem:[%s11052_s1 + $0x130] sm:$0xf]  ;;  %v6654_v53 = vld [vmem:[%s11052_s1 + $0x134] sm:$0xf0]  ;;  %v5832_v57 = vor.u32 %v6638_v51, %v5831_v49  ;;  %v5759_v59 = vld [vmem:[%s11052_s1 + $0x20] sm:$0xf] }
  0x18   : > { %1393 = vmatpush.bf16.msra.mxu2 %v5912_v34  ;;  %v5959_v54 = vld [vmem:[%s11052_s1 + $0x1b0] sm:$0xf]  ;;  %v6670_v55 = vld [vmem:[%s11052_s1 + $0x1b4] sm:$0xf0]  ;;  %v5896_v58 = vor.u32 %v6654_v53, %v5895_v52  ;;  %v6620_v60 = vld [vmem:[%s11052_s1 + $0x24] sm:$0xf0] }
  0x19   : > { %1482 = vmatpush.bf16.msra.mxu3 %v5976_v38  ;;  %v5823_v61 = vld [vmem:[%s11052_s1 + $0xa0] sm:$0xf]  ;;  %v5960_v62 = vor.u32 %v6670_v55, %v5959_v54  ;;  %v6636_v63 = vld [vmem:[%s11052_s1 + $0xa4] sm:$0xf0]  ;;  %v5760_v4 = vor.u32 %v6620_v60, %v5759_v59  ;;  %v5751_v5 = vld [vmem:[%s11052_s1 + $0x10] sm:$0xf] }
  0x1a   : > { %1216 = vmatpush.bf16.msra.mxu0 %v5776_v44  ;;  %v5887_v0 = vld [vmem:[%s11052_s1 + $0x120] sm:$0xf]  ;;  %v6652_v1 = vld [vmem:[%s11052_s1 + $0x124] sm:$0xf0]  ;;  %v5824_v6 = vor.u32 %v6636_v63, %v5823_v61  ;;  %v6618_v8 = vld [vmem:[%s11052_s1 + $0x14] sm:$0xf0] }
  0x1b   : > { %1305 = vmatpush.bf16.msra.mxu1 %v5840_v45  ;;  %v5951_v2 = vld [vmem:[%s11052_s1 + $0x1a0] sm:$0xf]  ;;  %v6668_v3 = vld [vmem:[%s11052_s1 + $0x1a4] sm:$0xf0]  ;;  %v5888_v7 = vor.u32 %v6652_v1, %v5887_v0  ;;  %v5815_v9 = vld [vmem:[%s11052_s1 + $0x90] sm:$0xf]  ;;  %v5752_v16 = vor.u32 %v6618_v8, %v5751_v5 }
  0x1c   : > { %1394 = vmatpush.bf16.msra.mxu2 %v5904_v46  ;;  %v6634_v10 = vld [vmem:[%s11052_s1 + $0x94] sm:$0xf0]  ;;  %v5952_v11 = vor.u32 %v6668_v3, %v5951_v2  ;;  %v5879_v12 = vld [vmem:[%s11052_s1 + $0x110] sm:$0xf]  ;;  %s5737_s11 = sshll.u32 %s5732_s19, 5  ;;  %vm1164_vm0 = vcmask 130048  }
  0x1d   : > { %1483 = vmatpush.bf16.msra.mxu3 %v5968_v50  ;;  %v6650_v13 = vld [vmem:[%s11052_s1 + $0x114] sm:$0xf0]  ;;  %v5943_v14 = vld [vmem:[%s11052_s1 + $0x190] sm:$0xf]  ;;  %p220_p3 = scmp.lt.s32.totalorder %s5737_s11, 63  ;;  %v5816_v20 = vor.u32 %v6634_v10, %v5815_v9  ;;  %vm5548_vm1 = vcmask 125952  }
  0x1e   : > { %1217 = vmatpush.bf16.msra.mxu0 %v5768_v56  ;;  %v6666_v15 = vld [vmem:[%s11052_s1 + $0x194] sm:$0xf0]  ;;  %v5743_v17 = vld [vmem:[%s11052_s1] sm:$0xf]  ;;  %v6616_v18 = vld [vmem:[%s11052_s1 + $0x4] sm:$0xf0]  ;;  %v5880_v21 = vor.u32 %v6650_v13, %v5879_v12 }
  0x1f   : > { %1306 = vmatpush.bf16.msra.mxu1 %v5832_v57  ;;  %v5807_v19 = vld [vmem:[%s11052_s1 + $0x80] sm:$0xf]  ;;  %v6632_v22 = vld [vmem:[%s11052_s1 + $0x84] sm:$0xf0]  ;;  %s11477_s11 = smov (!%p220_p3, %s5737_s11), 63  ;;  %v5944_v24 = vor.u32 %v6666_v15, %v5943_v14  ;;  %v5744_v30 = vor.u32 %v6616_v18, %v5743_v17 }
  0x20   : > { %1395 = vmatpush.bf16.msra.mxu2 %v5896_v58  ;;  %v5871_v23 = vld [vmem:[%s11052_s1 + $0x100] sm:$0xf]  ;;  %v6648_v25 = vld [vmem:[%s11052_s1 + $0x104] sm:$0xf0]  ;;  %s6825_s8 = smul.u32 56, %s11477_s11  ;;  %v5808_v33 = vor.u32 %v6632_v22, %v5807_v19 }
  0x21   : > { %1484 = vmatpush.bf16.msra.mxu3 %v5960_v62  ;;  %v5935_v26 = vld [vmem:[%s11052_s1 + $0x180] sm:$0xf]  ;;  %v6664_v27 = vld [vmem:[%s11052_s1 + $0x184] sm:$0xf0]  ;;  %v6055_v28 = vld [vmem:[%s11052_s1 + $0x270] sm:$0xf]  ;;  %v5872_v34 = vor.u32 %v6648_v25, %v5871_v23 }
  0x22   : > { %1218 = vmatpush.bf16.msra.mxu0 %v5760_v4  ;;  %v6694_v29 = vld [vmem:[%s11052_s1 + $0x274] sm:$0xf0]  ;;  %v6119_v31 = vld [vmem:[%s11052_s1 + $0x2f0] sm:$0xf]  ;;  %s7545_s19 = scalar_lea.vmem %s11051_s0, %s6825_s8  ;;  %v5936_v35 = vor.u32 %v6664_v27, %v5935_v26  ;;  %v6047_v50 = vld [vmem:[%s11052_s1 + $0x260] sm:$0xf] }
  0x23   : > { %1307 = vmatpush.bf16.msra.mxu1 %v5824_v6  ;;  %v6710_v32 = vld [vmem:[%s11052_s1 + $0x2f4] sm:$0xf0]  ;;  %v234_v36 = vld [vmem:[%s7545_s19] sm:$0xff]  ;;  %v235_v38 = vld [vmem:[%s7545_s19 + $0x8] sm:$0xff]  ;;  %v6056_v39 = vor.u32 %v6694_v29, %v6055_v28  ;;  %s6826_s17 = smul.u32 28, %s11477_s11 }
  0x24   : > { %1396 = vmatpush.bf16.msra.mxu2 %v5888_v7  ;;  %v241_v37 = vld [vmem:[%s7545_s19 + $0x38] sm:$0xff]  ;;  %v242_v41 = vld [vmem:[%s7545_s19 + $0x40] sm:$0xff]  ;;  %v236_v42 = vld [vmem:[%s7545_s19 + $0x10] sm:$0xff]  ;;  %v6120_v44 = vor.u32 %v6710_v32, %v6119_v31 }
  0x25   : > { %1485 = vmatpush.bf16.msra.mxu3 %v5952_v11  ;;  %v7550_v40 = vpack.c.bf16 %v241_v37, %v234_v36  ;;  %v243_v43 = vld [vmem:[%s7545_s19 + $0x48] sm:$0xff]  ;;  %v7555_v45 = vpack.c.bf16 %v242_v41, %v235_v38  ;;  %v237_v47 = vld [vmem:[%s7545_s19 + $0x18] sm:$0xff]  ;;  %v244_v48 = vld [vmem:[%s7545_s19 + $0x50] sm:$0xff]  ;;  %s9620_s22 = scalar_lea.vmem %s11056_s5, %s6826_s17 }
  0x26   : > { %1219 = vmatpush.bf16.msra.mxu0 %v5752_v16  ;;  %v7557_v46 = vpack.c.bf16 %v243_v43, %v236_v42  ;;  %v7561_v49 = vpack.c.bf16 %v244_v48, %v237_v47  ;;  %v6692_v51 = vld [vmem:[%s11052_s1 + $0x264] sm:$0xf0]  ;;  %v6111_v53 = vld [vmem:[%s11052_s1 + $0x2e0] sm:$0xf]  ;;  %v248_v56 = vld [vmem:[%s7545_s19 + $0x70] sm:$0xff] }
  0x27   : > { %1308 = vmatpush.bf16.msra.mxu1 %v5816_v20  ;;  %v6048_v52 = vor.u32 %v6692_v51, %v6047_v50  ;;  %v6708_v54 = vld [vmem:[%s11052_s1 + $0x2e4] sm:$0xf0]  ;;  %v249_v58 = vld [vmem:[%s7545_s19 + $0x78] sm:$0xff]  ;;  %v256_v59 = vld [vmem:[%s7545_s19 + $0xb0] sm:$0xff] }
  0x28   : > { %1397 = vmatpush.bf16.msra.mxu2 %v5880_v21  ;;  %v6112_v55 = vor.u32 %v6708_v54, %v6111_v53  ;;  %v255_v57 = vld [vmem:[%s7545_s19 + $0xa8] sm:$0xff]  ;;  %v250_v60 = vld [vmem:[%s7545_s19 + $0x80] sm:$0xff]  ;;  %v257_v61 = vld [vmem:[%s7545_s19 + $0xb8] sm:$0xff]  ;;  %v7589_v1 = vpack.c.bf16 %v256_v59, %v249_v58 }
  0x29   : > { %1486 = vmatpush.bf16.msra.mxu3 %v5944_v24  ;;  %v251_v62 = vld [vmem:[%s7545_s19 + $0x88] sm:$0xff]  ;;  %v258_v63 = vld [vmem:[%s7545_s19 + $0xc0] sm:$0xff]  ;;  %v7587_v0 = vpack.c.bf16 %v255_v57, %v248_v56  ;;  %v7591_v2 = vpack.c.bf16 %v257_v61, %v250_v60  ;;  %v269_v5 = vld [vmem:[%s7545_s19 + $0x118] sm:$0xff] }
  0x2a   : > { %1220 = vmatpush.bf16.msra.mxu0 %v5744_v30  ;;  %v7593_v3 = vpack.c.bf16 %v258_v63, %v251_v62  ;;  %v262_v4 = vld [vmem:[%s7545_s19 + $0xe0] sm:$0xff]  ;;  %v263_v6 = vld [vmem:[%s7545_s19 + $0xe8] sm:$0xff]  ;;  %v264_v8 = vld [vmem:[%s7545_s19 + $0xf0] sm:$0xff] }
  0x2b   : > { %1309 = vmatpush.bf16.msra.mxu1 %v5808_v33  ;;  %v270_v7 = vld [vmem:[%s7545_s19 + $0x120] sm:$0xff]  ;;  %v271_v9 = vld [vmem:[%s7545_s19 + $0x128] sm:$0xff]  ;;  %v265_v10 = vld [vmem:[%s7545_s19 + $0xf8] sm:$0xff]  ;;  %v7607_v12 = vpack.c.bf16 %v269_v5, %v262_v4 }
  0x2c   : > { %1398 = vmatpush.bf16.msra.mxu2 %v5872_v34  ;;  %v272_v11 = vld [vmem:[%s7545_s19 + $0x130] sm:$0xff]  ;;  %v7609_v13 = vpack.c.bf16 %v270_v7, %v263_v6  ;;  %v7611_v14 = vpack.c.bf16 %v271_v9, %v264_v8  ;;  %v6690_v17 = vld [vmem:[%s11052_s1 + $0x254] sm:$0xf0]  ;;  %v283_v23 = vld [vmem:[%s7545_s19 + $0x188] sm:$0xff] }
  0x2d   : > { %1487 = vmatpush.bf16.msra.mxu3 %v5936_v35  ;;  %1221 = vmatmul.bf16.vlgmr.msra.gmra.mxu0 %v7550_v40  ;;  %v7613_v15 = vpack.c.bf16 %v272_v11, %v265_v10  ;;  %v6039_v16 = vld [vmem:[%s11052_s1 + $0x250] sm:$0xf]  ;;  %v6706_v20 = vld [vmem:[%s11052_s1 + $0x2d4] sm:$0xf0]  ;;  %v278_v26 = vld [vmem:[%s7545_s19 + $0x160] sm:$0xff] }
  0x2e   : > { %1569 = vmatpush.bf16.msrb.mxu0 %v6056_v39  ;;  %1310 = vmatmul.bf16.vlgmr.msra.gmra.mxu1 %v7555_v45  ;;  %v6040_v18 = vor.u32 %v6690_v17, %v6039_v16  ;;  %v6103_v19 = vld [vmem:[%s11052_s1 + $0x2d0] sm:$0xf]  ;;  %v277_v24 = vld [vmem:[%s7545_s19 + $0x158] sm:$0xff]  ;;  %v279_v28 = vld [vmem:[%s7545_s19 + $0x168] sm:$0xff] }
  0x2f   : > { %1658 = vmatpush.bf16.msrb.mxu1 %v6120_v44  ;;  %1399 = vmatmul.bf16.vlgmr.msra.gmra.mxu2 %v7557_v46  ;;  %11204 = vst [vmem:[#allocation2_spill] sm:$0xff] %v7613_v15  ;;  %v6104_v21 = vor.u32 %v6706_v20, %v6103_v19  ;;  %v276_v22 = vld [vmem:[%s7545_s19 + $0x150] sm:$0xff]  ;;  %v285_v27 = vld [vmem:[%s7545_s19 + $0x198] sm:$0xff]  ;;  %v286_v29 = vld [vmem:[%s7545_s19 + $0x1a0] sm:$0xff] }
  0x30   : > { %1488 = vmatmul.bf16.vlgmr.msra.gmra.mxu3 %v7561_v49  ;;  %v284_v25 = vld [vmem:[%s7545_s19 + $0x190] sm:$0xff]  ;;  %v7639_v30 = vpack.c.bf16 %v283_v23, %v276_v22  ;;  %v7643_v32 = vpack.c.bf16 %v285_v27, %v278_v26  ;;  %v7645_v33 = vpack.c.bf16 %v286_v29, %v279_v28  ;;  %v290_v34 = vld [vmem:[%s7545_s19 + $0x1c0] sm:$0xff]  ;;  %v297_v35 = vld [vmem:[%s7545_s19 + $0x1f8] sm:$0xff] }
  0x31   : > { %v7641_v31 = vpack.c.bf16 %v284_v25, %v277_v24  ;;  %v291_v36 = vld [vmem:[%s7545_s19 + $0x1c8] sm:$0xff]  ;;  %v298_v37 = vld [vmem:[%s7545_s19 + $0x200] sm:$0xff]  ;;  %v292_v38 = vld [vmem:[%s7545_s19 + $0x1d0] sm:$0xff]  ;;  %v7659_v43 = vpack.c.bf16 %v297_v35, %v290_v34 }
  0x32   : > { %1570 = vmatpush.bf16.msrb.mxu0 %v6048_v52  ;;  %11206 = vst [vmem:[#allocation4_spill] sm:$0xff] %v7643_v32  ;;  %v299_v39 = vld [vmem:[%s7545_s19 + $0x208] sm:$0xff]  ;;  %v293_v41 = vld [vmem:[%s7545_s19 + $0x1d8] sm:$0xff]  ;;  %v300_v42 = vld [vmem:[%s7545_s19 + $0x210] sm:$0xff]  ;;  %v7661_v44 = vpack.c.bf16 %v298_v37, %v291_v36 }
  0x33   : > { %1659 = vmatpush.bf16.msrb.mxu1 %v6112_v55  ;;  %11205 = vst [vmem:[#allocation3_spill] sm:$0xff] %v7641_v31  ;;  %v7663_v47 = vpack.c.bf16 %v299_v39, %v292_v38  ;;  %v7665_v48 = vpack.c.bf16 %v300_v42, %v293_v41  ;;  %v6031_v50 = vld [vmem:[%s11052_s1 + $0x240] sm:$0xf]  ;;  %v6688_v51 = vld [vmem:[%s11052_s1 + $0x244] sm:$0xf0]  ;;  %v304_v56 = vld [vmem:[%s7545_s19 + $0x230] sm:$0xff] }
  0x34   : > { %11207 = vst [vmem:[#allocation5_spill] sm:$0xff] %v7645_v33  ;;  %v6032_v52 = vor.u32 %v6688_v51, %v6031_v50  ;;  %v6095_v53 = vld [vmem:[%s11052_s1 + $0x2c0] sm:$0xf]  ;;  %v6704_v54 = vld [vmem:[%s11052_s1 + $0x2c4] sm:$0xf0]  ;;  %v305_v58 = vld [vmem:[%s7545_s19 + $0x238] sm:$0xff] }
  0x35   : > { %11208 = vst [vmem:[#allocation6_spill] sm:$0xff] %v7661_v44  ;;  %v6096_v55 = vor.u32 %v6704_v54, %v6095_v53  ;;  %v311_v57 = vld [vmem:[%s7545_s19 + $0x268] sm:$0xff]  ;;  %v312_v59 = vld [vmem:[%s7545_s19 + $0x270] sm:$0xff]  ;;  %v306_v60 = vld [vmem:[%s7545_s19 + $0x240] sm:$0xff] }
  0x36   : > { %1571 = vmatpush.bf16.msrb.mxu0 %v6040_v18  ;;  %11209 = vst [vmem:[#allocation7_spill] sm:$0xff] %v7663_v47  ;;  %v313_v61 = vld [vmem:[%s7545_s19 + $0x278] sm:$0xff]  ;;  %v307_v62 = vld [vmem:[%s7545_s19 + $0x248] sm:$0xff]  ;;  %v314_v63 = vld [vmem:[%s7545_s19 + $0x280] sm:$0xff]  ;;  %v7691_v4 = vpack.c.bf16 %v311_v57, %v304_v56  ;;  %v7693_v5 = vpack.c.bf16 %v312_v59, %v305_v58 }
  0x37   : > { %1660 = vmatpush.bf16.msrb.mxu1 %v6104_v21  ;;  %11210 = vst [vmem:[#allocation8_spill] sm:$0xff] %v7665_v48  ;;  %v7695_v6 = vpack.c.bf16 %v313_v61, %v306_v60  ;;  %v7697_v7 = vpack.c.bf16 %v314_v63, %v307_v62  ;;  %v318_v8 = vld [vmem:[%s7545_s19 + $0x2a0] sm:$0xff]  ;;  %v325_v9 = vld [vmem:[%s7545_s19 + $0x2d8] sm:$0xff]  ;;  %v319_v10 = vld [vmem:[%s7545_s19 + $0x2a8] sm:$0xff] }
  0x38   : > { %11211 = vst [vmem:[#allocation9_spill] sm:$0xff] %v7693_v5  ;;  %v326_v11 = vld [vmem:[%s7545_s19 + $0x2e0] sm:$0xff]  ;;  %v320_v16 = vld [vmem:[%s7545_s19 + $0x2b0] sm:$0xff]  ;;  %v327_v17 = vld [vmem:[%s7545_s19 + $0x2e8] sm:$0xff]  ;;  %v7711_v20 = vpack.c.bf16 %v325_v9, %v318_v8 }
  0x39   : > { %11212 = vst [vmem:[#allocation10_spill] sm:$0xff] %v7695_v6  ;;  %v321_v18 = vld [vmem:[%s7545_s19 + $0x2b8] sm:$0xff]  ;;  %v328_v19 = vld [vmem:[%s7545_s19 + $0x2f0] sm:$0xff]  ;;  %v7713_v21 = vpack.c.bf16 %v326_v11, %v319_v10  ;;  %v7715_v22 = vpack.c.bf16 %v327_v17, %v320_v16  ;;  %v339_v35 = vld [vmem:[%s7545_s19 + $0x348] sm:$0xff] }
  0x3a   : > { %1572 = vmatpush.bf16.msrb.mxu0 %v6032_v52  ;;  %11213 = vst [vmem:[#allocation11_spill] sm:$0xff] %v7697_v7  ;;  %v7717_v23 = vpack.c.bf16 %v328_v19, %v321_v18  ;;  %v6023_v24 = vld [vmem:[%s11052_s1 + $0x230] sm:$0xf]  ;;  %v6686_v25 = vld [vmem:[%s11052_s1 + $0x234] sm:$0xf0]  ;;  %v334_v38 = vld [vmem:[%s7545_s19 + $0x320] sm:$0xff] }
  0x3b   : > { %1661 = vmatpush.bf16.msrb.mxu1 %v6096_v55  ;;  %11214 = vst [vmem:[#allocation12_spill] sm:$0xff] %v7713_v21  ;;  %v6024_v26 = vor.u32 %v6686_v25, %v6023_v24  ;;  %v6087_v27 = vld [vmem:[%s11052_s1 + $0x2b0] sm:$0xf]  ;;  %v6702_v28 = vld [vmem:[%s11052_s1 + $0x2b4] sm:$0xf0]  ;;  %v335_v41 = vld [vmem:[%s7545_s19 + $0x328] sm:$0xff] }
  0x3c   : > { %11215 = vst [vmem:[#allocation13_spill] sm:$0xff] %v7715_v22  ;;  %v6088_v29 = vor.u32 %v6702_v28, %v6087_v27  ;;  %v332_v34 = vld [vmem:[%s7545_s19 + $0x310] sm:$0xff]  ;;  %v333_v36 = vld [vmem:[%s7545_s19 + $0x318] sm:$0xff]  ;;  %v342_v42 = vld [vmem:[%s7545_s19 + $0x360] sm:$0xff] }
  0x3d   : > { %1226 = vmatmul.bf16.gmra.mxu0 %v7587_v0  ;;  %11216 = vst [vmem:[#allocation14_spill] sm:$0xff] %v7717_v23  ;;  %v340_v37 = vld [vmem:[%s7545_s19 + $0x350] sm:$0xff]  ;;  %v341_v39 = vld [vmem:[%s7545_s19 + $0x358] sm:$0xff]  ;;  %v7743_v50 = vpack.c.bf16 %v339_v35, %v332_v34  ;;  %v6127_v53 = vld [vmem:[%s11052_s1 + $0x300] sm:$0xf]  ;;  %v7755_v55 = vpack.c.bf16 %v342_v42, %v335_v41 }
  0x3e   : > { %1315 = vmatmul.bf16.gmra.mxu1 %v7589_v1  ;;  %1573 = vmatpush.bf16.msrb.mxu0 %v6024_v26  ;;  %v7745_v51 = vpack.c.bf16 %v340_v37, %v333_v36  ;;  %v7747_v52 = vpack.c.bf16 %v341_v39, %v334_v38  ;;  %v6712_v54 = vld [vmem:[%s11052_s1 + $0x304] sm:$0xf0]  ;;  %v6629_v57 = vld [vmem:[%s11052_s1 + $0x74] sm:$0xf]  ;;  %v5801_v58 = vld [vmem:[%s11052_s1 + $0x78] sm:$0xf0] }
  0x3f   : > { %1404 = vmatmul.bf16.gmra.mxu2 %v7591_v2  ;;  %1662 = vmatpush.bf16.msrb.mxu1 %v6088_v29  ;;  %11219 = vst [vmem:[#allocation17_spill] sm:$0xff] %v7755_v55  ;;  %v6128_v56 = vor.u32 %v6712_v54, %v6127_v53  ;;  %v5804_v59 = vor.u32 %v6629_v57, %v5801_v58  ;;  %v668_v60 = vld [vmem:[%s11053_s2] sm:$0x3]  ;;  %v353_v62 = vld [vmem:[%s7545_s19 + $0x3b8] sm:$0xff]  ;;  %v347_v63 = vld [vmem:[%s7545_s19 + $0x388] sm:$0xff] }
  0x40   : > { %1493 = vmatmul.bf16.gmra.mxu3 %v7593_v3  ;;  %11217 = vst [vmem:[#allocation15_spill] sm:$0xff] %v7745_v51  ;;  %v346_v61 = vld [vmem:[%s7545_s19 + $0x380] sm:$0xff]  ;;  %v7773_v8 = vperm.slane %v668_v60, 0  ;;  %v348_v10 = vld [vmem:[%s7545_s19 + $0x390] sm:$0xff]  ;;  %v355_v11 = vld [vmem:[%s7545_s19 + $0x3c8] sm:$0xff] }
  0x41   : > { %11218 = vst [vmem:[#allocation16_spill] sm:$0xff] %v7747_v52  ;;  %1754 = vmatpush.bf16.msrb.mxu2 %v6128_v56  ;;  %1836 = vmatpush.bf16.msrb.mxu3 %v5804_v59  ;;  %v354_v9 = vld [vmem:[%s7545_s19 + $0x3c0] sm:$0xff]  ;;  %v349_v16 = vld [vmem:[%s7545_s19 + $0x398] sm:$0xff]  ;;  %v356_v17 = vld [vmem:[%s7545_s19 + $0x3d0] sm:$0xff]  ;;  %v7780_v18 = vpack.c.bf16 %v353_v62, %v346_v61  ;;  %v7784_v25 = vpack.c.bf16 %v355_v11, %v348_v10 }
  0x42   : > { %v7782_v24 = vpack.c.bf16 %v354_v9, %v347_v63  ;;  %v7787_v28 = vpack.c.bf16 %v356_v17, %v349_v16  ;;  %v6015_v34 = vld [vmem:[%s11052_s1 + $0x220] sm:$0xf]  ;;  %v6684_v35 = vld [vmem:[%s11052_s1 + $0x224] sm:$0xf0]  ;;  %v360_v60 = vld [vmem:[%s7545_s19 + $0x3f0] sm:$0xff] }
  0x43   : > { %11221 = vst [vmem:[#allocation19_spill] sm:$0xff] %v7784_v25  ;;  %v6016_v36 = vor.u32 %v6684_v35, %v6015_v34  ;;  %v6079_v37 = vld [vmem:[%s11052_s1 + $0x2a0] sm:$0xf]  ;;  %v6700_v38 = vld [vmem:[%s11052_s1 + $0x2a4] sm:$0xf0]  ;;  %v361_v62 = vld [vmem:[%s7545_s19 + $0x3f8] sm:$0xff] }
  0x44   : > { %11220 = vst [vmem:[#allocation18_spill] sm:$0xff] %v7782_v24  ;;  %v6080_v39 = vor.u32 %v6700_v38, %v6079_v37  ;;  %v367_v61 = vld [vmem:[%s7545_s19 + $0x428] sm:$0xff]  ;;  %v368_v63 = vld [vmem:[%s7545_s19 + $0x430] sm:$0xff]  ;;  %v362_v9 = vld [vmem:[%s7545_s19 + $0x400] sm:$0xff] }
  0x45   : > { %11222 = vst [vmem:[#allocation20_spill] sm:$0xff] %v7787_v28  ;;  %1574 = vmatpush.bf16.msrb.mxu0 %v6016_v36  ;;  %v369_v10 = vld [vmem:[%s7545_s19 + $0x438] sm:$0xff]  ;;  %v363_v11 = vld [vmem:[%s7545_s19 + $0x408] sm:$0xff]  ;;  %v370_v16 = vld [vmem:[%s7545_s19 + $0x440] sm:$0xff]  ;;  %v7818_v34 = vpack.c.bf16 %v368_v63, %v361_v62 }
  0x46   : > { %1663 = vmatpush.bf16.msrb.mxu1 %v6080_v39  ;;  %v7820_v35 = vpack.c.bf16 %v369_v10, %v362_v9  ;;  %v7823_v38 = vpack.c.bf16 %v370_v16, %v363_v11  ;;  %v374_v10 = vld [vmem:[%s7545_s19 + $0x460] sm:$0xff]  ;;  %v381_v11 = vld [vmem:[%s7545_s19 + $0x498] sm:$0xff]  ;;  %v375_v16 = vld [vmem:[%s7545_s19 + $0x468] sm:$0xff] }
  0x47   : > { %11223 = vst [vmem:[#allocation21_spill] sm:$0xff] %v7818_v34 }
  0x48   : > { %11224 = vst [vmem:[#allocation22_spill] sm:$0xff] %v7820_v35 }
  0x49   : > { %11225 = vst [vmem:[#allocation23_spill] sm:$0xff] %v7823_v38 }
  0x4d   : > { %1231 = vmatmul.bf16.gmra.mxu0 %v7607_v12 }
  0x4e   : > { %1320 = vmatmul.bf16.gmra.mxu1 %v7609_v13 }
  0x4f   : > { %1409 = vmatmul.bf16.gmra.mxu2 %v7611_v14 }
  0x50   : > { %1498 = vmatmul.bf16.gmra.mxu3 %v7613_v15 }
  0x5d   : > { %1236 = vmatmul.bf16.gmra.mxu0 %v7639_v30 }
  0x5e   : > { %1325 = vmatmul.bf16.gmra.mxu1 %v7641_v31 }
  0x5f   : > { %1414 = vmatmul.bf16.gmra.mxu2 %v7643_v32 }
  0x60   : > { %1503 = vmatmul.bf16.gmra.mxu3 %v7645_v33 }
  0x6d   : > { %1241 = vmatmul.bf16.gmra.mxu0 %v7659_v43 }
  0x6e   : > { %1330 = vmatmul.bf16.gmra.mxu1 %v7661_v44  ;;  %v261_v44 = vld [vmem:[%s7545_s19 + $0xd8] sm:$0xff] }
  0x6f   : > { %1419 = vmatmul.bf16.gmra.mxu2 %v7663_v47 }
  0x70   : > { %1508 = vmatmul.bf16.gmra.mxu3 %v7665_v48 }
  0x7d   : > { %1246 = vmatmul.bf16.gmra.mxu0 %v7691_v4 }
  0x7e   : > { %1335 = vmatmul.bf16.gmra.mxu1 %v7693_v5 }
  0x7f   : > { %1424 = vmatmul.bf16.gmra.mxu2 %v7695_v6 }
  0x80   : > { %1513 = vmatmul.bf16.gmra.mxu3 %v7697_v7  ;;  %v454_v7 = vld [vmem:[%s7545_s19 + $0x6e0] sm:$0xff] }
  0x8d   : > { %1251 = vmatmul.bf16.gmra.mxu0 %v7711_v20 }
  0x8e   : > { %1340 = vmatmul.bf16.gmra.mxu1 %v7713_v21  ;;  %v6615_v21 = vld [vmem:[%s11052_s1 + $0x4] sm:$0xf] }
  0x8f   : > { %1429 = vmatmul.bf16.gmra.mxu2 %v7715_v22 }
  0x90   : > { %1518 = vmatmul.bf16.gmra.mxu3 %v7717_v23 }
  0x9d   : > { %1256 = vmatmul.bf16.gmra.mxu0 %v7743_v50 }
  0x9e   : > { %1345 = vmatmul.bf16.gmra.mxu1 %v7745_v51 }
  0x9f   : > { %1434 = vmatmul.bf16.gmra.mxu2 %v7747_v52 }
  0xa0   : > { %1523 = vmatmul.bf16.gmra.mxu3 %v7755_v55 }
  0xaa   : > { %v1222_v19 = vpop.f32.mrf.mxu0 }
  0xab   : > { %v1223_v26 = vadd.f32 %v1222_v19, %v7773_v8  ;;  %v1311_v27 = vpop.f32.mrf.mxu1  ;;  %v7816_v19 = vpack.c.bf16 %v367_v61, %v360_v60 }
  0xad   : > { %v1312_v29 = vadd.f32 %v1311_v27, %v1223_v26  ;;  %1261 = vmatmul.bf16.gmra.mxu0 %v7780_v18 }
  0xae   : > { %1350 = vmatmul.bf16.gmra.mxu1 %v7782_v24 }
  0xaf   : > { %1439 = vmatmul.bf16.gmra.mxu2 %v7784_v25 }
  0xb0   : > { %1528 = vmatmul.bf16.gmra.mxu3 %v7787_v28 }
  0xb2   : > { %v1400_v41 = vpop.f32.mrf.mxu2  ;;  %v1224_v53 = vpop.f32.mrf.mxu0 }
  0xb3   : > { %v1401_v42 = vadd.f32 %v1400_v41, %v1312_v29  ;;  %v1489_v54 = vpop.f32.mrf.mxu3  ;;  %v1225_v56 = vadd.f32 %v1224_v53, %v7773_v8  ;;  %v1313_v57 = vpop.f32.mrf.mxu1  ;;  %v5793_v53 = vld [vmem:[%s11052_s1 + $0x68] sm:$0xf0] }
  0xb5   : > { %v7806_v58 = vadd.f32 %v1489_v54, %v1401_v42  ;;  %v1314_v59 = vadd.f32 %v1313_v57, %v1225_v56  ;;  %v6627_v42 = vld [vmem:[%s11052_s1 + $0x64] sm:$0xf] }
  0xb6   : > { %v5796_v54 = vor.u32 %v6627_v42, %v5793_v53  ;;  %v7848_v42 = vpack.c.bf16 %v381_v11, %v374_v10  ;;  %v6682_v10 = vld [vmem:[%s11052_s1 + $0x214] sm:$0xf0] }
  0xb8   : > { %1837 = vmatpush.bf16.msrb.mxu3 %v5796_v54 }
  0xba   : > { %v1402_v17 = vpop.f32.mrf.mxu2  ;;  %v1227_v27 = vpop.f32.mrf.mxu0 }
  0xbb   : > { %v1403_v26 = vadd.f32 %v1402_v17, %v1314_v59  ;;  %v1491_v29 = vpop.f32.mrf.mxu3  ;;  %v1228_v36 = vadd.f32 %v1227_v27, %v7773_v8  ;;  %v1316_v37 = vpop.f32.mrf.mxu1  ;;  %v382_v17 = vld [vmem:[%s7545_s19 + $0x4a0] sm:$0xff]  ;;  %v383_v27 = vld [vmem:[%s7545_s19 + $0x4a8] sm:$0xff] }
  0xbd   : > { %v7825_v39 = vadd.f32 %v1491_v29, %v1403_v26  ;;  %v1317_v41 = vadd.f32 %v1316_v37, %v1228_v36  ;;  %1266 = vmatmul.bf16.gmra.mxu0 %v7816_v19  ;;  %v376_v26 = vld [vmem:[%s7545_s19 + $0x470] sm:$0xff]  ;;  %v377_v29 = vld [vmem:[%s7545_s19 + $0x478] sm:$0xff] }
  0xbe   : > { %1355 = vmatmul.bf16.gmra.mxu1 %v7818_v34  ;;  %v384_v36 = vld [vmem:[%s7545_s19 + $0x4b0] sm:$0xff] }
  0xbf   : > { %1444 = vmatmul.bf16.gmra.mxu2 %v7820_v35 }
  0xc0   : > { %1533 = vmatmul.bf16.gmra.mxu3 %v7823_v38 }
  0xc2   : > { %v1405_v56 = vpop.f32.mrf.mxu2  ;;  %v1229_v59 = vpop.f32.mrf.mxu0 }
  0xc3   : > { %v1406_v57 = vadd.f32 %v1405_v56, %v1317_v41  ;;  %v1494_v60 = vpop.f32.mrf.mxu3  ;;  %v1230_v61 = vadd.f32 %v1229_v59, %v7773_v8  ;;  %v1318_v62 = vpop.f32.mrf.mxu1  ;;  %v7850_v56 = vpack.c.bf16 %v382_v17, %v375_v16  ;;  %v7852_v59 = vpack.c.bf16 %v383_v27, %v376_v26  ;;  %v6071_v16 = vld [vmem:[%s11052_s1 + $0x290] sm:$0xf]  ;;  %v6698_v17 = vld [vmem:[%s11052_s1 + $0x294] sm:$0xf0] }
  0xc4   : > { %v6072_v26 = vor.u32 %v6698_v17, %v6071_v16  ;;  %v390_v16 = vld [vmem:[%s7545_s19 + $0x4e0] sm:$0xff]  ;;  %v397_v17 = vld [vmem:[%s7545_s19 + $0x518] sm:$0xff] }
  0xc5   : > { %v7838_v63 = vadd.f32 %v1494_v60, %v1406_v57  ;;  %v1319_v9 = vadd.f32 %v1318_v62, %v1230_v61  ;;  %11226 = vst [vmem:[#allocation24_spill] sm:$0xff] %v7850_v56  ;;  %v7855_v61 = vpack.c.bf16 %v384_v36, %v377_v29 }
  0xc6   : > { %11227 = vst [vmem:[#allocation25_spill] sm:$0xff] %v7852_v59  ;;  %1664 = vmatpush.bf16.msrb.mxu1 %v6072_v26 }
  0xc7   : > { %11228 = vst [vmem:[#allocation26_spill] sm:$0xff] %v7855_v61 }
  0xca   : > { %v1407_v37 = vpop.f32.mrf.mxu2  ;;  %v1232_v53 = vpop.f32.mrf.mxu0 }
  0xcb   : > { %v1408_v41 = vadd.f32 %v1407_v37, %v1319_v9  ;;  %v1496_v54 = vpop.f32.mrf.mxu3  ;;  %v1233_v57 = vadd.f32 %v1232_v53, %v7773_v8  ;;  %v1321_v60 = vpop.f32.mrf.mxu1  ;;  %v6007_v9 = vld [vmem:[%s11052_s1 + $0x210] sm:$0xf] }
  0xcc   : > { %v6008_v11 = vor.u32 %v6682_v10, %v6007_v9  ;;  %v395_v9 = vld [vmem:[%s7545_s19 + $0x508] sm:$0xff]  ;;  %v389_v10 = vld [vmem:[%s7545_s19 + $0x4d8] sm:$0xff] }
  0xcd   : > { %v7857_v62 = vadd.f32 %v1496_v54, %v1408_v41  ;;  %v1322_v38 = vadd.f32 %v1321_v60, %v1233_v57  ;;  %1271 = vmatmul.bf16.gmra.mxu0 %v7848_v42  ;;  %v388_v60 = vld [vmem:[%s7545_s19 + $0x4d0] sm:$0xff] }
  0xce   : > { %1360 = vmatmul.bf16.gmra.mxu1 %v7850_v56  ;;  %1575 = vmatpush.bf16.msrb.mxu0 %v6008_v11  ;;  %v398_v56 = vld [vmem:[%s7545_s19 + $0x520] sm:$0xff]  ;;  %v7886_v35 = vpack.c.bf16 %v395_v9, %v388_v60 }
  0xcf   : > { %1449 = vmatmul.bf16.gmra.mxu2 %v7852_v59  ;;  %v391_v59 = vld [vmem:[%s7545_s19 + $0x4e8] sm:$0xff] }
  0xd0   : > { %1538 = vmatmul.bf16.gmra.mxu3 %v7855_v61  ;;  %v396_v61 = vld [vmem:[%s7545_s19 + $0x510] sm:$0xff] }
  0xd1   : > { %v7888_v34 = vpack.c.bf16 %v396_v61, %v389_v10  ;;  %v5785_v61 = vld [vmem:[%s11052_s1 + $0x58] sm:$0xf0] }
  0xd2   : > { %v1410_v27 = vpop.f32.mrf.mxu2  ;;  %v1234_v36 = vpop.f32.mrf.mxu0 }
  0xd3   : > { %v1411_v29 = vadd.f32 %v1410_v27, %v1322_v38  ;;  %v1499_v37 = vpop.f32.mrf.mxu3  ;;  %v1235_v41 = vadd.f32 %v1234_v36, %v7773_v8  ;;  %v1323_v53 = vpop.f32.mrf.mxu1  ;;  %11229 = vst [vmem:[#allocation27_spill] sm:$0xff] %v7888_v34  ;;  %v7890_v36 = vpack.c.bf16 %v397_v17, %v390_v16 }
  0xd5   : > { %v7876_v54 = vadd.f32 %v1499_v37, %v1411_v29  ;;  %v1324_v57 = vadd.f32 %v1323_v53, %v1235_v41  ;;  %11230 = vst [vmem:[#allocation28_spill] sm:$0xff] %v7890_v36  ;;  %v7893_v41 = vpack.c.bf16 %v398_v56, %v391_v59 }
  0xd7   : > { %11231 = vst [vmem:[#allocation29_spill] sm:$0xff] %v7893_v41 }
  0xda   : > { %v1412_v11 = vpop.f32.mrf.mxu2  ;;  %v1237_v27 = vpop.f32.mrf.mxu0 }
  0xdb   : > { %v1413_v38 = vadd.f32 %v1412_v11, %v1324_v57  ;;  %v1501_v26 = vpop.f32.mrf.mxu3  ;;  %v1238_v29 = vadd.f32 %v1237_v27, %v7773_v8  ;;  %v1326_v37 = vpop.f32.mrf.mxu1  ;;  %v6625_v57 = vld [vmem:[%s11052_s1 + $0x54] sm:$0xf]  ;;  %v402_v27 = vld [vmem:[%s7545_s19 + $0x540] sm:$0xff] }
  0xdc   : > { %v5788_v56 = vor.u32 %v6625_v57, %v5785_v61  ;;  %v404_v57 = vld [vmem:[%s7545_s19 + $0x550] sm:$0xff]  ;;  %v411_v61 = vld [vmem:[%s7545_s19 + $0x588] sm:$0xff] }
  0xdd   : > { %v7895_v53 = vadd.f32 %v1501_v26, %v1413_v38  ;;  %v1327_v28 = vadd.f32 %v1326_v37, %v1238_v29  ;;  %1276 = vmatmul.bf16.gmra.mxu0 %v7886_v35  ;;  %v409_v26 = vld [vmem:[%s7545_s19 + $0x578] sm:$0xff]  ;;  %v403_v29 = vld [vmem:[%s7545_s19 + $0x548] sm:$0xff]  ;;  %v410_v37 = vld [vmem:[%s7545_s19 + $0x580] sm:$0xff] }
  0xde   : > { %1365 = vmatmul.bf16.gmra.mxu1 %v7888_v34  ;;  %1838 = vmatpush.bf16.msrb.mxu3 %v5788_v56  ;;  %v7918_v34 = vpack.c.bf16 %v409_v26, %v402_v27  ;;  %v7920_v24 = vpack.c.bf16 %v410_v37, %v403_v29  ;;  %v6680_v27 = vld [vmem:[%s11052_s1 + $0x204] sm:$0xf0] }
  0xdf   : > { %1454 = vmatmul.bf16.gmra.mxu2 %v7890_v36  ;;  %v412_v36 = vld [vmem:[%s7545_s19 + $0x590] sm:$0xff] }
  0xe0   : > { %1543 = vmatmul.bf16.gmra.mxu3 %v7893_v41  ;;  %v405_v41 = vld [vmem:[%s7545_s19 + $0x558] sm:$0xff]  ;;  %11232 = vst [vmem:[#allocation30_spill] sm:$0xff] %v7920_v24 }
  0xe2   : > { %v1415_v59 = vpop.f32.mrf.mxu2  ;;  %v1239_v9 = vpop.f32.mrf.mxu0 }
  0xe3   : > { %v1416_v60 = vadd.f32 %v1415_v59, %v1327_v28  ;;  %v1504_v10 = vpop.f32.mrf.mxu3  ;;  %v1240_v16 = vadd.f32 %v1239_v9, %v7773_v8  ;;  %v1328_v17 = vpop.f32.mrf.mxu1  ;;  %v7922_v9 = vpack.c.bf16 %v411_v61, %v404_v57 }
  0xe5   : > { %v7908_v11 = vadd.f32 %v1504_v10, %v1416_v60  ;;  %v1329_v38 = vadd.f32 %v1328_v17, %v1240_v16  ;;  %11233 = vst [vmem:[#allocation31_spill] sm:$0xff] %v7922_v9  ;;  %v7925_v16 = vpack.c.bf16 %v412_v36, %v405_v41  ;;  %v6063_v36 = vld [vmem:[%s11052_s1 + $0x280] sm:$0xf]  ;;  %v6696_v41 = vld [vmem:[%s11052_s1 + $0x284] sm:$0xf0] }
  0xe6   : > { %v6064_v26 = vor.u32 %v6696_v41, %v6063_v36  ;;  %v418_v36 = vld [vmem:[%s7545_s19 + $0x5c0] sm:$0xff]  ;;  %v425_v41 = vld [vmem:[%s7545_s19 + $0x5f8] sm:$0xff] }
  0xe7   : > { %11234 = vst [vmem:[#allocation32_spill] sm:$0xff] %v7925_v16 }
  0xe8   : > { %1665 = vmatpush.bf16.msrb.mxu1 %v6064_v26 }
  0xea   : > { %v1417_v56 = vpop.f32.mrf.mxu2  ;;  %v1242_v59 = vpop.f32.mrf.mxu0 }
  0xeb   : > { %v1418_v28 = vadd.f32 %v1417_v56, %v1329_v38  ;;  %v1506_v25 = vpop.f32.mrf.mxu3  ;;  %v1243_v60 = vadd.f32 %v1242_v59, %v7773_v8  ;;  %v1331_v10 = vpop.f32.mrf.mxu1  ;;  %v5999_v38 = vld [vmem:[%s11052_s1 + $0x200] sm:$0xf] }
  0xed   : > { %v7927_v17 = vadd.f32 %v1506_v25, %v1418_v28  ;;  %v1332_v55 = vadd.f32 %v1331_v10, %v1243_v60  ;;  %1281 = vmatmul.bf16.gmra.mxu0 %v7918_v34  ;;  %v6000_v25 = vor.u32 %v6680_v27, %v5999_v38  ;;  %v416_v10 = vld [vmem:[%s7545_s19 + $0x5b0] sm:$0xff]  ;;  %v423_v38 = vld [vmem:[%s7545_s19 + $0x5e8] sm:$0xff]  ;;  %v417_v27 = vld [vmem:[%s7545_s19 + $0x5b8] sm:$0xff] }
  0xee   : > { %1370 = vmatmul.bf16.gmra.mxu1 %v7920_v24  ;;  %v426_v24 = vld [vmem:[%s7545_s19 + $0x600] sm:$0xff]  ;;  %v7956_v52 = vpack.c.bf16 %v423_v38, %v416_v10 }
  0xef   : > { %1459 = vmatmul.bf16.gmra.mxu2 %v7922_v9  ;;  %1576 = vmatpush.bf16.msrb.mxu0 %v6000_v25  ;;  %v419_v9 = vld [vmem:[%s7545_s19 + $0x5c8] sm:$0xff] }
  0xf0   : > { %1548 = vmatmul.bf16.gmra.mxu3 %v7925_v16  ;;  %v424_v16 = vld [vmem:[%s7545_s19 + $0x5f0] sm:$0xff]  ;;  %v7969_v10 = vpack.c.bf16 %v426_v24, %v419_v9  ;;  %v5769_v24 = vld [vmem:[%s11052_s1 + $0x38] sm:$0xf0] }
  0xf1   : > { %v7958_v51 = vpack.c.bf16 %v424_v16, %v417_v27  ;;  %v6621_v27 = vld [vmem:[%s11052_s1 + $0x34] sm:$0xf] }
  0xf2   : > { %v1420_v29 = vpop.f32.mrf.mxu2  ;;  %v1244_v57 = vpop.f32.mrf.mxu0  ;;  %11237 = vst [vmem:[#allocation35_spill] sm:$0xff] %v7969_v10  ;;  %v5772_v9 = vor.u32 %v6621_v27, %v5769_v24  ;;  %v437_v27 = vld [vmem:[%s7545_s19 + $0x658] sm:$0xff]  ;;  %v431_v24 = vld [vmem:[%s7545_s19 + $0x628] sm:$0xff] }
  0xf3   : > { %v1421_v37 = vadd.f32 %v1420_v29, %v1332_v55  ;;  %v1509_v61 = vpop.f32.mrf.mxu3  ;;  %v1245_v56 = vadd.f32 %v1244_v57, %v7773_v8  ;;  %v1333_v28 = vpop.f32.mrf.mxu1  ;;  %11235 = vst [vmem:[#allocation33_spill] sm:$0xff] %v7958_v51  ;;  %v7960_v57 = vpack.c.bf16 %v425_v41, %v418_v36 }
  0xf5   : > { %v7946_v59 = vadd.f32 %v1509_v61, %v1421_v37  ;;  %v1334_v60 = vadd.f32 %v1333_v28, %v1245_v56  ;;  %11236 = vst [vmem:[#allocation34_spill] sm:$0xff] %v7960_v57  ;;  %v6623_v37 = vld [vmem:[%s11052_s1 + $0x44] sm:$0xf]  ;;  %v5777_v61 = vld [vmem:[%s11052_s1 + $0x48] sm:$0xf0] }
  0xfa   : > { %v1422_v25 = vpop.f32.mrf.mxu2  ;;  %v1247_v29 = vpop.f32.mrf.mxu0 }
  0xfb   : > { %v1423_v55 = vadd.f32 %v1422_v25, %v1334_v60  ;;  %v1511_v26 = vpop.f32.mrf.mxu3  ;;  %v1248_v56 = vadd.f32 %v1247_v29, %v7773_v8  ;;  %v1336_v28 = vpop.f32.mrf.mxu1  ;;  %v5780_v60 = vor.u32 %v6623_v37, %v5777_v61  ;;  %v6619_v29 = vld [vmem:[%s11052_s1 + $0x24] sm:$0xf] }
  0xfd   : > { %v7971_v38 = vadd.f32 %v1511_v26, %v1423_v55  ;;  %v1337_v16 = vadd.f32 %v1336_v28, %v1248_v56  ;;  %1286 = vmatmul.bf16.gmra.mxu0 %v7956_v52  ;;  %1839 = vmatpush.bf16.msrb.mxu3 %v5780_v60  ;;  %v5761_v26 = vld [vmem:[%s11052_s1 + $0x28] sm:$0xf0] }
  0xfe   : > { %1375 = vmatmul.bf16.gmra.mxu1 %v7958_v51  ;;  %v5764_v56 = vor.u32 %v6619_v29, %v5761_v26  ;;  %v433_v29 = vld [vmem:[%s7545_s19 + $0x638] sm:$0xff] }
  0xff   : > { %1464 = vmatmul.bf16.gmra.mxu2 %v7960_v57  ;;  %v439_v57 = vld [vmem:[%s7545_s19 + $0x668] sm:$0xff] }
 0x100   : > { %1553 = vmatmul.bf16.gmra.mxu3 %v7969_v10  ;;  %v438_v10 = vld [vmem:[%s7545_s19 + $0x660] sm:$0xff] }
 0x101   : > { %1840 = vmatpush.bf16.msrb.mxu3 %v5772_v9  ;;  %v6617_v9 = vld [vmem:[%s11052_s1 + $0x14] sm:$0xf]  ;;  %v8008_v23 = vpack.c.bf16 %v438_v10, %v431_v24  ;;  %v5865_v24 = vld [vmem:[%s11052_s1 + $0xf8] sm:$0xf0] }
 0x102   : > { %v1425_v36 = vpop.f32.mrf.mxu2  ;;  %v1249_v25 = vpop.f32.mrf.mxu0 }
 0x103   : > { %v1426_v41 = vadd.f32 %v1425_v36, %v1337_v16  ;;  %v1514_v55 = vpop.f32.mrf.mxu3  ;;  %v1250_v37 = vadd.f32 %v1249_v25, %v7773_v8  ;;  %v1338_v61 = vpop.f32.mrf.mxu1  ;;  %v430_v16 = vld [vmem:[%s7545_s19 + $0x620] sm:$0xff]  ;;  %v5753_v36 = vld [vmem:[%s11052_s1 + $0x18] sm:$0xf0]  ;;  %v432_v25 = vld [vmem:[%s7545_s19 + $0x630] sm:$0xff]  ;;  %11238 = vst [vmem:[#allocation36_spill] sm:$0xff] %v8008_v23 }
 0x104   : > { %v5756_v51 = vor.u32 %v6617_v9, %v5753_v36  ;;  %v8006_v26 = vpack.c.bf16 %v437_v27, %v430_v16  ;;  %v8010_v22 = vpack.c.bf16 %v439_v57, %v432_v25  ;;  %v5745_v9 = vld [vmem:[%s11052_s1 + $0x8] sm:$0xf0]  ;;  %v6645_v57 = vld [vmem:[%s11052_s1 + $0xf4] sm:$0xf] }
 0x105   : > { %v7990_v28 = vadd.f32 %v1514_v55, %v1426_v41  ;;  %v1339_v60 = vadd.f32 %v1338_v61, %v1250_v37  ;;  %1841 = vmatpush.bf16.msrb.mxu3 %v5764_v56  ;;  %v440_v41 = vld [vmem:[%s7545_s19 + $0x670] sm:$0xff] }
 0x106   : > { %11239 = vst [vmem:[#allocation37_spill] sm:$0xff] %v8010_v22  ;;  %v8019_v27 = vpack.c.bf16 %v440_v41, %v433_v29  ;;  %v6661_v25 = vld [vmem:[%s11052_s1 + $0x174] sm:$0xf]  ;;  %v5929_v29 = vld [vmem:[%s11052_s1 + $0x178] sm:$0xf0] }
 0x107   : > { %v5932_v41 = vor.u32 %v6661_v25, %v5929_v29  ;;  %v446_v25 = vld [vmem:[%s7545_s19 + $0x6a0] sm:$0xff]  ;;  %v453_v29 = vld [vmem:[%s7545_s19 + $0x6d8] sm:$0xff] }
 0x108   : > { %11240 = vst [vmem:[#allocation38_spill] sm:$0xff] %v8019_v27 }
 0x109   : > { %1842 = vmatpush.bf16.msrb.mxu3 %v5756_v51  ;;  %v5748_v51 = vor.u32 %v6615_v21, %v5745_v9  ;;  %v5868_v21 = vor.u32 %v6645_v57, %v5865_v24  ;;  %2014 = vmatpush.bf16.msra.mxu1 %v5932_v41  ;;  %v444_v57 = vld [vmem:[%s7545_s19 + $0x690] sm:$0xff]  ;;  %v451_v24 = vld [vmem:[%s7545_s19 + $0x6c8] sm:$0xff] }
 0x10a   : > { %v1427_v55 = vpop.f32.mrf.mxu2  ;;  %v1252_v61 = vpop.f32.mrf.mxu0  ;;  %v8050_v6 = vpack.c.bf16 %v451_v24, %v444_v57 }
 0x10b   : > { %v1428_v37 = vadd.f32 %v1427_v55, %v1339_v60  ;;  %v1516_v56 = vpop.f32.mrf.mxu3  ;;  %v1253_v36 = vadd.f32 %v1252_v61, %v7773_v8  ;;  %v1341_v16 = vpop.f32.mrf.mxu1  ;;  %1925 = vmatpush.bf16.msra.mxu0 %v5868_v21 }
 0x10d   : > { %v8021_v60 = vadd.f32 %v1516_v56, %v1428_v37  ;;  %v1342_v10 = vadd.f32 %v1341_v16, %v1253_v36  ;;  %1291 = vmatmul.bf16.gmra.mxu0 %v8006_v26  ;;  %1843 = vmatpush.bf16.msrb.mxu3 %v5748_v51 }
 0x10e   : > { %1380 = vmatmul.bf16.gmra.mxu1 %v8008_v23  ;;  %v447_v23 = vld [vmem:[%s7545_s19 + $0x6a8] sm:$0xff] }
 0x10f   : > { %1469 = vmatmul.bf16.gmra.mxu2 %v8010_v22  ;;  %v452_v22 = vld [vmem:[%s7545_s19 + $0x6d0] sm:$0xff] }
 0x110   : > { %1558 = vmatmul.bf16.gmra.mxu3 %v8019_v27  ;;  %v445_v27 = vld [vmem:[%s7545_s19 + $0x698] sm:$0xff] }
 0x111   : > { %v8052_v5 = vpack.c.bf16 %v452_v22, %v445_v27 }
 0x112   : > { %v1430_v55 = vpop.f32.mrf.mxu2  ;;  %v1254_v61 = vpop.f32.mrf.mxu0 }
 0x113   : > { %v1431_v37 = vadd.f32 %v1430_v55, %v1342_v10  ;;  %v1519_v56 = vpop.f32.mrf.mxu3  ;;  %v1255_v9 = vadd.f32 %v1254_v61, %v7773_v8  ;;  %v1343_v36 = vpop.f32.mrf.mxu1  ;;  %11241 = vst [vmem:[#allocation39_spill] sm:$0xff] %v8052_v5  ;;  %v8054_v61 = vpack.c.bf16 %v453_v29, %v446_v25  ;;  %v238_v29 = vld [vmem:[%s7545_s19 + $0x20] sm:$0xff] }
 0x115   : > { %v8040_v16 = vadd.f32 %v1519_v56, %v1431_v37  ;;  %v1344_v51 = vadd.f32 %v1343_v36, %v1255_v9  ;;  %11242 = vst [vmem:[#allocation40_spill] sm:$0xff] %v8054_v61  ;;  %v8057_v9 = vpack.c.bf16 %v454_v7, %v447_v23 }
 0x117   : > { %11243 = vst [vmem:[#allocation41_spill] sm:$0xff] %v8057_v9 }
 0x11a   : > { %v1432_v21 = vpop.f32.mrf.mxu2  ;;  %v1257_v55 = vpop.f32.mrf.mxu0 }
 0x11b   : > { %v1433_v10 = vadd.f32 %v1432_v21, %v1344_v51  ;;  %v1521_v41 = vpop.f32.mrf.mxu3  ;;  %v1258_v37 = vadd.f32 %v1257_v55, %v7773_v8  ;;  %v1346_v56 = vpop.f32.mrf.mxu1  ;;  %v245_v21 = vld [vmem:[%s7545_s19 + $0x58] sm:$0xff]  ;;  %v246_v55 = vld [vmem:[%s7545_s19 + $0x60] sm:$0xff] }
 0x11d   : > { %v8059_v36 = vadd.f32 %v1521_v41, %v1433_v10  ;;  %v1347_v48 = vadd.f32 %v1346_v56, %v1258_v37  ;;  %1296 = vmatmul.bf16.gmra.mxu0 %v8050_v6  ;;  %v239_v10 = vld [vmem:[%s7545_s19 + $0x28] sm:$0xff]  ;;  %v240_v41 = vld [vmem:[%s7545_s19 + $0x30] sm:$0xff] }
 0x11e   : > { %1385 = vmatmul.bf16.gmra.mxu1 %v8052_v5  ;;  %v247_v37 = vld [vmem:[%s7545_s19 + $0x68] sm:$0xff] }
 0x11f   : > { %1474 = vmatmul.bf16.gmra.mxu2 %v8054_v61  ;;  %v8074_v61 = vpack.c.bf16 %v245_v21, %v238_v29  ;;  %v8078_v47 = vpack.c.bf16 %v247_v37, %v240_v41  ;;  %v5921_v29 = vld [vmem:[%s11052_s1 + $0x168] sm:$0xf0] }
 0x120   : > { %1563 = vmatmul.bf16.gmra.mxu3 %v8057_v9 }
 0x121   : > { %11245 = vst [vmem:[#allocation43_spill] sm:$0xff] %v8078_v47 }
 0x122   : > { %v1435_v22 = vpop.f32.mrf.mxu2  ;;  %v1259_v7 = vpop.f32.mrf.mxu0 }
 0x123   : > { %v1436_v27 = vadd.f32 %v1435_v22, %v1347_v48  ;;  %v1524_v23 = vpop.f32.mrf.mxu3  ;;  %v1260_v51 = vadd.f32 %v1259_v7, %v7773_v8  ;;  %v1348_v57 = vpop.f32.mrf.mxu1  ;;  %v8076_v22 = vpack.c.bf16 %v246_v55, %v239_v10 }
 0x125   : > { %v8066_v24 = vadd.f32 %v1524_v23, %v1436_v27  ;;  %v1349_v25 = vadd.f32 %v1348_v57, %v1260_v51  ;;  %11244 = vst [vmem:[#allocation42_spill] sm:$0xff] %v8076_v22  ;;  %v6643_v57 = vld [vmem:[%s11052_s1 + $0xe4] sm:$0xf] }
 0x12a   : > { %v1437_v56 = vpop.f32.mrf.mxu2  ;;  %v1262_v5 = vpop.f32.mrf.mxu0 }
 0x12b   : > { %v1438_v9 = vadd.f32 %v1437_v56, %v1349_v25  ;;  %v1526_v48 = vpop.f32.mrf.mxu3  ;;  %v1263_v27 = vadd.f32 %v1262_v5, %v7773_v8  ;;  %v1351_v7 = vpop.f32.mrf.mxu1  ;;  %v5857_v5 = vld [vmem:[%s11052_s1 + $0xe8] sm:$0xf0]  ;;  %v6659_v25 = vld [vmem:[%s11052_s1 + $0x164] sm:$0xf] }
 0x12c   : > { %v5924_v21 = vor.u32 %v6659_v25, %v5921_v29 }
 0x12d   : > { %v8081_v23 = vadd.f32 %v1526_v48, %v1438_v9  ;;  %v1352_v51 = vadd.f32 %v1351_v7, %v1263_v27  ;;  %1577 = vmatmul.bf16.vlgmr.msrb.gmra.mxu0 %v8074_v61  ;;  %v5860_v9 = vor.u32 %v6643_v57, %v5857_v5  ;;  %v252_v7 = vld [vmem:[%s7545_s19 + $0x90] sm:$0xff]  ;;  %v259_v57 = vld [vmem:[%s7545_s19 + $0xc8] sm:$0xff]  ;;  %v253_v5 = vld [vmem:[%s7545_s19 + $0x98] sm:$0xff] }
 0x12e   : > { %1666 = vmatmul.bf16.vlgmr.msrb.gmra.mxu1 %v8076_v22  ;;  %v254_v22 = vld [vmem:[%s7545_s19 + $0xa0] sm:$0xff]  ;;  %v8109_v29 = vpack.c.bf16 %v259_v57, %v252_v7 }
 0x12f   : > { %6133 = vmatmul.msk.bf16.vlgmr.msrb.gmra.mxu2 %vm1164_vm0, %v8078_v47  ;;  %1926 = vmatpush.bf16.msra.mxu0 %v5860_v9  ;;  %v260_v47 = vld [vmem:[%s7545_s19 + $0xd0] sm:$0xff] }
 0x130   : > { %1844 = vmatmul.bf16.vlgmr.msrb.gmra.mxu3 %v7550_v40  ;;  %2015 = vmatpush.bf16.msra.mxu1 %v5924_v21  ;;  %v8111_v33 = vpack.c.bf16 %v260_v47, %v253_v5  ;;  %v8113_v21 = vpack.c.bf16 %v261_v44, %v254_v22 }
 0x132   : > { %v1440_v10 = vpop.f32.mrf.mxu2  ;;  %v1264_v41 = vpop.f32.mrf.mxu0  ;;  %11246 = vst [vmem:[#allocation44_spill] sm:$0xff] %v8111_v33 }
 0x133   : > { %v1441_v55 = vadd.f32 %v1440_v10, %v1352_v51  ;;  %v1529_v40 = vpop.f32.mrf.mxu3  ;;  %v1265_v37 = vadd.f32 %v1264_v41, %v7773_v8  ;;  %v1353_v56 = vpop.f32.mrf.mxu1  ;;  %11247 = vst [vmem:[#allocation45_spill] sm:$0xff] %v8113_v21 }
 0x135   : > { %v8101_v48 = vadd.f32 %v1529_v40, %v1441_v55  ;;  %v1354_v27 = vadd.f32 %v1353_v56, %v1265_v37 }
 0x13a   : > { %v1442_v25 = vpop.f32.mrf.mxu2  ;;  %v1267_v51 = vpop.f32.mrf.mxu0 }
 0x13b   : > { %v1443_v9 = vadd.f32 %v1442_v25, %v1354_v27  ;;  %v1531_v10 = vpop.f32.mrf.mxu3  ;;  %v1268_v55 = vadd.f32 %v1267_v51, %v7773_v8  ;;  %v1356_v41 = vpop.f32.mrf.mxu1  ;;  %v266_v25 = vld [vmem:[%s7545_s19 + $0x100] sm:$0xff]  ;;  %v267_v51 = vld [vmem:[%s7545_s19 + $0x108] sm:$0xff] }
 0x13d   : > { %v8116_v40 = vadd.f32 %v1531_v10, %v1443_v9  ;;  %v1357_v37 = vadd.f32 %v1356_v41, %v1268_v55  ;;  %1582 = vmatmul.bf16.gmra.mxu0 %v8109_v29  ;;  %v273_v9 = vld [vmem:[%s7545_s19 + $0x138] sm:$0xff]  ;;  %v274_v10 = vld [vmem:[%s7545_s19 + $0x140] sm:$0xff]  ;;  %v268_v55 = vld [vmem:[%s7545_s19 + $0x110] sm:$0xff] }
 0x13e   : > { %1671 = vmatmul.bf16.gmra.mxu1 %v8111_v33  ;;  %v275_v41 = vld [vmem:[%s7545_s19 + $0x148] sm:$0xff] }
 0x13f   : > { %6134 = vmatmul.msk.bf16.gmra.mxu2 %vm1164_vm0, %v8113_v21  ;;  %v8132_v21 = vpack.c.bf16 %v273_v9, %v266_v25  ;;  %v8136_v31 = vpack.c.bf16 %v275_v41, %v268_v55  ;;  %v5913_v25 = vld [vmem:[%s11052_s1 + $0x158] sm:$0xf0] }
 0x140   : > { %1849 = vmatmul.bf16.gmra.mxu3 %v7587_v0 }
 0x141   : > { %11248 = vst [vmem:[#allocation46_spill] sm:$0xff] %v8132_v21 }
 0x142   : > { %v1445_v44 = vpop.f32.mrf.mxu2  ;;  %v1269_v22 = vpop.f32.mrf.mxu0  ;;  %11250 = vst [vmem:[#allocation48_spill] sm:$0xff] %v8136_v31 }
 0x143   : > { %v1446_v47 = vadd.f32 %v1445_v44, %v1357_v37  ;;  %v1534_v56 = vpop.f32.mrf.mxu3  ;;  %v1270_v27 = vadd.f32 %v1269_v22, %v7773_v8  ;;  %v1358_v7 = vpop.f32.mrf.mxu1  ;;  %v8134_v44 = vpack.c.bf16 %v274_v10, %v267_v51 }
 0x145   : > { %v8124_v57 = vadd.f32 %v1534_v56, %v1446_v47  ;;  %v1359_v5 = vadd.f32 %v1358_v7, %v1270_v27  ;;  %11249 = vst [vmem:[#allocation47_spill] sm:$0xff] %v8134_v44  ;;  %v5849_v7 = vld [vmem:[%s11052_s1 + $0xd8] sm:$0xf0] }
 0x14a   : > { %v1447_v33 = vpop.f32.mrf.mxu2  ;;  %v1272_v32 = vpop.f32.mrf.mxu0 }
 0x14b   : > { %v1448_v0 = vadd.f32 %v1447_v33, %v1359_v5  ;;  %v1536_v37 = vpop.f32.mrf.mxu3  ;;  %v1273_v47 = vadd.f32 %v1272_v32, %v7773_v8  ;;  %v1361_v22 = vpop.f32.mrf.mxu1  ;;  %v6641_v33 = vld [vmem:[%s11052_s1 + $0xd4] sm:$0xf] }
 0x14c   : > { %v5852_v32 = vor.u32 %v6641_v33, %v5849_v7  ;;  %v6657_v5 = vld [vmem:[%s11052_s1 + $0x154] sm:$0xf]  ;;  %v287_v33 = vld [vmem:[%s7545_s19 + $0x1a8] sm:$0xff]  ;;  %v281_v7 = vld [vmem:[%s7545_s19 + $0x178] sm:$0xff] }
 0x14d   : > { %v8139_v56 = vadd.f32 %v1536_v37, %v1448_v0  ;;  %v1362_v27 = vadd.f32 %v1361_v22, %v1273_v47  ;;  %1587 = vmatmul.bf16.gmra.mxu0 %v8132_v21  ;;  %v5916_v9 = vor.u32 %v6657_v5, %v5913_v25  ;;  %v280_v22 = vld [vmem:[%s7545_s19 + $0x170] sm:$0xff]  ;;  %v289_v21 = vld [vmem:[%s7545_s19 + $0x1b8] sm:$0xff] }
 0x14e   : > { %1676 = vmatmul.bf16.gmra.mxu1 %v8134_v44  ;;  %1927 = vmatpush.bf16.msra.mxu0 %v5852_v32  ;;  %v282_v44 = vld [vmem:[%s7545_s19 + $0x180] sm:$0xff]  ;;  %v8167_v25 = vpack.c.bf16 %v287_v33, %v280_v22 }
 0x14f   : > { %6135 = vmatmul.msk.bf16.gmra.mxu2 %vm1164_vm0, %v8136_v31  ;;  %2016 = vmatpush.bf16.msra.mxu1 %v5916_v9  ;;  %v288_v31 = vld [vmem:[%s7545_s19 + $0x1b0] sm:$0xff]  ;;  %v8171_v9 = vpack.c.bf16 %v289_v21, %v282_v44 }
 0x150   : > { %1854 = vmatmul.bf16.gmra.mxu3 %v7607_v12  ;;  %11251 = vst [vmem:[#allocation49_spill] sm:$0xff] %v8167_v25  ;;  %v8169_v15 = vpack.c.bf16 %v288_v31, %v281_v7 }
 0x151   : > { %11253 = vst [vmem:[#allocation51_spill] sm:$0xff] %v8171_v9 }
 0x152   : > { %v1450_v51 = vpop.f32.mrf.mxu2  ;;  %v1274_v55 = vpop.f32.mrf.mxu0  ;;  %11252 = vst [vmem:[#allocation50_spill] sm:$0xff] %v8169_v15 }
 0x153   : > { %v1451_v10 = vadd.f32 %v1450_v51, %v1362_v27  ;;  %v1539_v12 = vpop.f32.mrf.mxu3  ;;  %v1275_v41 = vadd.f32 %v1274_v55, %v7773_v8  ;;  %v1363_v0 = vpop.f32.mrf.mxu1 }
 0x155   : > { %v8159_v37 = vadd.f32 %v1539_v12, %v1451_v10  ;;  %v1364_v47 = vadd.f32 %v1363_v0, %v1275_v41 }
 0x15a   : > { %v1452_v5 = vpop.f32.mrf.mxu2  ;;  %v1277_v27 = vpop.f32.mrf.mxu0 }
 0x15b   : > { %v1453_v32 = vadd.f32 %v1452_v5, %v1364_v47  ;;  %v1541_v51 = vpop.f32.mrf.mxu3  ;;  %v1278_v10 = vadd.f32 %v1277_v27, %v7773_v8  ;;  %v1366_v55 = vpop.f32.mrf.mxu1  ;;  %v294_v5 = vld [vmem:[%s7545_s19 + $0x1e0] sm:$0xff]  ;;  %v295_v27 = vld [vmem:[%s7545_s19 + $0x1e8] sm:$0xff] }
 0x15d   : > { %v8174_v12 = vadd.f32 %v1541_v51, %v1453_v32  ;;  %v1367_v41 = vadd.f32 %v1366_v55, %v1278_v10  ;;  %1592 = vmatmul.bf16.gmra.mxu0 %v8167_v25  ;;  %v301_v32 = vld [vmem:[%s7545_s19 + $0x218] sm:$0xff]  ;;  %v302_v51 = vld [vmem:[%s7545_s19 + $0x220] sm:$0xff]  ;;  %v296_v10 = vld [vmem:[%s7545_s19 + $0x1f0] sm:$0xff] }
 0x15e   : > { %1681 = vmatmul.bf16.gmra.mxu1 %v8169_v15  ;;  %v303_v55 = vld [vmem:[%s7545_s19 + $0x228] sm:$0xff] }
 0x15f   : > { %11254 = vst [vmem:[#allocation52_spill] sm:$0xff] %v8174_v12  ;;  %6136 = vmatmul.msk.bf16.gmra.mxu2 %vm1164_vm0, %v8171_v9  ;;  %v8190_v9 = vpack.c.bf16 %v301_v32, %v294_v5  ;;  %v8194_v12 = vpack.c.bf16 %v303_v55, %v296_v10  ;;  %v5905_v5 = vld [vmem:[%s11052_s1 + $0x148] sm:$0xf0] }
 0x160   : > { %1859 = vmatmul.bf16.gmra.mxu3 %v7639_v30 }
 0x161   : > { %11255 = vst [vmem:[#allocation53_spill] sm:$0xff] %v8190_v9 }
 0x162   : > { %v1455_v31 = vpop.f32.mrf.mxu2  ;;  %v1279_v44 = vpop.f32.mrf.mxu0  ;;  %11257 = vst [vmem:[#allocation55_spill] sm:$0xff] %v8194_v12 }
 0x163   : > { %v1456_v21 = vadd.f32 %v1455_v31, %v1367_v41  ;;  %v1544_v0 = vpop.f32.mrf.mxu3  ;;  %v1280_v47 = vadd.f32 %v1279_v44, %v7773_v8  ;;  %v1368_v22 = vpop.f32.mrf.mxu1  ;;  %v8192_v31 = vpack.c.bf16 %v302_v51, %v295_v27 }
 0x165   : > { %v8182_v33 = vadd.f32 %v1544_v0, %v1456_v21  ;;  %v1369_v7 = vadd.f32 %v1368_v22, %v1280_v47  ;;  %11256 = vst [vmem:[#allocation54_spill] sm:$0xff] %v8192_v31  ;;  %v5841_v22 = vld [vmem:[%s11052_s1 + $0xc8] sm:$0xf0] }
 0x16a   : > { %v1457_v15 = vpop.f32.mrf.mxu2  ;;  %v1282_v25 = vpop.f32.mrf.mxu0 }
 0x16b   : > { %v1458_v30 = vadd.f32 %v1457_v15, %v1369_v7  ;;  %v1546_v41 = vpop.f32.mrf.mxu3  ;;  %v1283_v21 = vadd.f32 %v1282_v25, %v7773_v8  ;;  %v1371_v44 = vpop.f32.mrf.mxu1  ;;  %v6639_v15 = vld [vmem:[%s11052_s1 + $0xc4] sm:$0xf] }
 0x16c   : > { %v5844_v25 = vor.u32 %v6639_v15, %v5841_v22  ;;  %v6655_v7 = vld [vmem:[%s11052_s1 + $0x144] sm:$0xf]  ;;  %v315_v15 = vld [vmem:[%s7545_s19 + $0x288] sm:$0xff]  ;;  %v309_v22 = vld [vmem:[%s7545_s19 + $0x258] sm:$0xff] }
 0x16d   : > { %v8197_v0 = vadd.f32 %v1546_v41, %v1458_v30  ;;  %v1372_v47 = vadd.f32 %v1371_v44, %v1283_v21  ;;  %1597 = vmatmul.bf16.gmra.mxu0 %v8190_v9  ;;  %v5908_v32 = vor.u32 %v6655_v7, %v5905_v5  ;;  %v308_v44 = vld [vmem:[%s7545_s19 + $0x250] sm:$0xff]  ;;  %v317_v9 = vld [vmem:[%s7545_s19 + $0x298] sm:$0xff] }
 0x16e   : > { %1686 = vmatmul.bf16.gmra.mxu1 %v8192_v31  ;;  %1928 = vmatpush.bf16.msra.mxu0 %v5844_v25  ;;  %v310_v31 = vld [vmem:[%s7545_s19 + $0x260] sm:$0xff]  ;;  %v8225_v5 = vpack.c.bf16 %v315_v15, %v308_v44 }
 0x16f   : > { %11258 = vst [vmem:[#allocation56_spill] sm:$0xff] %v8197_v0  ;;  %6137 = vmatmul.msk.bf16.gmra.mxu2 %vm1164_vm0, %v8194_v12  ;;  %2017 = vmatpush.bf16.msra.mxu1 %v5908_v32  ;;  %v316_v12 = vld [vmem:[%s7545_s19 + $0x290] sm:$0xff]  ;;  %v8229_v32 = vpack.c.bf16 %v317_v9, %v310_v31 }
 0x170   : > { %1864 = vmatmul.bf16.gmra.mxu3 %v7659_v43  ;;  %11259 = vst [vmem:[#allocation57_spill] sm:$0xff] %v8225_v5  ;;  %v8227_v0 = vpack.c.bf16 %v316_v12, %v309_v22 }
 0x171   : > { %11261 = vst [vmem:[#allocation59_spill] sm:$0xff] %v8229_v32 }
 0x172   : > { %v1460_v27 = vpop.f32.mrf.mxu2  ;;  %v1284_v10 = vpop.f32.mrf.mxu0  ;;  %11260 = vst [vmem:[#allocation58_spill] sm:$0xff] %v8227_v0 }
 0x173   : > { %v1461_v51 = vadd.f32 %v1460_v27, %v1372_v47  ;;  %v1549_v43 = vpop.f32.mrf.mxu3  ;;  %v1285_v55 = vadd.f32 %v1284_v10, %v7773_v8  ;;  %v1373_v30 = vpop.f32.mrf.mxu1 }
 0x175   : > { %v8217_v41 = vadd.f32 %v1549_v43, %v1461_v51  ;;  %v1374_v21 = vadd.f32 %v1373_v30, %v1285_v55 }
 0x17a   : > { %v1462_v7 = vpop.f32.mrf.mxu2  ;;  %v1287_v47 = vpop.f32.mrf.mxu0 }
 0x17b   : > { %v1463_v25 = vadd.f32 %v1462_v7, %v1374_v21  ;;  %v1551_v27 = vpop.f32.mrf.mxu3  ;;  %v1288_v51 = vadd.f32 %v1287_v47, %v7773_v8  ;;  %v1376_v10 = vpop.f32.mrf.mxu1  ;;  %v322_v7 = vld [vmem:[%s7545_s19 + $0x2c0] sm:$0xff]  ;;  %v323_v47 = vld [vmem:[%s7545_s19 + $0x2c8] sm:$0xff] }
 0x17d   : > { %v8232_v43 = vadd.f32 %v1551_v27, %v1463_v25  ;;  %v1377_v55 = vadd.f32 %v1376_v10, %v1288_v51  ;;  %1602 = vmatmul.bf16.gmra.mxu0 %v8225_v5  ;;  %v329_v25 = vld [vmem:[%s7545_s19 + $0x2f8] sm:$0xff]  ;;  %v330_v27 = vld [vmem:[%s7545_s19 + $0x300] sm:$0xff]  ;;  %v324_v51 = vld [vmem:[%s7545_s19 + $0x2d0] sm:$0xff] }
 0x17e   : > { %1691 = vmatmul.bf16.gmra.mxu1 %v8227_v0  ;;  %v331_v10 = vld [vmem:[%s7545_s19 + $0x308] sm:$0xff] }
 0x17f   : > { %11262 = vst [vmem:[#allocation60_spill] sm:$0xff] %v8232_v43  ;;  %6138 = vmatmul.msk.bf16.gmra.mxu2 %vm1164_vm0, %v8229_v32  ;;  %v8248_v32 = vpack.c.bf16 %v329_v25, %v322_v7  ;;  %v8252_v43 = vpack.c.bf16 %v331_v10, %v324_v51  ;;  %v5897_v7 = vld [vmem:[%s11052_s1 + $0x138] sm:$0xf0] }
 0x180   : > { %1869 = vmatmul.bf16.gmra.mxu3 %v7691_v4 }
 0x181   : > { %11263 = vst [vmem:[#allocation61_spill] sm:$0xff] %v8248_v32 }
 0x182   : > { %v1465_v9 = vpop.f32.mrf.mxu2  ;;  %v1289_v31 = vpop.f32.mrf.mxu0  ;;  %11265 = vst [vmem:[#allocation63_spill] sm:$0xff] %v8252_v43 }
 0x183   : > { %v1466_v12 = vadd.f32 %v1465_v9, %v1377_v55  ;;  %v1554_v30 = vpop.f32.mrf.mxu3  ;;  %v1290_v21 = vadd.f32 %v1289_v31, %v7773_v8  ;;  %v1378_v44 = vpop.f32.mrf.mxu1  ;;  %v8250_v9 = vpack.c.bf16 %v330_v27, %v323_v47 }
 0x185   : > { %v8240_v15 = vadd.f32 %v1554_v30, %v1466_v12  ;;  %v1379_v22 = vadd.f32 %v1378_v44, %v1290_v21  ;;  %11264 = vst [vmem:[#allocation62_spill] sm:$0xff] %v8250_v9  ;;  %v5833_v44 = vld [vmem:[%s11052_s1 + $0xb8] sm:$0xf0] }
 0x18a   : > { %v1467_v0 = vpop.f32.mrf.mxu2  ;;  %v1292_v5 = vpop.f32.mrf.mxu0 }
 0x18b   : > { %v1468_v4 = vadd.f32 %v1467_v0, %v1379_v22  ;;  %v1556_v55 = vpop.f32.mrf.mxu3  ;;  %v1293_v12 = vadd.f32 %v1292_v5, %v7773_v8  ;;  %v1381_v31 = vpop.f32.mrf.mxu1  ;;  %v6637_v0 = vld [vmem:[%s11052_s1 + $0xb4] sm:$0xf] }
 0x18c   : > { %v5836_v5 = vor.u32 %v6637_v0, %v5833_v44  ;;  %v6653_v22 = vld [vmem:[%s11052_s1 + $0x134] sm:$0xf]  ;;  %v343_v0 = vld [vmem:[%s7545_s19 + $0x368] sm:$0xff]  ;;  %v337_v44 = vld [vmem:[%s7545_s19 + $0x338] sm:$0xff] }
 0x18d   : > { %v8255_v30 = vadd.f32 %v1556_v55, %v1468_v4  ;;  %v1382_v21 = vadd.f32 %v1381_v31, %v1293_v12  ;;  %1607 = vmatmul.bf16.gmra.mxu0 %v8248_v32  ;;  %v5900_v25 = vor.u32 %v6653_v22, %v5897_v7  ;;  %v336_v31 = vld [vmem:[%s7545_s19 + $0x330] sm:$0xff]  ;;  %v345_v32 = vld [vmem:[%s7545_s19 + $0x378] sm:$0xff] }
 0x18e   : > { %1696 = vmatmul.bf16.gmra.mxu1 %v8250_v9  ;;  %1929 = vmatpush.bf16.msra.mxu0 %v5836_v5  ;;  %v338_v9 = vld [vmem:[%s7545_s19 + $0x340] sm:$0xff]  ;;  %v8283_v7 = vpack.c.bf16 %v343_v0, %v336_v31 }
 0x18f   : > { %11266 = vst [vmem:[#allocation64_spill] sm:$0xff] %v8255_v30  ;;  %6139 = vmatmul.msk.bf16.gmra.mxu2 %vm1164_vm0, %v8252_v43  ;;  %2018 = vmatpush.bf16.msra.mxu1 %v5900_v25  ;;  %v344_v43 = vld [vmem:[%s7545_s19 + $0x370] sm:$0xff]  ;;  %v8287_v25 = vpack.c.bf16 %v345_v32, %v338_v9  ;;  %v5993_v32 = vld [vmem:[%s11052_s1 + $0x1f8] sm:$0xf0] }
 0x190   : > { %1874 = vmatmul.bf16.gmra.mxu3 %v7711_v20  ;;  %11267 = vst [vmem:[#allocation65_spill] sm:$0xff] %v8283_v7  ;;  %v8285_v30 = vpack.c.bf16 %v344_v43, %v337_v44  ;;  %v6677_v43 = vld [vmem:[%s11052_s1 + $0x1f4] sm:$0xf] }
 0x191   : > { %11269 = vst [vmem:[#allocation67_spill] sm:$0xff] %v8287_v25  ;;  %v6693_v9 = vld [vmem:[%s11052_s1 + $0x274] sm:$0xf] }
 0x192   : > { %v1470_v47 = vpop.f32.mrf.mxu2  ;;  %v1294_v51 = vpop.f32.mrf.mxu0  ;;  %11268 = vst [vmem:[#allocation66_spill] sm:$0xff] %v8285_v30 }
 0x193   : > { %v1471_v27 = vadd.f32 %v1470_v47, %v1382_v21  ;;  %v1559_v20 = vpop.f32.mrf.mxu3  ;;  %v1295_v10 = vadd.f32 %v1294_v51, %v7773_v8  ;;  %v1383_v4 = vpop.f32.mrf.mxu1 }
 0x195   : > { %v8275_v55 = vadd.f32 %v1559_v20, %v1471_v27  ;;  %v1384_v12 = vadd.f32 %v1383_v4, %v1295_v10  ;;  %v5996_v4 = vor.u32 %v6677_v43, %v5993_v32  ;;  %v357_v43 = vld [vmem:[%s7545_s19 + $0x3d8] sm:$0xff]  ;;  %v351_v32 = vld [vmem:[%s7545_s19 + $0x3a8] sm:$0xff] }
 0x197   : > { %2103 = vmatpush.bf16.msra.mxu2 %v5996_v4 }
 0x19a   : > { %v1472_v22 = vpop.f32.mrf.mxu2  ;;  %v1297_v21 = vpop.f32.mrf.mxu0 }
 0x19b   : > { %v1473_v5 = vadd.f32 %v1472_v22, %v1384_v12  ;;  %v1561_v47 = vpop.f32.mrf.mxu3  ;;  %v1298_v27 = vadd.f32 %v1297_v21, %v7773_v8  ;;  %v1386_v51 = vpop.f32.mrf.mxu1  ;;  %v6057_v12 = vld [vmem:[%s11052_s1 + $0x278] sm:$0xf0] }
 0x19c   : > { %v6060_v31 = vor.u32 %v6693_v9, %v6057_v12 }
 0x19d   : > { %v8290_v20 = vadd.f32 %v1561_v47, %v1473_v5  ;;  %v1387_v10 = vadd.f32 %v1386_v51, %v1298_v27  ;;  %1612 = vmatmul.bf16.gmra.mxu0 %v8283_v7  ;;  %v350_v51 = vld [vmem:[%s7545_s19 + $0x3a0] sm:$0xff]  ;;  %v359_v7 = vld [vmem:[%s7545_s19 + $0x3e8] sm:$0xff] }
 0x19e   : > { %1701 = vmatmul.bf16.gmra.mxu1 %v8285_v30  ;;  %2192 = vmatpush.bf16.msra.mxu3 %v6060_v31  ;;  %v352_v30 = vld [vmem:[%s7545_s19 + $0x3b0] sm:$0xff]  ;;  %v8318_v12 = vpack.c.bf16 %v357_v43, %v350_v51 }
 0x19f   : > { %11270 = vst [vmem:[#allocation68_spill] sm:$0xff] %v8290_v20  ;;  %6140 = vmatmul.msk.bf16.gmra.mxu2 %vm1164_vm0, %v8287_v25  ;;  %v358_v25 = vld [vmem:[%s7545_s19 + $0x3e0] sm:$0xff]  ;;  %v8322_v31 = vpack.c.bf16 %v359_v7, %v352_v30 }
 0x1a0   : > { %1879 = vmatmul.bf16.gmra.mxu3 %v7743_v50  ;;  %11271 = vst [vmem:[#allocation69_spill] sm:$0xff] %v8318_v12  ;;  %v8320_v20 = vpack.c.bf16 %v358_v25, %v351_v32  ;;  %v6635_v25 = vld [vmem:[%s11052_s1 + $0xa4] sm:$0xf] }
 0x1a1   : > { %11273 = vst [vmem:[#allocation71_spill] sm:$0xff] %v8322_v31  ;;  %v6651_v7 = vld [vmem:[%s11052_s1 + $0x124] sm:$0xf] }
 0x1a2   : > { %v1475_v0 = vpop.f32.mrf.mxu2  ;;  %v1299_v22 = vpop.f32.mrf.mxu0  ;;  %11272 = vst [vmem:[#allocation70_spill] sm:$0xff] %v8320_v20 }
 0x1a3   : > { %v1476_v44 = vadd.f32 %v1475_v0, %v1387_v10  ;;  %v1564_v5 = vpop.f32.mrf.mxu3  ;;  %v1300_v21 = vadd.f32 %v1299_v22, %v7773_v8  ;;  %v1388_v47 = vpop.f32.mrf.mxu1 }
 0x1a5   : > { %v8310_v50 = vadd.f32 %v1564_v5, %v1476_v44  ;;  %v1389_v27 = vadd.f32 %v1388_v47, %v1300_v21  ;;  %v5889_v21 = vld [vmem:[%s11052_s1 + $0x128] sm:$0xf0] }
 0x1a6   : > { %v5892_v47 = vor.u32 %v6651_v7, %v5889_v21 }
 0x1a8   : > { %2019 = vmatpush.bf16.msra.mxu1 %v5892_v47 }
 0x1aa   : > { %v1477_v9 = vpop.f32.mrf.mxu2  ;;  %v1578_v0 = vpop.f32.mrf.mxu0 }
 0x1ab   : > { %v1478_v4 = vadd.f32 %v1477_v9, %v1389_v27  ;;  %v1566_v10 = vpop.f32.mrf.mxu3  ;;  %v1579_v8 = vadd.f32 %v1578_v0, %v7806_v58  ;;  %v1667_v44 = vpop.f32.mrf.mxu1  ;;  %v5825_v58 = vld [vmem:[%s11052_s1 + $0xa8] sm:$0xf0] }
 0x1ac   : > { %v5828_v30 = vor.u32 %v6635_v25, %v5825_v58  ;;  %v371_v0 = vld [vmem:[%s7545_s19 + $0x448] sm:$0xff]  ;;  %v366_v25 = vld [vmem:[%s7545_s19 + $0x420] sm:$0xff]  ;;  %v373_v58 = vld [vmem:[%s7545_s19 + $0x458] sm:$0xff] }
 0x1ad   : > { %v8325_v22 = vadd.f32 %v1566_v10, %v1478_v4  ;;  %v1668_v5 = vadd.f32 %v1667_v44, %v1579_v8  ;;  %1617 = vmatmul.bf16.gmra.mxu0 %v8318_v12  ;;  %v364_v10 = vld [vmem:[%s7545_s19 + $0x410] sm:$0xff]  ;;  %v365_v8 = vld [vmem:[%s7545_s19 + $0x418] sm:$0xff]  ;;  %v8359_v47 = vpack.c.bf16 %v373_v58, %v366_v25 }
 0x1ae   : > { %1706 = vmatmul.bf16.gmra.mxu1 %v8320_v20  ;;  %1930 = vmatpush.bf16.msra.mxu0 %v5828_v30  ;;  %v372_v44 = vld [vmem:[%s7545_s19 + $0x450] sm:$0xff]  ;;  %v8353_v20 = vpack.c.bf16 %v371_v0, %v364_v10  ;;  %v6049_v10 = vld [vmem:[%s11052_s1 + $0x268] sm:$0xf0] }
 0x1af   : > { %6141 = vmatmul.msk.bf16.gmra.mxu2 %vm1164_vm0, %v8322_v31  ;;  %v8357_v21 = vpack.c.bf16 %v372_v44, %v365_v8  ;;  %11275 = vst [vmem:[#allocation73_spill] sm:$0xff] %v8359_v47 }
 0x1b0   : > { %1884 = vmatmul.bf16.gmra.mxu3 %v7780_v18 }
 0x1b1   : > { %11274 = vst [vmem:[#allocation72_spill] sm:$0xff] %v8357_v21 }
 0x1b2   : > { %v1756_v27 = vpop.f32.mrf.mxu2  ;;  %v1580_v43 = vpop.f32.mrf.mxu0 }
 0x1b3   : > { %v1757_v51 = vadd.f32 %v1756_v27, %v1668_v5  ;;  %v8344_v32 = vpop.f32.mrf.mxu3  ;;  %v1581_v18 = vadd.f32 %v1580_v43, %v7825_v39  ;;  %v1669_v9 = vpop.f32.mrf.mxu1 }
 0x1b5   : > { %v1670_v4 = vadd.f32 %v1669_v9, %v1581_v18  ;;  %v2459_v43 = vmax.f32 %v1757_v51, 0.0  ;;  %v6691_v51 = vld [vmem:[%s11052_s1 + $0x264] sm:$0xf] }
 0x1b6   : > { %v6052_v0 = vor.u32 %v6691_v51, %v6049_v10 }
 0x1b8   : > { %2193 = vmatpush.bf16.msra.mxu3 %v6052_v0 }
 0x1ba   : > { %v1758_v31 = vpop.f32.mrf.mxu2  ;;  %v1583_v30 = vpop.f32.mrf.mxu0 }
 0x1bb   : > { %v1759_v7 = vadd.f32 %v1758_v31, %v1670_v4  ;;  %v8355_v5 = vpop.f32.mrf.mxu3  ;;  %v1584_v39 = vadd.f32 %v1583_v30, %v7838_v63  ;;  %v1672_v27 = vpop.f32.mrf.mxu1  ;;  %v6675_v31 = vld [vmem:[%s11052_s1 + $0x1e4] sm:$0xf]  ;;  %v5985_v63 = vld [vmem:[%s11052_s1 + $0x1e8] sm:$0xf0] }
 0x1bc   : > { %v5988_v4 = vor.u32 %v6675_v31, %v5985_v63  ;;  %v380_v31 = vld [vmem:[%s7545_s19 + $0x490] sm:$0xff]  ;;  %v387_v63 = vld [vmem:[%s7545_s19 + $0x4c8] sm:$0xff] }
 0x1bd   : > { %v2461_v18 = vmax.f32 %v1759_v7, 0.0  ;;  %v1673_v9 = vadd.f32 %v1672_v27, %v1584_v39  ;;  %1622 = vmatmul.bf16.gmra.mxu0 %v8353_v20  ;;  %v378_v39 = vld [vmem:[%s7545_s19 + $0x480] sm:$0xff]  ;;  %v385_v27 = vld [vmem:[%s7545_s19 + $0x4b8] sm:$0xff]  ;;  %v8396_v0 = vpack.c.bf16 %v387_v63, %v380_v31 }
 0x1be   : > { %1711 = vmatmul.bf16.gmra.mxu1 %v8357_v21  ;;  %2104 = vmatpush.bf16.msra.mxu2 %v5988_v4  ;;  %v8390_v21 = vpack.c.bf16 %v385_v27, %v378_v39  ;;  %v5881_v39 = vld [vmem:[%s11052_s1 + $0x118] sm:$0xf0] }
 0x1bf   : > { %v8363_v12 = vpack.c.bf16 %v2461_v18, %v2459_v43  ;;  %6142 = vmatmul.msk.bf16.gmra.mxu2 %vm1164_vm0, %v8359_v47  ;;  %v379_v43 = vld [vmem:[%s7545_s19 + $0x488] sm:$0xff]  ;;  %v386_v18 = vld [vmem:[%s7545_s19 + $0x4c0] sm:$0xff]  ;;  %11278 = vst [vmem:[#allocation76_spill] sm:$0xff] %v8396_v0 }
 0x1c0   : > { %1889 = vmatmul.bf16.gmra.mxu3 %v7816_v19  ;;  %v8394_v10 = vpack.c.bf16 %v386_v18, %v379_v43 }
 0x1c1   : > { %11276 = vst [vmem:[#allocation74_spill] sm:$0xff] %v8363_v12 }
 0x1c2   : > { %v1761_v8 = vpop.f32.mrf.mxu2  ;;  %v1585_v25 = vpop.f32.mrf.mxu0  ;;  %11277 = vst [vmem:[#allocation75_spill] sm:$0xff] %v8394_v10 }
 0x1c3   : > { %v1762_v44 = vadd.f32 %v1761_v8, %v1673_v9  ;;  %v8381_v58 = vpop.f32.mrf.mxu3  ;;  %v1586_v7 = vadd.f32 %v1585_v25, %v7857_v62  ;;  %v1674_v30 = vpop.f32.mrf.mxu1 }
 0x1c5   : > { %v1675_v19 = vadd.f32 %v1674_v30, %v1586_v7  ;;  %v2463_v25 = vmax.f32 %v1762_v44, 0.0 }
 0x1ca   : > { %v1763_v47 = vpop.f32.mrf.mxu2  ;;  %v1588_v4 = vpop.f32.mrf.mxu0 }
 0x1cb   : > { %v1764_v51 = vadd.f32 %v1763_v47, %v1675_v19  ;;  %v8392_v9 = vpop.f32.mrf.mxu3  ;;  %v1589_v62 = vadd.f32 %v1588_v4, %v7876_v54  ;;  %v1677_v8 = vpop.f32.mrf.mxu1  ;;  %v6633_v47 = vld [vmem:[%s11052_s1 + $0x94] sm:$0xf]  ;;  %v5817_v54 = vld [vmem:[%s11052_s1 + $0x98] sm:$0xf0] }
 0x1cc   : > { %v5820_v44 = vor.u32 %v6633_v47, %v5817_v54  ;;  %v6649_v19 = vld [vmem:[%s11052_s1 + $0x114] sm:$0xf]  ;;  %v394_v47 = vld [vmem:[%s7545_s19 + $0x500] sm:$0xff]  ;;  %v401_v54 = vld [vmem:[%s7545_s19 + $0x538] sm:$0xff] }
 0x1cd   : > { %v2465_v7 = vmax.f32 %v1764_v51, 0.0  ;;  %v1678_v30 = vadd.f32 %v1677_v8, %v1589_v62  ;;  %1627 = vmatmul.bf16.gmra.mxu0 %v8390_v21  ;;  %v5884_v27 = vor.u32 %v6649_v19, %v5881_v39  ;;  %v392_v62 = vld [vmem:[%s7545_s19 + $0x4f0] sm:$0xff]  ;;  %v399_v8 = vld [vmem:[%s7545_s19 + $0x528] sm:$0xff] }
 0x1ce   : > { %1716 = vmatmul.bf16.gmra.mxu1 %v8394_v10  ;;  %1931 = vmatpush.bf16.msra.mxu0 %v5820_v44  ;;  %v8427_v10 = vpack.c.bf16 %v399_v8, %v392_v62  ;;  %v6041_v62 = vld [vmem:[%s11052_s1 + $0x258] sm:$0xf0] }
 0x1cf   : > { %v8400_v12 = vpack.c.bf16 %v2465_v7, %v2463_v25  ;;  %6143 = vmatmul.msk.bf16.gmra.mxu2 %vm1164_vm0, %v8396_v0  ;;  %2020 = vmatpush.bf16.msra.mxu1 %v5884_v27  ;;  %v393_v25 = vld [vmem:[%s7545_s19 + $0x4f8] sm:$0xff]  ;;  %v400_v7 = vld [vmem:[%s7545_s19 + $0x530] sm:$0xff]  ;;  %v8433_v27 = vpack.c.bf16 %v401_v54, %v394_v47 }
 0x1d0   : > { %1894 = vmatmul.bf16.gmra.mxu3 %v7848_v42  ;;  %v8431_v39 = vpack.c.bf16 %v400_v7, %v393_v25 }
 0x1d1   : > { %11279 = vst [vmem:[#allocation77_spill] sm:$0xff] %v8400_v12 }
 0x1d2   : > { %v1766_v43 = vpop.f32.mrf.mxu2  ;;  %v1590_v31 = vpop.f32.mrf.mxu0  ;;  %11280 = vst [vmem:[#allocation78_spill] sm:$0xff] %v8431_v39 }
 0x1d3   : > { %v1767_v18 = vadd.f32 %v1766_v43, %v1678_v30  ;;  %v8418_v63 = vpop.f32.mrf.mxu3  ;;  %v1591_v42 = vadd.f32 %v1590_v31, %v7895_v53  ;;  %v1679_v51 = vpop.f32.mrf.mxu1  ;;  %11281 = vst [vmem:[#allocation79_spill] sm:$0xff] %v8433_v27 }
 0x1d5   : > { %v1680_v4 = vadd.f32 %v1679_v51, %v1591_v42  ;;  %v2467_v31 = vmax.f32 %v1767_v18, 0.0  ;;  %v6689_v18 = vld [vmem:[%s11052_s1 + $0x254] sm:$0xf] }
 0x1d6   : > { %v6044_v8 = vor.u32 %v6689_v18, %v6041_v62 }
 0x1d8   : > { %2194 = vmatpush.bf16.msra.mxu3 %v6044_v8 }
 0x1da   : > { %v1768_v0 = vpop.f32.mrf.mxu2  ;;  %v1593_v44 = vpop.f32.mrf.mxu0 }
 0x1db   : > { %v1769_v19 = vadd.f32 %v1768_v0, %v1680_v4  ;;  %v8429_v30 = vpop.f32.mrf.mxu3  ;;  %v1594_v53 = vadd.f32 %v1593_v44, %v7908_v11  ;;  %v1682_v43 = vpop.f32.mrf.mxu1  ;;  %v6673_v0 = vld [vmem:[%s11052_s1 + $0x1d4] sm:$0xf]  ;;  %v5977_v11 = vld [vmem:[%s11052_s1 + $0x1d8] sm:$0xf0] }
 0x1dc   : > { %v5980_v4 = vor.u32 %v6673_v0, %v5977_v11  ;;  %v408_v0 = vld [vmem:[%s7545_s19 + $0x570] sm:$0xff]  ;;  %v415_v11 = vld [vmem:[%s7545_s19 + $0x5a8] sm:$0xff] }
 0x1dd   : > { %v2469_v42 = vmax.f32 %v1769_v19, 0.0  ;;  %v1683_v51 = vadd.f32 %v1682_v43, %v1594_v53  ;;  %1632 = vmatmul.bf16.gmra.mxu0 %v8427_v10  ;;  %v406_v53 = vld [vmem:[%s7545_s19 + $0x560] sm:$0xff]  ;;  %v413_v43 = vld [vmem:[%s7545_s19 + $0x598] sm:$0xff]  ;;  %v8470_v8 = vpack.c.bf16 %v415_v11, %v408_v0 }
 0x1de   : > { %1721 = vmatmul.bf16.gmra.mxu1 %v8431_v39  ;;  %2105 = vmatpush.bf16.msra.mxu2 %v5980_v4  ;;  %v8464_v39 = vpack.c.bf16 %v413_v43, %v406_v53  ;;  %v5873_v53 = vld [vmem:[%s11052_s1 + $0x108] sm:$0xf0] }
 0x1df   : > { %v8437_v12 = vpack.c.bf16 %v2469_v42, %v2467_v31  ;;  %6144 = vmatmul.msk.bf16.gmra.mxu2 %vm1164_vm0, %v8433_v27  ;;  %v407_v31 = vld [vmem:[%s7545_s19 + $0x568] sm:$0xff]  ;;  %v414_v42 = vld [vmem:[%s7545_s19 + $0x5a0] sm:$0xff]  ;;  %11284 = vst [vmem:[#allocation82_spill] sm:$0xff] %v8470_v8 }
 0x1e0   : > { %1899 = vmatmul.bf16.gmra.mxu3 %v7886_v35  ;;  %v8468_v62 = vpack.c.bf16 %v414_v42, %v407_v31 }
 0x1e1   : > { %11282 = vst [vmem:[#allocation80_spill] sm:$0xff] %v8437_v12 }
 0x1e2   : > { %v1771_v25 = vpop.f32.mrf.mxu2  ;;  %v1595_v47 = vpop.f32.mrf.mxu0  ;;  %11283 = vst [vmem:[#allocation81_spill] sm:$0xff] %v8468_v62 }
 0x1e3   : > { %v1772_v7 = vadd.f32 %v1771_v25, %v1683_v51  ;;  %v8455_v54 = vpop.f32.mrf.mxu3  ;;  %v1596_v19 = vadd.f32 %v1595_v47, %v7927_v17  ;;  %v1684_v44 = vpop.f32.mrf.mxu1 }
 0x1e5   : > { %v1685_v35 = vadd.f32 %v1684_v44, %v1596_v19  ;;  %v2471_v47 = vmax.f32 %v1772_v7, 0.0 }
 0x1ea   : > { %v1773_v27 = vpop.f32.mrf.mxu2  ;;  %v1598_v4 = vpop.f32.mrf.mxu0 }
 0x1eb   : > { %v1774_v18 = vadd.f32 %v1773_v27, %v1685_v35  ;;  %v8466_v51 = vpop.f32.mrf.mxu3  ;;  %v1599_v17 = vadd.f32 %v1598_v4, %v7946_v59  ;;  %v1687_v25 = vpop.f32.mrf.mxu1  ;;  %v6631_v27 = vld [vmem:[%s11052_s1 + $0x84] sm:$0xf]  ;;  %v5809_v59 = vld [vmem:[%s11052_s1 + $0x88] sm:$0xf0] }
 0x1ec   : > { %v5812_v7 = vor.u32 %v6631_v27, %v5809_v59  ;;  %v6647_v35 = vld [vmem:[%s11052_s1 + $0x104] sm:$0xf]  ;;  %v429_v59 = vld [vmem:[%s7545_s19 + $0x618] sm:$0xff] }
 0x1ed   : > { %v2473_v19 = vmax.f32 %v1774_v18, 0.0  ;;  %v1688_v44 = vadd.f32 %v1687_v25, %v1599_v17  ;;  %1637 = vmatmul.bf16.gmra.mxu0 %v8464_v39  ;;  %v5876_v43 = vor.u32 %v6647_v35, %v5873_v53  ;;  %v420_v17 = vld [vmem:[%s7545_s19 + $0x5d0] sm:$0xff]  ;;  %v427_v25 = vld [vmem:[%s7545_s19 + $0x608] sm:$0xff]  ;;  %v422_v27 = vld [vmem:[%s7545_s19 + $0x5e0] sm:$0xff] }
 0x1ee   : > { %1726 = vmatmul.bf16.gmra.mxu1 %v8468_v62  ;;  %1932 = vmatpush.bf16.msra.mxu0 %v5812_v7  ;;  %v6671_v35 = vld [vmem:[%s11052_s1 + $0x1c4] sm:$0xf]  ;;  %v8507_v53 = vpack.c.bf16 %v427_v25, %v420_v17  ;;  %v6033_v62 = vld [vmem:[%s11052_s1 + $0x248] sm:$0xf0] }
 0x1ef   : > { %v8474_v12 = vpack.c.bf16 %v2473_v19, %v2471_v47  ;;  %6145 = vmatmul.msk.bf16.gmra.mxu2 %vm1164_vm0, %v8470_v8  ;;  %2021 = vmatpush.bf16.msra.mxu1 %v5876_v43  ;;  %v421_v47 = vld [vmem:[%s7545_s19 + $0x5d8] sm:$0xff]  ;;  %v428_v19 = vld [vmem:[%s7545_s19 + $0x610] sm:$0xff]  ;;  %v6687_v8 = vld [vmem:[%s11052_s1 + $0x244] sm:$0xf] }
 0x1f0   : > { %1904 = vmatmul.bf16.gmra.mxu3 %v7918_v34 }
 0x1f1   : > { %11285 = vst [vmem:[#allocation83_spill] sm:$0xff] %v8474_v12 }
 0x1f2   : > { %v1776_v31 = vpop.f32.mrf.mxu2  ;;  %v1600_v0 = vpop.f32.mrf.mxu0 }
 0x1f3   : > { %v1777_v42 = vadd.f32 %v1776_v31, %v1688_v44  ;;  %v8492_v11 = vpop.f32.mrf.mxu3  ;;  %v1601_v34 = vadd.f32 %v1600_v0, %v7971_v38  ;;  %v1689_v18 = vpop.f32.mrf.mxu1  ;;  %v5969_v44 = vld [vmem:[%s11052_s1 + $0x1c8] sm:$0xf0] }
 0x1f4   : > { %v5972_v38 = vor.u32 %v6671_v35, %v5969_v44 }
 0x1f5   : > { %v1690_v4 = vadd.f32 %v1689_v18, %v1601_v34  ;;  %v8511_v34 = vpack.c.bf16 %v428_v19, %v421_v47  ;;  %v8513_v18 = vpack.c.bf16 %v429_v59, %v422_v27  ;;  %v2475_v35 = vmax.f32 %v1777_v42, 0.0  ;;  %v6669_v47 = vld [vmem:[%s11052_s1 + $0x1b4] sm:$0xf]  ;;  %v5961_v19 = vld [vmem:[%s11052_s1 + $0x1b8] sm:$0xf0] }
 0x1f6   : > { %2106 = vmatpush.bf16.msra.mxu2 %v5972_v38  ;;  %v6667_v59 = vld [vmem:[%s11052_s1 + $0x1a4] sm:$0xf]  ;;  %v5953_v38 = vld [vmem:[%s11052_s1 + $0x1a8] sm:$0xf0] }
 0x1f7   : > { %11286 = vst [vmem:[#allocation84_spill] sm:$0xff] %v8511_v34 }
 0x1f8   : > { %11287 = vst [vmem:[#allocation85_spill] sm:$0xff] %v8513_v18 }
 0x1fa   : > { %v1778_v7 = vpop.f32.mrf.mxu2  ;;  %v1603_v31 = vpop.f32.mrf.mxu0 }
 0x1fb   : > { %v1779_v43 = vadd.f32 %v1778_v7, %v1690_v4  ;;  %v8509_v0 = vpop.f32.mrf.mxu3  ;;  %v1604_v17 = vadd.f32 %v1603_v31, %v7990_v28  ;;  %v1692_v25 = vpop.f32.mrf.mxu1  ;;  %v6036_v4 = vor.u32 %v6687_v8, %v6033_v62  ;;  %v5964_v28 = vor.u32 %v6669_v47, %v5961_v19  ;;  %v6685_v62 = vld [vmem:[%s11052_s1 + $0x234] sm:$0xf]  ;;  %v6025_v8 = vld [vmem:[%s11052_s1 + $0x238] sm:$0xf0] }
 0x1fc   : > { %v6028_v42 = vor.u32 %v6685_v62, %v6025_v8  ;;  %v5956_v31 = vor.u32 %v6667_v59, %v5953_v38  ;;  %v434_v8 = vld [vmem:[%s7545_s19 + $0x640] sm:$0xff]  ;;  %v435_v38 = vld [vmem:[%s7545_s19 + $0x648] sm:$0xff] }
 0x1fd   : > { %v2477_v44 = vmax.f32 %v1779_v43, 0.0  ;;  %v1693_v7 = vadd.f32 %v1692_v25, %v1604_v17  ;;  %1642 = vmatmul.bf16.gmra.mxu0 %v8507_v53  ;;  %2195 = vmatpush.bf16.msra.mxu3 %v6036_v4 }
 0x1fe   : > { %1731 = vmatmul.bf16.gmra.mxu1 %v8511_v34  ;;  %2107 = vmatpush.bf16.msra.mxu2 %v5964_v28  ;;  %v5945_v28 = vld [vmem:[%s11052_s1 + $0x198] sm:$0xf0] }
 0x1ff   : > { %v8529_v27 = vpack.c.bf16 %v2477_v44, %v2475_v35  ;;  %6146 = vmatmul.msk.bf16.gmra.mxu2 %vm1164_vm0, %v8513_v18  ;;  %v6017_v35 = vld [vmem:[%s11052_s1 + $0x228] sm:$0xf0] }
 0x200   : > { %1909 = vmatmul.bf16.gmra.mxu3 %v7956_v52  ;;  %v6683_v52 = vld [vmem:[%s11052_s1 + $0x224] sm:$0xf] }
 0x201   : > { %11288 = vst [vmem:[#allocation86_spill] sm:$0xff] %v8529_v27  ;;  %2196 = vmatpush.bf16.msra.mxu3 %v6028_v42  ;;  %v6020_v19 = vor.u32 %v6683_v52, %v6017_v35  ;;  %v441_v42 = vld [vmem:[%s7545_s19 + $0x678] sm:$0xff]  ;;  %v443_v52 = vld [vmem:[%s7545_s19 + $0x688] sm:$0xff] }
 0x202   : > { %v1781_v43 = vpop.f32.mrf.mxu2  ;;  %v1605_v25 = vpop.f32.mrf.mxu0  ;;  %2108 = vmatpush.bf16.msra.mxu2 %v5956_v31  ;;  %v442_v31 = vld [vmem:[%s7545_s19 + $0x680] sm:$0xff] }
 0x203   : > { %v1782_v17 = vadd.f32 %v1781_v43, %v1693_v7  ;;  %v8547_v4 = vpop.f32.mrf.mxu3  ;;  %v1606_v44 = vadd.f32 %v1605_v25, %v8021_v60  ;;  %v1694_v47 = vpop.f32.mrf.mxu1  ;;  %v6665_v7 = vld [vmem:[%s11052_s1 + $0x194] sm:$0xf]  ;;  %v6009_v43 = vld [vmem:[%s11052_s1 + $0x218] sm:$0xf0]  ;;  %v8584_v12 = vpack.c.bf16 %v442_v31, %v435_v38  ;;  %v6129_v31 = vld [vmem:[%s11052_s1 + $0x308] sm:$0xf0] }
 0x204   : > { %v5948_v59 = vor.u32 %v6665_v7, %v5945_v28  ;;  %v6681_v60 = vld [vmem:[%s11052_s1 + $0x214] sm:$0xf]  ;;  %v8580_v7 = vpack.c.bf16 %v441_v42, %v434_v8 }
 0x205   : > { %v1695_v62 = vadd.f32 %v1694_v47, %v1606_v44  ;;  %2197 = vmatpush.bf16.msra.mxu3 %v6020_v19  ;;  %v436_v25 = vld [vmem:[%s7545_s19 + $0x650] sm:$0xff]  ;;  %v6012_v35 = vor.u32 %v6681_v60, %v6009_v43  ;;  %v6663_v44 = vld [vmem:[%s11052_s1 + $0x184] sm:$0xf]  ;;  %v5937_v47 = vld [vmem:[%s11052_s1 + $0x188] sm:$0xf0]  ;;  %11289 = vst [vmem:[#allocation87_spill] sm:$0xff] %v8584_v12 }
 0x206   : > { %2109 = vmatpush.bf16.msra.mxu2 %v5948_v59  ;;  %v5940_v28 = vor.u32 %v6663_v44, %v5937_v47  ;;  %v8586_v59 = vpack.c.bf16 %v443_v52, %v436_v25  ;;  %v6679_v60 = vld [vmem:[%s11052_s1 + $0x204] sm:$0xf]  ;;  %v6001_v43 = vld [vmem:[%s11052_s1 + $0x208] sm:$0xf0] }
 0x208   : > { %11290 = vst [vmem:[#allocation88_spill] sm:$0xff] %v8586_v59 }
 0x209   : > { %2198 = vmatpush.bf16.msra.mxu3 %v6012_v35  ;;  %v6004_v35 = vor.u32 %v6679_v60, %v6001_v43 }
 0x20a   : > { %v1783_v19 = vpop.f32.mrf.mxu2  ;;  %v1608_v34 = vpop.f32.mrf.mxu0  ;;  %2110 = vmatpush.bf16.msra.mxu2 %v5940_v28 }
 0x20b   : > { %v1784_v18 = vadd.f32 %v1783_v19, %v1695_v62  ;;  %v8582_v27 = vpop.f32.mrf.mxu3  ;;  %v1609_v8 = vadd.f32 %v1608_v34, %v8040_v16  ;;  %v1697_v42 = vpop.f32.mrf.mxu1  ;;  %v2479_v62 = vmax.f32 %v1782_v17, 0.0  ;;  %v6709_v16 = vld [vmem:[%s11052_s1 + $0x2f4] sm:$0xf]  ;;  %v6121_v34 = vld [vmem:[%s11052_s1 + $0x2f8] sm:$0xf0] }
 0x20c   : > { %v6711_v17 = vld [vmem:[%s11052_s1 + $0x304] sm:$0xf] }
 0x20d   : > { %v2481_v44 = vmax.f32 %v1784_v18, 0.0  ;;  %v1698_v47 = vadd.f32 %v1697_v42, %v1609_v8  ;;  %1647 = vmatmul.bf16.gmra.mxu0 %v8580_v7  ;;  %2199 = vmatpush.bf16.msra.mxu3 %v6004_v35  ;;  %v6124_v18 = vor.u32 %v6709_v16, %v6121_v34  ;;  %v6132_v25 = vor.u32 %v6711_v17, %v6129_v31  ;;  %v448_v42 = vld [vmem:[%s7545_s19 + $0x6b0] sm:$0xff]  ;;  %v455_v35 = vld [vmem:[%s7545_s19 + $0x6e8] sm:$0xff]  ;;  %v450_v16 = vld [vmem:[%s7545_s19 + $0x6c0] sm:$0xff] }
 0x20e   : > { %1736 = vmatmul.bf16.gmra.mxu1 %v8584_v12  ;;  %v457_v34 = vld [vmem:[%s7545_s19 + $0x6f8] sm:$0xff]  ;;  %v8623_v12 = vpack.c.bf16 %v455_v35, %v448_v42 }
 0x20f   : > { %v8596_v38 = vpack.c.bf16 %v2481_v44, %v2479_v62  ;;  %6147 = vmatmul.msk.bf16.gmra.mxu2 %vm1164_vm0, %v8586_v59  ;;  %2281 = vmatpush.bf16.msrb.mxu0 %v6124_v18  ;;  %v449_v62 = vld [vmem:[%s7545_s19 + $0x6b8] sm:$0xff]  ;;  %v456_v44 = vld [vmem:[%s7545_s19 + $0x6f0] sm:$0xff] }
 0x210   : > { %1914 = vmatmul.bf16.gmra.mxu3 %v8006_v26  ;;  %2377 = vmatpush.bf16.msrb.mxu1 %v6132_v25  ;;  %v8627_v31 = vpack.c.bf16 %v456_v44, %v449_v62  ;;  %v8629_v25 = vpack.c.bf16 %v457_v34, %v450_v16 }
 0x211   : > { %11291 = vst [vmem:[#allocation89_spill] sm:$0xff] %v8596_v38 }
 0x212   : > { %v1786_v52 = vpop.f32.mrf.mxu2  ;;  %v1610_v28 = vpop.f32.mrf.mxu0  ;;  %11292 = vst [vmem:[#allocation90_spill] sm:$0xff] %v8627_v31 }
 0x213   : > { %v1787_v19 = vadd.f32 %v1786_v52, %v1698_v47  ;;  %v8614_v60 = vpop.f32.mrf.mxu3  ;;  %v1611_v26 = vadd.f32 %v1610_v28, %v8059_v36  ;;  %v1699_v43 = vpop.f32.mrf.mxu1  ;;  %11293 = vst [vmem:[#allocation91_spill] sm:$0xff] %v8629_v25 }
 0x215   : > { %v1700_v8 = vadd.f32 %v1699_v43, %v1611_v26  ;;  %v2483_v28 = vmax.f32 %v1787_v19, 0.0 }
 0x21a   : > { %v1788_v59 = vpop.f32.mrf.mxu2  ;;  %v1613_v18 = vpop.f32.mrf.mxu0 }
 0x21b   : > { %v1789_v17 = vadd.f32 %v1788_v59, %v1700_v8  ;;  %v8625_v47 = vpop.f32.mrf.mxu3  ;;  %v1614_v36 = vadd.f32 %v1613_v18, %v8066_v24  ;;  %v1702_v52 = vpop.f32.mrf.mxu1 }
 0x21d   : > { %v2485_v26 = vmax.f32 %v1789_v17, 0.0  ;;  %v1703_v43 = vadd.f32 %v1702_v52, %v1614_v36  ;;  %1652 = vmatmul.bf16.gmra.mxu0 %v8623_v12 }
 0x21e   : > { %1741 = vmatmul.bf16.gmra.mxu1 %v8627_v31  ;;  %v11330_v31 = vld [vmem:[#allocation18_spill] sm:$0xff] }
 0x21f   : > { %v8633_v38 = vpack.c.bf16 %v2485_v26, %v2483_v28  ;;  %6148 = vmatmul.msk.bf16.gmra.mxu2 %vm1164_vm0, %v8629_v25  ;;  %v11327_v25 = vld [vmem:[#allocation16_spill] sm:$0xff] }
 0x220   : > { %1919 = vmatmul.bf16.gmra.mxu3 %v8050_v6 }
 0x221   : > { %11294 = vst [vmem:[#allocation92_spill] sm:$0xff] %v8633_v38 }
 0x222   : > { %v1791_v59 = vpop.f32.mrf.mxu2  ;;  %v1615_v42 = vpop.f32.mrf.mxu0 }
 0x223   : > { %v1792_v8 = vadd.f32 %v1791_v59, %v1703_v43  ;;  %v8639_v35 = vpop.f32.mrf.mxu3  ;;  %v1616_v24 = vadd.f32 %v1615_v42, %v8081_v23  ;;  %v1704_v19 = vpop.f32.mrf.mxu1  ;;  %v6707_v23 = vld [vmem:[%s11052_s1 + $0x2e4] sm:$0xf] }
 0x225   : > { %v1705_v62 = vadd.f32 %v1704_v19, %v1616_v24  ;;  %v2487_v52 = vmax.f32 %v1792_v8, 0.0 }
 0x22a   : > { %v1793_v44 = vpop.f32.mrf.mxu2  ;;  %v1618_v34 = vpop.f32.mrf.mxu0 }
 0x22b   : > { %v1794_v16 = vadd.f32 %v1793_v44, %v1705_v62  ;;  %v8642_v17 = vpop.f32.mrf.mxu3  ;;  %v1619_v18 = vadd.f32 %v1618_v34, %v8101_v48  ;;  %v1707_v36 = vpop.f32.mrf.mxu1  ;;  %v6113_v48 = vld [vmem:[%s11052_s1 + $0x2e8] sm:$0xf0] }
 0x22c   : > { %v6116_v43 = vor.u32 %v6707_v23, %v6113_v48 }
 0x22d   : > { %v2489_v28 = vmax.f32 %v1794_v16, 0.0  ;;  %v1708_v6 = vadd.f32 %v1707_v36, %v1619_v18  ;;  %1933 = vmatmul.bf16.vlgmr.msra.gmra.mxu0 %v7555_v45 }
 0x22e   : > { %2022 = vmatmul.bf16.vlgmr.msra.gmra.mxu1 %v7557_v46  ;;  %2282 = vmatpush.bf16.msrb.mxu0 %v6116_v43 }
 0x22f   : > { %v8646_v26 = vpack.c.bf16 %v2489_v28, %v2487_v52  ;;  %2111 = vmatmul.bf16.vlgmr.msra.gmra.mxu2 %v7561_v49 }
 0x230   : > { %2200 = vmatmul.bf16.vlgmr.msra.gmra.mxu3 %v8074_v61 }
 0x231   : > { %11295 = vst [vmem:[#allocation93_spill] sm:$0xff] %v8646_v26 }
 0x232   : > { %v1796_v59 = vpop.f32.mrf.mxu2  ;;  %v1620_v8 = vpop.f32.mrf.mxu0 }
 0x233   : > { %v1797_v45 = vadd.f32 %v1796_v59, %v1708_v6  ;;  %v8657_v42 = vpop.f32.mrf.mxu3  ;;  %v1621_v46 = vadd.f32 %v1620_v8, %v8116_v40  ;;  %v1709_v49 = vpop.f32.mrf.mxu1 }
 0x235   : > { %v1710_v24 = vadd.f32 %v1709_v49, %v1621_v46  ;;  %v2491_v61 = vmax.f32 %v1797_v45, 0.0 }
 0x23a   : > { %v1798_v19 = vpop.f32.mrf.mxu2  ;;  %v1623_v44 = vpop.f32.mrf.mxu0 }
 0x23b   : > { %v1799_v62 = vadd.f32 %v1798_v19, %v1710_v24  ;;  %v8660_v16 = vpop.f32.mrf.mxu3  ;;  %v1624_v34 = vadd.f32 %v1623_v44, %v8124_v57  ;;  %v1712_v18 = vpop.f32.mrf.mxu1  ;;  %v11299_v44 = vld [vmem:[#allocation46_spill] sm:$0xff] }
 0x23d   : > { %v2493_v36 = vmax.f32 %v1799_v62, 0.0  ;;  %v1713_v52 = vadd.f32 %v1712_v18, %v1624_v34  ;;  %1938 = vmatmul.bf16.gmra.mxu0 %v7589_v1  ;;  %v6705_v62 = vld [vmem:[%s11052_s1 + $0x2d4] sm:$0xf] }
 0x23e   : > { %2027 = vmatmul.bf16.gmra.mxu1 %v7591_v2 }
 0x23f   : > { %v8664_v28 = vpack.c.bf16 %v2493_v36, %v2491_v61  ;;  %2116 = vmatmul.bf16.gmra.mxu2 %v7593_v3 }
 0x240   : > { %2205 = vmatmul.bf16.gmra.mxu3 %v8109_v29 }
 0x241   : > { %11296 = vst [vmem:[#allocation94_spill] sm:$0xff] %v8664_v28 }
 0x242   : > { %v1801_v40 = vpop.f32.mrf.mxu2  ;;  %v1625_v23 = vpop.f32.mrf.mxu0 }
 0x243   : > { %v1802_v6 = vadd.f32 %v1801_v40, %v1713_v52  ;;  %v8669_v48 = vpop.f32.mrf.mxu3  ;;  %v1626_v57 = vadd.f32 %v1625_v23, %v8139_v56  ;;  %v1714_v43 = vpop.f32.mrf.mxu1  ;;  %v11298_v56 = vld [vmem:[#allocation2_spill] sm:$0xff] }
 0x245   : > { %v1715_v59 = vadd.f32 %v1714_v43, %v1626_v57  ;;  %v2495_v3 = vmax.f32 %v1802_v6, 0.0 }
 0x24a   : > { %v1803_v45 = vpop.f32.mrf.mxu2  ;;  %v1628_v1 = vpop.f32.mrf.mxu0 }
 0x24b   : > { %v1804_v8 = vadd.f32 %v1803_v45, %v1715_v59  ;;  %v8672_v46 = vpop.f32.mrf.mxu3  ;;  %v1629_v2 = vadd.f32 %v1628_v1, %v8159_v37  ;;  %v1717_v49 = vpop.f32.mrf.mxu1  ;;  %v6105_v37 = vld [vmem:[%s11052_s1 + $0x2d8] sm:$0xf0] }
 0x24c   : > { %v6108_v34 = vor.u32 %v6705_v62, %v6105_v37  ;;  %v11305_v62 = vld [vmem:[#allocation49_spill] sm:$0xff] }
 0x24d   : > { %v2497_v24 = vmax.f32 %v1804_v8, 0.0  ;;  %v1718_v29 = vadd.f32 %v1717_v49, %v1629_v2  ;;  %1943 = vmatmul.bf16.gmra.mxu0 %v7609_v13 }
 0x24e   : > { %2032 = vmatmul.bf16.gmra.mxu1 %v7611_v14  ;;  %2283 = vmatpush.bf16.msrb.mxu0 %v6108_v34  ;;  %v11300_v14 = vld [vmem:[#allocation52_spill] sm:$0xff] }
 0x24f   : > { %v8676_v19 = vpack.c.bf16 %v2497_v24, %v2495_v3  ;;  %2121 = vmatmul.bf16.gmra.mxu2 %v11298_v56  ;;  %v11301_v3 = vld [vmem:[#allocation3_spill] sm:$0xff]  ;;  %v11304_v56 = vld [vmem:[#allocation5_spill] sm:$0xff] }
 0x250   : > { %2210 = vmatmul.bf16.gmra.mxu3 %v11299_v44 }
 0x251   : > { %11297 = vst [vmem:[#allocation95_spill] sm:$0xff] %v8676_v19 }
 0x252   : > { %v1806_v18 = vpop.f32.mrf.mxu2  ;;  %v1630_v61 = vpop.f32.mrf.mxu0 }
 0x253   : > { %v1807_v13 = vadd.f32 %v1806_v18, %v1718_v29  ;;  %v8687_v36 = vpop.f32.mrf.mxu3  ;;  %v1631_v52 = vadd.f32 %v1630_v61, %v11300_v14  ;;  %v1719_v40 = vpop.f32.mrf.mxu1  ;;  %v11303_v29 = vld [vmem:[#allocation4_spill] sm:$0xff] }
 0x255   : > { %v1720_v6 = vadd.f32 %v1719_v40, %v1631_v52  ;;  %v2499_v1 = vmax.f32 %v1807_v13, 0.0 }
 0x25a   : > { %v1808_v23 = vpop.f32.mrf.mxu2  ;;  %v1633_v43 = vpop.f32.mrf.mxu0 }
 0x25b   : > { %v1809_v57 = vadd.f32 %v1808_v23, %v1720_v6  ;;  %v8690_v59 = vpop.f32.mrf.mxu3  ;;  %v1634_v45 = vadd.f32 %v1633_v43, %v8182_v33  ;;  %v1722_v8 = vpop.f32.mrf.mxu1  ;;  %v11306_v33 = vld [vmem:[#allocation56_spill] sm:$0xff] }
 0x25d   : > { %v2501_v2 = vmax.f32 %v1809_v57, 0.0  ;;  %v1723_v49 = vadd.f32 %v1722_v8, %v1634_v45  ;;  %1948 = vmatmul.bf16.gmra.mxu0 %v11301_v3  ;;  %v11309_v3 = vld [vmem:[#allocation7_spill] sm:$0xff] }
 0x25e   : > { %2037 = vmatmul.bf16.gmra.mxu1 %v11303_v29  ;;  %v11310_v29 = vld [vmem:[#allocation8_spill] sm:$0xff] }
 0x25f   : > { %v8694_v24 = vpack.c.bf16 %v2501_v2, %v2499_v1  ;;  %2126 = vmatmul.bf16.gmra.mxu2 %v11304_v56  ;;  %v11307_v2 = vld [vmem:[#allocation6_spill] sm:$0xff] }
 0x260   : > { %2215 = vmatmul.bf16.gmra.mxu3 %v11305_v62  ;;  %v6703_v56 = vld [vmem:[%s11052_s1 + $0x2c4] sm:$0xf]  ;;  %v11311_v62 = vld [vmem:[#allocation53_spill] sm:$0xff] }
 0x261   : > { %11302 = vst [vmem:[#allocation2_spill] sm:$0xff] %v8694_v24 }
 0x262   : > { %v1811_v37 = vpop.f32.mrf.mxu2  ;;  %v1635_v34 = vpop.f32.mrf.mxu0 }
 0x263   : > { %v1812_v44 = vadd.f32 %v1811_v37, %v1723_v49  ;;  %v8699_v18 = vpop.f32.mrf.mxu3  ;;  %v1636_v61 = vadd.f32 %v1635_v34, %v11306_v33  ;;  %v1724_v13 = vpop.f32.mrf.mxu1 }
 0x265   : > { %v1725_v14 = vadd.f32 %v1724_v13, %v1636_v61  ;;  %v2503_v45 = vmax.f32 %v1812_v44, 0.0  ;;  %v11312_v13 = vld [vmem:[#allocation60_spill] sm:$0xff] }
 0x26a   : > { %v1813_v52 = vpop.f32.mrf.mxu2  ;;  %v1638_v6 = vpop.f32.mrf.mxu0 }
 0x26b   : > { %v1814_v40 = vadd.f32 %v1813_v52, %v1725_v14  ;;  %v8702_v23 = vpop.f32.mrf.mxu3  ;;  %v1639_v57 = vadd.f32 %v1638_v6, %v8217_v41  ;;  %v1727_v43 = vpop.f32.mrf.mxu1  ;;  %v6097_v41 = vld [vmem:[%s11052_s1 + $0x2c8] sm:$0xf0] }
 0x26c   : > { %v6100_v37 = vor.u32 %v6703_v56, %v6097_v41  ;;  %v11313_v41 = vld [vmem:[#allocation9_spill] sm:$0xff] }
 0x26d   : > { %v2505_v8 = vmax.f32 %v1814_v40, 0.0  ;;  %v1728_v1 = vadd.f32 %v1727_v43, %v1639_v57  ;;  %1953 = vmatmul.bf16.gmra.mxu0 %v11307_v2 }
 0x26e   : > { %2042 = vmatmul.bf16.gmra.mxu1 %v11309_v3  ;;  %2284 = vmatpush.bf16.msrb.mxu0 %v6100_v37  ;;  %v11316_v37 = vld [vmem:[#allocation11_spill] sm:$0xff] }
 0x26f   : > { %v8706_v49 = vpack.c.bf16 %v2505_v8, %v2503_v45  ;;  %2131 = vmatmul.bf16.gmra.mxu2 %v11310_v29 }
 0x270   : > { %2220 = vmatmul.bf16.gmra.mxu3 %v11311_v62  ;;  %v11315_v62 = vld [vmem:[#allocation10_spill] sm:$0xff] }
 0x271   : > { %11308 = vst [vmem:[#allocation46_spill] sm:$0xff] %v8706_v49 }
 0x272   : > { %v1816_v44 = vpop.f32.mrf.mxu2  ;;  %v1640_v33 = vpop.f32.mrf.mxu0 }
 0x273   : > { %v1817_v34 = vadd.f32 %v1816_v44, %v1728_v1  ;;  %v8717_v61 = vpop.f32.mrf.mxu3  ;;  %v1641_v14 = vadd.f32 %v1640_v33, %v11312_v13  ;;  %v1729_v52 = vpop.f32.mrf.mxu1  ;;  %v11317_v44 = vld [vmem:[#allocation57_spill] sm:$0xff] }
 0x275   : > { %v1730_v40 = vadd.f32 %v1729_v52, %v1641_v14  ;;  %v2507_v3 = vmax.f32 %v1817_v34, 0.0 }
 0x27a   : > { %v1818_v6 = vpop.f32.mrf.mxu2  ;;  %v1643_v43 = vpop.f32.mrf.mxu0 }
 0x27b   : > { %v1819_v57 = vadd.f32 %v1818_v6, %v1730_v40  ;;  %v8720_v45 = vpop.f32.mrf.mxu3  ;;  %v1644_v8 = vadd.f32 %v1643_v43, %v8240_v15  ;;  %v1732_v2 = vpop.f32.mrf.mxu1  ;;  %v11318_v15 = vld [vmem:[#allocation64_spill] sm:$0xff] }
 0x27d   : > { %v2509_v29 = vmax.f32 %v1819_v57, 0.0  ;;  %v1733_v56 = vadd.f32 %v1732_v2, %v1644_v8  ;;  %1958 = vmatmul.bf16.gmra.mxu0 %v11313_v41 }
 0x27e   : > { %2047 = vmatmul.bf16.gmra.mxu1 %v11315_v62 }
 0x27f   : > { %v8724_v1 = vpack.c.bf16 %v2509_v29, %v2507_v3  ;;  %2136 = vmatmul.bf16.gmra.mxu2 %v11316_v37 }
 0x280   : > { %2225 = vmatmul.bf16.gmra.mxu3 %v11317_v44  ;;  %v11319_v44 = vld [vmem:[#allocation12_spill] sm:$0xff] }
 0x281   : > { %11314 = vst [vmem:[#allocation52_spill] sm:$0xff] %v8724_v1 }
 0x282   : > { %v1821_v33 = vpop.f32.mrf.mxu2  ;;  %v1645_v14 = vpop.f32.mrf.mxu0 }
 0x283   : > { %v1822_v13 = vadd.f32 %v1821_v33, %v1733_v56  ;;  %v8729_v52 = vpop.f32.mrf.mxu3  ;;  %v1646_v40 = vadd.f32 %v1645_v14, %v11318_v15  ;;  %v1734_v34 = vpop.f32.mrf.mxu1  ;;  %v11321_v33 = vld [vmem:[#allocation13_spill] sm:$0xff]  ;;  %v11322_v14 = vld [vmem:[#allocation14_spill] sm:$0xff]  ;;  %v6701_v15 = vld [vmem:[%s11052_s1 + $0x2b4] sm:$0xf] }
 0x285   : > { %v1735_v6 = vadd.f32 %v1734_v34, %v1646_v40  ;;  %v2511_v41 = vmax.f32 %v1822_v13, 0.0  ;;  %v11323_v40 = vld [vmem:[#allocation61_spill] sm:$0xff] }
 0x28a   : > { %v1823_v57 = vpop.f32.mrf.mxu2  ;;  %v1648_v8 = vpop.f32.mrf.mxu0 }
 0x28b   : > { %v1824_v43 = vadd.f32 %v1823_v57, %v1735_v6  ;;  %v8732_v2 = vpop.f32.mrf.mxu3  ;;  %v1649_v3 = vadd.f32 %v1648_v8, %v8275_v55  ;;  %v1737_v29 = vpop.f32.mrf.mxu1  ;;  %v6089_v55 = vld [vmem:[%s11052_s1 + $0x2b8] sm:$0xf0]  ;;  %v11324_v8 = vld [vmem:[#allocation68_spill] sm:$0xff] }
 0x28c   : > { %v6092_v13 = vor.u32 %v6701_v15, %v6089_v55 }
 0x28d   : > { %v2513_v62 = vmax.f32 %v1824_v43, 0.0  ;;  %v1738_v37 = vadd.f32 %v1737_v29, %v1649_v3  ;;  %1963 = vmatmul.bf16.gmra.mxu0 %v11319_v44 }
 0x28e   : > { %2052 = vmatmul.bf16.gmra.mxu1 %v11321_v33  ;;  %2285 = vmatpush.bf16.msrb.mxu0 %v6092_v13 }
 0x28f   : > { %v8736_v56 = vpack.c.bf16 %v2513_v62, %v2511_v41  ;;  %2141 = vmatmul.bf16.gmra.mxu2 %v11322_v14 }
 0x290   : > { %2230 = vmatmul.bf16.gmra.mxu3 %v11323_v40  ;;  %v6363_v40 = vld [vmem:[%s11054_s3 + $0x188] sm:$0xf] }
 0x291   : > { %11320 = vst [vmem:[#allocation3_spill] sm:$0xff] %v8736_v56 }
 0x292   : > { %v1826_v34 = vpop.f32.mrf.mxu2  ;;  %v1650_v57 = vpop.f32.mrf.mxu0 }
 0x293   : > { %v1827_v6 = vadd.f32 %v1826_v34, %v1738_v37  ;;  %v8747_v43 = vpop.f32.mrf.mxu3  ;;  %v1651_v3 = vadd.f32 %v1650_v57, %v11324_v8  ;;  %v1739_v29 = vpop.f32.mrf.mxu1  ;;  %v6765_v37 = vld [vmem:[%s11054_s3 + $0x1a0] sm:$0xf0] }
 0x294   : > { %v6364_v13 = vor.u32 %v6765_v37, %v6363_v40 }
 0x295   : > { %v1740_v41 = vadd.f32 %v1739_v29, %v1651_v3  ;;  %v2515_v34 = vmax.f32 %v1827_v6, 0.0  ;;  %v11325_v3 = vld [vmem:[#allocation15_spill] sm:$0xff] }
 0x296   : > { %3275 = vmatpush.bf16.msrb.mxu2 %v6364_v13  ;;  %v6587_v29 = vld [vmem:[%s11054_s3 + $0x348] sm:$0xf] }
 0x29a   : > { %v1828_v62 = vpop.f32.mrf.mxu2  ;;  %v1653_v33 = vpop.f32.mrf.mxu0 }
 0x29b   : > { %v1829_v44 = vadd.f32 %v1828_v62, %v1740_v41  ;;  %v8750_v14 = vpop.f32.mrf.mxu3  ;;  %v1654_v15 = vadd.f32 %v1653_v33, %v8310_v50  ;;  %v1742_v55 = vpop.f32.mrf.mxu1  ;;  %v6821_v41 = vld [vmem:[%s11054_s3 + $0x360] sm:$0xf0]  ;;  %v11328_v50 = vld [vmem:[#allocation17_spill] sm:$0xff] }
 0x29c   : > { %v6588_v6 = vor.u32 %v6821_v41, %v6587_v29 }
 0x29d   : > { %v2517_v57 = vmax.f32 %v1829_v44, 0.0  ;;  %v1743_v8 = vadd.f32 %v1742_v55, %v1654_v15  ;;  %1968 = vmatmul.bf16.gmra.mxu0 %v11325_v3  ;;  %v11329_v44 = vld [vmem:[#allocation65_spill] sm:$0xff] }
 0x29e   : > { %2057 = vmatmul.bf16.gmra.mxu1 %v11327_v25  ;;  %3364 = vmatpush.bf16.msrb.mxu3 %v6588_v6 }
 0x29f   : > { %v8766_v62 = vpack.c.bf16 %v2517_v57, %v2515_v34  ;;  %2146 = vmatmul.bf16.gmra.mxu2 %v11328_v50  ;;  %v7283_v34 = vld [vmem:[%s11053_s2] sm:$0x3] }
 0x2a0   : > { %2235 = vmatmul.bf16.gmra.mxu3 %v11329_v44  ;;  %v8777_v57 = vperm.slane %v7283_v34, 1  ;;  %v11332_v34 = vld [vmem:[#allocation19_spill] sm:$0xff] }
 0x2a1   : > { %11326 = vst [vmem:[#allocation4_spill] sm:$0xff] %v8766_v62 }
 0x2a2   : > { %v1831_v33 = vpop.f32.mrf.mxu2  ;;  %v1655_v37 = vpop.f32.mrf.mxu0  ;;  %v1846_v3 = vadd.f32 %v8344_v32, %v8777_v57  ;;  %v6699_v32 = vld [vmem:[%s11052_s1 + $0x2a4] sm:$0xf] }
 0x2a3   : > { %v1832_v40 = vadd.f32 %v1831_v33, %v1743_v8  ;;  %v8771_v15 = vpop.f32.mrf.mxu3  ;;  %v1656_v55 = vadd.f32 %v1655_v37, %v8325_v22  ;;  %v1744_v13 = vpop.f32.mrf.mxu1 }
 0x2a5   : > { %v1745_v25 = vadd.f32 %v1744_v13, %v1656_v55  ;;  %v2519_v33 = vmax.f32 %v1832_v40, 0.0  ;;  %v11333_v55 = vld [vmem:[#allocation20_spill] sm:$0xff]  ;;  %v6081_v13 = vld [vmem:[%s11052_s1 + $0x2a8] sm:$0xf0] }
 0x2a6   : > { %v6084_v40 = vor.u32 %v6699_v32, %v6081_v13 }
 0x2a8   : > { %2286 = vmatpush.bf16.msrb.mxu0 %v6084_v40 }
 0x2aa   : > { %v1833_v29 = vpop.f32.mrf.mxu2  ;;  %v1934_v8 = vpop.f32.mrf.mxu0 }
 0x2ab   : > { %v1834_v41 = vadd.f32 %v1833_v29, %v1745_v25  ;;  %v8781_v50 = vpop.f32.mrf.mxu3  ;;  %v1935_v6 = vadd.f32 %v1934_v8, %v1846_v3  ;;  %v2023_v44 = vpop.f32.mrf.mxu1  ;;  %v11334_v25 = vld [vmem:[#allocation69_spill] sm:$0xff] }
 0x2ad   : > { %v2521_v22 = vmax.f32 %v1834_v41, 0.0  ;;  %v2024_v37 = vadd.f32 %v2023_v44, %v1935_v6  ;;  %1973 = vmatmul.bf16.gmra.mxu0 %v11330_v31  ;;  %v1848_v31 = vadd.f32 %v8355_v5, %v8777_v57  ;;  %v6335_v5 = vld [vmem:[%s11054_s3 + $0x150] sm:$0xf] }
 0x2ae   : > { %2062 = vmatmul.bf16.gmra.mxu1 %v11332_v34  ;;  %v1851_v34 = vadd.f32 %v8381_v58, %v8777_v57  ;;  %v6559_v58 = vld [vmem:[%s11054_s3 + $0x310] sm:$0xf] }
 0x2af   : > { %v8784_v62 = vpack.c.bf16 %v2521_v22, %v2519_v33  ;;  %2151 = vmatmul.bf16.gmra.mxu2 %v11333_v55 }
 0x2b0   : > { %2240 = vmatmul.bf16.gmra.mxu3 %v11334_v25 }
 0x2b1   : > { %11331 = vst [vmem:[#allocation5_spill] sm:$0xff] %v8784_v62 }
 0x2b2   : > { %v2112_v3 = vpop.f32.mrf.mxu2  ;;  %v1936_v41 = vpop.f32.mrf.mxu0 }
 0x2b3   : > { %v2113_v29 = vadd.f32 %v2112_v3, %v2024_v37  ;;  %v2201_v8 = vpop.f32.mrf.mxu3  ;;  %v1937_v6 = vadd.f32 %v1936_v41, %v1848_v31  ;;  %v2025_v44 = vpop.f32.mrf.mxu1  ;;  %v6758_v37 = vld [vmem:[%s11054_s3 + $0x168] sm:$0xf0]  ;;  %v11335_v41 = vld [vmem:[#allocation21_spill] sm:$0xff] }
 0x2b4   : > { %v6336_v31 = vor.u32 %v6758_v37, %v6335_v5 }
 0x2b5   : > { %v8797_v33 = vadd.f32 %v2201_v8, %v2113_v29  ;;  %v2026_v22 = vadd.f32 %v2025_v44, %v1937_v6  ;;  %v6814_v8 = vld [vmem:[%s11054_s3 + $0x328] sm:$0xf0]  ;;  %v11336_v6 = vld [vmem:[#allocation22_spill] sm:$0xff] }
 0x2b6   : > { %3276 = vmatpush.bf16.msrb.mxu2 %v6336_v31  ;;  %v11337_v44 = vld [vmem:[#allocation23_spill] sm:$0xff]  ;;  %v1856_v31 = vadd.f32 %v8418_v63, %v8777_v57  ;;  %v6073_v63 = vld [vmem:[%s11052_s1 + $0x298] sm:$0xf0] }
 0x2ba   : > { %v2114_v55 = vpop.f32.mrf.mxu2  ;;  %v1939_v25 = vpop.f32.mrf.mxu0 }
 0x2bb   : > { %v2115_v62 = vadd.f32 %v2114_v55, %v2026_v22  ;;  %v2203_v32 = vpop.f32.mrf.mxu3  ;;  %v1940_v13 = vadd.f32 %v1939_v25, %v1851_v34  ;;  %v2028_v40 = vpop.f32.mrf.mxu1  ;;  %v6560_v22 = vor.u32 %v6814_v8, %v6559_v58 }
 0x2bd   : > { %v8807_v3 = vadd.f32 %v2203_v32, %v2115_v62  ;;  %v2029_v29 = vadd.f32 %v2028_v40, %v1940_v13  ;;  %1978 = vmatmul.bf16.gmra.mxu0 %v11335_v41  ;;  %3365 = vmatpush.bf16.msrb.mxu3 %v6560_v22  ;;  %v1853_v62 = vadd.f32 %v8392_v9, %v8777_v57 }
 0x2be   : > { %2067 = vmatmul.bf16.gmra.mxu1 %v11336_v6 }
 0x2bf   : > { %2156 = vmatmul.bf16.gmra.mxu2 %v11337_v44 }
 0x2c0   : > { %2245 = vmatmul.bf16.gmra.mxu3 %v8353_v20 }
 0x2c2   : > { %v2117_v34 = vpop.f32.mrf.mxu2  ;;  %v1941_v25 = vpop.f32.mrf.mxu0 }
 0x2c3   : > { %v2118_v55 = vadd.f32 %v2117_v34, %v2029_v29  ;;  %v2206_v32 = vpop.f32.mrf.mxu3  ;;  %v1942_v5 = vadd.f32 %v1941_v25, %v1853_v62  ;;  %v2030_v37 = vpop.f32.mrf.mxu1  ;;  %v11338_v29 = vld [vmem:[#allocation24_spill] sm:$0xff]  ;;  %v11339_v34 = vld [vmem:[#allocation25_spill] sm:$0xff]  ;;  %v11340_v62 = vld [vmem:[#allocation26_spill] sm:$0xff] }
 0x2c5   : > { %v8821_v13 = vadd.f32 %v2206_v32, %v2118_v55  ;;  %v2031_v40 = vadd.f32 %v2030_v37, %v1942_v5  ;;  %v6697_v55 = vld [vmem:[%s11052_s1 + $0x294] sm:$0xf]  ;;  %v1858_v32 = vadd.f32 %v8429_v30, %v8777_v57  ;;  %v6307_v30 = vld [vmem:[%s11054_s3 + $0x118] sm:$0xf] }
 0x2c6   : > { %v6076_v25 = vor.u32 %v6697_v55, %v6073_v63 }
 0x2c8   : > { %2287 = vmatpush.bf16.msrb.mxu0 %v6076_v25 }
 0x2ca   : > { %v2119_v41 = vpop.f32.mrf.mxu2  ;;  %v1944_v8 = vpop.f32.mrf.mxu0 }
 0x2cb   : > { %v2120_v58 = vadd.f32 %v2119_v41, %v2031_v40  ;;  %v2208_v20 = vpop.f32.mrf.mxu3  ;;  %v1945_v6 = vadd.f32 %v1944_v8, %v1856_v31  ;;  %v2033_v44 = vpop.f32.mrf.mxu1 }
 0x2cd   : > { %v8825_v22 = vadd.f32 %v2208_v20, %v2120_v58  ;;  %v2034_v9 = vadd.f32 %v2033_v44, %v1945_v6  ;;  %1983 = vmatmul.bf16.gmra.mxu0 %v11338_v29  ;;  %v1861_v6 = vadd.f32 %v8455_v54, %v8777_v57  ;;  %v6531_v54 = vld [vmem:[%s11054_s3 + $0x2d8] sm:$0xf] }
 0x2ce   : > { %2072 = vmatmul.bf16.gmra.mxu1 %v11339_v34 }
 0x2cf   : > { %2161 = vmatmul.bf16.gmra.mxu2 %v11340_v62 }
 0x2d0   : > { %2250 = vmatmul.bf16.gmra.mxu3 %v8390_v21 }
 0x2d2   : > { %v2122_v5 = vpop.f32.mrf.mxu2  ;;  %v1946_v40 = vpop.f32.mrf.mxu0 }
 0x2d3   : > { %v2123_v37 = vadd.f32 %v2122_v5, %v2034_v9  ;;  %v2211_v31 = vpop.f32.mrf.mxu3  ;;  %v1947_v41 = vadd.f32 %v1946_v40, %v1858_v32  ;;  %v2035_v58 = vpop.f32.mrf.mxu1  ;;  %v6751_v9 = vld [vmem:[%s11054_s3 + $0x130] sm:$0xf0]  ;;  %v11341_v5 = vld [vmem:[#allocation27_spill] sm:$0xff] }
 0x2d4   : > { %v6308_v63 = vor.u32 %v6751_v9, %v6307_v30  ;;  %v11342_v40 = vld [vmem:[#allocation28_spill] sm:$0xff] }
 0x2d5   : > { %v8839_v8 = vadd.f32 %v2211_v31, %v2123_v37  ;;  %v2036_v20 = vadd.f32 %v2035_v58, %v1947_v41  ;;  %v6807_v37 = vld [vmem:[%s11054_s3 + $0x2f0] sm:$0xf0]  ;;  %v11343_v31 = vld [vmem:[#allocation29_spill] sm:$0xff]  ;;  %v1863_v58 = vadd.f32 %v8466_v51, %v8777_v57 }
 0x2d6   : > { %3277 = vmatpush.bf16.msrb.mxu2 %v6308_v63  ;;  %v6532_v41 = vor.u32 %v6807_v37, %v6531_v54 }
 0x2d8   : > { %3366 = vmatpush.bf16.msrb.mxu3 %v6532_v41  ;;  %v11346_v41 = vld [vmem:[#allocation32_spill] sm:$0xff] }
 0x2da   : > { %v2124_v44 = vpop.f32.mrf.mxu2  ;;  %v1949_v21 = vpop.f32.mrf.mxu0 }
 0x2db   : > { %v2125_v29 = vadd.f32 %v2124_v44, %v2036_v20  ;;  %v2213_v34 = vpop.f32.mrf.mxu3  ;;  %v1950_v62 = vadd.f32 %v1949_v21, %v1861_v6  ;;  %v2038_v55 = vpop.f32.mrf.mxu1 }
 0x2dd   : > { %v8849_v25 = vadd.f32 %v2213_v34, %v2125_v29  ;;  %v2039_v32 = vadd.f32 %v2038_v55, %v1950_v62  ;;  %1988 = vmatmul.bf16.gmra.mxu0 %v11341_v5  ;;  %v1866_v62 = vadd.f32 %v8492_v11, %v8777_v57  ;;  %v6065_v11 = vld [vmem:[%s11052_s1 + $0x288] sm:$0xf0] }
 0x2de   : > { %2077 = vmatmul.bf16.gmra.mxu1 %v11342_v40 }
 0x2df   : > { %2166 = vmatmul.bf16.gmra.mxu2 %v11343_v31  ;;  %v11345_v31 = vld [vmem:[#allocation31_spill] sm:$0xff] }
 0x2e0   : > { %2255 = vmatmul.bf16.gmra.mxu3 %v8427_v10 }
 0x2e2   : > { %v2127_v20 = vpop.f32.mrf.mxu2  ;;  %v1951_v44 = vpop.f32.mrf.mxu0 }
 0x2e3   : > { %v2128_v6 = vadd.f32 %v2127_v20, %v2039_v32  ;;  %v2216_v29 = vpop.f32.mrf.mxu3  ;;  %v1952_v21 = vadd.f32 %v1951_v44, %v1863_v58  ;;  %v2040_v34 = vpop.f32.mrf.mxu1  ;;  %v11344_v32 = vld [vmem:[#allocation30_spill] sm:$0xff] }
 0x2e4   : > { %v6695_v58 = vld [vmem:[%s11052_s1 + $0x284] sm:$0xf] }
 0x2e5   : > { %v8863_v30 = vadd.f32 %v2216_v29, %v2128_v6  ;;  %v2041_v9 = vadd.f32 %v2040_v34, %v1952_v21  ;;  %v6068_v20 = vor.u32 %v6695_v58, %v6065_v11  ;;  %v1868_v6 = vadd.f32 %v8509_v0, %v8777_v57  ;;  %v6251_v58 = vld [vmem:[%s11054_s3 + $0xa8] sm:$0xf]  ;;  %v6737_v11 = vld [vmem:[%s11054_s3 + $0xc0] sm:$0xf0] }
 0x2e6   : > { %v1871_v0 = vadd.f32 %v8547_v4, %v8777_v57  ;;  %v11347_v4 = vld [vmem:[#allocation33_spill] sm:$0xff] }
 0x2e7   : > { %2288 = vmatpush.bf16.msrb.mxu0 %v6068_v20 }
 0x2ea   : > { %v2129_v55 = vpop.f32.mrf.mxu2  ;;  %v1954_v5 = vpop.f32.mrf.mxu0 }
 0x2eb   : > { %v2130_v63 = vadd.f32 %v2129_v55, %v2041_v9  ;;  %v2218_v10 = vpop.f32.mrf.mxu3  ;;  %v1955_v54 = vadd.f32 %v1954_v5, %v1866_v62  ;;  %v2043_v37 = vpop.f32.mrf.mxu1  ;;  %v6279_v5 = vld [vmem:[%s11054_s3 + $0xe0] sm:$0xf] }
 0x2ed   : > { %v8867_v40 = vadd.f32 %v2218_v10, %v2130_v63  ;;  %v2044_v51 = vadd.f32 %v2043_v37, %v1955_v54  ;;  %1993 = vmatmul.bf16.gmra.mxu0 %v11344_v32 }
 0x2ee   : > { %2082 = vmatmul.bf16.gmra.mxu1 %v11345_v31 }
 0x2ef   : > { %2171 = vmatmul.bf16.gmra.mxu2 %v11346_v41 }
 0x2f0   : > { %2260 = vmatmul.bf16.gmra.mxu3 %v8464_v39  ;;  %v6744_v39 = vld [vmem:[%s11054_s3 + $0xf8] sm:$0xf0] }
 0x2f1   : > { %v6280_v54 = vor.u32 %v6744_v39, %v6279_v5  ;;  %v1873_v5 = vadd.f32 %v8582_v27, %v8777_v57 }
 0x2f2   : > { %v2132_v44 = vpop.f32.mrf.mxu2  ;;  %v1956_v21 = vpop.f32.mrf.mxu0 }
 0x2f3   : > { %v2133_v29 = vadd.f32 %v2132_v44, %v2044_v51  ;;  %v2221_v34 = vpop.f32.mrf.mxu3  ;;  %v1957_v9 = vadd.f32 %v1956_v21, %v1868_v6  ;;  %v2045_v62 = vpop.f32.mrf.mxu1  ;;  %3278 = vmatpush.bf16.msrb.mxu2 %v6280_v54  ;;  %v6503_v6 = vld [vmem:[%s11054_s3 + $0x2a0] sm:$0xf]  ;;  %v6800_v44 = vld [vmem:[%s11054_s3 + $0x2b8] sm:$0xf0] }
 0x2f4   : > { %v11348_v21 = vld [vmem:[#allocation34_spill] sm:$0xff] }
 0x2f5   : > { %v8881_v55 = vadd.f32 %v2221_v34, %v2133_v29  ;;  %v2046_v63 = vadd.f32 %v2045_v62, %v1957_v9  ;;  %v6252_v29 = vor.u32 %v6737_v11, %v6251_v58  ;;  %v11349_v34 = vld [vmem:[#allocation35_spill] sm:$0xff]  ;;  %v6504_v9 = vor.u32 %v6800_v44, %v6503_v6  ;;  %v6223_v62 = vld [vmem:[%s11054_s3 + $0x70] sm:$0xf]  ;;  %v6195_v58 = vld [vmem:[%s11054_s3 + $0x38] sm:$0xf] }
 0x2f6   : > { %v6723_v11 = vld [vmem:[%s11054_s3 + $0x50] sm:$0xf0]  ;;  %v6716_v6 = vld [vmem:[%s11054_s3 + $0x18] sm:$0xf0]  ;;  %v1876_v44 = vadd.f32 %v8614_v60, %v8777_v57  ;;  %v1878_v60 = vadd.f32 %v8625_v47, %v8777_v57 }
 0x2f7   : > { %3279 = vmatpush.bf16.msrb.mxu2 %v6252_v29  ;;  %3367 = vmatpush.bf16.msrb.mxu3 %v6504_v9  ;;  %v6196_v27 = vor.u32 %v6723_v11, %v6195_v58 }
 0x2fa   : > { %v2134_v10 = vpop.f32.mrf.mxu2  ;;  %v1959_v51 = vpop.f32.mrf.mxu0 }
 0x2fb   : > { %v8891_v37 = vadd.f32 %v2134_v10, %v2046_v63  ;;  %v8893_v32 = vpop.f32.mrf.mxu3  ;;  %v1960_v31 = vadd.f32 %v1959_v51, %v1871_v0  ;;  %v2048_v41 = vpop.f32.mrf.mxu1  ;;  %v6730_v63 = vld [vmem:[%s11054_s3 + $0x88] sm:$0xf0] }
 0x2fc   : > { %v6224_v0 = vor.u32 %v6730_v63, %v6223_v62 }
 0x2fd   : > { %v2049_v20 = vadd.f32 %v2048_v41, %v1960_v31  ;;  %1998 = vmatmul.bf16.gmra.mxu0 %v11347_v4 }
 0x2fe   : > { %2087 = vmatmul.bf16.gmra.mxu1 %v11348_v21  ;;  %3280 = vmatpush.bf16.msrb.mxu2 %v6224_v0  ;;  %v11350_v0 = vld [vmem:[#allocation36_spill] sm:$0xff] }
 0x2ff   : > { %2176 = vmatmul.bf16.gmra.mxu2 %v11349_v34 }
 0x300   : > { %2265 = vmatmul.bf16.gmra.mxu3 %v8507_v53 }
 0x302   : > { %v2137_v39 = vpop.f32.mrf.mxu2  ;;  %v1961_v54 = vpop.f32.mrf.mxu0  ;;  %3281 = vmatpush.bf16.msrb.mxu2 %v6196_v27 }
 0x303   : > { %v2138_v10 = vadd.f32 %v2137_v39, %v2049_v20  ;;  %v2226_v51 = vpop.f32.mrf.mxu3  ;;  %v1962_v31 = vadd.f32 %v1961_v54, %v1873_v5  ;;  %v2050_v53 = vpop.f32.mrf.mxu1  ;;  %v6167_v20 = vld [vmem:[%s11054_s3] sm:$0xf] }
 0x304   : > { %v6168_v21 = vor.u32 %v6716_v6, %v6167_v20  ;;  %v11352_v54 = vld [vmem:[#allocation38_spill] sm:$0xff]  ;;  %v1881_v6 = vadd.f32 %v8639_v35, %v8777_v57  ;;  %v11354_v35 = vld [vmem:[#allocation40_spill] sm:$0xff] }
 0x305   : > { %v8919_v41 = vadd.f32 %v2226_v51, %v2138_v10  ;;  %v2051_v4 = vadd.f32 %v2050_v53, %v1962_v31  ;;  %v11351_v10 = vld [vmem:[#allocation37_spill] sm:$0xff] }
 0x306   : > { %3282 = vmatpush.bf16.msrb.mxu2 %v6168_v21 }
 0x30a   : > { %v2139_v29 = vpop.f32.mrf.mxu2  ;;  %v1964_v9 = vpop.f32.mrf.mxu0 }
 0x30b   : > { %v8935_v34 = vadd.f32 %v2139_v29, %v2051_v4  ;;  %v8937_v62 = vpop.f32.mrf.mxu3  ;;  %v1965_v63 = vadd.f32 %v1964_v9, %v1876_v44  ;;  %v2053_v5 = vpop.f32.mrf.mxu1 }
 0x30d   : > { %v2054_v39 = vadd.f32 %v2053_v5, %v1965_v63  ;;  %2003 = vmatmul.bf16.gmra.mxu0 %v11350_v0  ;;  %v11353_v5 = vld [vmem:[#allocation39_spill] sm:$0xff]  ;;  %v6793_v0 = vld [vmem:[%s11054_s3 + $0x280] sm:$0xf0] }
 0x30e   : > { %2092 = vmatmul.bf16.gmra.mxu1 %v11351_v10  ;;  %v11355_v10 = vld [vmem:[#allocation41_spill] sm:$0xff] }
 0x30f   : > { %2181 = vmatmul.bf16.gmra.mxu2 %v11352_v54 }
 0x310   : > { %2270 = vmatmul.bf16.gmra.mxu3 %v8580_v7 }
 0x312   : > { %v2142_v51 = vpop.f32.mrf.mxu2  ;;  %v1966_v53 = vpop.f32.mrf.mxu0 }
 0x313   : > { %v2143_v31 = vadd.f32 %v2142_v51, %v2054_v39  ;;  %v2231_v58 = vpop.f32.mrf.mxu3  ;;  %v1967_v11 = vadd.f32 %v1966_v53, %v1878_v60  ;;  %v2055_v4 = vpop.f32.mrf.mxu1  ;;  %v6475_v39 = vld [vmem:[%s11054_s3 + $0x268] sm:$0xf]  ;;  %v1883_v60 = vadd.f32 %v8642_v17, %v8777_v57 }
 0x314   : > { %v6476_v54 = vor.u32 %v6793_v0, %v6475_v39  ;;  %v11357_v0 = vld [vmem:[#allocation43_spill] sm:$0xff] }
 0x315   : > { %v8945_v27 = vadd.f32 %v2231_v58, %v2143_v31  ;;  %v2056_v20 = vadd.f32 %v2055_v4, %v1967_v11 }
 0x316   : > { %3368 = vmatpush.bf16.msrb.mxu3 %v6476_v54 }
 0x31a   : > { %v2144_v44 = vpop.f32.mrf.mxu2  ;;  %v1969_v21 = vpop.f32.mrf.mxu0 }
 0x31b   : > { %v8949_v29 = vadd.f32 %v2144_v44, %v2056_v20  ;;  %v8951_v7 = vpop.f32.mrf.mxu3  ;;  %v1970_v9 = vadd.f32 %v1969_v21, %v1881_v6  ;;  %v2058_v47 = vpop.f32.mrf.mxu1  ;;  %v1886_v44 = vadd.f32 %v8657_v42, %v8777_v57 }
 0x31d   : > { %v2059_v63 = vadd.f32 %v2058_v47, %v1970_v9  ;;  %2008 = vmatmul.bf16.gmra.mxu0 %v11353_v5 }
 0x31e   : > { %2097 = vmatmul.bf16.gmra.mxu1 %v11354_v35  ;;  %v11358_v35 = vld [vmem:[#allocation74_spill] sm:$0xff] }
 0x31f   : > { %2186 = vmatmul.bf16.gmra.mxu2 %v11355_v10  ;;  %v1888_v10 = vadd.f32 %v8660_v16, %v8777_v57 }
 0x320   : > { %2275 = vmatmul.bf16.gmra.mxu3 %v8623_v12 }
 0x322   : > { %v2147_v51 = vpop.f32.mrf.mxu2  ;;  %v1971_v53 = vpop.f32.mrf.mxu0 }
 0x323   : > { %v2148_v31 = vadd.f32 %v2147_v51, %v2059_v63  ;;  %v2236_v58 = vpop.f32.mrf.mxu3  ;;  %v1972_v11 = vadd.f32 %v1971_v53, %v1883_v60  ;;  %v2060_v4 = vpop.f32.mrf.mxu1  ;;  %v11356_v63 = vld [vmem:[#allocation42_spill] sm:$0xff] }
 0x325   : > { %v8965_v20 = vadd.f32 %v2236_v58, %v2148_v31  ;;  %v2061_v6 = vadd.f32 %v2060_v4, %v1972_v11  ;;  %v1891_v4 = vadd.f32 %v8669_v48, %v8777_v57  ;;  %v11360_v48 = vld [vmem:[#allocation45_spill] sm:$0xff] }
 0x32a   : > { %v2149_v21 = vpop.f32.mrf.mxu2  ;;  %v1974_v12 = vpop.f32.mrf.mxu0 }
 0x32b   : > { %v8969_v9 = vadd.f32 %v2149_v21, %v2061_v6  ;;  %v8971_v47 = vpop.f32.mrf.mxu3  ;;  %v1975_v5 = vadd.f32 %v1974_v12, %v1886_v44  ;;  %v2063_v17 = vpop.f32.mrf.mxu1 }
 0x32d   : > { %v2064_v39 = vadd.f32 %v2063_v17, %v1975_v5  ;;  %2289 = vmatmul.bf16.vlgmr.msrb.gmra.mxu0 %v11356_v63  ;;  %v6447_v63 = vld [vmem:[%s11054_s3 + $0x230] sm:$0xf] }
 0x32e   : > { %6149 = vmatmul.msk.bf16.vlgmr.msrb.gmra.mxu1 %vm1164_vm0, %v11357_v0  ;;  %v6786_v0 = vld [vmem:[%s11054_s3 + $0x248] sm:$0xf0] }
 0x32f   : > { %3283 = vmatmul.bf16.vlgmr.msrb.gmra.mxu2 %v11358_v35 }
 0x332   : > { %v2152_v42 = vpop.f32.mrf.mxu2  ;;  %v1976_v60 = vpop.f32.mrf.mxu0 }
 0x333   : > { %v2153_v54 = vadd.f32 %v2152_v42, %v2064_v39  ;;  %v2241_v51 = vpop.f32.mrf.mxu3  ;;  %v1977_v31 = vadd.f32 %v1976_v60, %v1888_v10  ;;  %v2065_v53 = vpop.f32.mrf.mxu1  ;;  %v11359_v39 = vld [vmem:[#allocation44_spill] sm:$0xff]  ;;  %v11361_v10 = vld [vmem:[#allocation77_spill] sm:$0xff]  ;;  %v6448_v42 = vor.u32 %v6786_v0, %v6447_v63 }
 0x335   : > { %v8979_v58 = vadd.f32 %v2241_v51, %v2153_v54  ;;  %v2066_v11 = vadd.f32 %v2065_v53, %v1977_v31  ;;  %3369 = vmatpush.bf16.msrb.mxu3 %v6448_v42  ;;  %v1893_v54 = vadd.f32 %v8672_v46, %v8777_v57 }
 0x33a   : > { %v2154_v6 = vpop.f32.mrf.mxu2  ;;  %v1979_v21 = vpop.f32.mrf.mxu0 }
 0x33b   : > { %v8983_v44 = vadd.f32 %v2154_v6, %v2066_v11  ;;  %v8985_v12 = vpop.f32.mrf.mxu3  ;;  %v1980_v5 = vadd.f32 %v1979_v21, %v1891_v4  ;;  %v2068_v16 = vpop.f32.mrf.mxu1 }
 0x33d   : > { %v2069_v17 = vadd.f32 %v2068_v16, %v1980_v5  ;;  %2294 = vmatmul.bf16.gmra.mxu0 %v11359_v39  ;;  %v1896_v5 = vadd.f32 %v8687_v36, %v8777_v57 }
 0x33e   : > { %6150 = vmatmul.msk.bf16.gmra.mxu1 %vm1164_vm0, %v11360_v48 }
 0x33f   : > { %3288 = vmatmul.bf16.gmra.mxu2 %v11361_v10 }
 0x342   : > { %v2157_v60 = vpop.f32.mrf.mxu2  ;;  %v1981_v31 = vpop.f32.mrf.mxu0 }
 0x343   : > { %v2158_v51 = vadd.f32 %v2157_v60, %v2069_v17  ;;  %v2246_v53 = vpop.f32.mrf.mxu3  ;;  %v1982_v11 = vadd.f32 %v1981_v31, %v1893_v54  ;;  %v2070_v4 = vpop.f32.mrf.mxu1  ;;  %v11363_v17 = vld [vmem:[#allocation47_spill] sm:$0xff]  ;;  %v11364_v60 = vld [vmem:[#allocation48_spill] sm:$0xff] }
 0x344   : > { %v11365_v54 = vld [vmem:[#allocation80_spill] sm:$0xff] }
 0x345   : > { %v8999_v6 = vadd.f32 %v2246_v53, %v2158_v51  ;;  %v2071_v21 = vadd.f32 %v2070_v4, %v1982_v11  ;;  %v1898_v51 = vadd.f32 %v8690_v59, %v8777_v57 }
 0x34a   : > { %v2159_v16 = vpop.f32.mrf.mxu2  ;;  %v1984_v63 = vpop.f32.mrf.mxu0 }
 0x34b   : > { %v9003_v39 = vadd.f32 %v2159_v16, %v2071_v21  ;;  %v9005_v0 = vpop.f32.mrf.mxu3  ;;  %v1985_v48 = vadd.f32 %v1984_v63, %v1896_v5  ;;  %v2073_v46 = vpop.f32.mrf.mxu1  ;;  %v1901_v63 = vadd.f32 %v8699_v18, %v8777_v57  ;;  %v11368_v18 = vld [vmem:[#allocation51_spill] sm:$0xff] }
 0x34c   : > { %11362 = vst [vmem:[#allocation49_spill] sm:$0xff] %v9005_v0 }
 0x34d   : > { %v2074_v42 = vadd.f32 %v2073_v46, %v1985_v48  ;;  %2299 = vmatmul.bf16.gmra.mxu0 %v11363_v17 }
 0x34e   : > { %6151 = vmatmul.msk.bf16.gmra.mxu1 %vm1164_vm0, %v11364_v60 }
 0x34f   : > { %3293 = vmatmul.bf16.gmra.mxu2 %v11365_v54 }
 0x352   : > { %v2162_v36 = vpop.f32.mrf.mxu2  ;;  %v1986_v53 = vpop.f32.mrf.mxu0 }
 0x353   : > { %v2163_v31 = vadd.f32 %v2162_v36, %v2074_v42  ;;  %v2251_v11 = vpop.f32.mrf.mxu3  ;;  %v1987_v4 = vadd.f32 %v1986_v53, %v1898_v51  ;;  %v2075_v21 = vpop.f32.mrf.mxu1  ;;  %v11367_v42 = vld [vmem:[#allocation50_spill] sm:$0xff]  ;;  %v6419_v51 = vld [vmem:[%s11054_s3 + $0x1f8] sm:$0xf]  ;;  %v6779_v36 = vld [vmem:[%s11054_s3 + $0x210] sm:$0xf0] }
 0x354   : > { %v6420_v53 = vor.u32 %v6779_v36, %v6419_v51 }
 0x355   : > { %v9013_v16 = vadd.f32 %v2251_v11, %v2163_v31  ;;  %v2076_v5 = vadd.f32 %v2075_v21, %v1987_v4  ;;  %v11369_v31 = vld [vmem:[#allocation83_spill] sm:$0xff] }
 0x356   : > { %3370 = vmatpush.bf16.msrb.mxu3 %v6420_v53 }
 0x35a   : > { %v2164_v48 = vpop.f32.mrf.mxu2  ;;  %v1989_v17 = vpop.f32.mrf.mxu0 }
 0x35b   : > { %v9017_v46 = vadd.f32 %v2164_v48, %v2076_v5  ;;  %v9019_v60 = vpop.f32.mrf.mxu3  ;;  %v1990_v54 = vadd.f32 %v1989_v17, %v1901_v63  ;;  %v2078_v59 = vpop.f32.mrf.mxu1 }
 0x35c   : > { %11366 = vst [vmem:[#allocation56_spill] sm:$0xff] %v9019_v60 }
 0x35d   : > { %v2079_v0 = vadd.f32 %v2078_v59, %v1990_v54  ;;  %2304 = vmatmul.bf16.gmra.mxu0 %v11367_v42  ;;  %v1903_v54 = vadd.f32 %v8702_v23, %v8777_v57  ;;  %v1906_v42 = vadd.f32 %v8717_v61, %v8777_v57 }
 0x35e   : > { %6152 = vmatmul.msk.bf16.gmra.mxu1 %vm1164_vm0, %v11368_v18 }
 0x35f   : > { %3298 = vmatmul.bf16.gmra.mxu2 %v11369_v31 }
 0x362   : > { %v2167_v11 = vpop.f32.mrf.mxu2  ;;  %v1991_v21 = vpop.f32.mrf.mxu0 }
 0x363   : > { %v2168_v4 = vadd.f32 %v2167_v11, %v2079_v0  ;;  %v2256_v5 = vpop.f32.mrf.mxu3  ;;  %v1992_v63 = vadd.f32 %v1991_v21, %v1903_v54  ;;  %v2080_v48 = vpop.f32.mrf.mxu1  ;;  %v11371_v0 = vld [vmem:[#allocation54_spill] sm:$0xff]  ;;  %v11372_v11 = vld [vmem:[#allocation55_spill] sm:$0xff] }
 0x364   : > { %v11373_v54 = vld [vmem:[#allocation86_spill] sm:$0xff] }
 0x365   : > { %v9033_v17 = vadd.f32 %v2256_v5, %v2168_v4  ;;  %v2081_v59 = vadd.f32 %v2080_v48, %v1992_v63  ;;  %v1908_v4 = vadd.f32 %v8720_v45, %v8777_v57 }
 0x36a   : > { %v2169_v18 = vpop.f32.mrf.mxu2  ;;  %v1994_v51 = vpop.f32.mrf.mxu0 }
 0x36b   : > { %v9037_v60 = vadd.f32 %v2169_v18, %v2081_v59  ;;  %v9039_v36 = vpop.f32.mrf.mxu3  ;;  %v1995_v53 = vadd.f32 %v1994_v51, %v1906_v42  ;;  %v2083_v23 = vpop.f32.mrf.mxu1  ;;  %v1911_v51 = vadd.f32 %v8729_v52, %v8777_v57  ;;  %v11376_v52 = vld [vmem:[#allocation59_spill] sm:$0xff] }
 0x36c   : > { %11370 = vst [vmem:[#allocation6_spill] sm:$0xff] %v9039_v36 }
 0x36d   : > { %v2084_v31 = vadd.f32 %v2083_v23, %v1995_v53  ;;  %2309 = vmatmul.bf16.gmra.mxu0 %v11371_v0 }
 0x36e   : > { %6153 = vmatmul.msk.bf16.gmra.mxu1 %vm1164_vm0, %v11372_v11 }
 0x36f   : > { %3303 = vmatmul.bf16.gmra.mxu2 %v11373_v54 }
 0x372   : > { %v2172_v61 = vpop.f32.mrf.mxu2  ;;  %v1996_v5 = vpop.f32.mrf.mxu0 }
 0x373   : > { %v2173_v21 = vadd.f32 %v2172_v61, %v2084_v31  ;;  %v2261_v63 = vpop.f32.mrf.mxu3  ;;  %v1997_v48 = vadd.f32 %v1996_v5, %v1908_v4  ;;  %v2085_v59 = vpop.f32.mrf.mxu1  ;;  %v11375_v31 = vld [vmem:[#allocation58_spill] sm:$0xff]  ;;  %v6772_v61 = vld [vmem:[%s11054_s3 + $0x1d8] sm:$0xf0] }
 0x374   : > { %v6391_v4 = vld [vmem:[%s11054_s3 + $0x1c0] sm:$0xf] }
 0x375   : > { %v9047_v18 = vadd.f32 %v2261_v63, %v2173_v21  ;;  %v2086_v42 = vadd.f32 %v2085_v59, %v1997_v48  ;;  %v11377_v21 = vld [vmem:[#allocation89_spill] sm:$0xff]  ;;  %v6392_v5 = vor.u32 %v6772_v61, %v6391_v4 }
 0x377   : > { %3371 = vmatpush.bf16.msrb.mxu3 %v6392_v5 }
 0x37a   : > { %v2174_v53 = vpop.f32.mrf.mxu2  ;;  %v1999_v0 = vpop.f32.mrf.mxu0 }
 0x37b   : > { %v9051_v23 = vadd.f32 %v2174_v53, %v2086_v42  ;;  %v9053_v11 = vpop.f32.mrf.mxu3  ;;  %v2000_v54 = vadd.f32 %v1999_v0, %v1911_v51  ;;  %v2088_v45 = vpop.f32.mrf.mxu1 }
 0x37c   : > { %11374 = vst [vmem:[#allocation7_spill] sm:$0xff] %v9053_v11 }
 0x37d   : > { %v2089_v36 = vadd.f32 %v2088_v45, %v2000_v54  ;;  %2314 = vmatmul.bf16.gmra.mxu0 %v11375_v31  ;;  %v1913_v54 = vadd.f32 %v8732_v2, %v8777_v57  ;;  %v1916_v31 = vadd.f32 %v8747_v43, %v8777_v57 }
 0x37e   : > { %6154 = vmatmul.msk.bf16.gmra.mxu1 %vm1164_vm0, %v11376_v52 }
 0x37f   : > { %3308 = vmatmul.bf16.gmra.mxu2 %v11377_v21 }
 0x382   : > { %v2177_v63 = vpop.f32.mrf.mxu2  ;;  %v2001_v59 = vpop.f32.mrf.mxu0 }
 0x383   : > { %v2178_v48 = vadd.f32 %v2177_v63, %v2089_v36  ;;  %v2266_v42 = vpop.f32.mrf.mxu3  ;;  %v2002_v51 = vadd.f32 %v2001_v59, %v1913_v54  ;;  %v2090_v53 = vpop.f32.mrf.mxu1  ;;  %v11378_v36 = vld [vmem:[#allocation62_spill] sm:$0xff]  ;;  %v11379_v63 = vld [vmem:[#allocation63_spill] sm:$0xff]  ;;  %v1918_v54 = vadd.f32 %v8750_v14, %v8777_v57  ;;  %v6371_v14 = vld [vmem:[%s11054_s3 + $0x190] sm:$0xf] }
 0x385   : > { %v9067_v0 = vadd.f32 %v2266_v42, %v2178_v48  ;;  %v2091_v45 = vadd.f32 %v2090_v53, %v2002_v51 }
 0x38a   : > { %v2179_v52 = vpop.f32.mrf.mxu2  ;;  %v2004_v4 = vpop.f32.mrf.mxu0 }
 0x38b   : > { %v9071_v11 = vadd.f32 %v2179_v52, %v2091_v45  ;;  %v9073_v61 = vpop.f32.mrf.mxu3  ;;  %v2005_v5 = vadd.f32 %v2004_v4, %v1916_v31  ;;  %v2093_v2 = vpop.f32.mrf.mxu1  ;;  %v1921_v52 = vadd.f32 %v8771_v15, %v8777_v57  ;;  %v11381_v15 = vld [vmem:[#allocation67_spill] sm:$0xff] }
 0x38d   : > { %v2094_v21 = vadd.f32 %v2093_v2, %v2005_v5  ;;  %2319 = vmatmul.bf16.gmra.mxu0 %v11378_v36 }
 0x38e   : > { %6155 = vmatmul.msk.bf16.gmra.mxu1 %vm1164_vm0, %v11379_v63 }
 0x38f   : > { %3313 = vmatmul.bf16.gmra.mxu2 %v8633_v38 }
 0x392   : > { %v2182_v43 = vpop.f32.mrf.mxu2  ;;  %v2006_v59 = vpop.f32.mrf.mxu0 }
 0x393   : > { %v2183_v48 = vadd.f32 %v2182_v43, %v2094_v21  ;;  %v2271_v42 = vpop.f32.mrf.mxu3  ;;  %v2007_v51 = vadd.f32 %v2006_v59, %v1918_v54  ;;  %v2095_v53 = vpop.f32.mrf.mxu1  ;;  %v6766_v21 = vld [vmem:[%s11054_s3 + $0x1a8] sm:$0xf0]  ;;  %v11380_v59 = vld [vmem:[#allocation66_spill] sm:$0xff] }
 0x394   : > { %v6372_v43 = vor.u32 %v6766_v21, %v6371_v14 }
 0x395   : > { %v9081_v45 = vadd.f32 %v2271_v42, %v2183_v48  ;;  %v2096_v31 = vadd.f32 %v2095_v53, %v2007_v51  ;;  %v6595_v42 = vld [vmem:[%s11054_s3 + $0x350] sm:$0xf]  ;;  %v6822_v51 = vld [vmem:[%s11054_s3 + $0x368] sm:$0xf0] }
 0x396   : > { %3631 = vmatpush.bf16.msra.mxu2 %v6372_v43  ;;  %v6762_v53 = vld [vmem:[%s11054_s3 + $0x18c] sm:$0xf] }
 0x397   : > { %v6818_v43 = vld [vmem:[%s11054_s3 + $0x34c] sm:$0xf] }
 0x39a   : > { %v2184_v4 = vpop.f32.mrf.mxu2  ;;  %v2009_v2 = vpop.f32.mrf.mxu0 }
 0x39b   : > { %v9085_v5 = vadd.f32 %v2184_v4, %v2096_v31  ;;  %v9087_v36 = vpop.f32.mrf.mxu3  ;;  %v2010_v63 = vadd.f32 %v2009_v2, %v1921_v52  ;;  %v2098_v54 = vpop.f32.mrf.mxu1  ;;  %v6596_v31 = vor.u32 %v6822_v51, %v6595_v42  ;;  %v6365_v52 = vld [vmem:[%s11054_s3 + $0x1a4] sm:$0xf0]  ;;  %v1923_v4 = vadd.f32 %v8781_v50, %v8777_v57 }
 0x39c   : > { %v6368_v14 = vor.u32 %v6762_v53, %v6365_v52  ;;  %v11383_v52 = vld [vmem:[#allocation70_spill] sm:$0xff] }
 0x39d   : > { %v2099_v48 = vadd.f32 %v2098_v54, %v2010_v63  ;;  %2324 = vmatmul.bf16.gmra.mxu0 %v11380_v59  ;;  %3720 = vmatpush.bf16.msra.mxu3 %v6596_v31  ;;  %v6589_v59 = vld [vmem:[%s11054_s3 + $0x364] sm:$0xf0] }
 0x39e   : > { %6156 = vmatmul.msk.bf16.gmra.mxu1 %vm1164_vm0, %v11381_v15  ;;  %3453 = vmatpush.bf16.msra.mxu0 %v6368_v14  ;;  %v6592_v51 = vor.u32 %v6818_v43, %v6589_v59 }
 0x39f   : > { %3318 = vmatmul.bf16.gmra.mxu2 %v8646_v26 }
 0x3a0   : > { %3542 = vmatpush.bf16.msra.mxu1 %v6592_v51 }
 0x3a2   : > { %v2187_v2 = vpop.f32.mrf.mxu2  ;;  %v2011_v63 = vpop.f32.mrf.mxu0 }
 0x3a3   : > { %v2188_v21 = vadd.f32 %v2187_v2, %v2099_v48  ;;  %v2276_v54 = vpop.f32.mrf.mxu3  ;;  %v2012_v15 = vadd.f32 %v2011_v63, %v1923_v4  ;;  %v2100_v42 = vpop.f32.mrf.mxu1  ;;  %v11384_v2 = vld [vmem:[#allocation71_spill] sm:$0xff] }
 0x3a5   : > { %v9119_v26 = vadd.f32 %v2276_v54, %v2188_v21  ;;  %v2101_v57 = vadd.f32 %v2100_v42, %v2012_v15 }
 0x3aa   : > { %v2189_v50 = vpop.f32.mrf.mxu2  ;;  %v2290_v53 = vpop.f32.mrf.mxu0 }
 0x3ab   : > { %v9121_v48 = vadd.f32 %v2189_v50, %v2101_v57  ;;  %v2379_v31 = vpop.f32.mrf.mxu1  ;;  %v2291_v4 = vadd.f32 %v2290_v53, %v8797_v33  ;;  %v6759_v33 = vld [vmem:[%s11054_s3 + $0x170] sm:$0xf0] }
 0x3ad   : > { %11382 = vst [vmem:[#allocation8_spill] sm:$0xff] %v9121_v48  ;;  %2329 = vmatmul.bf16.gmra.mxu0 %v11383_v52  ;;  %v2380_v63 = vadd.f32 %v2379_v31, %v2291_v4  ;;  %v6343_v52 = vld [vmem:[%s11054_s3 + $0x158] sm:$0xf]  ;;  %v11385_v31 = vld [vmem:[#allocation72_spill] sm:$0xff]  ;;  %v11387_v48 = vld [vmem:[#allocation75_spill] sm:$0xff] }
 0x3ae   : > { %6157 = vmatmul.msk.bf16.gmra.mxu1 %vm1164_vm0, %v11384_v2  ;;  %v11386_v2 = vld [vmem:[#allocation73_spill] sm:$0xff] }
 0x3af   : > { %3323 = vmatmul.bf16.gmra.mxu2 %v8664_v28  ;;  %v2460_v15 = vmax.f32 %v2380_v63, 0.0  ;;  %v6815_v63 = vld [vmem:[%s11054_s3 + $0x330] sm:$0xf0] }
 0x3b2   : > { %v9128_v14 = vpop.f32.mrf.mxu2  ;;  %v2292_v21 = vpop.f32.mrf.mxu0 }
 0x3b3   : > { %v2293_v54 = vadd.f32 %v2292_v21, %v8807_v3  ;;  %v2381_v43 = vpop.f32.mrf.mxu1  ;;  %v6344_v3 = vor.u32 %v6759_v33, %v6343_v52  ;;  %v6567_v21 = vld [vmem:[%s11054_s3 + $0x318] sm:$0xf]  ;;  %v6561_v52 = vld [vmem:[%s11054_s3 + $0x32c] sm:$0xf0] }
 0x3b5   : > { %v2382_v59 = vadd.f32 %v2381_v43, %v2293_v54  ;;  %3632 = vmatpush.bf16.msra.mxu2 %v6344_v3  ;;  %v6568_v54 = vor.u32 %v6815_v63, %v6567_v21  ;;  %v6755_v43 = vld [vmem:[%s11054_s3 + $0x154] sm:$0xf] }
 0x3b7   : > { %v2462_v42 = vmax.f32 %v2382_v59, 0.0  ;;  %v6337_v59 = vld [vmem:[%s11054_s3 + $0x16c] sm:$0xf0]  ;;  %3721 = vmatpush.bf16.msra.mxu3 %v6568_v54 }
 0x3b9   : > { %v9131_v51 = vpack.c.bf16 %v2462_v42, %v2460_v15 }
 0x3ba   : > { %v9133_v57 = vpop.f32.mrf.mxu2  ;;  %v2295_v50 = vpop.f32.mrf.mxu0 }
 0x3bb   : > { %v2384_v53 = vpop.f32.mrf.mxu1  ;;  %3372 = vmatmul.bf16.vlgmr.msrb.gmra.mxu3 %v9131_v51  ;;  %v2296_v4 = vadd.f32 %v2295_v50, %v8821_v13  ;;  %v6340_v13 = vor.u32 %v6755_v43, %v6337_v59  ;;  %v6811_v50 = vld [vmem:[%s11054_s3 + $0x314] sm:$0xf] }
 0x3bd   : > { %2334 = vmatmul.bf16.gmra.mxu0 %v11385_v31  ;;  %v2385_v33 = vadd.f32 %v2384_v53, %v2296_v4  ;;  %v11388_v53 = vld [vmem:[#allocation76_spill] sm:$0xff] }
 0x3be   : > { %6158 = vmatmul.msk.bf16.gmra.mxu1 %vm1164_vm0, %v11386_v2  ;;  %3454 = vmatpush.bf16.msra.mxu0 %v6340_v13  ;;  %v6564_v2 = vor.u32 %v6811_v50, %v6561_v52 }
 0x3bf   : > { %3328 = vmatmul.bf16.gmra.mxu2 %v8676_v19  ;;  %v2464_v63 = vmax.f32 %v2385_v33, 0.0 }
 0x3c0   : > { %3543 = vmatpush.bf16.msra.mxu1 %v6564_v2 }
 0x3c2   : > { %v9159_v15 = vpop.f32.mrf.mxu2  ;;  %v2297_v42 = vpop.f32.mrf.mxu0 }
 0x3c3   : > { %v2298_v3 = vadd.f32 %v2297_v42, %v8825_v22  ;;  %v2386_v31 = vpop.f32.mrf.mxu1 }
 0x3c5   : > { %v2387_v21 = vadd.f32 %v2386_v31, %v2298_v3 }
 0x3c7   : > { %v2466_v43 = vmax.f32 %v2387_v21, 0.0 }
 0x3c9   : > { %v9168_v59 = vpack.c.bf16 %v2466_v43, %v2464_v63  ;;  %v6315_v63 = vld [vmem:[%s11054_s3 + $0x120] sm:$0xf]  ;;  %v11391_v43 = vld [vmem:[#allocation79_spill] sm:$0xff] }
 0x3ca   : > { %v9170_v54 = vpop.f32.mrf.mxu2  ;;  %v2300_v19 = vpop.f32.mrf.mxu0 }
 0x3cb   : > { %v2389_v28 = vpop.f32.mrf.mxu1  ;;  %3377 = vmatmul.bf16.gmra.mxu3 %v9168_v59  ;;  %v2301_v22 = vadd.f32 %v2300_v19, %v8839_v8  ;;  %v6752_v19 = vld [vmem:[%s11054_s3 + $0x138] sm:$0xf0] }
 0x3cc   : > { %v6316_v8 = vor.u32 %v6752_v19, %v6315_v63 }
 0x3cd   : > { %2339 = vmatmul.bf16.gmra.mxu0 %v11387_v48  ;;  %v2390_v42 = vadd.f32 %v2389_v28, %v2301_v22  ;;  %v6539_v22 = vld [vmem:[%s11054_s3 + $0x2e0] sm:$0xf] }
 0x3ce   : > { %6159 = vmatmul.msk.bf16.gmra.mxu1 %vm1164_vm0, %v11388_v53  ;;  %3633 = vmatpush.bf16.msra.mxu2 %v6316_v8 }
 0x3cf   : > { %3333 = vmatmul.bf16.gmra.mxu2 %v8694_v24  ;;  %v2468_v3 = vmax.f32 %v2390_v42, 0.0  ;;  %v11392_v24 = vld [vmem:[#allocation81_spill] sm:$0xff] }
 0x3d2   : > { %v9178_v4 = vpop.f32.mrf.mxu2  ;;  %v2302_v13 = vpop.f32.mrf.mxu0 }
 0x3d3   : > { %v2303_v50 = vadd.f32 %v2302_v13, %v8849_v25  ;;  %v2391_v52 = vpop.f32.mrf.mxu1  ;;  %v11390_v25 = vld [vmem:[#allocation78_spill] sm:$0xff]  ;;  %v6808_v13 = vld [vmem:[%s11054_s3 + $0x2f8] sm:$0xf0] }
 0x3d4   : > { %v6540_v42 = vor.u32 %v6808_v13, %v6539_v22 }
 0x3d5   : > { %v2392_v33 = vadd.f32 %v2391_v52, %v2303_v50  ;;  %v6748_v50 = vld [vmem:[%s11054_s3 + $0x11c] sm:$0xf]  ;;  %v6309_v52 = vld [vmem:[%s11054_s3 + $0x134] sm:$0xf0] }
 0x3d6   : > { %3722 = vmatpush.bf16.msra.mxu3 %v6540_v42 }
 0x3d7   : > { %v2470_v31 = vmax.f32 %v2392_v33, 0.0 }
 0x3d9   : > { %v9181_v2 = vpack.c.bf16 %v2470_v31, %v2468_v3  ;;  %v6804_v31 = vld [vmem:[%s11054_s3 + $0x2dc] sm:$0xf] }
 0x3da   : > { %v9183_v48 = vpop.f32.mrf.mxu2  ;;  %v2305_v21 = vpop.f32.mrf.mxu0 }
 0x3db   : > { %11389 = vst [vmem:[#allocation53_spill] sm:$0xff] %v9181_v2  ;;  %v2394_v28 = vpop.f32.mrf.mxu1  ;;  %3382 = vmatmul.bf16.gmra.mxu3 %v9181_v2  ;;  %v2306_v53 = vadd.f32 %v2305_v21, %v8863_v30  ;;  %v6312_v30 = vor.u32 %v6748_v50, %v6309_v52  ;;  %v6533_v21 = vld [vmem:[%s11054_s3 + $0x2f4] sm:$0xf0] }
 0x3dd   : > { %2344 = vmatmul.bf16.gmra.mxu0 %v11390_v25  ;;  %v2395_v63 = vadd.f32 %v2394_v28, %v2306_v53  ;;  %v6536_v25 = vor.u32 %v6804_v31, %v6533_v21  ;;  %v11393_v28 = vld [vmem:[#allocation82_spill] sm:$0xff]  ;;  %v2224_v53 = vadd.f32 %v8893_v32, %v8891_v37 }
 0x3de   : > { %6160 = vmatmul.msk.bf16.gmra.mxu1 %vm1164_vm0, %v11391_v43  ;;  %3455 = vmatpush.bf16.msra.mxu0 %v6312_v30  ;;  %v6741_v37 = vld [vmem:[%s11054_s3 + $0xe4] sm:$0xf] }
 0x3df   : > { %3338 = vmatmul.bf16.gmra.mxu2 %v8706_v49  ;;  %3544 = vmatpush.bf16.msra.mxu1 %v6536_v25  ;;  %v2472_v22 = vmax.f32 %v2395_v63, 0.0 }
 0x3e2   : > { %v9209_v33 = vpop.f32.mrf.mxu2  ;;  %v2307_v3 = vpop.f32.mrf.mxu0 }
 0x3e3   : > { %v2308_v19 = vadd.f32 %v2307_v3, %v8867_v40  ;;  %v2396_v8 = vpop.f32.mrf.mxu1 }
 0x3e5   : > { %v2397_v43 = vadd.f32 %v2396_v8, %v2308_v19 }
 0x3e7   : > { %v2474_v13 = vmax.f32 %v2397_v43, 0.0 }
 0x3e9   : > { %v9218_v50 = vpack.c.bf16 %v2474_v13, %v2472_v22  ;;  %v6281_v22 = vld [vmem:[%s11054_s3 + $0xfc] sm:$0xf0]  ;;  %v6797_v13 = vld [vmem:[%s11054_s3 + $0x2a4] sm:$0xf] }
 0x3ea   : > { %v9220_v42 = vpop.f32.mrf.mxu2  ;;  %v2310_v52 = vpop.f32.mrf.mxu0 }
 0x3eb   : > { %v2399_v49 = vpop.f32.mrf.mxu1  ;;  %3387 = vmatmul.bf16.gmra.mxu3 %v9218_v50  ;;  %v2311_v40 = vadd.f32 %v2310_v52, %v8881_v55  ;;  %v6745_v55 = vld [vmem:[%s11054_s3 + $0x100] sm:$0xf0]  ;;  %v6505_v52 = vld [vmem:[%s11054_s3 + $0x2bc] sm:$0xf0] }
 0x3ed   : > { %2349 = vmatmul.bf16.gmra.mxu0 %v11392_v24  ;;  %v2400_v31 = vadd.f32 %v2399_v49, %v2311_v40  ;;  %v6287_v24 = vld [vmem:[%s11054_s3 + $0xe8] sm:$0xf]  ;;  %v6284_v40 = vor.u32 %v6741_v37, %v6281_v22  ;;  %v11396_v37 = vld [vmem:[#allocation85_spill] sm:$0xff] }
 0x3ee   : > { %6161 = vmatmul.msk.bf16.gmra.mxu1 %vm1164_vm0, %v11393_v28  ;;  %v6288_v43 = vor.u32 %v6745_v55, %v6287_v24  ;;  %v6259_v24 = vld [vmem:[%s11054_s3 + $0xb0] sm:$0xf]  ;;  %v6738_v55 = vld [vmem:[%s11054_s3 + $0xc8] sm:$0xf0] }
 0x3ef   : > { %3343 = vmatmul.bf16.gmra.mxu2 %v8724_v1  ;;  %v2476_v8 = vmax.f32 %v2400_v31, 0.0  ;;  %3456 = vmatpush.bf16.msra.mxu0 %v6284_v40  ;;  %v6734_v31 = vld [vmem:[%s11054_s3 + $0xac] sm:$0xf]  ;;  %v6260_v22 = vor.u32 %v6738_v55, %v6259_v24  ;;  %v6801_v40 = vld [vmem:[%s11054_s3 + $0x2c0] sm:$0xf0] }
 0x3f0   : > { %3634 = vmatpush.bf16.msra.mxu2 %v6288_v43  ;;  %v6731_v24 = vld [vmem:[%s11054_s3 + $0x90] sm:$0xf0] }
 0x3f2   : > { %v9230_v30 = vpop.f32.mrf.mxu2  ;;  %v2312_v3 = vpop.f32.mrf.mxu0 }
 0x3f3   : > { %v2313_v21 = vadd.f32 %v2312_v3, %v2224_v53  ;;  %v2401_v63 = vpop.f32.mrf.mxu1  ;;  %v6508_v53 = vor.u32 %v6797_v13, %v6505_v52  ;;  %v6511_v52 = vld [vmem:[%s11054_s3 + $0x2a8] sm:$0xf] }
 0x3f4   : > { %3635 = vmatpush.bf16.msra.mxu2 %v6260_v22 }
 0x3f5   : > { %v2402_v19 = vadd.f32 %v2401_v63, %v2313_v21  ;;  %3545 = vmatpush.bf16.msra.mxu1 %v6508_v53  ;;  %v6253_v21 = vld [vmem:[%s11054_s3 + $0xc4] sm:$0xf0]  ;;  %v6790_v63 = vld [vmem:[%s11054_s3 + $0x26c] sm:$0xf]  ;;  %v6512_v53 = vor.u32 %v6801_v40, %v6511_v52  ;;  %v6720_v52 = vld [vmem:[%s11054_s3 + $0x3c] sm:$0xf] }
 0x3f6   : > { %v6197_v40 = vld [vmem:[%s11054_s3 + $0x54] sm:$0xf0] }
 0x3f7   : > { %v2478_v25 = vmax.f32 %v2402_v19, 0.0  ;;  %v11395_v19 = vld [vmem:[#allocation84_spill] sm:$0xff]  ;;  %3723 = vmatpush.bf16.msra.mxu3 %v6512_v53 }
 0x3f9   : > { %v9241_v32 = vpack.c.bf16 %v2478_v25, %v2476_v8  ;;  %v6256_v8 = vor.u32 %v6734_v31, %v6253_v21  ;;  %v6477_v25 = vld [vmem:[%s11054_s3 + $0x284] sm:$0xf0]  ;;  %v6727_v31 = vld [vmem:[%s11054_s3 + $0x74] sm:$0xf]  ;;  %v6225_v21 = vld [vmem:[%s11054_s3 + $0x8c] sm:$0xf0] }
 0x3fa   : > { %v9243_v49 = vpop.f32.mrf.mxu2  ;;  %v2315_v28 = vpop.f32.mrf.mxu0  ;;  %v6480_v43 = vor.u32 %v6790_v63, %v6477_v25  ;;  %v6231_v25 = vld [vmem:[%s11054_s3 + $0x78] sm:$0xf] }
 0x3fb   : > { %11394 = vst [vmem:[#allocation60_spill] sm:$0xff] %v9241_v32  ;;  %v2404_v3 = vpop.f32.mrf.mxu1  ;;  %3392 = vmatmul.bf16.gmra.mxu3 %v9241_v32  ;;  %v2316_v13 = vadd.f32 %v2315_v28, %v8919_v41  ;;  %3457 = vmatpush.bf16.msra.mxu0 %v6256_v8  ;;  %v6783_v41 = vld [vmem:[%s11054_s3 + $0x234] sm:$0xf]  ;;  %v2229_v28 = vadd.f32 %v8937_v62, %v8935_v34  ;;  %v6449_v8 = vld [vmem:[%s11054_s3 + $0x24c] sm:$0xf0] }
 0x3fc   : > { %3546 = vmatpush.bf16.msra.mxu1 %v6480_v43  ;;  %v6232_v34 = vor.u32 %v6731_v24, %v6231_v25  ;;  %v6713_v24 = vld [vmem:[%s11054_s3 + $0x4] sm:$0xf] }
 0x3fd   : > { %2354 = vmatmul.bf16.gmra.mxu0 %v11395_v19  ;;  %v6228_v19 = vor.u32 %v6727_v31, %v6225_v21  ;;  %v2405_v62 = vadd.f32 %v2404_v3, %v2316_v13  ;;  %v6776_v31 = vld [vmem:[%s11054_s3 + $0x1fc] sm:$0xf]  ;;  %v6200_v21 = vor.u32 %v6720_v52, %v6197_v40  ;;  %v6421_v3 = vld [vmem:[%s11054_s3 + $0x214] sm:$0xf0]  ;;  %v6203_v13 = vld [vmem:[%s11054_s3 + $0x40] sm:$0xf] }
 0x3fe   : > { %6162 = vmatmul.msk.bf16.gmra.mxu1 %vm1164_vm0, %v11396_v37  ;;  %v6452_v37 = vor.u32 %v6783_v41, %v6449_v8  ;;  %3636 = vmatpush.bf16.msra.mxu2 %v6232_v34  ;;  %v6724_v41 = vld [vmem:[%s11054_s3 + $0x58] sm:$0xf0]  ;;  %v6175_v52 = vld [vmem:[%s11054_s3 + $0x8] sm:$0xf]  ;;  %v6717_v40 = vld [vmem:[%s11054_s3 + $0x20] sm:$0xf0] }
 0x3ff   : > { %3348 = vmatmul.bf16.gmra.mxu2 %v8736_v56  ;;  %3458 = vmatpush.bf16.msra.mxu0 %v6228_v19  ;;  %v6204_v19 = vor.u32 %v6724_v41, %v6203_v13  ;;  %v2480_v8 = vmax.f32 %v2405_v62, 0.0  ;;  %v11397_v13 = vld [vmem:[#allocation87_spill] sm:$0xff]  ;;  %v11398_v41 = vld [vmem:[#allocation88_spill] sm:$0xff] }
 0x400   : > { %3547 = vmatpush.bf16.msra.mxu1 %v6452_v37  ;;  %v6769_v37 = vld [vmem:[%s11054_s3 + $0x1c4] sm:$0xf] }
 0x402   : > { %v9295_v63 = vpop.f32.mrf.mxu2  ;;  %v2317_v55 = vpop.f32.mrf.mxu0  ;;  %3637 = vmatpush.bf16.msra.mxu2 %v6204_v19 }
 0x403   : > { %v2318_v43 = vadd.f32 %v2317_v55, %v2229_v28  ;;  %v2406_v22 = vpop.f32.mrf.mxu1  ;;  %v6424_v28 = vor.u32 %v6776_v31, %v6421_v3  ;;  %3459 = vmatpush.bf16.msra.mxu0 %v6200_v21  ;;  %v6169_v55 = vld [vmem:[%s11054_s3 + $0x1c] sm:$0xf0]  ;;  %v6176_v21 = vor.u32 %v6717_v40, %v6175_v52 }
 0x404   : > { %v6172_v62 = vor.u32 %v6713_v24, %v6169_v55 }
 0x405   : > { %v2407_v53 = vadd.f32 %v2406_v22, %v2318_v43  ;;  %3548 = vmatpush.bf16.msra.mxu1 %v6424_v28  ;;  %v6393_v22 = vld [vmem:[%s11054_s3 + $0x1dc] sm:$0xf0]  ;;  %v11399_v28 = vld [vmem:[#allocation4_spill] sm:$0xff] }
 0x406   : > { %3638 = vmatpush.bf16.msra.mxu2 %v6176_v21 }
 0x407   : > { %v2482_v25 = vmax.f32 %v2407_v53, 0.0  ;;  %v6396_v53 = vor.u32 %v6769_v37, %v6393_v22  ;;  %3460 = vmatpush.bf16.msra.mxu0 %v6172_v62 }
 0x409   : > { %v9333_v34 = vpack.c.bf16 %v2482_v25, %v2480_v8  ;;  %3549 = vmatpush.bf16.msra.mxu1 %v6396_v53  ;;  %v2234_v8 = vadd.f32 %v8951_v7, %v8949_v29  ;;  %v11402_v29 = vld [vmem:[#allocation91_spill] sm:$0xff]  ;;  %v11403_v7 = vld [vmem:[#allocation5_spill] sm:$0xff] }
 0x40a   : > { %v9335_v43 = vpop.f32.mrf.mxu2  ;;  %v2320_v31 = vpop.f32.mrf.mxu0 }
 0x40b   : > { %v2409_v3 = vpop.f32.mrf.mxu1  ;;  %3397 = vmatmul.bf16.gmra.mxu3 %v9333_v34  ;;  %v2321_v19 = vadd.f32 %v2320_v31, %v8945_v27  ;;  %v11401_v27 = vld [vmem:[#allocation90_spill] sm:$0xff] }
 0x40d   : > { %2359 = vmatmul.bf16.gmra.mxu0 %v11397_v13  ;;  %v2410_v55 = vadd.f32 %v2409_v3, %v2321_v19  ;;  %v6483_v3 = vld [vmem:[%s11054_s3 + $0x270] sm:$0xf]  ;;  %v6794_v19 = vld [vmem:[%s11054_s3 + $0x288] sm:$0xf0] }
 0x40e   : > { %6163 = vmatmul.msk.bf16.gmra.mxu1 %vm1164_vm0, %v11398_v41 }
 0x40f   : > { %3353 = vmatmul.bf16.gmra.mxu2 %v11399_v28  ;;  %v2484_v52 = vmax.f32 %v2410_v55, 0.0 }
 0x412   : > { %v9354_v25 = vpop.f32.mrf.mxu2  ;;  %v2322_v24 = vpop.f32.mrf.mxu0 }
 0x413   : > { %v2323_v37 = vadd.f32 %v2322_v24, %v2234_v8  ;;  %v2411_v62 = vpop.f32.mrf.mxu1  ;;  %v6484_v8 = vor.u32 %v6794_v19, %v6483_v3  ;;  %v2239_v24 = vadd.f32 %v8971_v47, %v8969_v9  ;;  %v2244_v47 = vadd.f32 %v8985_v12, %v8983_v44 }
 0x415   : > { %v2412_v22 = vadd.f32 %v2411_v62, %v2323_v37  ;;  %3724 = vmatpush.bf16.msra.mxu3 %v6484_v8 }
 0x417   : > { %v2486_v40 = vmax.f32 %v2412_v22, 0.0 }
 0x419   : > { %v9356_v53 = vpack.c.bf16 %v2486_v40, %v2484_v52 }
 0x41a   : > { %v9358_v21 = vpop.f32.mrf.mxu2  ;;  %v2325_v13 = vpop.f32.mrf.mxu0 }
 0x41b   : > { %11400 = vst [vmem:[#allocation9_spill] sm:$0xff] %v9356_v53  ;;  %v2414_v41 = vpop.f32.mrf.mxu1  ;;  %3402 = vmatmul.bf16.gmra.mxu3 %v9356_v53  ;;  %v2326_v31 = vadd.f32 %v2325_v13, %v8965_v20 }
 0x41d   : > { %2364 = vmatmul.bf16.gmra.mxu0 %v11401_v27  ;;  %v2415_v62 = vadd.f32 %v2414_v41, %v2326_v31 }
 0x41e   : > { %6164 = vmatmul.msk.bf16.gmra.mxu1 %vm1164_vm0, %v11402_v29 }
 0x41f   : > { %3358 = vmatmul.bf16.gmra.mxu2 %v11403_v7  ;;  %v2488_v40 = vmax.f32 %v2415_v62, 0.0  ;;  %v9394_v62 = vld [vmem:[%s11055_s4] sm:$0x7f] }
 0x422   : > { %v9374_v55 = vpop.f32.mrf.mxu2  ;;  %v2327_v37 = vpop.f32.mrf.mxu0 }
 0x423   : > { %v2328_v22 = vadd.f32 %v2327_v37, %v2239_v24  ;;  %v2416_v52 = vpop.f32.mrf.mxu1  ;;  %v9389_v37 = vpop.f32.mrf.mxu3 }
 0x425   : > { %v2417_v20 = vadd.f32 %v2416_v52, %v2328_v22 }
 0x427   : > { %v2490_v13 = vmax.f32 %v2417_v20, 0.0 }
 0x429   : > { %v9376_v27 = vpack.c.bf16 %v2490_v13, %v2488_v40 }
 0x42a   : > { %v9378_v29 = vpop.f32.mrf.mxu2  ;;  %v2330_v7 = vpop.f32.mrf.mxu0 }
 0x42b   : > { %v2419_v28 = vpop.f32.mrf.mxu1  ;;  %3407 = vmatmul.bf16.gmra.mxu3 %v9376_v27  ;;  %v2331_v9 = vadd.f32 %v2330_v7, %v8979_v58  ;;  %v9397_v58 = vperm.slane %v9394_v62, 0 }
 0x42d   : > { %3461 = vmatmul.bf16.vlgmr.msra.gmra.mxu0 %v11358_v35  ;;  %v2420_v3 = vadd.f32 %v2419_v28, %v2331_v9  ;;  %v3285_v20 = vadd.f32 %v9128_v14, %v9397_v58 }
 0x42e   : > { %3550 = vmatmul.bf16.vlgmr.msra.gmra.mxu1 %v9131_v51 }
 0x42f   : > { %3639 = vmatmul.bf16.vlgmr.msra.gmra.mxu2 %v11358_v35  ;;  %v2492_v22 = vmax.f32 %v2420_v3, 0.0  ;;  %v3290_v35 = vadd.f32 %v9159_v15, %v9397_v58 }
 0x432   : > { %v9387_v41 = vpop.f32.mrf.mxu2  ;;  %v2332_v31 = vpop.f32.mrf.mxu0 }
 0x433   : > { %v2333_v19 = vadd.f32 %v2332_v31, %v2244_v47  ;;  %v2421_v8 = vpop.f32.mrf.mxu1  ;;  %v11404_v47 = vld [vmem:[#allocation49_spill] sm:$0xff] }
 0x434   : > { %v2249_v31 = vadd.f32 %v11404_v47, %v9003_v39 }
 0x435   : > { %v2422_v24 = vadd.f32 %v2421_v8, %v2333_v19 }
 0x437   : > { %v2494_v52 = vmax.f32 %v2422_v24, 0.0 }
 0x439   : > { %v9399_v44 = vpack.c.bf16 %v2494_v52, %v2492_v22  ;;  %v6455_v22 = vld [vmem:[%s11054_s3 + $0x238] sm:$0xf]  ;;  %v6787_v52 = vld [vmem:[%s11054_s3 + $0x250] sm:$0xf0] }
 0x43a   : > { %v9401_v12 = vpop.f32.mrf.mxu2  ;;  %v2335_v28 = vpop.f32.mrf.mxu0 }
 0x43b   : > { %v2424_v7 = vpop.f32.mrf.mxu1  ;;  %3412 = vmatmul.bf16.gmra.mxu3 %v9399_v44  ;;  %v2336_v13 = vadd.f32 %v2335_v28, %v8999_v6  ;;  %v3287_v6 = vadd.f32 %v9133_v57, %v9397_v58  ;;  %v11405_v57 = vld [vmem:[#allocation80_spill] sm:$0xff] }
 0x43d   : > { %3466 = vmatmul.bf16.gmra.mxu0 %v11361_v10  ;;  %v2425_v8 = vadd.f32 %v2424_v7, %v2336_v13 }
 0x43e   : > { %3555 = vmatmul.bf16.gmra.mxu1 %v9168_v59  ;;  %v3373_v40 = vpop.f32.mrf.mxu3 }
 0x43f   : > { %3644 = vmatmul.bf16.gmra.mxu2 %v11361_v10  ;;  %v9410_v9 = vadd.f32 %v3373_v40, %v3285_v20  ;;  %v6456_v20 = vor.u32 %v6787_v52, %v6455_v22  ;;  %v2496_v40 = vmax.f32 %v2425_v8, 0.0  ;;  %v11406_v22 = vld [vmem:[#allocation56_spill] sm:$0xff] }
 0x440   : > { %v2254_v52 = vadd.f32 %v11406_v22, %v9017_v46 }
 0x441   : > { %3725 = vmatpush.bf16.msra.mxu3 %v6456_v20 }
 0x442   : > { %v9414_v3 = vpop.f32.mrf.mxu2  ;;  %v2337_v19 = vpop.f32.mrf.mxu0 }
 0x443   : > { %v2338_v24 = vadd.f32 %v2337_v19, %v2249_v31  ;;  %v2426_v14 = vpop.f32.mrf.mxu1 }
 0x445   : > { %v2427_v28 = vadd.f32 %v2426_v14, %v2338_v24 }
 0x446   : > { %v3375_v39 = vpop.f32.mrf.mxu3 }
 0x447   : > { %v2498_v47 = vmax.f32 %v2427_v28, 0.0  ;;  %v9424_v10 = vadd.f32 %v3375_v39, %v3287_v6 }
 0x449   : > { %v9426_v7 = vpack.c.bf16 %v2498_v47, %v2496_v40  ;;  %v3292_v40 = vadd.f32 %v9170_v54, %v9397_v58 }
 0x44a   : > { %v9428_v13 = vpop.f32.mrf.mxu2  ;;  %v2340_v31 = vpop.f32.mrf.mxu0 }
 0x44b   : > { %v2429_v19 = vpop.f32.mrf.mxu1  ;;  %3417 = vmatmul.bf16.gmra.mxu3 %v9426_v7  ;;  %v2341_v24 = vadd.f32 %v2340_v31, %v9013_v16 }
 0x44d   : > { %3471 = vmatmul.bf16.gmra.mxu0 %v11405_v57  ;;  %v2430_v20 = vadd.f32 %v2429_v19, %v2341_v24  ;;  %v3295_v19 = vadd.f32 %v9178_v4, %v9397_v58 }
 0x44e   : > { %3560 = vmatmul.bf16.gmra.mxu1 %v9181_v2  ;;  %v3378_v8 = vpop.f32.mrf.mxu3 }
 0x44f   : > { %3649 = vmatmul.bf16.gmra.mxu2 %v11405_v57  ;;  %v9437_v14 = vadd.f32 %v3378_v8, %v3290_v35  ;;  %v2500_v57 = vmax.f32 %v2430_v20, 0.0  ;;  %v11407_v8 = vld [vmem:[#allocation83_spill] sm:$0xff] }
 0x452   : > { %v9441_v6 = vpop.f32.mrf.mxu2  ;;  %v2342_v28 = vpop.f32.mrf.mxu0 }
 0x453   : > { %v2343_v39 = vadd.f32 %v2342_v28, %v2254_v52  ;;  %v2431_v15 = vpop.f32.mrf.mxu1 }
 0x455   : > { %v2432_v47 = vadd.f32 %v2431_v15, %v2343_v39  ;;  %v6427_v39 = vld [vmem:[%s11054_s3 + $0x200] sm:$0xf]  ;;  %v6780_v15 = vld [vmem:[%s11054_s3 + $0x218] sm:$0xf0] }
 0x456   : > { %v3380_v56 = vpop.f32.mrf.mxu3 }
 0x457   : > { %v2502_v1 = vmax.f32 %v2432_v47, 0.0  ;;  %v9445_v2 = vadd.f32 %v3380_v56, %v3292_v40  ;;  %v6428_v47 = vor.u32 %v6780_v15, %v6427_v39  ;;  %v11411_v39 = vld [vmem:[#allocation7_spill] sm:$0xff] }
 0x458   : > { %v2264_v15 = vadd.f32 %v11411_v39, %v9051_v23 }
 0x459   : > { %v9447_v35 = vpack.c.bf16 %v2502_v1, %v2500_v57  ;;  %v11408_v57 = vld [vmem:[#allocation6_spill] sm:$0xff]  ;;  %3726 = vmatpush.bf16.msra.mxu3 %v6428_v47 }
 0x45a   : > { %v9449_v16 = vpop.f32.mrf.mxu2  ;;  %v2345_v46 = vpop.f32.mrf.mxu0  ;;  %v2259_v24 = vadd.f32 %v11408_v57, %v9037_v60 }
 0x45b   : > { %v2434_v31 = vpop.f32.mrf.mxu1  ;;  %3422 = vmatmul.bf16.gmra.mxu3 %v9447_v35  ;;  %v2346_v56 = vadd.f32 %v2345_v46, %v9033_v17  ;;  %v3297_v17 = vadd.f32 %v9183_v48, %v9397_v58  ;;  %v11410_v48 = vld [vmem:[#allocation86_spill] sm:$0xff] }
 0x45d   : > { %3476 = vmatmul.bf16.gmra.mxu0 %v11407_v8  ;;  %v2435_v28 = vadd.f32 %v2434_v31, %v2346_v56 }
 0x45e   : > { %3565 = vmatmul.bf16.gmra.mxu1 %v9218_v50  ;;  %v3383_v54 = vpop.f32.mrf.mxu3 }
 0x45f   : > { %3654 = vmatmul.bf16.gmra.mxu2 %v11407_v8  ;;  %v9458_v1 = vadd.f32 %v3383_v54, %v3295_v19  ;;  %v2504_v46 = vmax.f32 %v2435_v28, 0.0 }
 0x462   : > { %v9462_v22 = vpop.f32.mrf.mxu2  ;;  %v2347_v52 = vpop.f32.mrf.mxu0 }
 0x463   : > { %v2348_v20 = vadd.f32 %v2347_v52, %v2259_v24  ;;  %v2436_v4 = vpop.f32.mrf.mxu1  ;;  %v3300_v52 = vadd.f32 %v9209_v33, %v9397_v58 }
 0x465   : > { %v2437_v40 = vadd.f32 %v2436_v4, %v2348_v20 }
 0x466   : > { %v3385_v60 = vpop.f32.mrf.mxu3 }
 0x467   : > { %v2506_v19 = vmax.f32 %v2437_v40, 0.0  ;;  %v9472_v54 = vadd.f32 %v3385_v60, %v3297_v17 }
 0x469   : > { %v9474_v31 = vpack.c.bf16 %v2506_v19, %v2504_v46  ;;  %v3302_v46 = vadd.f32 %v9220_v42, %v9397_v58 }
 0x46a   : > { %v9476_v56 = vpop.f32.mrf.mxu2  ;;  %v2350_v57 = vpop.f32.mrf.mxu0 }
 0x46b   : > { %11409 = vst [vmem:[#allocation10_spill] sm:$0xff] %v9476_v56  ;;  %v2439_v24 = vpop.f32.mrf.mxu1  ;;  %3427 = vmatmul.bf16.gmra.mxu3 %v9474_v31  ;;  %v2351_v20 = vadd.f32 %v2350_v57, %v9047_v18 }
 0x46d   : > { %3481 = vmatmul.bf16.gmra.mxu0 %v11410_v48  ;;  %v2440_v47 = vadd.f32 %v2439_v24, %v2351_v20  ;;  %v3305_v24 = vadd.f32 %v9230_v30, %v9397_v58 }
 0x46e   : > { %3570 = vmatmul.bf16.gmra.mxu1 %v9241_v32  ;;  %v3388_v28 = vpop.f32.mrf.mxu3 }
 0x46f   : > { %3659 = vmatmul.bf16.gmra.mxu2 %v11410_v48  ;;  %v9485_v4 = vadd.f32 %v3388_v28, %v3300_v52  ;;  %v2508_v48 = vmax.f32 %v2440_v47, 0.0  ;;  %v11413_v28 = vld [vmem:[#allocation89_spill] sm:$0xff]  ;;  %v6399_v47 = vld [vmem:[%s11054_s3 + $0x1c8] sm:$0xf] }
 0x472   : > { %v9489_v17 = vpop.f32.mrf.mxu2  ;;  %v2352_v40 = vpop.f32.mrf.mxu0 }
 0x473   : > { %v2353_v60 = vadd.f32 %v2352_v40, %v2264_v15  ;;  %v2441_v33 = vpop.f32.mrf.mxu1 }
 0x475   : > { %v2442_v19 = vadd.f32 %v2441_v33, %v2353_v60  ;;  %v6773_v60 = vld [vmem:[%s11054_s3 + $0x1e0] sm:$0xf0] }
 0x476   : > { %v3390_v8 = vpop.f32.mrf.mxu3 }
 0x477   : > { %v2510_v32 = vmax.f32 %v2442_v19, 0.0  ;;  %v9493_v56 = vadd.f32 %v3390_v8, %v3302_v46  ;;  %v6400_v46 = vor.u32 %v6773_v60, %v6399_v47 }
 0x479   : > { %v9495_v18 = vpack.c.bf16 %v2510_v32, %v2508_v48  ;;  %v2269_v48 = vadd.f32 %v9073_v61, %v9071_v11  ;;  %3727 = vmatpush.bf16.msra.mxu3 %v6400_v46 }
 0x47a   : > { %v9497_v57 = vpop.f32.mrf.mxu2  ;;  %v2355_v23 = vpop.f32.mrf.mxu0 }
 0x47b   : > { %11412 = vst [vmem:[#allocation11_spill] sm:$0xff] %v9495_v18  ;;  %v2444_v52 = vpop.f32.mrf.mxu1  ;;  %3432 = vmatmul.bf16.gmra.mxu3 %v9495_v18  ;;  %v2356_v8 = vadd.f32 %v2355_v23, %v9067_v0  ;;  %v3307_v0 = vadd.f32 %v9243_v49, %v9397_v58 }
 0x47d   : > { %3486 = vmatmul.bf16.gmra.mxu0 %v11413_v28  ;;  %v2445_v15 = vadd.f32 %v2444_v52, %v2356_v8 }
 0x47e   : > { %3575 = vmatmul.bf16.gmra.mxu1 %v9333_v34  ;;  %v3393_v42 = vpop.f32.mrf.mxu3 }
 0x47f   : > { %3664 = vmatmul.bf16.gmra.mxu2 %v11413_v28  ;;  %v9506_v32 = vadd.f32 %v3393_v42, %v3305_v24  ;;  %v2512_v61 = vmax.f32 %v2445_v15, 0.0 }
 0x482   : > { %v9510_v20 = vpop.f32.mrf.mxu2  ;;  %v2357_v39 = vpop.f32.mrf.mxu0 }
 0x483   : > { %v2358_v40 = vadd.f32 %v2357_v39, %v2269_v48  ;;  %v2446_v30 = vpop.f32.mrf.mxu1  ;;  %v3310_v48 = vadd.f32 %v9295_v63, %v9397_v58 }
 0x485   : > { %v2447_v33 = vadd.f32 %v2446_v30, %v2358_v40  ;;  %v2274_v40 = vadd.f32 %v9087_v36, %v9085_v5 }
 0x486   : > { %v3395_v11 = vpop.f32.mrf.mxu3 }
 0x487   : > { %v2514_v19 = vmax.f32 %v2447_v33, 0.0  ;;  %v9520_v23 = vadd.f32 %v3395_v11, %v3307_v0  ;;  %v3312_v33 = vadd.f32 %v9335_v43, %v9397_v58 }
 0x489   : > { %v9522_v52 = vpack.c.bf16 %v2514_v19, %v2512_v61 }
 0x48a   : > { %v9524_v24 = vpop.f32.mrf.mxu2  ;;  %v2360_v42 = vpop.f32.mrf.mxu0 }
 0x48b   : > { %v2449_v8 = vpop.f32.mrf.mxu1  ;;  %3437 = vmatmul.bf16.gmra.mxu3 %v9522_v52  ;;  %v2361_v39 = vadd.f32 %v2360_v42, %v9081_v45 }
 0x48d   : > { %3491 = vmatmul.bf16.gmra.mxu0 %v8633_v38  ;;  %v2450_v60 = vadd.f32 %v2449_v8, %v2361_v39  ;;  %v3315_v8 = vadd.f32 %v9354_v25, %v9397_v58 }
 0x48e   : > { %3580 = vmatmul.bf16.gmra.mxu1 %v9356_v53  ;;  %v3398_v49 = vpop.f32.mrf.mxu3 }
 0x48f   : > { %3669 = vmatmul.bf16.gmra.mxu2 %v8633_v38  ;;  %v9533_v15 = vadd.f32 %v3398_v49, %v3310_v48  ;;  %v2516_v61 = vmax.f32 %v2450_v60, 0.0  ;;  %v11415_v48 = vld [vmem:[#allocation93_spill] sm:$0xff] }
 0x492   : > { %v9537_v30 = vpop.f32.mrf.mxu2  ;;  %v2362_v47 = vpop.f32.mrf.mxu0 }
 0x493   : > { %v2363_v0 = vadd.f32 %v2362_v47, %v2274_v40  ;;  %v2451_v63 = vpop.f32.mrf.mxu1  ;;  %v11416_v40 = vld [vmem:[#allocation8_spill] sm:$0xff] }
 0x494   : > { %v2279_v47 = vadd.f32 %v9389_v37, %v11416_v40  ;;  %v6767_v37 = vld [vmem:[%s11054_s3 + $0x1b0] sm:$0xf0] }
 0x495   : > { %v2452_v46 = vadd.f32 %v2451_v63, %v2363_v0 }
 0x496   : > { %v3400_v11 = vpop.f32.mrf.mxu3 }
 0x497   : > { %v2518_v19 = vmax.f32 %v2452_v46, 0.0  ;;  %v9541_v38 = vadd.f32 %v3400_v11, %v3312_v33  ;;  %v3317_v46 = vadd.f32 %v9358_v21, %v9397_v58  ;;  %v4521_v21 = vmul.f32 0.5, %v9410_v9 }
 0x499   : > { %v9543_v45 = vpack.c.bf16 %v2518_v19, %v2516_v61  ;;  %v9563_v19 = vperm.slane %v9394_v62, 1  ;;  %6835 = vtanh.f32 %v4521_v21  ;;  %v6597_v21 = vld [vmem:[%s11054_s3 + $0x36c] sm:$0xf0] }
 0x49a   : > { %v9545_v42 = vpop.f32.mrf.mxu2  ;;  %v2365_v5 = vpop.f32.mrf.mxu0 }
 0x49b   : > { %11414 = vst [vmem:[#allocation57_spill] sm:$0xff] %v9543_v45  ;;  %v2454_v36 = vpop.f32.mrf.mxu1  ;;  %3442 = vmatmul.bf16.gmra.mxu3 %v9543_v45  ;;  %v2366_v49 = vadd.f32 %v2365_v5, %v9119_v26  ;;  %v6379_v26 = vld [vmem:[%s11054_s3 + $0x198] sm:$0xf] }
 0x49d   : > { %3496 = vmatmul.bf16.gmra.mxu0 %v11415_v48  ;;  %v2455_v63 = vadd.f32 %v2454_v36, %v2366_v49 }
 0x49e   : > { %3585 = vmatmul.bf16.gmra.mxu1 %v9376_v27  ;;  %v3403_v43 = vpop.f32.mrf.mxu3 }
 0x49f   : > { %3674 = vmatmul.bf16.gmra.mxu2 %v11415_v48  ;;  %v9554_v39 = vadd.f32 %v3403_v43, %v3315_v8  ;;  %v2520_v5 = vmax.f32 %v2455_v63, 0.0  ;;  %v6380_v43 = vor.u32 %v6767_v37, %v6379_v26  ;;  %v3320_v63 = vadd.f32 %v9374_v55, %v9397_v58  ;;  %v6763_v55 = vld [vmem:[%s11054_s3 + $0x194] sm:$0xf] }
 0x4a1   : > { %3987 = vmatpush.bf16.msrb.mxu2 %v6380_v43 }
 0x4a2   : > { %v9558_v60 = vpop.f32.mrf.mxu2  ;;  %v2367_v0 = vpop.f32.mrf.mxu0 }
 0x4a3   : > { %v2368_v33 = vadd.f32 %v2367_v0, %v2279_v47  ;;  %v2456_v25 = vpop.f32.mrf.mxu1 }
 0x4a5   : > { %v2457_v11 = vadd.f32 %v2456_v25, %v2368_v33  ;;  %v11417_v25 = vld [vmem:[#allocation94_spill] sm:$0xff] }
 0x4a6   : > { %v3405_v61 = vpop.f32.mrf.mxu3 }
 0x4a7   : > { %v2522_v36 = vmax.f32 %v2457_v11, 0.0  ;;  %v9571_v8 = vadd.f32 %v3405_v61, %v3317_v46  ;;  %v6603_v46 = vld [vmem:[%s11054_s3 + $0x358] sm:$0xf]  ;;  %v6823_v11 = vld [vmem:[%s11054_s3 + $0x370] sm:$0xf0] }
 0x4a8   : > { %v6604_v37 = vor.u32 %v6823_v11, %v6603_v46  ;;  %v3322_v11 = vadd.f32 %v9378_v29, %v9397_v58 }
 0x4a9   : > { %v9574_v49 = vpack.c.bf16 %v2522_v36, %v2520_v5  ;;  %v6373_v5 = vld [vmem:[%s11054_s3 + $0x1ac] sm:$0xf0]  ;;  %v6819_v36 = vld [vmem:[%s11054_s3 + $0x354] sm:$0xf] }
 0x4aa   : > { %v9576_v40 = vpop.f32.mrf.mxu2  ;;  %v3462_v62 = vpop.f32.mrf.mxu0  ;;  %v6376_v43 = vor.u32 %v6763_v55, %v6373_v5  ;;  %4076 = vmatpush.bf16.msrb.mxu3 %v6604_v37 }
 0x4ab   : > { %v3463_v47 = vadd.f32 %v3462_v62, %v9563_v19  ;;  %v3551_v0 = vpop.f32.mrf.mxu1  ;;  %3447 = vmatmul.bf16.gmra.mxu3 %v9574_v49  ;;  %v4528_v62 = vmul.f32 0.5, %v9424_v10 }
 0x4ac   : > { %3809 = vmatpush.bf16.msrb.mxu0 %v6376_v43 }
 0x4ad   : > { %v3552_v33 = vadd.f32 %v3551_v0, %v3463_v47  ;;  %3501 = vmatmul.bf16.gmra.mxu0 %v11417_v25  ;;  %v6600_v0 = vor.u32 %v6819_v36, %v6597_v21  ;;  %v4535_v36 = vmul.f32 0.5, %v9437_v14  ;;  %v3325_v14 = vadd.f32 %v9387_v41, %v9397_v58 }
 0x4ae   : > { %3590 = vmatmul.bf16.gmra.mxu1 %v9399_v44  ;;  %v3408_v9 = vpop.f32.mrf.mxu3 }
 0x4af   : > { %3679 = vmatmul.bf16.gmra.mxu2 %v11417_v25  ;;  %v4522_v61 = vmul.f32 0.5, %v3552_v33  ;;  %v9594_v26 = vadd.f32 %v3408_v9, %v3320_v63  ;;  %v6836_v33 = vpop.eup %6835  ;;  %3898 = vmatpush.bf16.msrb.mxu1 %v6600_v0 }
 0x4b0   : > { %v4969_v5 = vadd.f32 1.0, %v6836_v33 }
 0x4b1   : > { %6837 = vtanh.f32 %v4522_v61 }
 0x4b2   : > { %v9606_v47 = vpop.f32.mrf.mxu2  ;;  %v3464_v63 = vpop.f32.mrf.mxu0  ;;  %6839 = vtanh.f32 %v4528_v62  ;;  %v5193_v21 = vmul.f32 0.5, %v4969_v5 }
 0x4b3   : > { %v3465_v9 = vadd.f32 %v3464_v63, %v9563_v19  ;;  %v3553_v46 = vpop.f32.mrf.mxu1 }
 0x4b5   : > { %v3554_v55 = vadd.f32 %v3553_v46, %v3465_v9  ;;  %v11418_v9 = vld [vmem:[#allocation95_spill] sm:$0xff] }
 0x4b6   : > { %v3410_v10 = vpop.f32.mrf.mxu3 }
 0x4b7   : > { %v6838_v61 = vpop.eup %6837  ;;  %v4529_v25 = vmul.f32 0.5, %v3554_v55  ;;  %v9612_v48 = vadd.f32 %v3410_v10, %v3322_v11 }
 0x4b8   : > { %v4970_v37 = vadd.f32 1.0, %v6838_v61  ;;  %v6840_v28 = vpop.eup %6839 }
 0x4b9   : > { %6841 = vtanh.f32 %v4529_v25  ;;  %v4976_v46 = vadd.f32 1.0, %v6840_v28 }
 0x4ba   : > { %v9615_v43 = vpop.f32.mrf.mxu2  ;;  %v5194_v0 = vmul.f32 0.5, %v4970_v37  ;;  %v3467_v63 = vpop.f32.mrf.mxu0  ;;  %6843 = vtanh.f32 %v4535_v36  ;;  %v4542_v37 = vmul.f32 0.5, %v9445_v2  ;;  %v6351_v2 = vld [vmem:[%s11054_s3 + $0x160] sm:$0xf] }
 0x4bb   : > { %v3468_v29 = vadd.f32 %v3467_v63, %v9563_v19  ;;  %v3556_v62 = vpop.f32.mrf.mxu1  ;;  %3728 = vmatmul.bf16.vlgmr.msra.gmra.mxu3 %v9131_v51  ;;  %v5200_v36 = vmul.f32 0.5, %v4976_v46  ;;  %v6760_v46 = vld [vmem:[%s11054_s3 + $0x178] sm:$0xf0] }
 0x4bc   : > { %v5417_v33 = vpack.c.bf16 %v5194_v0, %v5193_v21 }
 0x4bd   : > { %v3557_v25 = vadd.f32 %v3556_v62, %v3468_v29  ;;  %3506 = vmatmul.bf16.gmra.mxu0 %v11418_v9 }
 0x4be   : > { %5545 = vst [vmem:[%s9620_s22] sm:$0xff] %v5417_v33  ;;  %3595 = vmatmul.bf16.gmra.mxu1 %v9426_v7  ;;  %v3413_v11 = vpop.f32.mrf.mxu3  ;;  %v3327_v33 = vadd.f32 %v9401_v12, %v9397_v58  ;;  %v4549_v12 = vmul.f32 0.5, %v9458_v1 }
 0x4bf   : > { %3684 = vmatmul.bf16.gmra.mxu2 %v11418_v9  ;;  %v6842_v55 = vpop.eup %6841  ;;  %v4536_v5 = vmul.f32 0.5, %v3557_v25  ;;  %v9630_v10 = vadd.f32 %v3413_v11, %v3325_v14 }
 0x4c0   : > { %v4977_v61 = vadd.f32 1.0, %v6842_v55  ;;  %v6844_v0 = vpop.eup %6843 }
 0x4c1   : > { %6845 = vtanh.f32 %v4536_v5  ;;  %v4983_v25 = vadd.f32 1.0, %v6844_v0 }
 0x4c2   : > { %v9633_v41 = vpop.f32.mrf.mxu2  ;;  %v5201_v21 = vmul.f32 0.5, %v4977_v61  ;;  %v3469_v28 = vpop.f32.mrf.mxu0  ;;  %6847 = vtanh.f32 %v4542_v37 }
 0x4c3   : > { %v3470_v63 = vadd.f32 %v3469_v28, %v9563_v19  ;;  %v3558_v29 = vpop.f32.mrf.mxu1  ;;  %v5207_v28 = vmul.f32 0.5, %v4983_v25 }
 0x4c4   : > { %v5421_v62 = vpack.c.bf16 %v5201_v21, %v5200_v36  ;;  %v6352_v36 = vor.u32 %v6760_v46, %v6351_v2  ;;  %v6575_v46 = vld [vmem:[%s11054_s3 + $0x320] sm:$0xf] }
 0x4c5   : > { %v3559_v14 = vadd.f32 %v3558_v29, %v3470_v63 }
 0x4c6   : > { %5550 = vst [vmem:[%s9620_s22 + $0x1c] sm:$0xff] %v5421_v62  ;;  %v3415_v11 = vpop.f32.mrf.mxu3  ;;  %3988 = vmatpush.bf16.msrb.mxu2 %v6352_v36 }
 0x4c7   : > { %v6846_v55 = vpop.eup %6845  ;;  %v4543_v5 = vmul.f32 0.5, %v3559_v14  ;;  %v9645_v61 = vadd.f32 %v3415_v11, %v3327_v33  ;;  %v3330_v14 = vadd.f32 %v9414_v3, %v9397_v58  ;;  %v11419_v11 = vld [vmem:[#allocation2_spill] sm:$0xff] }
 0x4c8   : > { %v4984_v21 = vadd.f32 1.0, %v6846_v55  ;;  %v6848_v29 = vpop.eup %6847  ;;  %v6816_v55 = vld [vmem:[%s11054_s3 + $0x338] sm:$0xf0] }
 0x4c9   : > { %6849 = vtanh.f32 %v4543_v5  ;;  %v4990_v2 = vadd.f32 1.0, %v6848_v29  ;;  %v6576_v36 = vor.u32 %v6816_v55, %v6575_v46  ;;  %v6569_v29 = vld [vmem:[%s11054_s3 + $0x334] sm:$0xf0] }
 0x4ca   : > { %v9648_v37 = vpop.f32.mrf.mxu2  ;;  %v5208_v0 = vmul.f32 0.5, %v4984_v21  ;;  %v3472_v63 = vpop.f32.mrf.mxu0  ;;  %6851 = vtanh.f32 %v4549_v12  ;;  %v6756_v21 = vld [vmem:[%s11054_s3 + $0x15c] sm:$0xf]  ;;  %v6345_v12 = vld [vmem:[%s11054_s3 + $0x174] sm:$0xf0] }
 0x4cb   : > { %v3473_v62 = vadd.f32 %v3472_v63, %v9563_v19  ;;  %v3561_v9 = vpop.f32.mrf.mxu1  ;;  %3733 = vmatmul.bf16.gmra.mxu3 %v9168_v59  ;;  %v6812_v63 = vld [vmem:[%s11054_s3 + $0x31c] sm:$0xf] }
 0x4cc   : > { %v5425_v33 = vpack.c.bf16 %v5208_v0, %v5207_v28  ;;  %v6348_v0 = vor.u32 %v6756_v21, %v6345_v12  ;;  %4077 = vmatpush.bf16.msrb.mxu3 %v6576_v36 }
 0x4cd   : > { %v3562_v1 = vadd.f32 %v3561_v9, %v3473_v62  ;;  %3511 = vmatmul.bf16.gmra.mxu0 %v11419_v11  ;;  %v4556_v62 = vmul.f32 0.5, %v9472_v54 }
 0x4ce   : > { %5554 = vst [vmem:[%s9620_s22 + $0x38] sm:$0xff] %v5425_v33  ;;  %3600 = vmatmul.bf16.gmra.mxu1 %v9447_v35  ;;  %v3418_v25 = vpop.f32.mrf.mxu3  ;;  %3810 = vmatpush.bf16.msrb.mxu0 %v6348_v0  ;;  %v4563_v0 = vmul.f32 0.5, %v9485_v4  ;;  %v11422_v4 = vld [vmem:[#allocation46_spill] sm:$0xff] }
 0x4cf   : > { %3689 = vmatmul.bf16.gmra.mxu2 %v11419_v11  ;;  %v6850_v3 = vpop.eup %6849  ;;  %v4550_v5 = vmul.f32 0.5, %v3562_v1  ;;  %v9664_v9 = vadd.f32 %v3418_v25, %v3330_v14  ;;  %v6572_v14 = vor.u32 %v6812_v63, %v6569_v29  ;;  %v5214_v1 = vmul.f32 0.5, %v4990_v2 }
 0x4d0   : > { %v4991_v28 = vadd.f32 1.0, %v6850_v3  ;;  %v6852_v55 = vpop.eup %6851  ;;  %v3332_v11 = vadd.f32 %v9428_v13, %v9397_v58 }
 0x4d1   : > { %6853 = vtanh.f32 %v4550_v5  ;;  %3899 = vmatpush.bf16.msrb.mxu1 %v6572_v14  ;;  %v4997_v5 = vadd.f32 1.0, %v6852_v55  ;;  %v11421_v55 = vld [vmem:[#allocation53_spill] sm:$0xff] }
 0x4d2   : > { %v9679_v33 = vpop.f32.mrf.mxu2  ;;  %v5215_v25 = vmul.f32 0.5, %v4991_v28  ;;  %v3474_v46 = vpop.f32.mrf.mxu0  ;;  %6855 = vtanh.f32 %v4556_v62 }
 0x4d3   : > { %11420 = vst [vmem:[#allocation64_spill] sm:$0xff] %v9679_v33  ;;  %v3475_v3 = vadd.f32 %v3474_v46, %v9563_v19  ;;  %v3563_v21 = vpop.f32.mrf.mxu1  ;;  %v5221_v14 = vmul.f32 0.5, %v4997_v5 }
 0x4d4   : > { %v5429_v12 = vpack.c.bf16 %v5215_v25, %v5214_v1 }
 0x4d5   : > { %v3564_v54 = vadd.f32 %v3563_v21, %v3475_v3 }
 0x4d6   : > { %5558 = vst [vmem:[%s9620_s22 + $0x54] sm:$0xff] %v5429_v12  ;;  %v3420_v33 = vpop.f32.mrf.mxu3 }
 0x4d7   : > { %v6854_v36 = vpop.eup %6853  ;;  %v4557_v63 = vmul.f32 0.5, %v3564_v54  ;;  %v9685_v2 = vadd.f32 %v3420_v33, %v3332_v11  ;;  %v3335_v11 = vadd.f32 %v9441_v6, %v9397_v58 }
 0x4d8   : > { %v4998_v28 = vadd.f32 1.0, %v6854_v36  ;;  %v6856_v13 = vpop.eup %6855 }
 0x4d9   : > { %6857 = vtanh.f32 %v4557_v63  ;;  %v5004_v21 = vadd.f32 1.0, %v6856_v13 }
 0x4da   : > { %v9688_v29 = vpop.f32.mrf.mxu2  ;;  %v5222_v1 = vmul.f32 0.5, %v4998_v28  ;;  %v3477_v25 = vpop.f32.mrf.mxu0  ;;  %6859 = vtanh.f32 %v4563_v0  ;;  %v4570_v28 = vmul.f32 0.5, %v9493_v56  ;;  %v6323_v56 = vld [vmem:[%s11054_s3 + $0x128] sm:$0xf] }
 0x4db   : > { %v3478_v62 = vadd.f32 %v3477_v25, %v9563_v19  ;;  %v3566_v46 = vpop.f32.mrf.mxu1  ;;  %3738 = vmatmul.bf16.gmra.mxu3 %v11421_v55  ;;  %v5228_v0 = vmul.f32 0.5, %v5004_v21  ;;  %v6753_v21 = vld [vmem:[%s11054_s3 + $0x140] sm:$0xf0] }
 0x4dc   : > { %v5433_v3 = vpack.c.bf16 %v5222_v1, %v5221_v14 }
 0x4dd   : > { %v3567_v33 = vadd.f32 %v3566_v46, %v3478_v62  ;;  %3516 = vmatmul.bf16.gmra.mxu0 %v11422_v4 }
 0x4de   : > { %5562 = vst [vmem:[%s9620_s22 + $0x70] sm:$0xff] %v5433_v3  ;;  %3605 = vmatmul.bf16.gmra.mxu1 %v9474_v31  ;;  %v3423_v12 = vpop.f32.mrf.mxu3  ;;  %v3337_v3 = vadd.f32 %v9449_v16, %v9397_v58  ;;  %v4577_v16 = vmul.f32 0.5, %v9506_v32 }
 0x4df   : > { %3694 = vmatmul.bf16.gmra.mxu2 %v11422_v4  ;;  %v6858_v54 = vpop.eup %6857  ;;  %v4564_v5 = vmul.f32 0.5, %v3567_v33  ;;  %v9698_v36 = vadd.f32 %v3423_v12, %v3335_v11 }
 0x4e0   : > { %v5005_v63 = vadd.f32 1.0, %v6858_v54  ;;  %v6860_v25 = vpop.eup %6859 }
 0x4e1   : > { %6861 = vtanh.f32 %v4564_v5  ;;  %v5011_v33 = vadd.f32 1.0, %v6860_v25 }
 0x4e2   : > { %v9701_v6 = vpop.f32.mrf.mxu2  ;;  %v5229_v14 = vmul.f32 0.5, %v5005_v63  ;;  %v3479_v1 = vpop.f32.mrf.mxu0  ;;  %6863 = vtanh.f32 %v4570_v28 }
 0x4e3   : > { %v3480_v13 = vadd.f32 %v3479_v1, %v9563_v19  ;;  %v3568_v62 = vpop.f32.mrf.mxu1  ;;  %v5235_v1 = vmul.f32 0.5, %v5011_v33 }
 0x4e4   : > { %v5437_v46 = vpack.c.bf16 %v5229_v14, %v5228_v0  ;;  %v6324_v0 = vor.u32 %v6753_v21, %v6323_v56  ;;  %v6547_v21 = vld [vmem:[%s11054_s3 + $0x2e8] sm:$0xf] }
 0x4e5   : > { %v3569_v11 = vadd.f32 %v3568_v62, %v3480_v13 }
 0x4e6   : > { %5566 = vst [vmem:[%s9620_s22 + $0x8c] sm:$0xff] %v5437_v46  ;;  %v3425_v12 = vpop.f32.mrf.mxu3  ;;  %3989 = vmatpush.bf16.msrb.mxu2 %v6324_v0 }
 0x4e7   : > { %v6862_v54 = vpop.eup %6861  ;;  %v4571_v5 = vmul.f32 0.5, %v3569_v11  ;;  %v9713_v63 = vadd.f32 %v3425_v12, %v3337_v3  ;;  %v3340_v11 = vadd.f32 %v9462_v22, %v9397_v58  ;;  %v11423_v12 = vld [vmem:[#allocation52_spill] sm:$0xff] }
 0x4e8   : > { %v5012_v14 = vadd.f32 1.0, %v6862_v54  ;;  %v6864_v62 = vpop.eup %6863  ;;  %v6809_v54 = vld [vmem:[%s11054_s3 + $0x300] sm:$0xf0] }
 0x4e9   : > { %6865 = vtanh.f32 %v4571_v5  ;;  %v5018_v56 = vadd.f32 1.0, %v6864_v62  ;;  %v6548_v0 = vor.u32 %v6809_v54, %v6547_v21  ;;  %v6541_v62 = vld [vmem:[%s11054_s3 + $0x2fc] sm:$0xf0] }
 0x4ea   : > { %v9716_v28 = vpop.f32.mrf.mxu2  ;;  %v5236_v25 = vmul.f32 0.5, %v5012_v14  ;;  %v3482_v13 = vpop.f32.mrf.mxu0  ;;  %6867 = vtanh.f32 %v4577_v16  ;;  %v6749_v14 = vld [vmem:[%s11054_s3 + $0x124] sm:$0xf]  ;;  %v6317_v16 = vld [vmem:[%s11054_s3 + $0x13c] sm:$0xf0] }
 0x4eb   : > { %v3483_v46 = vadd.f32 %v3482_v13, %v9563_v19  ;;  %v3571_v4 = vpop.f32.mrf.mxu1  ;;  %3743 = vmatmul.bf16.gmra.mxu3 %v9218_v50  ;;  %v6805_v13 = vld [vmem:[%s11054_s3 + $0x2e4] sm:$0xf] }
 0x4ec   : > { %v5441_v3 = vpack.c.bf16 %v5236_v25, %v5235_v1  ;;  %v6320_v25 = vor.u32 %v6749_v14, %v6317_v16  ;;  %4078 = vmatpush.bf16.msrb.mxu3 %v6548_v0 }
 0x4ed   : > { %v3572_v32 = vadd.f32 %v3571_v4, %v3483_v46  ;;  %3521 = vmatmul.bf16.gmra.mxu0 %v11423_v12  ;;  %v4584_v46 = vmul.f32 0.5, %v9520_v23 }
 0x4ee   : > { %5570 = vst [vmem:[%s9620_s22 + $0xa8] sm:$0xff] %v5441_v3  ;;  %3610 = vmatmul.bf16.gmra.mxu1 %v9495_v18  ;;  %v3428_v33 = vpop.f32.mrf.mxu3  ;;  %3811 = vmatpush.bf16.msrb.mxu0 %v6320_v25  ;;  %v6295_v25 = vld [vmem:[%s11054_s3 + $0xf0] sm:$0xf] }
 0x4ef   : > { %3699 = vmatmul.bf16.gmra.mxu2 %v11423_v12  ;;  %v6866_v22 = vpop.eup %6865  ;;  %v4578_v5 = vmul.f32 0.5, %v3572_v32  ;;  %v9732_v4 = vadd.f32 %v3428_v33, %v3340_v11  ;;  %v6544_v11 = vor.u32 %v6805_v13, %v6541_v62  ;;  %v5242_v32 = vmul.f32 0.5, %v5018_v56  ;;  %v11425_v12 = vld [vmem:[#allocation10_spill] sm:$0xff]  ;;  %v6746_v62 = vld [vmem:[%s11054_s3 + $0x108] sm:$0xf0] }
 0x4f0   : > { %v5019_v1 = vadd.f32 1.0, %v6866_v22  ;;  %v6868_v54 = vpop.eup %6867  ;;  %v3342_v18 = vadd.f32 %v11425_v12, %v9397_v58  ;;  %v4591_v12 = vmul.f32 0.5, %v9533_v15  ;;  %v6798_v15 = vld [vmem:[%s11054_s3 + $0x2ac] sm:$0xf] }
 0x4f1   : > { %6869 = vtanh.f32 %v4578_v5  ;;  %3900 = vmatpush.bf16.msrb.mxu1 %v6544_v11  ;;  %v5025_v5 = vadd.f32 1.0, %v6868_v54  ;;  %v6296_v11 = vor.u32 %v6746_v62, %v6295_v25  ;;  %v6261_v25 = vld [vmem:[%s11054_s3 + $0xcc] sm:$0xf0]  ;;  %v3345_v62 = vadd.f32 %v9489_v17, %v9397_v58 }
 0x4f2   : > { %v9747_v3 = vpop.f32.mrf.mxu2  ;;  %v5243_v33 = vmul.f32 0.5, %v5019_v1  ;;  %v3484_v21 = vpop.f32.mrf.mxu0  ;;  %6871 = vtanh.f32 %v4584_v46 }
 0x4f3   : > { %11424 = vst [vmem:[#allocation12_spill] sm:$0xff] %v9747_v3  ;;  %v3485_v22 = vadd.f32 %v3484_v21, %v9563_v19  ;;  %v3573_v14 = vpop.f32.mrf.mxu1  ;;  %3990 = vmatpush.bf16.msrb.mxu2 %v6296_v11 }
 0x4f4   : > { %v5445_v16 = vpack.c.bf16 %v5243_v33, %v5242_v32  ;;  %v5249_v32 = vmul.f32 0.5, %v5025_v5 }
 0x4f5   : > { %v3574_v23 = vadd.f32 %v3573_v14, %v3485_v22  ;;  %v6513_v22 = vld [vmem:[%s11054_s3 + $0x2c4] sm:$0xf0] }
 0x4f6   : > { %5574 = vst [vmem:[%s9620_s22 + $0xc4] sm:$0xff] %v5445_v16  ;;  %v3430_v3 = vpop.f32.mrf.mxu3  ;;  %v6516_v5 = vor.u32 %v6798_v15, %v6513_v22  ;;  %v6739_v15 = vld [vmem:[%s11054_s3 + $0xd0] sm:$0xf0] }
 0x4f7   : > { %v6870_v0 = vpop.eup %6869  ;;  %v4585_v13 = vmul.f32 0.5, %v3574_v23  ;;  %v9753_v56 = vadd.f32 %v3430_v3, %v3342_v18  ;;  %v6742_v18 = vld [vmem:[%s11054_s3 + $0xec] sm:$0xf]  ;;  %v6289_v3 = vld [vmem:[%s11054_s3 + $0x104] sm:$0xf0] }
 0x4f8   : > { %v5026_v1 = vadd.f32 1.0, %v6870_v0  ;;  %v6292_v54 = vor.u32 %v6742_v18, %v6289_v3  ;;  %v6872_v14 = vpop.eup %6871  ;;  %v11426_v0 = vld [vmem:[#allocation60_spill] sm:$0xff]  ;;  %v11427_v3 = vld [vmem:[#allocation3_spill] sm:$0xff]  ;;  %3901 = vmatpush.bf16.msrb.mxu1 %v6516_v5 }
 0x4f9   : > { %6873 = vtanh.f32 %v4585_v13 }
 0x4fa   : > { %v9762_v46 = vpop.f32.mrf.mxu2  ;;  %v5250_v33 = vmul.f32 0.5, %v5026_v1  ;;  %v3487_v21 = vpop.f32.mrf.mxu0  ;;  %3812 = vmatpush.bf16.msrb.mxu0 %v6292_v54  ;;  %v6735_v1 = vld [vmem:[%s11054_s3 + $0xb4] sm:$0xf]  ;;  %6875 = vtanh.f32 %v4591_v12  ;;  %v5032_v54 = vadd.f32 1.0, %v6872_v14  ;;  %v6728_v14 = vld [vmem:[%s11054_s3 + $0x7c] sm:$0xf] }
 0x4fb   : > { %v3488_v16 = vadd.f32 %v3487_v21, %v9563_v19  ;;  %v3576_v23 = vpop.f32.mrf.mxu1  ;;  %3748 = vmatmul.bf16.gmra.mxu3 %v11426_v0  ;;  %v6264_v11 = vor.u32 %v6735_v1, %v6261_v25  ;;  %v6267_v21 = vld [vmem:[%s11054_s3 + $0xb8] sm:$0xf]  ;;  %v4598_v25 = vmul.f32 0.5, %v9541_v38  ;;  %v6239_v38 = vld [vmem:[%s11054_s3 + $0x80] sm:$0xf] }
 0x4fc   : > { %v5449_v13 = vpack.c.bf16 %v5250_v33, %v5249_v32  ;;  %v6791_v32 = vld [vmem:[%s11054_s3 + $0x274] sm:$0xf]  ;;  %v6485_v33 = vld [vmem:[%s11054_s3 + $0x28c] sm:$0xf0]  ;;  %v6268_v5 = vor.u32 %v6739_v15, %v6267_v21 }
 0x4fd   : > { %v3577_v18 = vadd.f32 %v3576_v23, %v3488_v16  ;;  %3526 = vmatmul.bf16.gmra.mxu0 %v11427_v3  ;;  %v6488_v12 = vor.u32 %v6791_v32, %v6485_v33  ;;  %v5256_v33 = vmul.f32 0.5, %v5032_v54  ;;  %v6721_v54 = vld [vmem:[%s11054_s3 + $0x44] sm:$0xf] }
 0x4fe   : > { %5578 = vst [vmem:[%s9620_s22 + $0xe0] sm:$0xff] %v5449_v13  ;;  %3615 = vmatmul.bf16.gmra.mxu1 %v9522_v52  ;;  %v3433_v17 = vpop.f32.mrf.mxu3  ;;  %3813 = vmatpush.bf16.msrb.mxu0 %v6264_v11  ;;  %v6233_v13 = vld [vmem:[%s11054_s3 + $0x94] sm:$0xf0] }
 0x4ff   : > { %3704 = vmatmul.bf16.gmra.mxu2 %v11427_v3  ;;  %v6874_v22 = vpop.eup %6873  ;;  %v4592_v16 = vmul.f32 0.5, %v3577_v18  ;;  %v9802_v23 = vadd.f32 %v3433_v17, %v3345_v62  ;;  %3902 = vmatpush.bf16.msrb.mxu1 %v6488_v12  ;;  %v6236_v62 = vor.u32 %v6728_v14, %v6233_v13  ;;  %v6784_v18 = vld [vmem:[%s11054_s3 + $0x23c] sm:$0xf]  ;;  %v6457_v11 = vld [vmem:[%s11054_s3 + $0x254] sm:$0xf0] }
 0x500   : > { %v5033_v1 = vadd.f32 1.0, %v6874_v22  ;;  %3991 = vmatpush.bf16.msrb.mxu2 %v6268_v5  ;;  %v6460_v15 = vor.u32 %v6784_v18, %v6457_v11  ;;  %v6732_v12 = vld [vmem:[%s11054_s3 + $0x98] sm:$0xf0]  ;;  %v6876_v22 = vpop.eup %6875  ;;  %v3347_v18 = vadd.f32 %v9497_v57, %v9397_v58 }
 0x501   : > { %6877 = vtanh.f32 %v4592_v16  ;;  %v6240_v14 = vor.u32 %v6732_v12, %v6239_v38  ;;  %v5039_v38 = vadd.f32 1.0, %v6876_v22  ;;  %v6177_v22 = vld [vmem:[%s11054_s3 + $0x24] sm:$0xf0] }
 0x502   : > { %v9811_v32 = vpop.f32.mrf.mxu2  ;;  %v5257_v21 = vmul.f32 0.5, %v5033_v1  ;;  %v3489_v17 = vpop.f32.mrf.mxu0  ;;  %3814 = vmatpush.bf16.msrb.mxu0 %v6236_v62  ;;  %v6205_v1 = vld [vmem:[%s11054_s3 + $0x5c] sm:$0xf0]  ;;  %6879 = vtanh.f32 %v4598_v25  ;;  %v6777_v62 = vld [vmem:[%s11054_s3 + $0x204] sm:$0xf] }
 0x503   : > { %v3490_v16 = vadd.f32 %v3489_v17, %v9563_v19  ;;  %v3578_v5 = vpop.f32.mrf.mxu1  ;;  %3903 = vmatpush.bf16.msrb.mxu1 %v6460_v15  ;;  %v6208_v17 = vor.u32 %v6721_v54, %v6205_v1  ;;  %v6725_v15 = vld [vmem:[%s11054_s3 + $0x60] sm:$0xf0]  ;;  %v6714_v1 = vld [vmem:[%s11054_s3 + $0xc] sm:$0xf] }
 0x504   : > { %v5453_v13 = vpack.c.bf16 %v5257_v21, %v5256_v33  ;;  %3992 = vmatpush.bf16.msrb.mxu2 %v6240_v14  ;;  %v6429_v33 = vld [vmem:[%s11054_s3 + $0x21c] sm:$0xf0]  ;;  %v6211_v21 = vld [vmem:[%s11054_s3 + $0x48] sm:$0xf] }
 0x505   : > { %v3579_v11 = vadd.f32 %v3578_v5, %v3490_v16  ;;  %v6432_v25 = vor.u32 %v6777_v62, %v6429_v33  ;;  %v6212_v14 = vor.u32 %v6725_v15, %v6211_v21  ;;  %v5263_v33 = vmul.f32 0.5, %v5039_v38 }
 0x506   : > { %5582 = vst [vmem:[%s9620_s22 + $0xfc] sm:$0xff] %v5453_v13  ;;  %v3435_v57 = vpop.f32.mrf.mxu3  ;;  %3815 = vmatpush.bf16.msrb.mxu0 %v6208_v17  ;;  %v4605_v13 = vmul.f32 0.5, %v9554_v39  ;;  %v6401_v17 = vld [vmem:[%s11054_s3 + $0x1e4] sm:$0xf0]  ;;  %v6183_v39 = vld [vmem:[%s11054_s3 + $0x10] sm:$0xf] }
 0x507   : > { %v6878_v12 = vpop.eup %6877  ;;  %v4599_v16 = vmul.f32 0.5, %v3579_v11  ;;  %v9847_v5 = vadd.f32 %v3435_v57, %v3347_v18  ;;  %3904 = vmatpush.bf16.msrb.mxu1 %v6432_v25  ;;  %v6180_v18 = vor.u32 %v6714_v1, %v6177_v22  ;;  %v6770_v11 = vld [vmem:[%s11054_s3 + $0x1cc] sm:$0xf] }
 0x508   : > { %v5040_v54 = vadd.f32 1.0, %v6878_v12  ;;  %3993 = vmatpush.bf16.msrb.mxu2 %v6212_v14  ;;  %v6404_v15 = vor.u32 %v6770_v11, %v6401_v17  ;;  %v6718_v25 = vld [vmem:[%s11054_s3 + $0x28] sm:$0xf0]  ;;  %v6880_v12 = vpop.eup %6879  ;;  %v11428_v11 = vld [vmem:[#allocation4_spill] sm:$0xff] }
 0x509   : > { %6881 = vtanh.f32 %v4599_v16  ;;  %v6184_v1 = vor.u32 %v6718_v25, %v6183_v39  ;;  %v5046_v17 = vadd.f32 1.0, %v6880_v12  ;;  %v4612_v25 = vmul.f32 0.5, %v9571_v8 }
 0x50a   : > { %v9856_v62 = vpop.f32.mrf.mxu2  ;;  %v5264_v21 = vmul.f32 0.5, %v5040_v54  ;;  %v3492_v57 = vpop.f32.mrf.mxu0  ;;  %3816 = vmatpush.bf16.msrb.mxu0 %v6180_v18  ;;  %v3350_v54 = vadd.f32 %v9510_v20, %v9397_v58  ;;  %6883 = vtanh.f32 %v4605_v13  ;;  %v6802_v20 = vld [vmem:[%s11054_s3 + $0x2c8] sm:$0xf0] }
 0x50b   : > { %v3493_v16 = vadd.f32 %v3492_v57, %v9563_v19  ;;  %v3581_v14 = vpop.f32.mrf.mxu1  ;;  %3753 = vmatmul.bf16.gmra.mxu3 %v9333_v34  ;;  %3905 = vmatpush.bf16.msrb.mxu1 %v6404_v15 }
 0x50c   : > { %v5457_v38 = vpack.c.bf16 %v5264_v21, %v5263_v33  ;;  %v6519_v33 = vld [vmem:[%s11054_s3 + $0x2b0] sm:$0xf]  ;;  %3994 = vmatpush.bf16.msrb.mxu2 %v6184_v1 }
 0x50d   : > { %v3582_v22 = vadd.f32 %v3581_v14, %v3493_v16  ;;  %3531 = vmatmul.bf16.gmra.mxu0 %v11428_v11  ;;  %v6520_v15 = vor.u32 %v6802_v20, %v6519_v33  ;;  %v5270_v16 = vmul.f32 0.5, %v5046_v17 }
 0x50e   : > { %5586 = vst [vmem:[%s9620_s22 + $0x118] sm:$0xff] %v5457_v38  ;;  %3620 = vmatmul.bf16.gmra.mxu1 %v9543_v45  ;;  %v3438_v57 = vpop.f32.mrf.mxu3 }
 0x50f   : > { %3709 = vmatmul.bf16.gmra.mxu2 %v11428_v11  ;;  %v6882_v13 = vpop.eup %6881  ;;  %v4606_v18 = vmul.f32 0.5, %v3582_v22  ;;  %v9884_v21 = vadd.f32 %v3438_v57, %v3350_v54  ;;  %4079 = vmatpush.bf16.msrb.mxu3 %v6520_v15  ;;  %v3352_v54 = vadd.f32 %v9524_v24, %v9397_v58 }
 0x510   : > { %v5047_v39 = vadd.f32 1.0, %v6882_v13  ;;  %v6884_v11 = vpop.eup %6883 }
 0x511   : > { %6885 = vtanh.f32 %v4606_v18  ;;  %v5053_v57 = vadd.f32 1.0, %v6884_v11  ;;  %v4619_v18 = vmul.f32 0.5, %v9594_v26  ;;  %v11429_v26 = vld [vmem:[#allocation5_spill] sm:$0xff] }
 0x512   : > { %v9887_v12 = vpop.f32.mrf.mxu2  ;;  %v5271_v14 = vmul.f32 0.5, %v5047_v39  ;;  %v3494_v38 = vpop.f32.mrf.mxu0  ;;  %6887 = vtanh.f32 %v4612_v25  ;;  %v3355_v25 = vadd.f32 %v9537_v30, %v9397_v58 }
 0x513   : > { %v3495_v3 = vadd.f32 %v3494_v38, %v9563_v19  ;;  %v3583_v45 = vpop.f32.mrf.mxu1  ;;  %v5277_v39 = vmul.f32 0.5, %v5053_v57 }
 0x514   : > { %v5461_v22 = vpack.c.bf16 %v5271_v14, %v5270_v16 }
 0x515   : > { %v3584_v1 = vadd.f32 %v3583_v45, %v3495_v3 }
 0x516   : > { %5590 = vst [vmem:[%s9620_s22 + $0x134] sm:$0xff] %v5461_v22  ;;  %v3440_v8 = vpop.f32.mrf.mxu3 }
 0x517   : > { %v6886_v33 = vpop.eup %6885  ;;  %v4613_v20 = vmul.f32 0.5, %v3584_v1  ;;  %v9893_v13 = vadd.f32 %v3440_v8, %v3352_v54 }
 0x518   : > { %v5054_v17 = vadd.f32 1.0, %v6886_v33  ;;  %v6888_v24 = vpop.eup %6887 }
 0x519   : > { %6889 = vtanh.f32 %v4613_v20  ;;  %v5060_v22 = vadd.f32 1.0, %v6888_v24  ;;  %v4626_v20 = vmul.f32 0.5, %v9612_v48 }
 0x51a   : > { %v9896_v15 = vpop.f32.mrf.mxu2  ;;  %v5278_v16 = vmul.f32 0.5, %v5054_v17  ;;  %v3497_v14 = vpop.f32.mrf.mxu0  ;;  %6891 = vtanh.f32 %v4619_v18 }
 0x51b   : > { %v3498_v45 = vadd.f32 %v3497_v14, %v9563_v19  ;;  %v3586_v3 = vpop.f32.mrf.mxu1  ;;  %3758 = vmatmul.bf16.gmra.mxu3 %v9356_v53  ;;  %v5284_v17 = vmul.f32 0.5, %v5060_v22 }
 0x51c   : > { %v5465_v11 = vpack.c.bf16 %v5278_v16, %v5277_v39 }
 0x51d   : > { %v3587_v38 = vadd.f32 %v3586_v3, %v3498_v45  ;;  %3536 = vmatmul.bf16.gmra.mxu0 %v11429_v26  ;;  %v3357_v3 = vadd.f32 %v9545_v42, %v9397_v58 }
 0x51e   : > { %5594 = vst [vmem:[%s9620_s22 + $0x150] sm:$0xff] %v5465_v11  ;;  %3625 = vmatmul.bf16.gmra.mxu1 %v9574_v49  ;;  %v3443_v54 = vpop.f32.mrf.mxu3 }
 0x51f   : > { %3714 = vmatmul.bf16.gmra.mxu2 %v11429_v26  ;;  %v6890_v1 = vpop.eup %6889  ;;  %v4620_v57 = vmul.f32 0.5, %v3587_v38  ;;  %v9906_v8 = vadd.f32 %v3443_v54, %v3355_v25 }
 0x520   : > { %v5061_v33 = vadd.f32 1.0, %v6890_v1  ;;  %v6892_v16 = vpop.eup %6891 }
 0x521   : > { %6893 = vtanh.f32 %v4620_v57  ;;  %v5067_v25 = vadd.f32 1.0, %v6892_v16  ;;  %v4633_v57 = vmul.f32 0.5, %v9630_v10  ;;  %v11430_v10 = vld [vmem:[#allocation74_spill] sm:$0xff] }
 0x522   : > { %v9909_v30 = vpop.f32.mrf.mxu2  ;;  %v5285_v18 = vmul.f32 0.5, %v5061_v33  ;;  %v3499_v39 = vpop.f32.mrf.mxu0  ;;  %6895 = vtanh.f32 %v4626_v20 }
 0x523   : > { %v3500_v14 = vadd.f32 %v3499_v39, %v9563_v19  ;;  %v3588_v24 = vpop.f32.mrf.mxu1 }
 0x524   : > { %v5469_v45 = vpack.c.bf16 %v5285_v18, %v5284_v17  ;;  %v5291_v17 = vmul.f32 0.5, %v5067_v25  ;;  %v6491_v25 = vld [vmem:[%s11054_s3 + $0x278] sm:$0xf] }
 0x525   : > { %v3589_v11 = vadd.f32 %v3588_v24, %v3500_v14  ;;  %v3360_v24 = vadd.f32 %v9558_v60, %v9397_v58 }
 0x526   : > { %5598 = vst [vmem:[%s9620_s22 + $0x16c] sm:$0xff] %v5469_v45  ;;  %v3445_v38 = vpop.f32.mrf.mxu3 }
 0x527   : > { %v6894_v48 = vpop.eup %6893  ;;  %v4627_v54 = vmul.f32 0.5, %v3589_v11  ;;  %v9915_v1 = vadd.f32 %v3445_v38, %v3357_v3  ;;  %v6795_v38 = vld [vmem:[%s11054_s3 + $0x290] sm:$0xf0] }
 0x528   : > { %v5068_v22 = vadd.f32 1.0, %v6894_v48  ;;  %v6896_v42 = vpop.eup %6895 }
 0x529   : > { %6897 = vtanh.f32 %v4627_v54  ;;  %v5074_v3 = vadd.f32 1.0, %v6896_v42 }
 0x52a   : > { %v9918_v33 = vpop.f32.mrf.mxu2  ;;  %v5292_v18 = vmul.f32 0.5, %v5068_v22  ;;  %v3502_v39 = vpop.f32.mrf.mxu0  ;;  %6899 = vtanh.f32 %v4633_v57  ;;  %v6492_v22 = vor.u32 %v6795_v38, %v6491_v25 }
 0x52b   : > { %v3503_v20 = vadd.f32 %v3502_v39, %v9563_v19  ;;  %v3591_v16 = vpop.f32.mrf.mxu1  ;;  %3763 = vmatmul.bf16.gmra.mxu3 %v9376_v27  ;;  %v5298_v39 = vmul.f32 0.5, %v5074_v3 }
 0x52c   : > { %v5473_v14 = vpack.c.bf16 %v5292_v18, %v5291_v17  ;;  %v4640_v17 = vmul.f32 0.5, %v9645_v61  ;;  %4080 = vmatpush.bf16.msrb.mxu3 %v6492_v22 }
 0x52d   : > { %v3592_v45 = vadd.f32 %v3591_v16, %v3503_v20  ;;  %3817 = vmatmul.bf16.vlgmr.msrb.gmra.mxu0 %v11430_v10 }
 0x52e   : > { %5602 = vst [vmem:[%s9620_s22 + $0x188] sm:$0xff] %v5473_v14  ;;  %3906 = vmatmul.bf16.vlgmr.msrb.gmra.mxu1 %v9131_v51  ;;  %v3448_v11 = vpop.f32.mrf.mxu3 }
 0x52f   : > { %3995 = vmatmul.bf16.vlgmr.msrb.gmra.mxu2 %v11430_v10  ;;  %v6898_v60 = vpop.eup %6897  ;;  %v4634_v48 = vmul.f32 0.5, %v3592_v45  ;;  %v9934_v54 = vadd.f32 %v3448_v11, %v3360_v24  ;;  %v3362_v24 = vadd.f32 %v9576_v40, %v9397_v58  ;;  %v4647_v58 = vmul.f32 0.5, %v9664_v9  ;;  %v11431_v9 = vld [vmem:[#allocation77_spill] sm:$0xff] }
 0x530   : > { %v5075_v57 = vadd.f32 1.0, %v6898_v60  ;;  %v6900_v16 = vpop.eup %6899 }
 0x531   : > { %6901 = vtanh.f32 %v4634_v48  ;;  %v5081_v11 = vadd.f32 1.0, %v6900_v16  ;;  %v9948_v48 = vld [vmem:[%s11055_s4] sm:$0x7f] }
 0x532   : > { %v9937_v18 = vpop.f32.mrf.mxu2  ;;  %v5299_v42 = vmul.f32 0.5, %v5075_v57  ;;  %v3504_v20 = vpop.f32.mrf.mxu0  ;;  %6903 = vtanh.f32 %v4640_v17  ;;  %v9951_v22 = vperm.slane %v9948_v48, 2 }
 0x533   : > { %v3505_v14 = vadd.f32 %v3504_v20, %v9563_v19  ;;  %v3593_v10 = vpop.f32.mrf.mxu1 }
 0x534   : > { %v5477_v26 = vpack.c.bf16 %v5299_v42, %v5298_v39  ;;  %v3641_v16 = vadd.f32 %v9606_v47, %v9951_v22 }
 0x535   : > { %v3594_v45 = vadd.f32 %v3593_v10, %v3505_v14 }
 0x536   : > { %5606 = vst [vmem:[%s9620_s22 + $0x1a4] sm:$0xff] %v5477_v26  ;;  %v3450_v61 = vpop.f32.mrf.mxu3  ;;  %v5305_v26 = vmul.f32 0.5, %v5081_v11 }
 0x537   : > { %v6902_v25 = vpop.eup %6901  ;;  %v4641_v38 = vmul.f32 0.5, %v3594_v45  ;;  %v9943_v60 = vadd.f32 %v3450_v61, %v3362_v24 }
 0x538   : > { %v5082_v3 = vadd.f32 1.0, %v6902_v25  ;;  %v6904_v17 = vpop.eup %6903 }
 0x539   : > { %6905 = vtanh.f32 %v4641_v38  ;;  %v5088_v24 = vadd.f32 1.0, %v6904_v17 }
 0x53a   : > { %v9954_v40 = vpop.f32.mrf.mxu2  ;;  %v5306_v10 = vmul.f32 0.5, %v5082_v3  ;;  %v3507_v57 = vpop.f32.mrf.mxu0  ;;  %6907 = vtanh.f32 %v4647_v58  ;;  %v4654_v3 = vmul.f32 0.5, %v9685_v2 }
 0x53b   : > { %v3508_v39 = vadd.f32 %v3507_v57, %v9563_v19  ;;  %v3596_v42 = vpop.f32.mrf.mxu1  ;;  %3768 = vmatmul.bf16.gmra.mxu3 %v9399_v44  ;;  %v5312_v58 = vmul.f32 0.5, %v5088_v24 }
 0x53c   : > { %v5481_v20 = vpack.c.bf16 %v5306_v10, %v5305_v26 }
 0x53d   : > { %v3597_v14 = vadd.f32 %v3596_v42, %v3508_v39  ;;  %3822 = vmatmul.bf16.gmra.mxu0 %v11431_v9 }
 0x53e   : > { %5610 = vst [vmem:[%s9620_s22 + $0x1c0] sm:$0xff] %v5481_v20  ;;  %3911 = vmatmul.bf16.gmra.mxu1 %v9168_v59  ;;  %v3729_v45 = vpop.f32.mrf.mxu3  ;;  %v3643_v20 = vadd.f32 %v9615_v43, %v9951_v22 }
 0x53f   : > { %4000 = vmatmul.bf16.gmra.mxu2 %v11431_v9  ;;  %v6906_v11 = vpop.eup %6905  ;;  %v4648_v61 = vmul.f32 0.5, %v3597_v14  ;;  %v9964_v25 = vadd.f32 %v3729_v45, %v3641_v16 }
 0x540   : > { %v5089_v38 = vadd.f32 1.0, %v6906_v11  ;;  %v6908_v57 = vpop.eup %6907 }
 0x541   : > { %6909 = vtanh.f32 %v4648_v61  ;;  %v5095_v14 = vadd.f32 1.0, %v6908_v57 }
 0x542   : > { %v9967_v47 = vpop.f32.mrf.mxu2  ;;  %v5313_v26 = vmul.f32 0.5, %v5089_v38  ;;  %v3509_v10 = vpop.f32.mrf.mxu0  ;;  %6911 = vtanh.f32 %v4654_v3  ;;  %v4661_v38 = vmul.f32 0.5, %v9698_v36  ;;  %v11432_v36 = vld [vmem:[#allocation80_spill] sm:$0xff] }
 0x543   : > { %v3510_v17 = vadd.f32 %v3509_v10, %v9563_v19  ;;  %v3598_v39 = vpop.f32.mrf.mxu1 }
 0x544   : > { %v5485_v42 = vpack.c.bf16 %v5313_v26, %v5312_v58  ;;  %v5319_v58 = vmul.f32 0.5, %v5095_v14  ;;  %v6788_v14 = vld [vmem:[%s11054_s3 + $0x258] sm:$0xf0] }
 0x545   : > { %v3599_v16 = vadd.f32 %v3598_v39, %v3510_v17  ;;  %v3646_v39 = vadd.f32 %v9633_v41, %v9951_v22 }
 0x546   : > { %5614 = vst [vmem:[%s9620_s22 + $0x1dc] sm:$0xff] %v5485_v42  ;;  %v3731_v45 = vpop.f32.mrf.mxu3 }
 0x547   : > { %v6910_v2 = vpop.eup %6909  ;;  %v4655_v11 = vmul.f32 0.5, %v3599_v16  ;;  %v9973_v61 = vadd.f32 %v3731_v45, %v3643_v20 }
 0x548   : > { %v5096_v24 = vadd.f32 1.0, %v6910_v2  ;;  %v6912_v43 = vpop.eup %6911 }
 0x549   : > { %6913 = vtanh.f32 %v4655_v11  ;;  %v5102_v20 = vadd.f32 1.0, %v6912_v43 }
 0x54a   : > { %v9976_v10 = vpop.f32.mrf.mxu2  ;;  %v5320_v26 = vmul.f32 0.5, %v5096_v24  ;;  %v3512_v9 = vpop.f32.mrf.mxu0  ;;  %6915 = vtanh.f32 %v4661_v38  ;;  %v4668_v38 = vmul.f32 0.5, %v9713_v63 }
 0x54b   : > { %v3513_v3 = vadd.f32 %v3512_v9, %v9563_v19  ;;  %v3601_v57 = vpop.f32.mrf.mxu1  ;;  %3773 = vmatmul.bf16.gmra.mxu3 %v9426_v7  ;;  %v6463_v9 = vld [vmem:[%s11054_s3 + $0x240] sm:$0xf] }
 0x54c   : > { %v5489_v17 = vpack.c.bf16 %v5320_v26, %v5319_v58  ;;  %v6464_v11 = vor.u32 %v6788_v14, %v6463_v9  ;;  %v5326_v26 = vmul.f32 0.5, %v5102_v20 }
 0x54d   : > { %v3602_v42 = vadd.f32 %v3601_v57, %v3513_v3  ;;  %3827 = vmatmul.bf16.gmra.mxu0 %v11432_v36 }
 0x54e   : > { %5618 = vst [vmem:[%s9620_s22 + $0x1f8] sm:$0xff] %v5489_v17  ;;  %3916 = vmatmul.bf16.gmra.mxu1 %v11421_v55  ;;  %v3734_v16 = vpop.f32.mrf.mxu3  ;;  %4081 = vmatpush.bf16.msrb.mxu3 %v6464_v11 }
 0x54f   : > { %4005 = vmatmul.bf16.gmra.mxu2 %v11432_v36  ;;  %v6914_v41 = vpop.eup %6913  ;;  %v4662_v45 = vmul.f32 0.5, %v3602_v42  ;;  %v9992_v2 = vadd.f32 %v3734_v16, %v3646_v39  ;;  %v3648_v39 = vadd.f32 %v9648_v37, %v9951_v22 }
 0x550   : > { %v5103_v24 = vadd.f32 1.0, %v6914_v41  ;;  %v6916_v57 = vpop.eup %6915 }
 0x551   : > { %6917 = vtanh.f32 %v4662_v45  ;;  %v5109_v16 = vadd.f32 1.0, %v6916_v57  ;;  %v4675_v45 = vmul.f32 0.5, %v9732_v4  ;;  %v11434_v4 = vld [vmem:[#allocation83_spill] sm:$0xff] }
 0x552   : > { %v9995_v58 = vpop.f32.mrf.mxu2  ;;  %v5327_v43 = vmul.f32 0.5, %v5103_v24  ;;  %v3514_v3 = vpop.f32.mrf.mxu0  ;;  %6919 = vtanh.f32 %v4668_v38 }
 0x553   : > { %v3515_v17 = vadd.f32 %v3514_v3, %v9563_v19  ;;  %v3603_v36 = vpop.f32.mrf.mxu1  ;;  %v5333_v24 = vmul.f32 0.5, %v5109_v16  ;;  %v11433_v3 = vld [vmem:[#allocation64_spill] sm:$0xff] }
 0x554   : > { %v5493_v55 = vpack.c.bf16 %v5327_v43, %v5326_v26  ;;  %v3651_v57 = vadd.f32 %v11433_v3, %v9951_v22  ;;  %v3653_v3 = vadd.f32 %v9688_v29, %v9951_v22 }
 0x555   : > { %v3604_v42 = vadd.f32 %v3603_v36, %v3515_v17 }
 0x556   : > { %5622 = vst [vmem:[%s9620_s22 + $0x214] sm:$0xff] %v5493_v55  ;;  %v3736_v63 = vpop.f32.mrf.mxu3 }
 0x557   : > { %v6918_v9 = vpop.eup %6917  ;;  %v4669_v14 = vmul.f32 0.5, %v3604_v42  ;;  %v10001_v41 = vadd.f32 %v3736_v63, %v3648_v39 }
 0x558   : > { %v5110_v20 = vadd.f32 1.0, %v6918_v9  ;;  %v6920_v37 = vpop.eup %6919 }
 0x559   : > { %6921 = vtanh.f32 %v4669_v14  ;;  %v5116_v39 = vadd.f32 1.0, %v6920_v37 }
 0x55a   : > { %v10004_v11 = vpop.f32.mrf.mxu2  ;;  %v5334_v26 = vmul.f32 0.5, %v5110_v20  ;;  %v3517_v43 = vpop.f32.mrf.mxu0  ;;  %6923 = vtanh.f32 %v4675_v45  ;;  %v4682_v20 = vmul.f32 0.5, %v9753_v56 }
 0x55b   : > { %v3518_v36 = vadd.f32 %v3517_v43, %v9563_v19  ;;  %v3606_v38 = vpop.f32.mrf.mxu1  ;;  %3778 = vmatmul.bf16.gmra.mxu3 %v9447_v35 }
 0x55c   : > { %v5497_v55 = vpack.c.bf16 %v5334_v26, %v5333_v24  ;;  %v5340_v24 = vmul.f32 0.5, %v5116_v39 }
 0x55d   : > { %v3607_v17 = vadd.f32 %v3606_v38, %v3518_v36  ;;  %3832 = vmatmul.bf16.gmra.mxu0 %v11434_v4 }
 0x55e   : > { %5626 = vst [vmem:[%s9620_s22 + $0x230] sm:$0xff] %v5497_v55  ;;  %3921 = vmatmul.bf16.gmra.mxu1 %v9218_v50  ;;  %v3739_v42 = vpop.f32.mrf.mxu3 }
 0x55f   : > { %4010 = vmatmul.bf16.gmra.mxu2 %v11434_v4  ;;  %v6922_v16 = vpop.eup %6921  ;;  %v4676_v63 = vmul.f32 0.5, %v3607_v17  ;;  %v10014_v9 = vadd.f32 %v3739_v42, %v3651_v57 }
 0x560   : > { %v5117_v14 = vadd.f32 1.0, %v6922_v16  ;;  %v6924_v37 = vpop.eup %6923 }
 0x561   : > { %6925 = vtanh.f32 %v4676_v63  ;;  %v5123_v17 = vadd.f32 1.0, %v6924_v37 }
 0x562   : > { %v10017_v45 = vpop.f32.mrf.mxu2  ;;  %v5341_v26 = vmul.f32 0.5, %v5117_v14  ;;  %v3519_v43 = vpop.f32.mrf.mxu0  ;;  %6927 = vtanh.f32 %v4682_v20  ;;  %v4689_v14 = vmul.f32 0.5, %v9802_v23  ;;  %v11435_v23 = vld [vmem:[#allocation86_spill] sm:$0xff] }
 0x563   : > { %v3520_v36 = vadd.f32 %v3519_v43, %v9563_v19  ;;  %v3608_v38 = vpop.f32.mrf.mxu1 }
 0x564   : > { %v5501_v55 = vpack.c.bf16 %v5341_v26, %v5340_v24  ;;  %v5347_v24 = vmul.f32 0.5, %v5123_v17  ;;  %v6781_v17 = vld [vmem:[%s11054_s3 + $0x220] sm:$0xf0] }
 0x565   : > { %v3609_v57 = vadd.f32 %v3608_v38, %v3520_v36  ;;  %v3656_v38 = vadd.f32 %v9701_v6, %v9951_v22 }
 0x566   : > { %5630 = vst [vmem:[%s9620_s22 + $0x24c] sm:$0xff] %v5501_v55  ;;  %v3741_v42 = vpop.f32.mrf.mxu3 }
 0x567   : > { %v6926_v56 = vpop.eup %6925  ;;  %v4683_v16 = vmul.f32 0.5, %v3609_v57  ;;  %v10023_v63 = vadd.f32 %v3741_v42, %v3653_v3 }
 0x568   : > { %v5124_v39 = vadd.f32 1.0, %v6926_v56  ;;  %v6928_v29 = vpop.eup %6927 }
 0x569   : > { %6929 = vtanh.f32 %v4683_v16  ;;  %v5130_v3 = vadd.f32 1.0, %v6928_v29 }
 0x56a   : > { %v10026_v43 = vpop.f32.mrf.mxu2  ;;  %v5348_v26 = vmul.f32 0.5, %v5124_v39  ;;  %v3522_v4 = vpop.f32.mrf.mxu0  ;;  %6931 = vtanh.f32 %v4689_v14  ;;  %v4696_v14 = vmul.f32 0.5, %v9847_v5 }
 0x56b   : > { %v3523_v20 = vadd.f32 %v3522_v4, %v9563_v19  ;;  %v3611_v37 = vpop.f32.mrf.mxu1  ;;  %3783 = vmatmul.bf16.gmra.mxu3 %v9474_v31  ;;  %v6435_v4 = vld [vmem:[%s11054_s3 + $0x208] sm:$0xf] }
 0x56c   : > { %v5505_v36 = vpack.c.bf16 %v5348_v26, %v5347_v24  ;;  %v6436_v16 = vor.u32 %v6781_v17, %v6435_v4  ;;  %v5354_v26 = vmul.f32 0.5, %v5130_v3 }
 0x56d   : > { %v3612_v55 = vadd.f32 %v3611_v37, %v3523_v20  ;;  %3837 = vmatmul.bf16.gmra.mxu0 %v11435_v23 }
 0x56e   : > { %5634 = vst [vmem:[%s9620_s22 + $0x268] sm:$0xff] %v5505_v36  ;;  %3926 = vmatmul.bf16.gmra.mxu1 %v11426_v0  ;;  %v3744_v57 = vpop.f32.mrf.mxu3  ;;  %4082 = vmatpush.bf16.msrb.mxu3 %v6436_v16 }
 0x56f   : > { %4015 = vmatmul.bf16.gmra.mxu2 %v11435_v23  ;;  %v6930_v6 = vpop.eup %6929  ;;  %v4690_v42 = vmul.f32 0.5, %v3612_v55  ;;  %v10042_v56 = vadd.f32 %v3744_v57, %v3656_v38  ;;  %v3658_v38 = vadd.f32 %v9716_v28, %v9951_v22 }
 0x570   : > { %v5131_v39 = vadd.f32 1.0, %v6930_v6  ;;  %v6932_v37 = vpop.eup %6931 }
 0x571   : > { %6933 = vtanh.f32 %v4690_v42  ;;  %v5137_v57 = vadd.f32 1.0, %v6932_v37  ;;  %v4703_v42 = vmul.f32 0.5, %v9884_v21  ;;  %v11437_v37 = vld [vmem:[#allocation12_spill] sm:$0xff]  ;;  %v11438_v21 = vld [vmem:[#allocation89_spill] sm:$0xff] }
 0x572   : > { %v10045_v24 = vpop.f32.mrf.mxu2  ;;  %v5355_v29 = vmul.f32 0.5, %v5131_v39  ;;  %v3524_v20 = vpop.f32.mrf.mxu0  ;;  %6935 = vtanh.f32 %v4696_v14 }
 0x573   : > { %v3525_v36 = vadd.f32 %v3524_v20, %v9563_v19  ;;  %v3613_v23 = vpop.f32.mrf.mxu1  ;;  %v5361_v39 = vmul.f32 0.5, %v5137_v57 }
 0x574   : > { %v5509_v0 = vpack.c.bf16 %v5355_v29, %v5354_v26 }
 0x575   : > { %v3614_v55 = vadd.f32 %v3613_v23, %v3525_v36  ;;  %v3661_v36 = vadd.f32 %v11437_v37, %v9951_v22 }
 0x576   : > { %5638 = vst [vmem:[%s9620_s22 + $0x284] sm:$0xff] %v5509_v0  ;;  %v3746_v5 = vpop.f32.mrf.mxu3  ;;  %v11436_v0 = vld [vmem:[#allocation11_spill] sm:$0xff] }
 0x577   : > { %v6934_v4 = vpop.eup %6933  ;;  %v4697_v17 = vmul.f32 0.5, %v3614_v55  ;;  %v10051_v6 = vadd.f32 %v3746_v5, %v3658_v38 }
 0x578   : > { %v5138_v3 = vadd.f32 1.0, %v6934_v4  ;;  %v6936_v28 = vpop.eup %6935 }
 0x579   : > { %6937 = vtanh.f32 %v4697_v17  ;;  %v5144_v55 = vadd.f32 1.0, %v6936_v28 }
 0x57a   : > { %v10054_v16 = vpop.f32.mrf.mxu2  ;;  %v5362_v26 = vmul.f32 0.5, %v5138_v3  ;;  %v3527_v29 = vpop.f32.mrf.mxu0  ;;  %6939 = vtanh.f32 %v4703_v42 }
 0x57b   : > { %v3528_v23 = vadd.f32 %v3527_v29, %v9563_v19  ;;  %v3616_v14 = vpop.f32.mrf.mxu1  ;;  %3788 = vmatmul.bf16.gmra.mxu3 %v11436_v0 }
 0x57c   : > { %v5513_v20 = vpack.c.bf16 %v5362_v26, %v5361_v39  ;;  %v4710_v39 = vmul.f32 0.5, %v9893_v13  ;;  %v5368_v26 = vmul.f32 0.5, %v5144_v55 }
 0x57d   : > { %v3617_v38 = vadd.f32 %v3616_v14, %v3528_v23  ;;  %3842 = vmatmul.bf16.gmra.mxu0 %v11438_v21 }
 0x57e   : > { %5642 = vst [vmem:[%s9620_s22 + $0x2a0] sm:$0xff] %v5513_v20  ;;  %3931 = vmatmul.bf16.gmra.mxu1 %v9333_v34  ;;  %v3749_v57 = vpop.f32.mrf.mxu3 }
 0x57f   : > { %4020 = vmatmul.bf16.gmra.mxu2 %v11438_v21  ;;  %v6938_v5 = vpop.eup %6937  ;;  %v4704_v4 = vmul.f32 0.5, %v3617_v38  ;;  %v10064_v17 = vadd.f32 %v3749_v57, %v3661_v36  ;;  %v3663_v38 = vadd.f32 %v9762_v46, %v9951_v22 }
 0x580   : > { %v5145_v3 = vadd.f32 1.0, %v6938_v5  ;;  %v6940_v23 = vpop.eup %6939 }
 0x581   : > { %6941 = vtanh.f32 %v4704_v4  ;;  %v5151_v57 = vadd.f32 1.0, %v6940_v23 }
 0x582   : > { %v10067_v42 = vpop.f32.mrf.mxu2  ;;  %v5369_v29 = vmul.f32 0.5, %v5145_v3  ;;  %v3529_v28 = vpop.f32.mrf.mxu0  ;;  %6943 = vtanh.f32 %v4710_v39  ;;  %v4717_v3 = vmul.f32 0.5, %v9906_v8  ;;  %v11440_v8 = vld [vmem:[#allocation92_spill] sm:$0xff] }
 0x583   : > { %11439 = vst [vmem:[#allocation13_spill] sm:$0xff] %v10067_v42  ;;  %v3530_v14 = vadd.f32 %v3529_v28, %v9563_v19  ;;  %v3618_v20 = vpop.f32.mrf.mxu1 }
 0x584   : > { %v5517_v37 = vpack.c.bf16 %v5369_v29, %v5368_v26  ;;  %v5375_v26 = vmul.f32 0.5, %v5151_v57  ;;  %v6774_v57 = vld [vmem:[%s11054_s3 + $0x1e8] sm:$0xf0] }
 0x585   : > { %v3619_v36 = vadd.f32 %v3618_v20, %v3530_v14  ;;  %v3666_v20 = vadd.f32 %v9811_v32, %v9951_v22 }
 0x586   : > { %5646 = vst [vmem:[%s9620_s22 + $0x2bc] sm:$0xff] %v5517_v37  ;;  %v3751_v5 = vpop.f32.mrf.mxu3 }
 0x587   : > { %v6942_v13 = vpop.eup %6941  ;;  %v4711_v4 = vmul.f32 0.5, %v3619_v36  ;;  %v10073_v21 = vadd.f32 %v3751_v5, %v3663_v38 }
 0x588   : > { %v5152_v55 = vadd.f32 1.0, %v6942_v13  ;;  %v6944_v46 = vpop.eup %6943 }
 0x589   : > { %6945 = vtanh.f32 %v4711_v4  ;;  %v5158_v38 = vadd.f32 1.0, %v6944_v46 }
 0x58a   : > { %v10076_v28 = vpop.f32.mrf.mxu2  ;;  %v5376_v29 = vmul.f32 0.5, %v5152_v55  ;;  %v3532_v42 = vpop.f32.mrf.mxu0  ;;  %6947 = vtanh.f32 %v4717_v3  ;;  %v4724_v3 = vmul.f32 0.5, %v9915_v1 }
 0x58b   : > { %v3533_v39 = vadd.f32 %v3532_v42, %v9563_v19  ;;  %v3621_v23 = vpop.f32.mrf.mxu1  ;;  %3793 = vmatmul.bf16.gmra.mxu3 %v9522_v52  ;;  %v6407_v42 = vld [vmem:[%s11054_s3 + $0x1d0] sm:$0xf] }
 0x58c   : > { %v5521_v14 = vpack.c.bf16 %v5376_v29, %v5375_v26  ;;  %v6408_v4 = vor.u32 %v6774_v57, %v6407_v42  ;;  %v5382_v29 = vmul.f32 0.5, %v5158_v38 }
 0x58d   : > { %v3622_v37 = vadd.f32 %v3621_v23, %v3533_v39  ;;  %3847 = vmatmul.bf16.gmra.mxu0 %v11440_v8 }
 0x58e   : > { %5650 = vst [vmem:[%s9620_s22 + $0x2d8] sm:$0xff] %v5521_v14  ;;  %3936 = vmatmul.bf16.gmra.mxu1 %v9356_v53  ;;  %v3754_v36 = vpop.f32.mrf.mxu3  ;;  %4083 = vmatpush.bf16.msrb.mxu3 %v6408_v4 }
 0x58f   : > { %4025 = vmatmul.bf16.gmra.mxu2 %v11440_v8  ;;  %v6946_v32 = vpop.eup %6945  ;;  %v4718_v5 = vmul.f32 0.5, %v3622_v37  ;;  %v10092_v13 = vadd.f32 %v3754_v36, %v3666_v20  ;;  %v3668_v20 = vadd.f32 %v9856_v62, %v9951_v22 }
 0x590   : > { %v5159_v55 = vadd.f32 1.0, %v6946_v32  ;;  %v6948_v23 = vpop.eup %6947 }
 0x591   : > { %6949 = vtanh.f32 %v4718_v5  ;;  %v5165_v36 = vadd.f32 1.0, %v6948_v23  ;;  %v4731_v5 = vmul.f32 0.5, %v9934_v54  ;;  %v3671_v23 = vadd.f32 %v9887_v12, %v9951_v22  ;;  %v11442_v54 = vld [vmem:[#allocation93_spill] sm:$0xff] }
 0x592   : > { %v10095_v26 = vpop.f32.mrf.mxu2  ;;  %v5383_v46 = vmul.f32 0.5, %v5159_v55  ;;  %v3534_v39 = vpop.f32.mrf.mxu0  ;;  %6951 = vtanh.f32 %v4724_v3 }
 0x593   : > { %v3535_v14 = vadd.f32 %v3534_v39, %v9563_v19  ;;  %v3623_v8 = vpop.f32.mrf.mxu1  ;;  %v5389_v55 = vmul.f32 0.5, %v5165_v36 }
 0x594   : > { %v5525_v53 = vpack.c.bf16 %v5383_v46, %v5382_v29 }
 0x595   : > { %v3624_v37 = vadd.f32 %v3623_v8, %v3535_v14 }
 0x596   : > { %5654 = vst [vmem:[%s9620_s22 + $0x2f4] sm:$0xff] %v5525_v53  ;;  %v3756_v1 = vpop.f32.mrf.mxu3  ;;  %v11441_v53 = vld [vmem:[#allocation57_spill] sm:$0xff] }
 0x597   : > { %v6950_v42 = vpop.eup %6949  ;;  %v4725_v57 = vmul.f32 0.5, %v3624_v37  ;;  %v10101_v32 = vadd.f32 %v3756_v1, %v3668_v20 }
 0x598   : > { %v5166_v38 = vadd.f32 1.0, %v6950_v42  ;;  %v6952_v62 = vpop.eup %6951 }
 0x599   : > { %6953 = vtanh.f32 %v4725_v57  ;;  %v5172_v20 = vadd.f32 1.0, %v6952_v62 }
 0x59a   : > { %v10104_v4 = vpop.f32.mrf.mxu2  ;;  %v5390_v29 = vmul.f32 0.5, %v5166_v38  ;;  %v3537_v46 = vpop.f32.mrf.mxu0  ;;  %6955 = vtanh.f32 %v4731_v5  ;;  %v4738_v38 = vmul.f32 0.5, %v9943_v60  ;;  %v6387_v60 = vld [vmem:[%s11054_s3 + $0x1a0] sm:$0xf] }
 0x59b   : > { %v3538_v8 = vadd.f32 %v3537_v46, %v9563_v19  ;;  %v3626_v3 = vpop.f32.mrf.mxu1  ;;  %3798 = vmatmul.bf16.gmra.mxu3 %v11441_v53  ;;  %v5396_v5 = vmul.f32 0.5, %v5172_v20  ;;  %v6768_v20 = vld [vmem:[%s11054_s3 + $0x1b8] sm:$0xf0] }
 0x59c   : > { %v5529_v39 = vpack.c.bf16 %v5390_v29, %v5389_v55 }
 0x59d   : > { %v3627_v14 = vadd.f32 %v3626_v3, %v3538_v8  ;;  %3852 = vmatmul.bf16.gmra.mxu0 %v11442_v54 }
 0x59e   : > { %5658 = vst [vmem:[%s9620_s22 + $0x310] sm:$0xff] %v5529_v39  ;;  %3941 = vmatmul.bf16.gmra.mxu1 %v9376_v27  ;;  %v3759_v37 = vpop.f32.mrf.mxu3  ;;  %v3673_v39 = vadd.f32 %v9896_v15, %v9951_v22  ;;  %v6388_v15 = vor.u32 %v6768_v20, %v6387_v60  ;;  %v6611_v20 = vld [vmem:[%s11054_s3 + $0x360] sm:$0xf] }
 0x59f   : > { %4030 = vmatmul.bf16.gmra.mxu2 %v11442_v54  ;;  %v6954_v36 = vpop.eup %6953  ;;  %v4732_v1 = vmul.f32 0.5, %v3627_v14  ;;  %v10114_v42 = vadd.f32 %v3759_v37, %v3671_v23 }
 0x5a0   : > { %v5173_v57 = vadd.f32 1.0, %v6954_v36  ;;  %v6956_v46 = vpop.eup %6955  ;;  %4343 = vmatpush.bf16.msra.mxu2 %v6388_v15 }
 0x5a1   : > { %6957 = vtanh.f32 %v4732_v1  ;;  %v5179_v14 = vadd.f32 1.0, %v6956_v46 }
 0x5a2   : > { %v10117_v12 = vpop.f32.mrf.mxu2  ;;  %v5397_v55 = vmul.f32 0.5, %v5173_v57  ;;  %v3539_v29 = vpop.f32.mrf.mxu0  ;;  %6959 = vtanh.f32 %v4738_v38  ;;  %v10132_v57 = vperm.slane %v9948_v48, 3 }
 0x5a3   : > { %v3540_v62 = vadd.f32 %v3539_v29, %v9563_v19  ;;  %v3628_v8 = vpop.f32.mrf.mxu1  ;;  %v5403_v29 = vmul.f32 0.5, %v5179_v14 }
 0x5a4   : > { %v5533_v3 = vpack.c.bf16 %v5397_v55, %v5396_v5  ;;  %v4523_v5 = vmul.f32 0.5, %v9964_v25 }
 0x5a5   : > { %v3629_v23 = vadd.f32 %v3628_v8, %v3540_v62 }
 0x5a6   : > { %5662 = vst [vmem:[%s9620_s22 + $0x32c] sm:$0xff] %v5533_v3  ;;  %v3761_v37 = vpop.f32.mrf.mxu3 }
 0x5a7   : > { %v6958_v36 = vpop.eup %6957  ;;  %v4739_v19 = vmul.f32 0.5, %v3629_v23  ;;  %v10129_v1 = vadd.f32 %v3761_v37, %v3673_v39  ;;  %v3676_v23 = vadd.f32 %v9909_v30, %v9951_v22  ;;  %v11443_v37 = vld [vmem:[#allocation94_spill] sm:$0xff] }
 0x5a8   : > { %v5180_v38 = vadd.f32 1.0, %v6958_v36  ;;  %v6960_v8 = vpop.eup %6959  ;;  %v6824_v36 = vld [vmem:[%s11054_s3 + $0x378] sm:$0xf0] }
 0x5a9   : > { %6961 = vtanh.f32 %v4739_v19  ;;  %v5186_v60 = vadd.f32 1.0, %v6960_v8  ;;  %v6820_v8 = vld [vmem:[%s11054_s3 + $0x35c] sm:$0xf] }
 0x5aa   : > { %v10135_v55 = vpop.f32.mrf.mxu2  ;;  %v5404_v46 = vmul.f32 0.5, %v5180_v38  ;;  %v3818_v62 = vpop.f32.mrf.mxu0  ;;  %6963 = vtanh.f32 %v4523_v5  ;;  %v6612_v38 = vor.u32 %v6824_v36, %v6611_v20  ;;  %v6764_v5 = vld [vmem:[%s11054_s3 + $0x19c] sm:$0xf] }
 0x5ab   : > { %v3819_v3 = vadd.f32 %v3818_v62, %v10132_v57  ;;  %v3907_v39 = vpop.f32.mrf.mxu1  ;;  %3803 = vmatmul.bf16.gmra.mxu3 %v9574_v49 }
 0x5ac   : > { %v5537_v48 = vpack.c.bf16 %v5404_v46, %v5403_v29  ;;  %v6381_v29 = vld [vmem:[%s11054_s3 + $0x1b4] sm:$0xf0]  ;;  %4432 = vmatpush.bf16.msra.mxu3 %v6612_v38 }
 0x5ad   : > { %v3908_v25 = vadd.f32 %v3907_v39, %v3819_v3  ;;  %3857 = vmatmul.bf16.gmra.mxu0 %v11443_v37  ;;  %v6384_v62 = vor.u32 %v6764_v5, %v6381_v29  ;;  %v6605_v3 = vld [vmem:[%s11054_s3 + $0x374] sm:$0xf0]  ;;  %v4530_v39 = vmul.f32 0.5, %v9973_v61 }
 0x5ae   : > { %5666 = vst [vmem:[%s9620_s22 + $0x348] sm:$0xff] %v5537_v48  ;;  %3946 = vmatmul.bf16.gmra.mxu1 %v9399_v44  ;;  %v3764_v14 = vpop.f32.mrf.mxu3 }
 0x5af   : > { %4035 = vmatmul.bf16.gmra.mxu2 %v11443_v37  ;;  %v6962_v30 = vpop.eup %6961  ;;  %v4524_v19 = vmul.f32 0.5, %v3908_v25  ;;  %v10151_v15 = vadd.f32 %v3764_v14, %v3676_v23  ;;  %v6608_v23 = vor.u32 %v6820_v8, %v6605_v3  ;;  %v5410_v25 = vmul.f32 0.5, %v5186_v60  ;;  %4165 = vmatpush.bf16.msra.mxu0 %v6384_v62 }
 0x5b0   : > { %v5187_v46 = vadd.f32 1.0, %v6962_v30  ;;  %v6964_v36 = vpop.eup %6963  ;;  %v3678_v37 = vadd.f32 %v9918_v33, %v9951_v22  ;;  %v4537_v62 = vmul.f32 0.5, %v9992_v2  ;;  %v11444_v2 = vld [vmem:[#allocation95_spill] sm:$0xff] }
 0x5b1   : > { %6965 = vtanh.f32 %v4524_v19  ;;  %4254 = vmatpush.bf16.msra.mxu1 %v6608_v23  ;;  %v4971_v19 = vadd.f32 1.0, %v6964_v36 }
 0x5b2   : > { %v10166_v48 = vpop.f32.mrf.mxu2  ;;  %v5411_v14 = vmul.f32 0.5, %v5187_v46  ;;  %v3820_v20 = vpop.f32.mrf.mxu0  ;;  %6967 = vtanh.f32 %v4530_v39 }
 0x5b3   : > { %v3821_v30 = vadd.f32 %v3820_v20, %v10132_v57  ;;  %v3909_v5 = vpop.f32.mrf.mxu1  ;;  %v5195_v23 = vmul.f32 0.5, %v4971_v19 }
 0x5b4   : > { %v5541_v29 = vpack.c.bf16 %v5411_v14, %v5410_v25 }
 0x5b5   : > { %v3910_v61 = vadd.f32 %v3909_v5, %v3821_v30 }
 0x5b6   : > { %5670 = vst [vmem:[%s9620_s22 + $0x364] sm:$0xff] %v5541_v29  ;;  %v3766_v54 = vpop.f32.mrf.mxu3 }
 0x5b7   : > { %v6966_v38 = vpop.eup %6965  ;;  %v4531_v8 = vmul.f32 0.5, %v3910_v61  ;;  %v10172_v60 = vadd.f32 %v3766_v54, %v3678_v37  ;;  %v3681_v54 = vadd.f32 %v9937_v18, %v9951_v22 }
 0x5b8   : > { %v4972_v46 = vadd.f32 1.0, %v6966_v38  ;;  %v6968_v33 = vpop.eup %6967 }
 0x5b9   : > { %6969 = vtanh.f32 %v4531_v8  ;;  %v4978_v30 = vadd.f32 1.0, %v6968_v33  ;;  %v4544_v8 = vmul.f32 0.5, %v10001_v41  ;;  %v6359_v41 = vld [vmem:[%s11054_s3 + $0x168] sm:$0xf] }
 0x5ba   : > { %v10175_v3 = vpop.f32.mrf.mxu2  ;;  %v5196_v25 = vmul.f32 0.5, %v4972_v46  ;;  %v3823_v14 = vpop.f32.mrf.mxu0  ;;  %6971 = vtanh.f32 %v4537_v62 }
 0x5bb   : > { %v3824_v39 = vadd.f32 %v3823_v14, %v10132_v57  ;;  %v3912_v20 = vpop.f32.mrf.mxu1  ;;  %4084 = vmatmul.bf16.vlgmr.msrb.gmra.mxu3 %v9131_v51  ;;  %v5202_v46 = vmul.f32 0.5, %v4978_v30  ;;  %v6761_v30 = vld [vmem:[%s11054_s3 + $0x180] sm:$0xf0] }
 0x5bc   : > { %v5418_v36 = vpack.c.bf16 %v5196_v25, %v5195_v23 }
 0x5bd   : > { %v3913_v37 = vadd.f32 %v3912_v20, %v3824_v39  ;;  %3862 = vmatmul.bf16.gmra.mxu0 %v11444_v2  ;;  %v3683_v20 = vadd.f32 %v9954_v40, %v9951_v22  ;;  %v4551_v40 = vmul.f32 0.5, %v10014_v9 }
 0x5be   : > { %5546 = vst [vmem:[%s9620_s22 + $0x8] sm:$0xff] %v5418_v36  ;;  %3951 = vmatmul.bf16.gmra.mxu1 %v9426_v7  ;;  %v3769_v5 = vpop.f32.mrf.mxu3 }
 0x5bf   : > { %4040 = vmatmul.bf16.gmra.mxu2 %v11444_v2  ;;  %v6970_v29 = vpop.eup %6969  ;;  %v4538_v61 = vmul.f32 0.5, %v3913_v37  ;;  %v10185_v19 = vadd.f32 %v3769_v5, %v3681_v54 }
 0x5c0   : > { %v4979_v38 = vadd.f32 1.0, %v6970_v29  ;;  %v6972_v25 = vpop.eup %6971 }
 0x5c1   : > { %6973 = vtanh.f32 %v4538_v61  ;;  %v4985_v54 = vadd.f32 1.0, %v6972_v25 }
 0x5c2   : > { %v10188_v18 = vpop.f32.mrf.mxu2  ;;  %v5203_v62 = vmul.f32 0.5, %v4979_v38  ;;  %v3825_v23 = vpop.f32.mrf.mxu0  ;;  %6975 = vtanh.f32 %v4544_v8  ;;  %v6360_v38 = vor.u32 %v6761_v30, %v6359_v41  ;;  %v6583_v30 = vld [vmem:[%s11054_s3 + $0x328] sm:$0xf] }
 0x5c3   : > { %v3826_v14 = vadd.f32 %v3825_v23, %v10132_v57  ;;  %v3914_v33 = vpop.f32.mrf.mxu1 }
 0x5c4   : > { %v5422_v39 = vpack.c.bf16 %v5203_v62, %v5202_v46  ;;  %4344 = vmatpush.bf16.msra.mxu2 %v6360_v38  ;;  %v5209_v62 = vmul.f32 0.5, %v4985_v54 }
 0x5c5   : > { %v3915_v36 = vadd.f32 %v3914_v33, %v3826_v14 }
 0x5c6   : > { %5551 = vst [vmem:[%s9620_s22 + $0x24] sm:$0xff] %v5422_v39  ;;  %v3771_v37 = vpop.f32.mrf.mxu3 }
 0x5c7   : > { %v6974_v5 = vpop.eup %6973  ;;  %v4545_v29 = vmul.f32 0.5, %v3915_v36  ;;  %v10200_v61 = vadd.f32 %v3771_v37, %v3683_v20  ;;  %v3686_v36 = vadd.f32 %v9967_v47, %v9951_v22  ;;  %v11445_v37 = vld [vmem:[#allocation2_spill] sm:$0xff] }
 0x5c8   : > { %v4986_v46 = vadd.f32 1.0, %v6974_v5  ;;  %v6976_v14 = vpop.eup %6975  ;;  %v6817_v5 = vld [vmem:[%s11054_s3 + $0x340] sm:$0xf0] }
 0x5c9   : > { %6977 = vtanh.f32 %v4545_v29  ;;  %v4992_v41 = vadd.f32 1.0, %v6976_v14  ;;  %v6813_v14 = vld [vmem:[%s11054_s3 + $0x324] sm:$0xf] }
 0x5ca   : > { %v10203_v8 = vpop.f32.mrf.mxu2  ;;  %v5210_v23 = vmul.f32 0.5, %v4986_v46  ;;  %v3828_v25 = vpop.f32.mrf.mxu0  ;;  %6979 = vtanh.f32 %v4551_v40  ;;  %v6584_v46 = vor.u32 %v6817_v5, %v6583_v30  ;;  %v6757_v40 = vld [vmem:[%s11054_s3 + $0x164] sm:$0xf] }
 0x5cb   : > { %v3829_v33 = vadd.f32 %v3828_v25, %v10132_v57  ;;  %v3917_v39 = vpop.f32.mrf.mxu1  ;;  %4089 = vmatmul.bf16.gmra.mxu3 %v9168_v59 }
 0x5cc   : > { %v5426_v20 = vpack.c.bf16 %v5210_v23, %v5209_v62  ;;  %v6353_v62 = vld [vmem:[%s11054_s3 + $0x17c] sm:$0xf0]  ;;  %4433 = vmatpush.bf16.msra.mxu3 %v6584_v46 }
 0x5cd   : > { %v3918_v9 = vadd.f32 %v3917_v39, %v3829_v33  ;;  %3867 = vmatmul.bf16.gmra.mxu0 %v11445_v37  ;;  %v6356_v25 = vor.u32 %v6757_v40, %v6353_v62  ;;  %v6577_v33 = vld [vmem:[%s11054_s3 + $0x33c] sm:$0xf0]  ;;  %v4558_v39 = vmul.f32 0.5, %v10023_v63 }
 0x5ce   : > { %5555 = vst [vmem:[%s9620_s22 + $0x40] sm:$0xff] %v5426_v20  ;;  %3956 = vmatmul.bf16.gmra.mxu1 %v9447_v35  ;;  %v3774_v54 = vpop.f32.mrf.mxu3 }
 0x5cf   : > { %4045 = vmatmul.bf16.gmra.mxu2 %v11445_v37  ;;  %v6978_v47 = vpop.eup %6977  ;;  %v4552_v29 = vmul.f32 0.5, %v3918_v9  ;;  %v10219_v38 = vadd.f32 %v3774_v54, %v3686_v36  ;;  %v6580_v36 = vor.u32 %v6813_v14, %v6577_v33  ;;  %v5216_v9 = vmul.f32 0.5, %v4992_v41  ;;  %4166 = vmatpush.bf16.msra.mxu0 %v6356_v25 }
 0x5d0   : > { %v4993_v23 = vadd.f32 1.0, %v6978_v47  ;;  %v6980_v5 = vpop.eup %6979  ;;  %v3688_v37 = vadd.f32 %v9976_v10, %v9951_v22  ;;  %v4565_v25 = vmul.f32 0.5, %v10042_v56  ;;  %v11447_v56 = vld [vmem:[#allocation46_spill] sm:$0xff] }
 0x5d1   : > { %6981 = vtanh.f32 %v4552_v29  ;;  %4255 = vmatpush.bf16.msra.mxu1 %v6580_v36  ;;  %v4999_v29 = vadd.f32 1.0, %v6980_v5  ;;  %v11446_v5 = vld [vmem:[#allocation53_spill] sm:$0xff] }
 0x5d2   : > { %v10234_v20 = vpop.f32.mrf.mxu2  ;;  %v5217_v54 = vmul.f32 0.5, %v4993_v23  ;;  %v3830_v30 = vpop.f32.mrf.mxu0  ;;  %6983 = vtanh.f32 %v4558_v39 }
 0x5d3   : > { %v3831_v47 = vadd.f32 %v3830_v30, %v10132_v57  ;;  %v3919_v40 = vpop.f32.mrf.mxu1  ;;  %v5223_v36 = vmul.f32 0.5, %v4999_v29 }
 0x5d4   : > { %v5430_v62 = vpack.c.bf16 %v5217_v54, %v5216_v9 }
 0x5d5   : > { %v3920_v63 = vadd.f32 %v3919_v40, %v3831_v47 }
 0x5d6   : > { %5559 = vst [vmem:[%s9620_s22 + $0x5c] sm:$0xff] %v5430_v62  ;;  %v3776_v2 = vpop.f32.mrf.mxu3 }
 0x5d7   : > { %v6982_v46 = vpop.eup %6981  ;;  %v4559_v14 = vmul.f32 0.5, %v3920_v63  ;;  %v10240_v41 = vadd.f32 %v3776_v2, %v3688_v37  ;;  %v3691_v2 = vadd.f32 %v9995_v58, %v9951_v22 }
 0x5d8   : > { %v5000_v23 = vadd.f32 1.0, %v6982_v46  ;;  %v6984_v10 = vpop.eup %6983 }
 0x5d9   : > { %6985 = vtanh.f32 %v4559_v14  ;;  %v5006_v40 = vadd.f32 1.0, %v6984_v10 }
 0x5da   : > { %v10243_v33 = vpop.f32.mrf.mxu2  ;;  %v5224_v9 = vmul.f32 0.5, %v5000_v23  ;;  %v3833_v54 = vpop.f32.mrf.mxu0  ;;  %6987 = vtanh.f32 %v4565_v25  ;;  %v4572_v23 = vmul.f32 0.5, %v10051_v6  ;;  %v6331_v6 = vld [vmem:[%s11054_s3 + $0x130] sm:$0xf] }
 0x5db   : > { %v3834_v39 = vadd.f32 %v3833_v54, %v10132_v57  ;;  %v3922_v30 = vpop.f32.mrf.mxu1  ;;  %4094 = vmatmul.bf16.gmra.mxu3 %v11446_v5  ;;  %v5230_v25 = vmul.f32 0.5, %v5006_v40  ;;  %v6754_v40 = vld [vmem:[%s11054_s3 + $0x148] sm:$0xf0] }
 0x5dc   : > { %v5434_v47 = vpack.c.bf16 %v5224_v9, %v5223_v36 }
 0x5dd   : > { %v3923_v37 = vadd.f32 %v3922_v30, %v3834_v39  ;;  %3872 = vmatmul.bf16.gmra.mxu0 %v11447_v56 }
 0x5de   : > { %5563 = vst [vmem:[%s9620_s22 + $0x78] sm:$0xff] %v5434_v47  ;;  %3961 = vmatmul.bf16.gmra.mxu1 %v9474_v31  ;;  %v3779_v62 = vpop.f32.mrf.mxu3  ;;  %v3693_v47 = vadd.f32 %v10004_v11, %v9951_v22  ;;  %v4579_v11 = vmul.f32 0.5, %v10064_v17 }
 0x5df   : > { %4050 = vmatmul.bf16.gmra.mxu2 %v11447_v56  ;;  %v6986_v63 = vpop.eup %6985  ;;  %v4566_v29 = vmul.f32 0.5, %v3923_v37  ;;  %v10253_v46 = vadd.f32 %v3779_v62, %v3691_v2 }
 0x5e0   : > { %v5007_v14 = vadd.f32 1.0, %v6986_v63  ;;  %v6988_v54 = vpop.eup %6987 }
 0x5e1   : > { %6989 = vtanh.f32 %v4566_v29  ;;  %v5013_v37 = vadd.f32 1.0, %v6988_v54 }
 0x5e2   : > { %v10256_v58 = vpop.f32.mrf.mxu2  ;;  %v5231_v36 = vmul.f32 0.5, %v5007_v14  ;;  %v3835_v9 = vpop.f32.mrf.mxu0  ;;  %6991 = vtanh.f32 %v4572_v23 }
 0x5e3   : > { %v3836_v10 = vadd.f32 %v3835_v9, %v10132_v57  ;;  %v3924_v39 = vpop.f32.mrf.mxu1  ;;  %v5237_v9 = vmul.f32 0.5, %v5013_v37 }
 0x5e4   : > { %v5438_v30 = vpack.c.bf16 %v5231_v36, %v5230_v25  ;;  %v6332_v25 = vor.u32 %v6754_v40, %v6331_v6  ;;  %v6555_v40 = vld [vmem:[%s11054_s3 + $0x2f0] sm:$0xf] }
 0x5e5   : > { %v3925_v2 = vadd.f32 %v3924_v39, %v3836_v10 }
 0x5e6   : > { %5567 = vst [vmem:[%s9620_s22 + $0x94] sm:$0xff] %v5438_v30  ;;  %v3781_v62 = vpop.f32.mrf.mxu3  ;;  %4345 = vmatpush.bf16.msra.mxu2 %v6332_v25 }
 0x5e7   : > { %v6990_v63 = vpop.eup %6989  ;;  %v4573_v29 = vmul.f32 0.5, %v3925_v2  ;;  %v10268_v14 = vadd.f32 %v3781_v62, %v3693_v47  ;;  %v3696_v2 = vadd.f32 %v10017_v45, %v9951_v22  ;;  %v11448_v62 = vld [vmem:[#allocation52_spill] sm:$0xff] }
 0x5e8   : > { %v5014_v36 = vadd.f32 1.0, %v6990_v63  ;;  %v6992_v39 = vpop.eup %6991  ;;  %v6810_v63 = vld [vmem:[%s11054_s3 + $0x308] sm:$0xf0] }
 0x5e9   : > { %6993 = vtanh.f32 %v4573_v29  ;;  %v5020_v6 = vadd.f32 1.0, %v6992_v39  ;;  %v6556_v25 = vor.u32 %v6810_v63, %v6555_v40  ;;  %v6549_v39 = vld [vmem:[%s11054_s3 + $0x304] sm:$0xf0] }
 0x5ea   : > { %v10271_v23 = vpop.f32.mrf.mxu2  ;;  %v5238_v54 = vmul.f32 0.5, %v5014_v36  ;;  %v3838_v10 = vpop.f32.mrf.mxu0  ;;  %6995 = vtanh.f32 %v4579_v11  ;;  %v6750_v36 = vld [vmem:[%s11054_s3 + $0x12c] sm:$0xf]  ;;  %v6325_v11 = vld [vmem:[%s11054_s3 + $0x144] sm:$0xf0] }
 0x5eb   : > { %v3839_v30 = vadd.f32 %v3838_v10, %v10132_v57  ;;  %v3927_v56 = vpop.f32.mrf.mxu1  ;;  %4099 = vmatmul.bf16.gmra.mxu3 %v9218_v50  ;;  %v6806_v10 = vld [vmem:[%s11054_s3 + $0x2ec] sm:$0xf] }
 0x5ec   : > { %v5442_v47 = vpack.c.bf16 %v5238_v54, %v5237_v9  ;;  %v6328_v54 = vor.u32 %v6750_v36, %v6325_v11  ;;  %4434 = vmatpush.bf16.msra.mxu3 %v6556_v25 }
 0x5ed   : > { %v3928_v17 = vadd.f32 %v3927_v56, %v3839_v30  ;;  %3877 = vmatmul.bf16.gmra.mxu0 %v11448_v62  ;;  %v4586_v30 = vmul.f32 0.5, %v10073_v21 }
 0x5ee   : > { %5571 = vst [vmem:[%s9620_s22 + $0xb0] sm:$0xff] %v5442_v47  ;;  %3966 = vmatmul.bf16.gmra.mxu1 %v11436_v0  ;;  %v3784_v37 = vpop.f32.mrf.mxu3  ;;  %4167 = vmatpush.bf16.msra.mxu0 %v6328_v54  ;;  %v6303_v54 = vld [vmem:[%s11054_s3 + $0xf8] sm:$0xf] }
 0x5ef   : > { %4055 = vmatmul.bf16.gmra.mxu2 %v11448_v62  ;;  %v6994_v45 = vpop.eup %6993  ;;  %v4580_v29 = vmul.f32 0.5, %v3928_v17  ;;  %v10287_v56 = vadd.f32 %v3784_v37, %v3696_v2  ;;  %v6552_v2 = vor.u32 %v6806_v10, %v6549_v39  ;;  %v5244_v17 = vmul.f32 0.5, %v5020_v6  ;;  %v6747_v39 = vld [vmem:[%s11054_s3 + $0x110] sm:$0xf0] }
 0x5f0   : > { %v5021_v9 = vadd.f32 1.0, %v6994_v45  ;;  %v6996_v63 = vpop.eup %6995  ;;  %v3698_v62 = vadd.f32 %v10026_v43, %v9951_v22  ;;  %v4593_v43 = vmul.f32 0.5, %v10092_v13  ;;  %v6799_v13 = vld [vmem:[%s11054_s3 + $0x2b4] sm:$0xf] }
 0x5f1   : > { %6997 = vtanh.f32 %v4580_v29  ;;  %4256 = vmatpush.bf16.msra.mxu1 %v6552_v2  ;;  %v5027_v29 = vadd.f32 1.0, %v6996_v63  ;;  %v6304_v2 = vor.u32 %v6747_v39, %v6303_v54  ;;  %v6269_v54 = vld [vmem:[%s11054_s3 + $0xd4] sm:$0xf0]  ;;  %v3701_v39 = vadd.f32 %v10045_v24, %v9951_v22 }
 0x5f2   : > { %v10302_v47 = vpop.f32.mrf.mxu2  ;;  %v5245_v37 = vmul.f32 0.5, %v5021_v9  ;;  %v3840_v40 = vpop.f32.mrf.mxu0  ;;  %6999 = vtanh.f32 %v4586_v30 }
 0x5f3   : > { %11449 = vst [vmem:[#allocation14_spill] sm:$0xff] %v10302_v47  ;;  %v3841_v45 = vadd.f32 %v3840_v40, %v10132_v57  ;;  %v3929_v36 = vpop.f32.mrf.mxu1  ;;  %4346 = vmatpush.bf16.msra.mxu2 %v6304_v2 }
 0x5f4   : > { %v5446_v11 = vpack.c.bf16 %v5245_v37, %v5244_v17  ;;  %v5251_v17 = vmul.f32 0.5, %v5027_v29 }
 0x5f5   : > { %v3930_v21 = vadd.f32 %v3929_v36, %v3841_v45  ;;  %v6521_v45 = vld [vmem:[%s11054_s3 + $0x2cc] sm:$0xf0] }
 0x5f6   : > { %5575 = vst [vmem:[%s9620_s22 + $0xcc] sm:$0xff] %v5446_v11  ;;  %v3786_v47 = vpop.f32.mrf.mxu3  ;;  %v6524_v29 = vor.u32 %v6799_v13, %v6521_v45  ;;  %v6740_v13 = vld [vmem:[%s11054_s3 + $0xd8] sm:$0xf0] }
 0x5f7   : > { %v6998_v25 = vpop.eup %6997  ;;  %v4587_v10 = vmul.f32 0.5, %v3930_v21  ;;  %v10308_v6 = vadd.f32 %v3786_v47, %v3698_v62  ;;  %v6743_v62 = vld [vmem:[%s11054_s3 + $0xf4] sm:$0xf]  ;;  %v6297_v47 = vld [vmem:[%s11054_s3 + $0x10c] sm:$0xf0] }
 0x5f8   : > { %v5028_v9 = vadd.f32 1.0, %v6998_v25  ;;  %v6300_v63 = vor.u32 %v6743_v62, %v6297_v47  ;;  %v7000_v36 = vpop.eup %6999  ;;  %v11450_v25 = vld [vmem:[#allocation60_spill] sm:$0xff]  ;;  %v11451_v47 = vld [vmem:[#allocation3_spill] sm:$0xff]  ;;  %4257 = vmatpush.bf16.msra.mxu1 %v6524_v29 }
 0x5f9   : > { %7001 = vtanh.f32 %v4587_v10 }
 0x5fa   : > { %v10317_v30 = vpop.f32.mrf.mxu2  ;;  %v5252_v37 = vmul.f32 0.5, %v5028_v9  ;;  %v3843_v40 = vpop.f32.mrf.mxu0  ;;  %4168 = vmatpush.bf16.msra.mxu0 %v6300_v63  ;;  %v6736_v9 = vld [vmem:[%s11054_s3 + $0xbc] sm:$0xf]  ;;  %7003 = vtanh.f32 %v4593_v43  ;;  %v5034_v63 = vadd.f32 1.0, %v7000_v36  ;;  %v6729_v36 = vld [vmem:[%s11054_s3 + $0x84] sm:$0xf] }
 0x5fb   : > { %v3844_v11 = vadd.f32 %v3843_v40, %v10132_v57  ;;  %v3932_v21 = vpop.f32.mrf.mxu1  ;;  %4104 = vmatmul.bf16.gmra.mxu3 %v11450_v25  ;;  %v6272_v2 = vor.u32 %v6736_v9, %v6269_v54  ;;  %v6275_v40 = vld [vmem:[%s11054_s3 + $0xc0] sm:$0xf]  ;;  %v4600_v54 = vmul.f32 0.5, %v10101_v32  ;;  %v6247_v32 = vld [vmem:[%s11054_s3 + $0x88] sm:$0xf] }
 0x5fc   : > { %v5450_v10 = vpack.c.bf16 %v5252_v37, %v5251_v17  ;;  %v6792_v17 = vld [vmem:[%s11054_s3 + $0x27c] sm:$0xf]  ;;  %v6493_v37 = vld [vmem:[%s11054_s3 + $0x294] sm:$0xf0]  ;;  %v6276_v29 = vor.u32 %v6740_v13, %v6275_v40 }
 0x5fd   : > { %v3933_v62 = vadd.f32 %v3932_v21, %v3844_v11  ;;  %3882 = vmatmul.bf16.gmra.mxu0 %v11451_v47  ;;  %v6496_v43 = vor.u32 %v6792_v17, %v6493_v37  ;;  %v5258_v37 = vmul.f32 0.5, %v5034_v63  ;;  %v6722_v63 = vld [vmem:[%s11054_s3 + $0x4c] sm:$0xf] }
 0x5fe   : > { %5579 = vst [vmem:[%s9620_s22 + $0xe8] sm:$0xff] %v5450_v10  ;;  %3971 = vmatmul.bf16.gmra.mxu1 %v9522_v52  ;;  %v3789_v24 = vpop.f32.mrf.mxu3  ;;  %4169 = vmatpush.bf16.msra.mxu0 %v6272_v2  ;;  %v6241_v10 = vld [vmem:[%s11054_s3 + $0x9c] sm:$0xf0] }
 0x5ff   : > { %4060 = vmatmul.bf16.gmra.mxu2 %v11451_v47  ;;  %v7002_v45 = vpop.eup %7001  ;;  %v4594_v11 = vmul.f32 0.5, %v3933_v62  ;;  %v10357_v21 = vadd.f32 %v3789_v24, %v3701_v39  ;;  %4258 = vmatpush.bf16.msra.mxu1 %v6496_v43  ;;  %v6244_v39 = vor.u32 %v6729_v36, %v6241_v10  ;;  %v6785_v62 = vld [vmem:[%s11054_s3 + $0x244] sm:$0xf]  ;;  %v6465_v2 = vld [vmem:[%s11054_s3 + $0x25c] sm:$0xf0] }
 0x600   : > { %v5035_v9 = vadd.f32 1.0, %v7002_v45  ;;  %4347 = vmatpush.bf16.msra.mxu2 %v6276_v29  ;;  %v6468_v13 = vor.u32 %v6785_v62, %v6465_v2  ;;  %v6733_v43 = vld [vmem:[%s11054_s3 + $0xa0] sm:$0xf0]  ;;  %v7004_v45 = vpop.eup %7003  ;;  %v3703_v62 = vadd.f32 %v10054_v16, %v9951_v22 }
 0x601   : > { %7005 = vtanh.f32 %v4594_v11  ;;  %v6248_v36 = vor.u32 %v6733_v43, %v6247_v32  ;;  %v5041_v32 = vadd.f32 1.0, %v7004_v45  ;;  %v6185_v45 = vld [vmem:[%s11054_s3 + $0x2c] sm:$0xf0] }
 0x602   : > { %v10366_v17 = vpop.f32.mrf.mxu2  ;;  %v5259_v40 = vmul.f32 0.5, %v5035_v9  ;;  %v3845_v24 = vpop.f32.mrf.mxu0  ;;  %4170 = vmatpush.bf16.msra.mxu0 %v6244_v39  ;;  %v6213_v9 = vld [vmem:[%s11054_s3 + $0x64] sm:$0xf0]  ;;  %7007 = vtanh.f32 %v4600_v54  ;;  %v6778_v39 = vld [vmem:[%s11054_s3 + $0x20c] sm:$0xf] }
 0x603   : > { %v3846_v11 = vadd.f32 %v3845_v24, %v10132_v57  ;;  %v3934_v29 = vpop.f32.mrf.mxu1  ;;  %4259 = vmatpush.bf16.msra.mxu1 %v6468_v13  ;;  %v6216_v24 = vor.u32 %v6722_v63, %v6213_v9  ;;  %v6726_v13 = vld [vmem:[%s11054_s3 + $0x68] sm:$0xf0]  ;;  %v6715_v9 = vld [vmem:[%s11054_s3 + $0x14] sm:$0xf] }
 0x604   : > { %v5454_v10 = vpack.c.bf16 %v5259_v40, %v5258_v37  ;;  %4348 = vmatpush.bf16.msra.mxu2 %v6248_v36  ;;  %v6437_v37 = vld [vmem:[%s11054_s3 + $0x224] sm:$0xf0]  ;;  %v6219_v40 = vld [vmem:[%s11054_s3 + $0x50] sm:$0xf] }
 0x605   : > { %v3935_v2 = vadd.f32 %v3934_v29, %v3846_v11  ;;  %v6440_v54 = vor.u32 %v6778_v39, %v6437_v37  ;;  %v6220_v36 = vor.u32 %v6726_v13, %v6219_v40  ;;  %v5265_v37 = vmul.f32 0.5, %v5041_v32 }
 0x606   : > { %5583 = vst [vmem:[%s9620_s22 + $0x104] sm:$0xff] %v5454_v10  ;;  %v3791_v16 = vpop.f32.mrf.mxu3  ;;  %4171 = vmatpush.bf16.msra.mxu0 %v6216_v24  ;;  %v4607_v10 = vmul.f32 0.5, %v10114_v42  ;;  %v6409_v24 = vld [vmem:[%s11054_s3 + $0x1ec] sm:$0xf0]  ;;  %v6191_v42 = vld [vmem:[%s11054_s3 + $0x18] sm:$0xf] }
 0x607   : > { %v7006_v43 = vpop.eup %7005  ;;  %v4601_v11 = vmul.f32 0.5, %v3935_v2  ;;  %v10402_v29 = vadd.f32 %v3791_v16, %v3703_v62  ;;  %4260 = vmatpush.bf16.msra.mxu1 %v6440_v54  ;;  %v6188_v62 = vor.u32 %v6715_v9, %v6185_v45  ;;  %v6771_v2 = vld [vmem:[%s11054_s3 + $0x1d4] sm:$0xf] }
 0x608   : > { %v5042_v63 = vadd.f32 1.0, %v7006_v43  ;;  %4349 = vmatpush.bf16.msra.mxu2 %v6220_v36  ;;  %v6412_v13 = vor.u32 %v6771_v2, %v6409_v24  ;;  %v6719_v54 = vld [vmem:[%s11054_s3 + $0x30] sm:$0xf0]  ;;  %v7008_v43 = vpop.eup %7007 }
 0x609   : > { %7009 = vtanh.f32 %v4601_v11  ;;  %v6192_v9 = vor.u32 %v6719_v54, %v6191_v42  ;;  %v11454_v24 = vld [vmem:[#allocation4_spill] sm:$0xff]  ;;  %v5048_v47 = vadd.f32 1.0, %v7008_v43  ;;  %v4614_v43 = vmul.f32 0.5, %v10129_v1 }
 0x60a   : > { %v10411_v39 = vpop.f32.mrf.mxu2  ;;  %v5266_v40 = vmul.f32 0.5, %v5042_v63  ;;  %v3848_v16 = vpop.f32.mrf.mxu0  ;;  %4172 = vmatpush.bf16.msra.mxu0 %v6188_v62  ;;  %v11453_v63 = vld [vmem:[#allocation13_spill] sm:$0xff]  ;;  %7011 = vtanh.f32 %v4607_v10  ;;  %v6803_v62 = vld [vmem:[%s11054_s3 + $0x2d0] sm:$0xf0] }
 0x60b   : > { %11452 = vst [vmem:[#allocation61_spill] sm:$0xff] %v10411_v39  ;;  %v3849_v11 = vadd.f32 %v3848_v16, %v10132_v57  ;;  %v3937_v36 = vpop.f32.mrf.mxu1  ;;  %4109 = vmatmul.bf16.gmra.mxu3 %v9333_v34  ;;  %v3706_v45 = vadd.f32 %v11453_v63, %v9951_v22  ;;  %4261 = vmatpush.bf16.msra.mxu1 %v6412_v13 }
 0x60c   : > { %v5458_v32 = vpack.c.bf16 %v5266_v40, %v5265_v37  ;;  %v6527_v37 = vld [vmem:[%s11054_s3 + $0x2b8] sm:$0xf]  ;;  %4350 = vmatpush.bf16.msra.mxu2 %v6192_v9 }
 0x60d   : > { %v3938_v2 = vadd.f32 %v3937_v36, %v3849_v11  ;;  %3887 = vmatmul.bf16.gmra.mxu0 %v11454_v24  ;;  %v6528_v13 = vor.u32 %v6803_v62, %v6527_v37  ;;  %v5272_v36 = vmul.f32 0.5, %v5048_v47 }
 0x60e   : > { %5587 = vst [vmem:[%s9620_s22 + $0x120] sm:$0xff] %v5458_v32  ;;  %3976 = vmatmul.bf16.gmra.mxu1 %v11441_v53  ;;  %v3794_v16 = vpop.f32.mrf.mxu3 }
 0x60f   : > { %4065 = vmatmul.bf16.gmra.mxu2 %v11454_v24  ;;  %v7010_v10 = vpop.eup %7009  ;;  %v4608_v40 = vmul.f32 0.5, %v3938_v2  ;;  %v10439_v42 = vadd.f32 %v3794_v16, %v3706_v45  ;;  %4435 = vmatpush.bf16.msra.mxu3 %v6528_v13  ;;  %v3708_v45 = vadd.f32 %v10076_v28, %v9951_v22 }
 0x610   : > { %v5049_v54 = vadd.f32 1.0, %v7010_v10  ;;  %v7012_v24 = vpop.eup %7011 }
 0x611   : > { %7013 = vtanh.f32 %v4608_v40  ;;  %v5055_v16 = vadd.f32 1.0, %v7012_v24  ;;  %v4621_v40 = vmul.f32 0.5, %v10151_v15  ;;  %v11455_v24 = vld [vmem:[#allocation9_spill] sm:$0xff] }
 0x612   : > { %v10442_v11 = vpop.f32.mrf.mxu2  ;;  %v5273_v32 = vmul.f32 0.5, %v5049_v54  ;;  %v3850_v63 = vpop.f32.mrf.mxu0  ;;  %7015 = vtanh.f32 %v4614_v43  ;;  %v11456_v15 = vld [vmem:[#allocation5_spill] sm:$0xff] }
 0x613   : > { %v3851_v53 = vadd.f32 %v3850_v63, %v10132_v57  ;;  %v3939_v39 = vpop.f32.mrf.mxu1  ;;  %v5279_v13 = vmul.f32 0.5, %v5055_v16  ;;  %v3711_v63 = vadd.f32 %v10095_v26, %v9951_v22 }
 0x614   : > { %v5462_v2 = vpack.c.bf16 %v5273_v32, %v5272_v36 }
 0x615   : > { %v3940_v9 = vadd.f32 %v3939_v39, %v3851_v53 }
 0x616   : > { %5591 = vst [vmem:[%s9620_s22 + $0x13c] sm:$0xff] %v5462_v2  ;;  %v3796_v1 = vpop.f32.mrf.mxu3 }
 0x617   : > { %v7014_v37 = vpop.eup %7013  ;;  %v4615_v62 = vmul.f32 0.5, %v3940_v9  ;;  %v10448_v10 = vadd.f32 %v3796_v1, %v3708_v45 }
 0x618   : > { %v5056_v47 = vadd.f32 1.0, %v7014_v37  ;;  %v7016_v28 = vpop.eup %7015 }
 0x619   : > { %7017 = vtanh.f32 %v4615_v62  ;;  %v5062_v45 = vadd.f32 1.0, %v7016_v28 }
 0x61a   : > { %v5280_v54 = vmul.f32 0.5, %v5056_v47  ;;  %v10451_v36 = vpop.f32.mrf.mxu2  ;;  %v3853_v32 = vpop.f32.mrf.mxu0  ;;  %7019 = vtanh.f32 %v4621_v40  ;;  %v4628_v47 = vmul.f32 0.5, %v10172_v60 }
 0x61b   : > { %v3854_v53 = vadd.f32 %v3853_v32, %v10132_v57  ;;  %v3942_v39 = vpop.f32.mrf.mxu1  ;;  %4114 = vmatmul.bf16.gmra.mxu3 %v11455_v24  ;;  %v5286_v26 = vmul.f32 0.5, %v5062_v45 }
 0x61c   : > { %v5466_v43 = vpack.c.bf16 %v5280_v54, %v5279_v13 }
 0x61d   : > { %v3943_v2 = vadd.f32 %v3942_v39, %v3854_v53  ;;  %3892 = vmatmul.bf16.gmra.mxu0 %v11456_v15 }
 0x61e   : > { %5595 = vst [vmem:[%s9620_s22 + $0x158] sm:$0xff] %v5466_v43  ;;  %3981 = vmatmul.bf16.gmra.mxu1 %v9574_v49  ;;  %v3799_v9 = vpop.f32.mrf.mxu3  ;;  %v3713_v43 = vadd.f32 %v10104_v4, %v9951_v22 }
 0x61f   : > { %4070 = vmatmul.bf16.gmra.mxu2 %v11456_v15  ;;  %v7018_v16 = vpop.eup %7017  ;;  %v4622_v1 = vmul.f32 0.5, %v3943_v2  ;;  %v10461_v37 = vadd.f32 %v3799_v9, %v3711_v63 }
 0x620   : > { %v5063_v62 = vadd.f32 1.0, %v7018_v16  ;;  %v7020_v54 = vpop.eup %7019 }
 0x621   : > { %7021 = vtanh.f32 %v4622_v1  ;;  %v5069_v2 = vadd.f32 1.0, %v7020_v54 }
 0x622   : > { %v5287_v40 = vmul.f32 0.5, %v5063_v62  ;;  %v3855_v13 = vpop.f32.mrf.mxu0  ;;  %v10465_v39 = vpop.f32.mrf.mxu2  ;;  %7023 = vtanh.f32 %v4628_v47  ;;  %v4635_v62 = vmul.f32 0.5, %v10185_v19 }
 0x623   : > { %v3856_v32 = vadd.f32 %v3855_v13, %v10132_v57  ;;  %v3944_v28 = vpop.f32.mrf.mxu1 }
 0x624   : > { %v5470_v53 = vpack.c.bf16 %v5287_v40, %v5286_v26  ;;  %v5293_v26 = vmul.f32 0.5, %v5069_v2  ;;  %v6499_v2 = vld [vmem:[%s11054_s3 + $0x280] sm:$0xf] }
 0x625   : > { %v3945_v63 = vadd.f32 %v3944_v28, %v3856_v32  ;;  %v3716_v32 = vadd.f32 %v10117_v12, %v9951_v22  ;;  %v6796_v12 = vld [vmem:[%s11054_s3 + $0x298] sm:$0xf0] }
 0x626   : > { %5599 = vst [vmem:[%s9620_s22 + $0x174] sm:$0xff] %v5470_v53  ;;  %v3801_v9 = vpop.f32.mrf.mxu3  ;;  %v11457_v53 = vld [vmem:[#allocation74_spill] sm:$0xff] }
 0x627   : > { %v7022_v60 = vpop.eup %7021  ;;  %v4629_v16 = vmul.f32 0.5, %v3945_v63  ;;  %v10470_v45 = vadd.f32 %v3801_v9, %v3713_v43 }
 0x628   : > { %v5070_v1 = vadd.f32 1.0, %v7022_v60  ;;  %v7024_v15 = vpop.eup %7023 }
 0x629   : > { %7025 = vtanh.f32 %v4629_v16  ;;  %v5076_v43 = vadd.f32 1.0, %v7024_v15  ;;  %v6500_v15 = vor.u32 %v6796_v12, %v6499_v2 }
 0x62a   : > { %v5294_v40 = vmul.f32 0.5, %v5070_v1  ;;  %v3858_v13 = vpop.f32.mrf.mxu0  ;;  %7027 = vtanh.f32 %v4635_v62  ;;  %v10479_v19 = vpop.f32.mrf.mxu2  ;;  %v4642_v62 = vmul.f32 0.5, %v10200_v61 }
 0x62b   : > { %v3859_v4 = vadd.f32 %v3858_v13, %v10132_v57  ;;  %v3947_v47 = vpop.f32.mrf.mxu1  ;;  %4119 = vmatmul.bf16.gmra.mxu3 %v9376_v27 }
 0x62c   : > { %v5474_v54 = vpack.c.bf16 %v5294_v40, %v5293_v26  ;;  %4436 = vmatpush.bf16.msra.mxu3 %v6500_v15  ;;  %v5300_v26 = vmul.f32 0.5, %v5076_v43  ;;  %v10503_v15 = vld [vmem:[%s11055_s4] sm:$0x7f] }
 0x62d   : > { %v3948_v28 = vadd.f32 %v3947_v47, %v3859_v4  ;;  %4173 = vmatmul.bf16.vlgmr.msra.gmra.mxu0 %v11457_v53 }
 0x62e   : > { %5603 = vst [vmem:[%s9620_s22 + $0x190] sm:$0xff] %v5474_v54  ;;  %4262 = vmatmul.bf16.vlgmr.msra.gmra.mxu1 %v9131_v51  ;;  %v3804_v63 = vpop.f32.mrf.mxu3 }
 0x62f   : > { %4351 = vmatmul.bf16.vlgmr.msra.gmra.mxu2 %v11457_v53  ;;  %v7026_v9 = vpop.eup %7025  ;;  %v4636_v60 = vmul.f32 0.5, %v3948_v28  ;;  %v10489_v16 = vadd.f32 %v3804_v63, %v3716_v32  ;;  %v3718_v28 = vadd.f32 %v10135_v55, %v9951_v22  ;;  %v4649_v22 = vmul.f32 0.5, %v10219_v38 }
 0x630   : > { %v5077_v1 = vadd.f32 1.0, %v7026_v9  ;;  %v7028_v4 = vpop.eup %7027 }
 0x631   : > { %7029 = vtanh.f32 %v4636_v60  ;;  %v5083_v63 = vadd.f32 1.0, %v7028_v4 }
 0x632   : > { %v5301_v40 = vmul.f32 0.5, %v5077_v1  ;;  %v3860_v13 = vpop.f32.mrf.mxu0  ;;  %7031 = vtanh.f32 %v4642_v62  ;;  %v10498_v60 = vpop.f32.mrf.mxu2  ;;  %v10506_v1 = vperm.slane %v10503_v15, 4 }
 0x633   : > { %v3861_v47 = vadd.f32 %v3860_v13, %v10132_v57  ;;  %v3949_v54 = vpop.f32.mrf.mxu1  ;;  %v5307_v55 = vmul.f32 0.5, %v5083_v63 }
 0x634   : > { %v5478_v53 = vpack.c.bf16 %v5301_v40, %v5300_v26 }
 0x635   : > { %v3950_v32 = vadd.f32 %v3949_v54, %v3861_v47  ;;  %v3997_v54 = vadd.f32 %v10166_v48, %v10506_v1 }
 0x636   : > { %5607 = vst [vmem:[%s9620_s22 + $0x1ac] sm:$0xff] %v5478_v53  ;;  %v3806_v2 = vpop.f32.mrf.mxu3 }
 0x637   : > { %v7030_v12 = vpop.eup %7029  ;;  %v4643_v61 = vmul.f32 0.5, %v3950_v32  ;;  %v10496_v9 = vadd.f32 %v3806_v2, %v3718_v28  ;;  %v11458_v28 = vld [vmem:[#allocation77_spill] sm:$0xff] }
 0x638   : > { %v5084_v43 = vadd.f32 1.0, %v7030_v12  ;;  %v7032_v40 = vpop.eup %7031 }
 0x639   : > { %7033 = vtanh.f32 %v4643_v61  ;;  %v5090_v32 = vadd.f32 1.0, %v7032_v40 }
 0x63a   : > { %v5308_v62 = vmul.f32 0.5, %v5084_v43  ;;  %v3863_v26 = vpop.f32.mrf.mxu0  ;;  %7035 = vtanh.f32 %v4649_v22  ;;  %v4656_v43 = vmul.f32 0.5, %v10240_v41 }
 0x63b   : > { %v3864_v13 = vadd.f32 %v3863_v26, %v10132_v57  ;;  %v3952_v4 = vpop.f32.mrf.mxu1  ;;  %4124 = vmatmul.bf16.gmra.mxu3 %v9399_v44  ;;  %v5314_v48 = vmul.f32 0.5, %v5090_v32 }
 0x63c   : > { %v5482_v47 = vpack.c.bf16 %v5308_v62, %v5307_v55  ;;  %v10520_v55 = vpop.f32.mrf.mxu2 }
 0x63d   : > { %v3953_v53 = vadd.f32 %v3952_v4, %v3864_v13  ;;  %4178 = vmatmul.bf16.gmra.mxu0 %v11458_v28 }
 0x63e   : > { %5611 = vst [vmem:[%s9620_s22 + $0x1c8] sm:$0xff] %v5482_v47  ;;  %4267 = vmatmul.bf16.gmra.mxu1 %v9168_v59  ;;  %v4085_v38 = vpop.f32.mrf.mxu3  ;;  %v3999_v47 = vadd.f32 %v10175_v3, %v10506_v1 }
 0x63f   : > { %4356 = vmatmul.bf16.gmra.mxu2 %v11458_v28  ;;  %v7034_v63 = vpop.eup %7033  ;;  %v4650_v2 = vmul.f32 0.5, %v3953_v53  ;;  %v10517_v12 = vadd.f32 %v4085_v38, %v3997_v54 }
 0x640   : > { %v5091_v61 = vadd.f32 1.0, %v7034_v63  ;;  %v7036_v26 = vpop.eup %7035 }
 0x641   : > { %7037 = vtanh.f32 %v4650_v2  ;;  %v5097_v53 = vadd.f32 1.0, %v7036_v26  ;;  %v4663_v2 = vmul.f32 0.5, %v10253_v46  ;;  %v11459_v46 = vld [vmem:[#allocation80_spill] sm:$0xff] }
 0x642   : > { %v5315_v22 = vmul.f32 0.5, %v5091_v61  ;;  %v3865_v62 = vpop.f32.mrf.mxu0  ;;  %7039 = vtanh.f32 %v4656_v43 }
 0x643   : > { %v3866_v40 = vadd.f32 %v3865_v62, %v10132_v57  ;;  %v3954_v13 = vpop.f32.mrf.mxu1  ;;  %v5321_v61 = vmul.f32 0.5, %v5097_v53  ;;  %v6471_v53 = vld [vmem:[%s11054_s3 + $0x248] sm:$0xf] }
 0x644   : > { %v5486_v4 = vpack.c.bf16 %v5315_v22, %v5314_v48 }
 0x645   : > { %v3955_v54 = vadd.f32 %v3954_v13, %v3866_v40  ;;  %v10531_v40 = vpop.f32.mrf.mxu2  ;;  %v4002_v13 = vadd.f32 %v10188_v18, %v10506_v1 }
 0x646   : > { %5615 = vst [vmem:[%s9620_s22 + $0x1e4] sm:$0xff] %v5486_v4  ;;  %v4087_v28 = vpop.f32.mrf.mxu3 }
 0x647   : > { %v7038_v41 = vpop.eup %7037  ;;  %v4657_v38 = vmul.f32 0.5, %v3955_v54  ;;  %v10526_v32 = vadd.f32 %v4087_v28, %v3999_v47  ;;  %v6789_v28 = vld [vmem:[%s11054_s3 + $0x260] sm:$0xf0] }
 0x648   : > { %v5098_v63 = vadd.f32 1.0, %v7038_v41  ;;  %v7040_v22 = vpop.eup %7039 }
 0x649   : > { %7041 = vtanh.f32 %v4657_v38  ;;  %v5104_v47 = vadd.f32 1.0, %v7040_v22 }
 0x64a   : > { %v5322_v62 = vmul.f32 0.5, %v5098_v63  ;;  %v3868_v48 = vpop.f32.mrf.mxu0  ;;  %7043 = vtanh.f32 %v4663_v2  ;;  %v6472_v63 = vor.u32 %v6789_v28, %v6471_v53 }
 0x64b   : > { %v3869_v3 = vadd.f32 %v3868_v48, %v10132_v57  ;;  %v3957_v43 = vpop.f32.mrf.mxu1  ;;  %4129 = vmatmul.bf16.gmra.mxu3 %v9426_v7 }
 0x64c   : > { %v5490_v26 = vpack.c.bf16 %v5322_v62, %v5321_v61  ;;  %v4670_v61 = vmul.f32 0.5, %v10268_v14  ;;  %4437 = vmatpush.bf16.msra.mxu3 %v6472_v63  ;;  %v5328_v62 = vmul.f32 0.5, %v5104_v47  ;;  %v4677_v63 = vmul.f32 0.5, %v10287_v56 }
 0x64d   : > { %v3958_v4 = vadd.f32 %v3957_v43, %v3869_v3  ;;  %4183 = vmatmul.bf16.gmra.mxu0 %v11459_v46  ;;  %v10552_v53 = vpop.f32.mrf.mxu2 }
 0x64e   : > { %5619 = vst [vmem:[%s9620_s22 + $0x200] sm:$0xff] %v5490_v26  ;;  %4272 = vmatmul.bf16.gmra.mxu1 %v11446_v5  ;;  %v4090_v54 = vpop.f32.mrf.mxu3 }
 0x64f   : > { %4361 = vmatmul.bf16.gmra.mxu2 %v11459_v46  ;;  %v7042_v18 = vpop.eup %7041  ;;  %v4664_v41 = vmul.f32 0.5, %v3958_v4  ;;  %v10545_v38 = vadd.f32 %v4090_v54, %v4002_v13  ;;  %v4004_v4 = vadd.f32 %v10203_v8, %v10506_v1 }
 0x650   : > { %v5105_v2 = vadd.f32 1.0, %v7042_v18  ;;  %v7044_v3 = vpop.eup %7043 }
 0x651   : > { %7045 = vtanh.f32 %v4664_v41  ;;  %v5111_v54 = vadd.f32 1.0, %v7044_v3 }
 0x652   : > { %v5329_v48 = vmul.f32 0.5, %v5105_v2  ;;  %v3870_v22 = vpop.f32.mrf.mxu0  ;;  %7047 = vtanh.f32 %v4670_v61 }
 0x653   : > { %v3871_v43 = vadd.f32 %v3870_v22, %v10132_v57  ;;  %v3959_v26 = vpop.f32.mrf.mxu1  ;;  %v5335_v2 = vmul.f32 0.5, %v5111_v54 }
 0x654   : > { %v5494_v46 = vpack.c.bf16 %v5329_v48, %v5328_v62 }
 0x655   : > { %v3960_v13 = vadd.f32 %v3959_v26, %v3871_v43  ;;  %v4007_v43 = vadd.f32 %v10234_v20, %v10506_v1  ;;  %v4684_v20 = vmul.f32 0.5, %v10308_v6 }
 0x656   : > { %5623 = vst [vmem:[%s9620_s22 + $0x21c] sm:$0xff] %v5494_v46  ;;  %v4092_v14 = vpop.f32.mrf.mxu3  ;;  %v11460_v46 = vld [vmem:[#allocation83_spill] sm:$0xff] }
 0x657   : > { %v7046_v28 = vpop.eup %7045  ;;  %v4671_v18 = vmul.f32 0.5, %v3960_v13  ;;  %v10554_v47 = vadd.f32 %v4092_v14, %v4004_v4 }
 0x658   : > { %v5112_v41 = vadd.f32 1.0, %v7046_v28  ;;  %v7048_v8 = vpop.eup %7047  ;;  %v10567_v28 = vpop.f32.mrf.mxu2 }
 0x659   : > { %7049 = vtanh.f32 %v4671_v18  ;;  %v5118_v4 = vadd.f32 1.0, %v7048_v8 }
 0x65a   : > { %v5336_v62 = vmul.f32 0.5, %v5112_v41  ;;  %v3873_v48 = vpop.f32.mrf.mxu0  ;;  %7051 = vtanh.f32 %v4677_v63 }
 0x65b   : > { %v3874_v61 = vadd.f32 %v3873_v48, %v10132_v57  ;;  %v3962_v22 = vpop.f32.mrf.mxu1  ;;  %4134 = vmatmul.bf16.gmra.mxu3 %v9447_v35  ;;  %v5342_v41 = vmul.f32 0.5, %v5118_v4 }
 0x65c   : > { %v5498_v3 = vpack.c.bf16 %v5336_v62, %v5335_v2 }
 0x65d   : > { %v3963_v26 = vadd.f32 %v3962_v22, %v3874_v61  ;;  %4188 = vmatmul.bf16.gmra.mxu0 %v11460_v46  ;;  %v4009_v22 = vadd.f32 %v10243_v33, %v10506_v1 }
 0x65e   : > { %5627 = vst [vmem:[%s9620_s22 + $0x238] sm:$0xff] %v5498_v3  ;;  %4277 = vmatmul.bf16.gmra.mxu1 %v9218_v50  ;;  %v4095_v56 = vpop.f32.mrf.mxu3 }
 0x65f   : > { %4366 = vmatmul.bf16.gmra.mxu2 %v11460_v46  ;;  %v7050_v13 = vpop.eup %7049  ;;  %v4678_v54 = vmul.f32 0.5, %v3963_v26  ;;  %v10565_v14 = vadd.f32 %v4095_v56, %v4007_v43 }
 0x660   : > { %v5119_v18 = vadd.f32 1.0, %v7050_v13  ;;  %v7052_v62 = vpop.eup %7051  ;;  %v4691_v13 = vmul.f32 0.5, %v10357_v21  ;;  %v11461_v21 = vld [vmem:[#allocation86_spill] sm:$0xff] }
 0x661   : > { %7053 = vtanh.f32 %v4678_v54  ;;  %v5125_v43 = vadd.f32 1.0, %v7052_v62 }
 0x662   : > { %v5343_v63 = vmul.f32 0.5, %v5119_v18  ;;  %v3875_v2 = vpop.f32.mrf.mxu0  ;;  %7055 = vtanh.f32 %v4684_v20  ;;  %v10577_v18 = vpop.f32.mrf.mxu2 }
 0x663   : > { %v3876_v48 = vadd.f32 %v3875_v2, %v10132_v57  ;;  %v3964_v8 = vpop.f32.mrf.mxu1  ;;  %v5349_v54 = vmul.f32 0.5, %v5125_v43  ;;  %v6782_v43 = vld [vmem:[%s11054_s3 + $0x228] sm:$0xf0] }
 0x664   : > { %v5502_v61 = vpack.c.bf16 %v5343_v63, %v5342_v41 }
 0x665   : > { %v3965_v3 = vadd.f32 %v3964_v8, %v3876_v48  ;;  %v4012_v48 = vadd.f32 %v10256_v58, %v10506_v1 }
 0x666   : > { %5631 = vst [vmem:[%s9620_s22 + $0x254] sm:$0xff] %v5502_v61  ;;  %v4097_v26 = vpop.f32.mrf.mxu3 }
 0x667   : > { %v7054_v46 = vpop.eup %7053  ;;  %v4685_v56 = vmul.f32 0.5, %v3965_v3  ;;  %v10574_v6 = vadd.f32 %v4097_v26, %v4009_v22  ;;  %v6443_v3 = vld [vmem:[%s11054_s3 + $0x210] sm:$0xf] }
 0x668   : > { %v5126_v4 = vadd.f32 1.0, %v7054_v46  ;;  %v7056_v33 = vpop.eup %7055 }
 0x669   : > { %7057 = vtanh.f32 %v4685_v56  ;;  %v5132_v61 = vadd.f32 1.0, %v7056_v33  ;;  %v6444_v56 = vor.u32 %v6782_v43, %v6443_v3 }
 0x66a   : > { %v5350_v41 = vmul.f32 0.5, %v5126_v4  ;;  %v3878_v63 = vpop.f32.mrf.mxu0  ;;  %7059 = vtanh.f32 %v4691_v13  ;;  %v4698_v13 = vmul.f32 0.5, %v10402_v29 }
 0x66b   : > { %v3879_v20 = vadd.f32 %v3878_v63, %v10132_v57  ;;  %v3967_v2 = vpop.f32.mrf.mxu1  ;;  %4139 = vmatmul.bf16.gmra.mxu3 %v9474_v31 }
 0x66c   : > { %v5506_v62 = vpack.c.bf16 %v5350_v41, %v5349_v54  ;;  %4438 = vmatpush.bf16.msra.mxu3 %v6444_v56  ;;  %v5356_v54 = vmul.f32 0.5, %v5132_v61 }
 0x66d   : > { %v3968_v8 = vadd.f32 %v3967_v2, %v3879_v20  ;;  %4193 = vmatmul.bf16.gmra.mxu0 %v11461_v21 }
 0x66e   : > { %5635 = vst [vmem:[%s9620_s22 + $0x270] sm:$0xff] %v5506_v62  ;;  %4282 = vmatmul.bf16.gmra.mxu1 %v11450_v25  ;;  %v4100_v22 = vpop.f32.mrf.mxu3  ;;  %v10597_v62 = vpop.f32.mrf.mxu2 }
 0x66f   : > { %4371 = vmatmul.bf16.gmra.mxu2 %v11461_v21  ;;  %v7058_v58 = vpop.eup %7057  ;;  %v4692_v26 = vmul.f32 0.5, %v3968_v8  ;;  %v10593_v46 = vadd.f32 %v4100_v22, %v4012_v48  ;;  %v4014_v48 = vadd.f32 %v10271_v23, %v10506_v1 }
 0x670   : > { %v5133_v4 = vadd.f32 1.0, %v7058_v58  ;;  %v7060_v33 = vpop.eup %7059 }
 0x671   : > { %7061 = vtanh.f32 %v4692_v26  ;;  %v5139_v22 = vadd.f32 1.0, %v7060_v33  ;;  %v4705_v26 = vmul.f32 0.5, %v10439_v42  ;;  %v11462_v33 = vld [vmem:[#allocation14_spill] sm:$0xff] }
 0x672   : > { %v5357_v41 = vmul.f32 0.5, %v5133_v4  ;;  %v3880_v63 = vpop.f32.mrf.mxu0  ;;  %7063 = vtanh.f32 %v4698_v13 }
 0x673   : > { %v3881_v20 = vadd.f32 %v3880_v63, %v10132_v57  ;;  %v3969_v2 = vpop.f32.mrf.mxu1  ;;  %v5363_v56 = vmul.f32 0.5, %v5139_v22 }
 0x674   : > { %v5510_v21 = vpack.c.bf16 %v5357_v41, %v5356_v54 }
 0x675   : > { %v3970_v8 = vadd.f32 %v3969_v2, %v3881_v20  ;;  %v4017_v20 = vadd.f32 %v11462_v33, %v10506_v1 }
 0x676   : > { %5639 = vst [vmem:[%s9620_s22 + $0x28c] sm:$0xff] %v5510_v21  ;;  %v4102_v29 = vpop.f32.mrf.mxu3  ;;  %v11463_v21 = vld [vmem:[#allocation89_spill] sm:$0xff] }
 0x677   : > { %v7062_v3 = vpop.eup %7061  ;;  %v4699_v43 = vmul.f32 0.5, %v3970_v8  ;;  %v10602_v61 = vadd.f32 %v4102_v29, %v4014_v48  ;;  %v10610_v48 = vpop.f32.mrf.mxu2 }
 0x678   : > { %v5140_v58 = vadd.f32 1.0, %v7062_v3  ;;  %v7064_v41 = vpop.eup %7063 }
 0x679   : > { %7065 = vtanh.f32 %v4699_v43  ;;  %v5146_v42 = vadd.f32 1.0, %v7064_v41 }
 0x67a   : > { %v5364_v4 = vmul.f32 0.5, %v5140_v58  ;;  %v3883_v54 = vpop.f32.mrf.mxu0  ;;  %7067 = vtanh.f32 %v4705_v26  ;;  %v4712_v58 = vmul.f32 0.5, %v10448_v10 }
 0x67b   : > { %v3884_v23 = vadd.f32 %v3883_v54, %v10132_v57  ;;  %v3972_v13 = vpop.f32.mrf.mxu1  ;;  %4144 = vmatmul.bf16.gmra.mxu3 %v11436_v0  ;;  %v5370_v26 = vmul.f32 0.5, %v5146_v42 }
 0x67c   : > { %v5514_v63 = vpack.c.bf16 %v5364_v4, %v5363_v56 }
 0x67d   : > { %v3973_v2 = vadd.f32 %v3972_v13, %v3884_v23  ;;  %4198 = vmatmul.bf16.gmra.mxu0 %v11463_v21 }
 0x67e   : > { %5643 = vst [vmem:[%s9620_s22 + $0x2a8] sm:$0xff] %v5514_v63  ;;  %4287 = vmatmul.bf16.gmra.mxu1 %v9333_v34  ;;  %v4105_v8 = vpop.f32.mrf.mxu3  ;;  %v4019_v63 = vadd.f32 %v10317_v30, %v10506_v1 }
 0x67f   : > { %4376 = vmatmul.bf16.gmra.mxu2 %v11463_v21  ;;  %v7066_v22 = vpop.eup %7065  ;;  %v4706_v29 = vmul.f32 0.5, %v3973_v2  ;;  %v10615_v3 = vadd.f32 %v4105_v8, %v4017_v20  ;;  %v10624_v42 = vpop.f32.mrf.mxu2 }
 0x680   : > { %v5147_v43 = vadd.f32 1.0, %v7066_v22  ;;  %v7068_v54 = vpop.eup %7067 }
 0x681   : > { %7069 = vtanh.f32 %v4706_v29  ;;  %v5153_v2 = vadd.f32 1.0, %v7068_v54  ;;  %v4719_v29 = vmul.f32 0.5, %v10461_v37 }
 0x682   : > { %v5371_v56 = vmul.f32 0.5, %v5147_v43  ;;  %v3885_v4 = vpop.f32.mrf.mxu0  ;;  %7071 = vtanh.f32 %v4712_v58 }
 0x683   : > { %v3886_v41 = vadd.f32 %v3885_v4, %v10132_v57  ;;  %v3974_v23 = vpop.f32.mrf.mxu1  ;;  %v5377_v43 = vmul.f32 0.5, %v5153_v2  ;;  %v6775_v2 = vld [vmem:[%s11054_s3 + $0x1f0] sm:$0xf0] }
 0x684   : > { %v5518_v13 = vpack.c.bf16 %v5371_v56, %v5370_v26 }
 0x685   : > { %v3975_v33 = vadd.f32 %v3974_v23, %v3886_v41  ;;  %v4022_v41 = vadd.f32 %v10366_v17, %v10506_v1 }
 0x686   : > { %5647 = vst [vmem:[%s9620_s22 + $0x2c4] sm:$0xff] %v5518_v13  ;;  %v4107_v20 = vpop.f32.mrf.mxu3  ;;  %v11464_v13 = vld [vmem:[#allocation92_spill] sm:$0xff] }
 0x687   : > { %v7070_v21 = vpop.eup %7069  ;;  %v4713_v8 = vmul.f32 0.5, %v3975_v33  ;;  %v10622_v10 = vadd.f32 %v4107_v20, %v4019_v63  ;;  %v6415_v33 = vld [vmem:[%s11054_s3 + $0x1d8] sm:$0xf] }
 0x688   : > { %v5154_v22 = vadd.f32 1.0, %v7070_v21  ;;  %v7072_v30 = vpop.eup %7071 }
 0x689   : > { %7073 = vtanh.f32 %v4713_v8  ;;  %v5160_v63 = vadd.f32 1.0, %v7072_v30  ;;  %v6416_v8 = vor.u32 %v6775_v2, %v6415_v33 }
 0x68a   : > { %v5378_v26 = vmul.f32 0.5, %v5154_v22  ;;  %v3888_v56 = vpop.f32.mrf.mxu0  ;;  %7075 = vtanh.f32 %v4719_v29  ;;  %v4726_v29 = vmul.f32 0.5, %v10470_v45 }
 0x68b   : > { %v3889_v58 = vadd.f32 %v3888_v56, %v10132_v57  ;;  %v3977_v4 = vpop.f32.mrf.mxu1  ;;  %4149 = vmatmul.bf16.gmra.mxu3 %v9522_v52 }
 0x68c   : > { %v5522_v54 = vpack.c.bf16 %v5378_v26, %v5377_v43  ;;  %4439 = vmatpush.bf16.msra.mxu3 %v6416_v8  ;;  %v5384_v43 = vmul.f32 0.5, %v5160_v63  ;;  %v10644_v26 = vpop.f32.mrf.mxu2  ;;  %v4733_v8 = vmul.f32 0.5, %v10489_v16  ;;  %v11467_v16 = vld [vmem:[#allocation93_spill] sm:$0xff] }
 0x68d   : > { %v3978_v23 = vadd.f32 %v3977_v4, %v3889_v58  ;;  %4203 = vmatmul.bf16.gmra.mxu0 %v11464_v13 }
 0x68e   : > { %5651 = vst [vmem:[%s9620_s22 + $0x2e0] sm:$0xff] %v5522_v54  ;;  %4292 = vmatmul.bf16.gmra.mxu1 %v11455_v24  ;;  %v4110_v37 = vpop.f32.mrf.mxu3 }
 0x68f   : > { %4381 = vmatmul.bf16.gmra.mxu2 %v11464_v13  ;;  %v7074_v17 = vpop.eup %7073  ;;  %v4720_v20 = vmul.f32 0.5, %v3978_v23  ;;  %v10641_v21 = vadd.f32 %v4110_v37, %v4022_v41  ;;  %v11465_v41 = vld [vmem:[#allocation61_spill] sm:$0xff] }
 0x690   : > { %v5161_v22 = vadd.f32 1.0, %v7074_v17  ;;  %v7076_v58 = vpop.eup %7075  ;;  %v4024_v23 = vadd.f32 %v11465_v41, %v10506_v1 }
 0x691   : > { %7077 = vtanh.f32 %v4720_v20  ;;  %v5167_v33 = vadd.f32 1.0, %v7076_v58 }
 0x692   : > { %v5385_v56 = vmul.f32 0.5, %v5161_v22  ;;  %v3890_v30 = vpop.f32.mrf.mxu0  ;;  %7079 = vtanh.f32 %v4726_v29 }
 0x693   : > { %v3891_v4 = vadd.f32 %v3890_v30, %v10132_v57  ;;  %v3979_v54 = vpop.f32.mrf.mxu1  ;;  %v5391_v22 = vmul.f32 0.5, %v5167_v33 }
 0x694   : > { %v5526_v13 = vpack.c.bf16 %v5385_v56, %v5384_v43  ;;  %v10655_v58 = vpop.f32.mrf.mxu2 }
 0x695   : > { %v3980_v37 = vadd.f32 %v3979_v54, %v3891_v4  ;;  %v11466_v4 = vld [vmem:[#allocation57_spill] sm:$0xff] }
 0x696   : > { %5655 = vst [vmem:[%s9620_s22 + $0x2fc] sm:$0xff] %v5526_v13  ;;  %v4112_v45 = vpop.f32.mrf.mxu3  ;;  %v4027_v13 = vadd.f32 %v10442_v11, %v10506_v1 }
 0x697   : > { %v7078_v2 = vpop.eup %7077  ;;  %v4727_v17 = vmul.f32 0.5, %v3980_v37  ;;  %v10650_v63 = vadd.f32 %v4112_v45, %v4024_v23 }
 0x698   : > { %v5168_v20 = vadd.f32 1.0, %v7078_v2  ;;  %v7080_v56 = vpop.eup %7079 }
 0x699   : > { %7081 = vtanh.f32 %v4727_v17  ;;  %v5174_v37 = vadd.f32 1.0, %v7080_v56 }
 0x69a   : > { %v5392_v30 = vmul.f32 0.5, %v5168_v20  ;;  %v3893_v43 = vpop.f32.mrf.mxu0  ;;  %7083 = vtanh.f32 %v4733_v8 }
 0x69b   : > { %v3894_v41 = vadd.f32 %v3893_v43, %v10132_v57  ;;  %v3982_v29 = vpop.f32.mrf.mxu1  ;;  %4154 = vmatmul.bf16.gmra.mxu3 %v11466_v4  ;;  %v5398_v11 = vmul.f32 0.5, %v5174_v37 }
 0x69c   : > { %v5530_v54 = vpack.c.bf16 %v5392_v30, %v5391_v22  ;;  %v4740_v22 = vmul.f32 0.5, %v10496_v9 }
 0x69d   : > { %v3983_v23 = vadd.f32 %v3982_v29, %v3894_v41  ;;  %4208 = vmatmul.bf16.gmra.mxu0 %v11467_v16 }
 0x69e   : > { %5659 = vst [vmem:[%s9620_s22 + $0x318] sm:$0xff] %v5530_v54  ;;  %4297 = vmatmul.bf16.gmra.mxu1 %v9376_v27  ;;  %v4115_v33 = vpop.f32.mrf.mxu3  ;;  %v4029_v54 = vadd.f32 %v10451_v36, %v10506_v1 }
 0x69f   : > { %4386 = vmatmul.bf16.gmra.mxu2 %v11467_v16  ;;  %v7082_v45 = vpop.eup %7081  ;;  %v4734_v2 = vmul.f32 0.5, %v3983_v23  ;;  %v10663_v17 = vadd.f32 %v4115_v33, %v4027_v13  ;;  %v10669_v16 = vpop.f32.mrf.mxu2 }
 0x6a0   : > { %v5175_v20 = vadd.f32 1.0, %v7082_v45  ;;  %v7084_v43 = vpop.eup %7083 }
 0x6a1   : > { %7085 = vtanh.f32 %v4734_v2  ;;  %v5181_v13 = vadd.f32 1.0, %v7084_v43  ;;  %v10675_v2 = vperm.slane %v10503_v15, 5 }
 0x6a2   : > { %v5399_v8 = vmul.f32 0.5, %v5175_v20  ;;  %v3895_v30 = vpop.f32.mrf.mxu0  ;;  %7087 = vtanh.f32 %v4740_v22  ;;  %v4525_v20 = vmul.f32 0.5, %v10517_v12 }
 0x6a3   : > { %v3896_v56 = vadd.f32 %v3895_v30, %v10132_v57  ;;  %v3984_v41 = vpop.f32.mrf.mxu1  ;;  %v5405_v36 = vmul.f32 0.5, %v5181_v13 }
 0x6a4   : > { %v5534_v29 = vpack.c.bf16 %v5399_v8, %v5398_v11 }
 0x6a5   : > { %v3985_v23 = vadd.f32 %v3984_v41, %v3896_v56  ;;  %v4032_v41 = vadd.f32 %v10465_v39, %v10506_v1  ;;  %v4532_v39 = vmul.f32 0.5, %v10526_v32 }
 0x6a6   : > { %5663 = vst [vmem:[%s9620_s22 + $0x334] sm:$0xff] %v5534_v29  ;;  %v4117_v33 = vpop.f32.mrf.mxu3  ;;  %v11468_v29 = vld [vmem:[#allocation94_spill] sm:$0xff] }
 0x6a7   : > { %v7086_v9 = vpop.eup %7085  ;;  %v4741_v45 = vmul.f32 0.5, %v3985_v23  ;;  %v10672_v37 = vadd.f32 %v4117_v33, %v4029_v54 }
 0x6a8   : > { %v5182_v57 = vadd.f32 1.0, %v7086_v9  ;;  %v7088_v8 = vpop.eup %7087  ;;  %v10688_v9 = vpop.f32.mrf.mxu2 }
 0x6a9   : > { %7089 = vtanh.f32 %v4741_v45  ;;  %v5188_v54 = vadd.f32 1.0, %v7088_v8 }
 0x6aa   : > { %v5406_v22 = vmul.f32 0.5, %v5182_v57  ;;  %v4174_v11 = vpop.f32.mrf.mxu0  ;;  %7091 = vtanh.f32 %v4525_v20 }
 0x6ab   : > { %v4175_v30 = vadd.f32 %v4174_v11, %v10675_v2  ;;  %v4263_v43 = vpop.f32.mrf.mxu1  ;;  %4159 = vmatmul.bf16.gmra.mxu3 %v9574_v49  ;;  %v5412_v57 = vmul.f32 0.5, %v5188_v54 }
 0x6ac   : > { %v5538_v56 = vpack.c.bf16 %v5406_v22, %v5405_v36 }
 0x6ad   : > { %v4264_v15 = vadd.f32 %v4263_v43, %v4175_v30  ;;  %4213 = vmatmul.bf16.gmra.mxu0 %v11468_v29  ;;  %v4034_v43 = vadd.f32 %v10479_v19, %v10506_v1 }
 0x6ae   : > { %5667 = vst [vmem:[%s9620_s22 + $0x350] sm:$0xff] %v5538_v56  ;;  %4302 = vmatmul.bf16.gmra.mxu1 %v9399_v44  ;;  %v4120_v12 = vpop.f32.mrf.mxu3 }
 0x6af   : > { %4391 = vmatmul.bf16.gmra.mxu2 %v11468_v29  ;;  %v7090_v23 = vpop.eup %7089  ;;  %v4526_v13 = vmul.f32 0.5, %v4264_v15  ;;  %v10686_v33 = vadd.f32 %v4120_v12, %v4032_v41 }
 0x6b0   : > { %v5189_v45 = vadd.f32 1.0, %v7090_v23  ;;  %v7092_v22 = vpop.eup %7091  ;;  %v4539_v23 = vmul.f32 0.5, %v10545_v38  ;;  %v11469_v38 = vld [vmem:[#allocation95_spill] sm:$0xff] }
 0x6b1   : > { %7093 = vtanh.f32 %v4526_v13  ;;  %v4973_v41 = vadd.f32 1.0, %v7092_v22 }
 0x6b2   : > { %v5413_v20 = vmul.f32 0.5, %v5189_v45  ;;  %v4176_v36 = vpop.f32.mrf.mxu0  ;;  %7095 = vtanh.f32 %v4532_v39  ;;  %v10698_v45 = vpop.f32.mrf.mxu2 }
 0x6b3   : > { %v4177_v11 = vadd.f32 %v4176_v36, %v10675_v2  ;;  %v4265_v8 = vpop.f32.mrf.mxu1  ;;  %v5197_v13 = vmul.f32 0.5, %v4973_v41 }
 0x6b4   : > { %v5542_v30 = vpack.c.bf16 %v5413_v20, %v5412_v57 }
 0x6b5   : > { %v4266_v56 = vadd.f32 %v4265_v8, %v4177_v11  ;;  %v4037_v11 = vadd.f32 %v10498_v60, %v10506_v1 }
 0x6b6   : > { %5671 = vst [vmem:[%s9620_s22 + $0x36c] sm:$0xff] %v5542_v30  ;;  %v4122_v15 = vpop.f32.mrf.mxu3 }
 0x6b7   : > { %v7094_v29 = vpop.eup %7093  ;;  %v4533_v12 = vmul.f32 0.5, %v4266_v56  ;;  %v10695_v32 = vadd.f32 %v4122_v15, %v4034_v43 }
 0x6b8   : > { %v4974_v54 = vadd.f32 1.0, %v7094_v29  ;;  %v7096_v19 = vpop.eup %7095  ;;  %v4546_v29 = vmul.f32 0.5, %v10554_v47 }
 0x6b9   : > { %7097 = vtanh.f32 %v4533_v12  ;;  %v4980_v30 = vadd.f32 1.0, %v7096_v19 }
 0x6ba   : > { %v5198_v57 = vmul.f32 0.5, %v4974_v54  ;;  %v4179_v20 = vpop.f32.mrf.mxu0  ;;  %7099 = vtanh.f32 %v4539_v23 }
 0x6bb   : > { %v4180_v39 = vadd.f32 %v4179_v20, %v10675_v2  ;;  %v4268_v36 = vpop.f32.mrf.mxu1  ;;  %4440 = vmatmul.bf16.vlgmr.msra.gmra.mxu3 %v9131_v51  ;;  %v5204_v60 = vmul.f32 0.5, %v4980_v30  ;;  %v10712_v20 = vpop.f32.mrf.mxu2 }
 0x6bc   : > { %v5419_v22 = vpack.c.bf16 %v5198_v57, %v5197_v13 }
 0x6bd   : > { %v4269_v8 = vadd.f32 %v4268_v36, %v4180_v39  ;;  %4218 = vmatmul.bf16.gmra.mxu0 %v11469_v38  ;;  %v4039_v39 = vadd.f32 %v10520_v55, %v10506_v1 }
 0x6be   : > { %5547 = vst [vmem:[%s9620_s22 + $0x10] sm:$0xff] %v5419_v22  ;;  %4307 = vmatmul.bf16.gmra.mxu1 %v9426_v7  ;;  %v4125_v43 = vpop.f32.mrf.mxu3 }
 0x6bf   : > { %4396 = vmatmul.bf16.gmra.mxu2 %v11469_v38  ;;  %v7098_v56 = vpop.eup %7097  ;;  %v4540_v41 = vmul.f32 0.5, %v4269_v8  ;;  %v10708_v15 = vadd.f32 %v4125_v43, %v4037_v11  ;;  %v4553_v43 = vmul.f32 0.5, %v10565_v14 }
 0x6c0   : > { %v4981_v51 = vadd.f32 1.0, %v7098_v56  ;;  %v7100_v23 = vpop.eup %7099 }
 0x6c1   : > { %7101 = vtanh.f32 %v4540_v41  ;;  %v4987_v22 = vadd.f32 1.0, %v7100_v23 }
 0x6c2   : > { %v5205_v12 = vmul.f32 0.5, %v4981_v51  ;;  %v4181_v54 = vpop.f32.mrf.mxu0  ;;  %7103 = vtanh.f32 %v4546_v29 }
 0x6c3   : > { %v4182_v13 = vadd.f32 %v4181_v54, %v10675_v2  ;;  %v4270_v57 = vpop.f32.mrf.mxu1  ;;  %v5211_v56 = vmul.f32 0.5, %v4987_v22  ;;  %v4042_v54 = vadd.f32 %v10531_v40, %v10506_v1  ;;  %v4560_v40 = vmul.f32 0.5, %v10574_v6 }
 0x6c4   : > { %v5423_v19 = vpack.c.bf16 %v5205_v12, %v5204_v60 }
 0x6c5   : > { %v4271_v36 = vadd.f32 %v4270_v57, %v4182_v13  ;;  %v11470_v13 = vld [vmem:[#allocation2_spill] sm:$0xff]  ;;  %v10725_v57 = vpop.f32.mrf.mxu2 }
 0x6c6   : > { %5552 = vst [vmem:[%s9620_s22 + $0x2c] sm:$0xff] %v5423_v19  ;;  %v4127_v11 = vpop.f32.mrf.mxu3 }
 0x6c7   : > { %v7102_v47 = vpop.eup %7101  ;;  %v4547_v8 = vmul.f32 0.5, %v4271_v36  ;;  %v10717_v38 = vadd.f32 %v4127_v11, %v4039_v39 }
 0x6c8   : > { %v4988_v30 = vadd.f32 1.0, %v7102_v47  ;;  %v7104_v60 = vpop.eup %7103 }
 0x6c9   : > { %7105 = vtanh.f32 %v4547_v8  ;;  %v4994_v14 = vadd.f32 1.0, %v7104_v60 }
 0x6ca   : > { %v5212_v41 = vmul.f32 0.5, %v4988_v30  ;;  %v4184_v51 = vpop.f32.mrf.mxu0  ;;  %7107 = vtanh.f32 %v4553_v43 }
 0x6cb   : > { %v4185_v55 = vadd.f32 %v4184_v51, %v10675_v2  ;;  %v4273_v29 = vpop.f32.mrf.mxu1  ;;  %4445 = vmatmul.bf16.gmra.mxu3 %v9168_v59  ;;  %v5218_v11 = vmul.f32 0.5, %v4994_v14  ;;  %v4044_v51 = vadd.f32 %v10552_v53, %v10506_v1  ;;  %v4567_v14 = vmul.f32 0.5, %v10593_v46 }
 0x6cc   : > { %v5427_v12 = vpack.c.bf16 %v5212_v41, %v5211_v56 }
 0x6cd   : > { %v4274_v23 = vadd.f32 %v4273_v29, %v4185_v55  ;;  %4223 = vmatmul.bf16.gmra.mxu0 %v11470_v13 }
 0x6ce   : > { %5556 = vst [vmem:[%s9620_s22 + $0x48] sm:$0xff] %v5427_v12  ;;  %4312 = vmatmul.bf16.gmra.mxu1 %v9447_v35  ;;  %v4130_v19 = vpop.f32.mrf.mxu3 }
 0x6cf   : > { %4401 = vmatmul.bf16.gmra.mxu2 %v11470_v13  ;;  %v7106_v39 = vpop.eup %7105  ;;  %v4554_v36 = vmul.f32 0.5, %v4274_v23  ;;  %v10730_v59 = vadd.f32 %v4130_v19, %v4042_v54  ;;  %v10739_v23 = vpop.f32.mrf.mxu2 }
 0x6d0   : > { %v4995_v22 = vadd.f32 1.0, %v7106_v39  ;;  %v7108_v30 = vpop.eup %7107 }
 0x6d1   : > { %7109 = vtanh.f32 %v4554_v36  ;;  %v5001_v55 = vadd.f32 1.0, %v7108_v30  ;;  %v11471_v30 = vld [vmem:[#allocation46_spill] sm:$0xff] }
 0x6d2   : > { %v5219_v47 = vmul.f32 0.5, %v4995_v22  ;;  %v4186_v8 = vpop.f32.mrf.mxu0  ;;  %7111 = vtanh.f32 %v4560_v40 }
 0x6d3   : > { %v4187_v43 = vadd.f32 %v4186_v8, %v10675_v2  ;;  %v4275_v56 = vpop.f32.mrf.mxu1  ;;  %v5225_v19 = vmul.f32 0.5, %v5001_v55 }
 0x6d4   : > { %v5431_v41 = vpack.c.bf16 %v5219_v47, %v5218_v11  ;;  %v4047_v47 = vadd.f32 %v10567_v28, %v10506_v1 }
 0x6d5   : > { %v4276_v60 = vadd.f32 %v4275_v56, %v4187_v43 }
 0x6d6   : > { %5560 = vst [vmem:[%s9620_s22 + $0x64] sm:$0xff] %v5431_v41  ;;  %v4132_v29 = vpop.f32.mrf.mxu3 }
 0x6d7   : > { %v7110_v12 = vpop.eup %7109  ;;  %v4561_v54 = vmul.f32 0.5, %v4276_v60  ;;  %v10737_v6 = vadd.f32 %v4132_v29, %v4044_v51  ;;  %v4574_v60 = vmul.f32 0.5, %v10602_v61  ;;  %v10753_v55 = vpop.f32.mrf.mxu2 }
 0x6d8   : > { %v5002_v13 = vadd.f32 1.0, %v7110_v12  ;;  %v7112_v53 = vpop.eup %7111 }
 0x6d9   : > { %7113 = vtanh.f32 %v4561_v54  ;;  %v5008_v43 = vadd.f32 1.0, %v7112_v53 }
 0x6da   : > { %v5226_v39 = vmul.f32 0.5, %v5002_v13  ;;  %v4189_v36 = vpop.f32.mrf.mxu0  ;;  %7115 = vtanh.f32 %v4567_v14 }
 0x6db   : > { %v4190_v22 = vadd.f32 %v4189_v36, %v10675_v2  ;;  %v4278_v40 = vpop.f32.mrf.mxu1  ;;  %4450 = vmatmul.bf16.gmra.mxu3 %v11446_v5  ;;  %v5232_v28 = vmul.f32 0.5, %v5008_v43 }
 0x6dc   : > { %v5435_v11 = vpack.c.bf16 %v5226_v39, %v5225_v19  ;;  %v4049_v39 = vadd.f32 %v10577_v18, %v10506_v1 }
 0x6dd   : > { %v4279_v8 = vadd.f32 %v4278_v40, %v4190_v22  ;;  %4228 = vmatmul.bf16.gmra.mxu0 %v11471_v30 }
 0x6de   : > { %5564 = vst [vmem:[%s9620_s22 + $0x80] sm:$0xff] %v5435_v11  ;;  %4317 = vmatmul.bf16.gmra.mxu1 %v9474_v31  ;;  %v4135_v46 = vpop.f32.mrf.mxu3 }
 0x6df   : > { %4406 = vmatmul.bf16.gmra.mxu2 %v11471_v30  ;;  %v7114_v56 = vpop.eup %7113  ;;  %v4568_v41 = vmul.f32 0.5, %v4279_v8  ;;  %v10750_v51 = vadd.f32 %v4135_v46, %v4047_v47  ;;  %v4581_v8 = vmul.f32 0.5, %v10615_v3  ;;  %v11472_v3 = vld [vmem:[#allocation52_spill] sm:$0xff] }
 0x6e0   : > { %v5009_v5 = vadd.f32 1.0, %v7114_v56  ;;  %v7116_v54 = vpop.eup %7115 }
 0x6e1   : > { %7117 = vtanh.f32 %v4568_v41  ;;  %v5015_v53 = vadd.f32 1.0, %v7116_v54 }
 0x6e2   : > { %v5233_v29 = vmul.f32 0.5, %v5009_v5  ;;  %v4191_v12 = vpop.f32.mrf.mxu0  ;;  %7119 = vtanh.f32 %v4574_v60  ;;  %v10764_v5 = vpop.f32.mrf.mxu2 }
 0x6e3   : > { %v4192_v13 = vadd.f32 %v4191_v12, %v10675_v2  ;;  %v4280_v14 = vpop.f32.mrf.mxu1  ;;  %v5239_v30 = vmul.f32 0.5, %v5015_v53 }
 0x6e4   : > { %v5439_v19 = vpack.c.bf16 %v5233_v29, %v5232_v28  ;;  %v4052_v28 = vadd.f32 %v10597_v62, %v10506_v1 }
 0x6e5   : > { %v4281_v36 = vadd.f32 %v4280_v14, %v4192_v13 }
 0x6e6   : > { %5568 = vst [vmem:[%s9620_s22 + $0x9c] sm:$0xff] %v5439_v19  ;;  %v4137_v22 = vpop.f32.mrf.mxu3 }
 0x6e7   : > { %v7118_v61 = vpop.eup %7117  ;;  %v4575_v40 = vmul.f32 0.5, %v4281_v36  ;;  %v10759_v11 = vadd.f32 %v4137_v22, %v4049_v39  ;;  %v4588_v39 = vmul.f32 0.5, %v10622_v10 }
 0x6e8   : > { %v5016_v47 = vadd.f32 1.0, %v7118_v61  ;;  %v7120_v56 = vpop.eup %7119 }
 0x6e9   : > { %7121 = vtanh.f32 %v4575_v40  ;;  %v5022_v12 = vadd.f32 1.0, %v7120_v56 }
 0x6ea   : > { %v5240_v43 = vmul.f32 0.5, %v5016_v47  ;;  %v4194_v46 = vpop.f32.mrf.mxu0  ;;  %7123 = vtanh.f32 %v4581_v8  ;;  %v4054_v8 = vadd.f32 %v10610_v48, %v10506_v1 }
 0x6eb   : > { %v4195_v18 = vadd.f32 %v4194_v46, %v10675_v2  ;;  %v4283_v41 = vpop.f32.mrf.mxu1  ;;  %4455 = vmatmul.bf16.gmra.mxu3 %v9218_v50  ;;  %v5246_v62 = vmul.f32 0.5, %v5022_v12  ;;  %v10778_v46 = vpop.f32.mrf.mxu2 }
 0x6ec   : > { %v5443_v60 = vpack.c.bf16 %v5240_v43, %v5239_v30 }
 0x6ed   : > { %v4284_v29 = vadd.f32 %v4283_v41, %v4195_v18  ;;  %4233 = vmatmul.bf16.gmra.mxu0 %v11472_v3 }
 0x6ee   : > { %5572 = vst [vmem:[%s9620_s22 + $0xb8] sm:$0xff] %v5443_v60  ;;  %4322 = vmatmul.bf16.gmra.mxu1 %v11436_v0  ;;  %v4140_v54 = vpop.f32.mrf.mxu3 }
 0x6ef   : > { %4411 = vmatmul.bf16.gmra.mxu2 %v11472_v3  ;;  %v7122_v13 = vpop.eup %7121  ;;  %v4582_v14 = vmul.f32 0.5, %v4284_v29  ;;  %v10772_v50 = vadd.f32 %v4140_v54, %v4052_v28  ;;  %v4595_v28 = vmul.f32 0.5, %v10641_v21 }
 0x6f0   : > { %v5023_v19 = vadd.f32 1.0, %v7122_v13  ;;  %v7124_v22 = vpop.eup %7123 }
 0x6f1   : > { %7125 = vtanh.f32 %v4582_v14  ;;  %v5029_v43 = vadd.f32 1.0, %v7124_v22 }
 0x6f2   : > { %v5247_v36 = vmul.f32 0.5, %v5023_v19  ;;  %v4196_v53 = vpop.f32.mrf.mxu0  ;;  %7127 = vtanh.f32 %v4588_v39  ;;  %v4057_v19 = vadd.f32 %v10624_v42, %v10506_v1  ;;  %v4602_v42 = vmul.f32 0.5, %v10650_v63 }
 0x6f3   : > { %v4197_v61 = vadd.f32 %v4196_v53, %v10675_v2  ;;  %v4285_v40 = vpop.f32.mrf.mxu1  ;;  %v5253_v29 = vmul.f32 0.5, %v5029_v43 }
 0x6f4   : > { %v5447_v47 = vpack.c.bf16 %v5247_v36, %v5246_v62  ;;  %v11473_v62 = vld [vmem:[#allocation3_spill] sm:$0xff] }
 0x6f5   : > { %v4286_v30 = vadd.f32 %v4285_v40, %v4197_v61 }
 0x6f6   : > { %5576 = vst [vmem:[%s9620_s22 + $0xd4] sm:$0xff] %v5447_v47  ;;  %v4142_v56 = vpop.f32.mrf.mxu3 }
 0x6f7   : > { %v7126_v10 = vpop.eup %7125  ;;  %v4589_v18 = vmul.f32 0.5, %v4286_v30  ;;  %v10781_v41 = vadd.f32 %v4142_v56, %v4054_v8 }
 0x6f8   : > { %v5030_v60 = vadd.f32 1.0, %v7126_v10  ;;  %v7128_v48 = vpop.eup %7127 }
 0x6f9   : > { %7129 = vtanh.f32 %v4589_v18  ;;  %v5036_v36 = vadd.f32 1.0, %v7128_v48 }
 0x6fa   : > { %v5254_v3 = vmul.f32 0.5, %v5030_v60  ;;  %v4199_v12 = vpop.f32.mrf.mxu0  ;;  %7131 = vtanh.f32 %v4595_v28  ;;  %v4059_v60 = vadd.f32 %v10644_v26, %v10506_v1 }
 0x6fb   : > { %v4200_v54 = vadd.f32 %v4199_v12, %v10675_v2  ;;  %v4288_v13 = vpop.f32.mrf.mxu1  ;;  %4460 = vmatmul.bf16.gmra.mxu3 %v11450_v25  ;;  %v10794_v25 = vpop.f32.mrf.mxu2  ;;  %v5260_v47 = vmul.f32 0.5, %v5036_v36 }
 0x6fc   : > { %v5451_v14 = vpack.c.bf16 %v5254_v3, %v5253_v29 }
 0x6fd   : > { %v4289_v39 = vadd.f32 %v4288_v13, %v4200_v54  ;;  %4238 = vmatmul.bf16.gmra.mxu0 %v11473_v62  ;;  %v4609_v13 = vmul.f32 0.5, %v10663_v17  ;;  %v11474_v17 = vld [vmem:[#allocation4_spill] sm:$0xff] }
 0x6fe   : > { %5580 = vst [vmem:[%s9620_s22 + $0xf0] sm:$0xff] %v5451_v14  ;;  %4327 = vmatmul.bf16.gmra.mxu1 %v9522_v52  ;;  %v4145_v21 = vpop.f32.mrf.mxu3 }
 0x6ff   : > { %4416 = vmatmul.bf16.gmra.mxu2 %v11473_v62  ;;  %v7130_v53 = vpop.eup %7129  ;;  %v4596_v22 = vmul.f32 0.5, %v4289_v39  ;;  %v10792_v61 = vadd.f32 %v4145_v21, %v4057_v19 }
 0x700   : > { %v5037_v40 = vadd.f32 1.0, %v7130_v53  ;;  %v7132_v43 = vpop.eup %7131 }
 0x701   : > { %7133 = vtanh.f32 %v4596_v22  ;;  %v5043_v29 = vadd.f32 1.0, %v7132_v43  ;;  %v4062_v22 = vadd.f32 %v10655_v58, %v10506_v1 }
 0x702   : > { %v5261_v8 = vmul.f32 0.5, %v5037_v40  ;;  %v4201_v30 = vpop.f32.mrf.mxu0  ;;  %7135 = vtanh.f32 %v4602_v42 }
 0x703   : > { %v4202_v56 = vadd.f32 %v4201_v30, %v10675_v2  ;;  %v4290_v10 = vpop.f32.mrf.mxu1  ;;  %v5267_v14 = vmul.f32 0.5, %v5043_v29  ;;  %v10804_v19 = vpop.f32.mrf.mxu2 }
 0x704   : > { %v5455_v18 = vpack.c.bf16 %v5261_v8, %v5260_v47 }
 0x705   : > { %v4291_v28 = vadd.f32 %v4290_v10, %v4202_v56  ;;  %v4616_v56 = vmul.f32 0.5, %v10672_v37 }
 0x706   : > { %5584 = vst [vmem:[%s9620_s22 + $0x10c] sm:$0xff] %v5455_v18  ;;  %v4147_v3 = vpop.f32.mrf.mxu3 }
 0x707   : > { %v7134_v12 = vpop.eup %7133  ;;  %v4603_v48 = vmul.f32 0.5, %v4291_v28  ;;  %v10801_v63 = vadd.f32 %v4147_v3, %v4059_v60 }
 0x708   : > { %v5044_v54 = vadd.f32 1.0, %v7134_v12  ;;  %v7136_v26 = vpop.eup %7135 }
 0x709   : > { %7137 = vtanh.f32 %v4603_v48  ;;  %v5050_v42 = vadd.f32 1.0, %v7136_v26  ;;  %v4064_v48 = vadd.f32 %v10669_v16, %v10506_v1 }
 0x70a   : > { %v5268_v39 = vmul.f32 0.5, %v5044_v54  ;;  %v4204_v62 = vpop.f32.mrf.mxu0  ;;  %7139 = vtanh.f32 %v4609_v13 }
 0x70b   : > { %v4205_v36 = vadd.f32 %v4204_v62, %v10675_v2  ;;  %v4293_v21 = vpop.f32.mrf.mxu1  ;;  %4465 = vmatmul.bf16.gmra.mxu3 %v9333_v34  ;;  %v5274_v58 = vmul.f32 0.5, %v5050_v42  ;;  %v10818_v3 = vpop.f32.mrf.mxu2 }
 0x70c   : > { %v5459_v53 = vpack.c.bf16 %v5268_v39, %v5267_v14 }
 0x70d   : > { %v4294_v40 = vadd.f32 %v4293_v21, %v4205_v36  ;;  %4243 = vmatmul.bf16.gmra.mxu0 %v11474_v17  ;;  %v4623_v36 = vmul.f32 0.5, %v10686_v33 }
 0x70e   : > { %5588 = vst [vmem:[%s9620_s22 + $0x128] sm:$0xff] %v5459_v53  ;;  %4332 = vmatmul.bf16.gmra.mxu1 %v11466_v4  ;;  %v4150_v47 = vpop.f32.mrf.mxu3 }
 0x70f   : > { %4421 = vmatmul.bf16.gmra.mxu2 %v11474_v17  ;;  %v7138_v8 = vpop.eup %7137  ;;  %v4610_v30 = vmul.f32 0.5, %v4294_v40  ;;  %v10814_v43 = vadd.f32 %v4150_v47, %v4062_v22  ;;  %v4067_v47 = vadd.f32 %v10688_v9, %v10506_v1  ;;  %v4630_v9 = vmul.f32 0.5, %v10695_v32 }
 0x710   : > { %v5051_v34 = vadd.f32 1.0, %v7138_v8  ;;  %v7140_v60 = vpop.eup %7139 }
 0x711   : > { %7141 = vtanh.f32 %v4610_v30  ;;  %v5057_v13 = vadd.f32 1.0, %v7140_v60  ;;  %v11475_v30 = vld [vmem:[#allocation5_spill] sm:$0xff] }
 0x712   : > { %v5275_v10 = vmul.f32 0.5, %v5051_v34  ;;  %v4206_v18 = vpop.f32.mrf.mxu0  ;;  %7143 = vtanh.f32 %v4616_v56 }
 0x713   : > { %v4207_v28 = vadd.f32 %v4206_v18, %v10675_v2  ;;  %v4295_v29 = vpop.f32.mrf.mxu1  ;;  %v5281_v21 = vmul.f32 0.5, %v5057_v13  ;;  %v10831_v34 = vpop.f32.mrf.mxu2 }
 0x714   : > { %v5463_v12 = vpack.c.bf16 %v5275_v10, %v5274_v58 }
 0x715   : > { %v4296_v54 = vadd.f32 %v4295_v29, %v4207_v28 }
 0x716   : > { %5592 = vst [vmem:[%s9620_s22 + $0x144] sm:$0xff] %v5463_v12  ;;  %v4152_v14 = vpop.f32.mrf.mxu3 }
 0x717   : > { %v7142_v37 = vpop.eup %7141  ;;  %v4617_v39 = vmul.f32 0.5, %v4296_v54  ;;  %v10823_v62 = vadd.f32 %v4152_v14, %v4064_v48  ;;  %v4069_v14 = vadd.f32 %v10698_v45, %v10506_v1 }
 0x718   : > { %v5058_v26 = vadd.f32 1.0, %v7142_v37  ;;  %v7144_v40 = vpop.eup %7143 }
 0x719   : > { %7145 = vtanh.f32 %v4617_v39  ;;  %v5064_v33 = vadd.f32 1.0, %v7144_v40 }
 0x71a   : > { %v5282_v53 = vmul.f32 0.5, %v5058_v26  ;;  %v4209_v22 = vpop.f32.mrf.mxu0  ;;  %7147 = vtanh.f32 %v4623_v36 }
 0x71b   : > { %v4210_v16 = vadd.f32 %v4209_v22, %v10675_v2  ;;  %v4298_v17 = vpop.f32.mrf.mxu1  ;;  %4470 = vmatmul.bf16.gmra.mxu3 %v11455_v24  ;;  %v5288_v60 = vmul.f32 0.5, %v5064_v33  ;;  %v4637_v22 = vmul.f32 0.5, %v10708_v15 }
 0x71c   : > { %v5467_v42 = vpack.c.bf16 %v5282_v53, %v5281_v21 }
 0x71d   : > { %v4299_v8 = vadd.f32 %v4298_v17, %v4210_v16  ;;  %4248 = vmatmul.bf16.gmra.mxu0 %v11475_v30 }
 0x71e   : > { %5596 = vst [vmem:[%s9620_s22 + $0x160] sm:$0xff] %v5467_v42  ;;  %4337 = vmatmul.bf16.gmra.mxu1 %v9574_v49  ;;  %v4155_v56 = vpop.f32.mrf.mxu3 }
 0x71f   : > { %4426 = vmatmul.bf16.gmra.mxu2 %v11475_v30  ;;  %v7146_v58 = vpop.eup %7145  ;;  %v4624_v10 = vmul.f32 0.5, %v4299_v8  ;;  %v10836_v24 = vadd.f32 %v4155_v56, %v4067_v47  ;;  %v4072_v30 = vadd.f32 %v10712_v20, %v10506_v1 }
 0x720   : > { %v5065_v18 = vadd.f32 1.0, %v7146_v58  ;;  %v7148_v12 = vpop.eup %7147 }
 0x721   : > { %7149 = vtanh.f32 %v4624_v10  ;;  %v5071_v39 = vadd.f32 1.0, %v7148_v12 }
 0x722   : > { %v5289_v28 = vmul.f32 0.5, %v5065_v18  ;;  %v4211_v29 = vpop.f32.mrf.mxu0  ;;  %7151 = vtanh.f32 %v4630_v9 }
 0x723   : > { %v4212_v48 = vadd.f32 %v4211_v29, %v10675_v2  ;;  %v4300_v54 = vpop.f32.mrf.mxu1  ;;  %v5295_v40 = vmul.f32 0.5, %v5071_v39 }
 0x724   : > { %v5471_v13 = vpack.c.bf16 %v5289_v28, %v5288_v60  ;;  %v4644_v60 = vmul.f32 0.5, %v10717_v38 }
 0x725   : > { %v4301_v37 = vadd.f32 %v4300_v54, %v4212_v48 }
 0x726   : > { %5600 = vst [vmem:[%s9620_s22 + $0x17c] sm:$0xff] %v5471_v13  ;;  %v4157_v26 = vpop.f32.mrf.mxu3  ;;  %v4074_v13 = vadd.f32 %v10725_v57, %v10506_v1 }
 0x727   : > { %v7150_v36 = vpop.eup %7149  ;;  %v4631_v21 = vmul.f32 0.5, %v4301_v37  ;;  %v10843_v32 = vadd.f32 %v4157_v26, %v4069_v14 }
 0x728   : > { %v5072_v53 = vadd.f32 1.0, %v7150_v36  ;;  %v7152_v42 = vpop.eup %7151 }
 0x729   : > { %7153 = vtanh.f32 %v4631_v21  ;;  %v5078_v56 = vadd.f32 1.0, %v7152_v42 }
 0x72a   : > { %v5296_v16 = vmul.f32 0.5, %v5072_v53  ;;  %v4214_v17 = vpop.f32.mrf.mxu0  ;;  %7155 = vtanh.f32 %v4637_v22  ;;  %v7286_v53 = vld [vmem:[%s11055_s4] sm:$0x7f] }
 0x72b   : > { %v4215_v45 = vadd.f32 %v4214_v17, %v10675_v2  ;;  %v4303_v47 = vpop.f32.mrf.mxu1  ;;  %4475 = vmatmul.bf16.gmra.mxu3 %v9376_v27  ;;  %v5302_v28 = vmul.f32 0.5, %v5078_v56  ;;  %v10863_v22 = vperm.slane %v7286_v53, 6 }
 0x72c   : > { %v5475_v8 = vpack.c.bf16 %v5296_v16, %v5295_v40  ;;  %v4651_v40 = vmul.f32 0.5, %v10730_v59 }
 0x72d   : > { %v4304_v33 = vadd.f32 %v4303_v47, %v4215_v45 }
 0x72e   : > { %5604 = vst [vmem:[%s9620_s22 + $0x198] sm:$0xff] %v5475_v8  ;;  %v4160_v58 = vpop.f32.mrf.mxu3  ;;  %v4353_v8 = vadd.f32 %v10739_v23, %v10863_v22 }
 0x72f   : > { %v7154_v15 = vpop.eup %7153  ;;  %v4638_v10 = vmul.f32 0.5, %v4304_v33  ;;  %v10851_v18 = vadd.f32 %v4160_v58, %v4072_v30 }
 0x730   : > { %v5079_v9 = vadd.f32 1.0, %v7154_v15  ;;  %v7156_v12 = vpop.eup %7155 }
 0x731   : > { %7157 = vtanh.f32 %v4638_v10  ;;  %v5085_v37 = vadd.f32 1.0, %v7156_v12 }
 0x732   : > { %v5303_v27 = vmul.f32 0.5, %v5079_v9  ;;  %v4216_v29 = vpop.f32.mrf.mxu0  ;;  %7159 = vtanh.f32 %v4644_v60  ;;  %v4658_v9 = vmul.f32 0.5, %v10737_v6 }
 0x733   : > { %v4217_v20 = vadd.f32 %v4216_v29, %v10675_v2  ;;  %v4305_v48 = vpop.f32.mrf.mxu1  ;;  %v5309_v1 = vmul.f32 0.5, %v5085_v37 }
 0x734   : > { %v5479_v54 = vpack.c.bf16 %v5303_v27, %v5302_v28 }
 0x735   : > { %v4306_v14 = vadd.f32 %v4305_v48, %v4217_v20  ;;  %v4355_v48 = vadd.f32 %v10753_v55, %v10863_v22 }
 0x736   : > { %5608 = vst [vmem:[%s9620_s22 + $0x1b4] sm:$0xff] %v5479_v54  ;;  %v4162_v39 = vpop.f32.mrf.mxu3 }
 0x737   : > { %v7158_v26 = vpop.eup %7157  ;;  %v4645_v36 = vmul.f32 0.5, %v4306_v14  ;;  %v10858_v38 = vadd.f32 %v4162_v39, %v4074_v13 }
 0x738   : > { %v5086_v21 = vadd.f32 1.0, %v7158_v26  ;;  %v7160_v17 = vpop.eup %7159 }
 0x739   : > { %7161 = vtanh.f32 %v4645_v36  ;;  %v5092_v33 = vadd.f32 1.0, %v7160_v17 }
 0x73a   : > { %v5310_v57 = vmul.f32 0.5, %v5086_v21  ;;  %v4219_v16 = vpop.f32.mrf.mxu0  ;;  %7163 = vtanh.f32 %v4651_v40  ;;  %v4665_v21 = vmul.f32 0.5, %v10750_v51  ;;  %v4358_v51 = vadd.f32 %v10764_v5, %v10863_v22 }
 0x73b   : > { %v4220_v42 = vadd.f32 %v4219_v16, %v10675_v2  ;;  %v4308_v45 = vpop.f32.mrf.mxu1  ;;  %4480 = vmatmul.bf16.gmra.mxu3 %v9399_v44  ;;  %v5316_v28 = vmul.f32 0.5, %v5092_v33 }
 0x73c   : > { %v5483_v47 = vpack.c.bf16 %v5310_v57, %v5309_v1 }
 0x73d   : > { %v4309_v30 = vadd.f32 %v4308_v45, %v4220_v42  ;;  %v10879_v45 = vpop.f32.mrf.mxu2 }
 0x73e   : > { %5612 = vst [vmem:[%s9620_s22 + $0x1d0] sm:$0xff] %v5483_v47  ;;  %v4441_v56 = vpop.f32.mrf.mxu3 }
 0x73f   : > { %v7162_v59 = vpop.eup %7161  ;;  %v4652_v58 = vmul.f32 0.5, %v4309_v30  ;;  %v4442_v15 = vadd.f32 %v4441_v56, %v4353_v8 }
 0x740   : > { %v5093_v10 = vadd.f32 1.0, %v7162_v59  ;;  %v7164_v29 = vpop.eup %7163 }
 0x741   : > { %7165 = vtanh.f32 %v4652_v58  ;;  %v4527_v60 = vmul.f32 0.5, %v4442_v15  ;;  %v5099_v13 = vadd.f32 1.0, %v7164_v29 }
 0x742   : > { %v5317_v44 = vmul.f32 0.5, %v5093_v10  ;;  %v4221_v27 = vpop.f32.mrf.mxu0 }
 0x743   : > { %7167 = vtanh.f32 %v4527_v60  ;;  %v4222_v23 = vadd.f32 %v4221_v27, %v10675_v2  ;;  %v4310_v12 = vpop.f32.mrf.mxu1  ;;  %v5323_v40 = vmul.f32 0.5, %v5099_v13  ;;  %v4672_v60 = vmul.f32 0.5, %v10759_v11 }
 0x744   : > { %v5487_v20 = vpack.c.bf16 %v5317_v44, %v5316_v28  ;;  %7169 = vtanh.f32 %v4658_v9  ;;  %v4360_v13 = vadd.f32 %v10778_v46, %v10863_v22 }
 0x745   : > { %v4311_v54 = vadd.f32 %v4310_v12, %v4222_v23 }
 0x746   : > { %5616 = vst [vmem:[%s9620_s22 + $0x1ec] sm:$0xff] %v5487_v20  ;;  %v4443_v14 = vpop.f32.mrf.mxu3 }
 0x747   : > { %v7166_v6 = vpop.eup %7165  ;;  %v4659_v37 = vmul.f32 0.5, %v4311_v54  ;;  %v4444_v39 = vadd.f32 %v4443_v14, %v4355_v48 }
 0x748   : > { %v5100_v26 = vadd.f32 1.0, %v7166_v6  ;;  %v10890_v6 = vpop.f32.mrf.mxu2 }
 0x749   : > { %v7168_v36 = vpop.eup %7167  ;;  %7171 = vtanh.f32 %v4659_v37  ;;  %v4534_v53 = vmul.f32 0.5, %v4444_v39 }
 0x74a   : > { %v5324_v1 = vmul.f32 0.5, %v5100_v26  ;;  %v4975_v57 = vadd.f32 1.0, %v7168_v36  ;;  %v4224_v16 = vpop.f32.mrf.mxu0  ;;  %v7170_v55 = vpop.eup %7169 }
 0x74b   : > { %7173 = vtanh.f32 %v4534_v53  ;;  %v4225_v17 = vadd.f32 %v4224_v16, %v10675_v2  ;;  %v4313_v42 = vpop.f32.mrf.mxu1  ;;  %4485 = vmatmul.bf16.gmra.mxu3 %v9426_v7  ;;  %v5106_v33 = vadd.f32 1.0, %v7170_v55 }
 0x74c   : > { %v5491_v47 = vpack.c.bf16 %v5324_v1, %v5323_v40  ;;  %v5199_v8 = vmul.f32 0.5, %v4975_v57  ;;  %7175 = vtanh.f32 %v4665_v21  ;;  %v4679_v1 = vmul.f32 0.5, %v10772_v50 }
 0x74d   : > { %v4314_v30 = vadd.f32 %v4313_v42, %v4225_v17  ;;  %v5330_v5 = vmul.f32 0.5, %v5106_v33  ;;  %v4363_v50 = vadd.f32 %v10794_v25, %v10863_v22 }
 0x74e   : > { %5620 = vst [vmem:[%s9620_s22 + $0x208] sm:$0xff] %v5491_v47  ;;  %v5420_v56 = vpack.c.bf16 %v5199_v8, %v5199_v8  ;;  %v4446_v59 = vpop.f32.mrf.mxu3 }
 0x74f   : > { %v7172_v58 = vpop.eup %7171  ;;  %v4666_v15 = vmul.f32 0.5, %v4314_v30  ;;  %v4447_v10 = vadd.f32 %v4446_v59, %v4358_v51 }
 0x750   : > { %5549 = vst.msk [vmem:[%s9620_s22 + $0x18] sm:$0xf] %vm5548_vm1, %v5420_v56  ;;  %v5107_v7 = vadd.f32 1.0, %v7172_v58 }
 0x751   : > { %v7174_v9 = vpop.eup %7173  ;;  %7177 = vtanh.f32 %v4666_v15  ;;  %v4541_v28 = vmul.f32 0.5, %v4447_v10 }
 0x752   : > { %v5331_v44 = vmul.f32 0.5, %v5107_v7  ;;  %v4982_v27 = vadd.f32 1.0, %v7174_v9  ;;  %v4226_v29 = vpop.f32.mrf.mxu0  ;;  %v7176_v23 = vpop.eup %7175 }
 0x753   : > { %7179 = vtanh.f32 %v4541_v28  ;;  %v4227_v12 = vadd.f32 %v4226_v29, %v10675_v2  ;;  %v4315_v20 = vpop.f32.mrf.mxu1  ;;  %v5113_v14 = vadd.f32 1.0, %v7176_v23  ;;  %v10901_v9 = vpop.f32.mrf.mxu2  ;;  %v4686_v28 = vmul.f32 0.5, %v10781_v41 }
 0x754   : > { %v5495_v48 = vpack.c.bf16 %v5331_v44, %v5330_v5  ;;  %v5206_v54 = vmul.f32 0.5, %v4982_v27  ;;  %7181 = vtanh.f32 %v4672_v60 }
 0x755   : > { %v4316_v11 = vadd.f32 %v4315_v20, %v4227_v12  ;;  %v5337_v46 = vmul.f32 0.5, %v5113_v14 }
 0x756   : > { %5624 = vst [vmem:[%s9620_s22 + $0x224] sm:$0xff] %v5495_v48  ;;  %v5424_v37 = vpack.c.bf16 %v5206_v54, %v5206_v54  ;;  %v4448_v39 = vpop.f32.mrf.mxu3 }
 0x757   : > { %v7178_v26 = vpop.eup %7177  ;;  %v4673_v36 = vmul.f32 0.5, %v4316_v11  ;;  %v4449_v21 = vadd.f32 %v4448_v39, %v4360_v13  ;;  %v4365_v13 = vadd.f32 %v10804_v19, %v10863_v22 }
 0x758   : > { %5553 = vst.msk [vmem:[%s9620_s22 + $0x34] sm:$0xf] %vm5548_vm1, %v5424_v37  ;;  %v5114_v53 = vadd.f32 1.0, %v7178_v26 }
 0x759   : > { %v7180_v40 = vpop.eup %7179  ;;  %7183 = vtanh.f32 %v4673_v36  ;;  %v4548_v57 = vmul.f32 0.5, %v4449_v21 }
 0x75a   : > { %v5338_v16 = vmul.f32 0.5, %v5114_v53  ;;  %v4989_v55 = vadd.f32 1.0, %v7180_v40  ;;  %v4229_v17 = vpop.f32.mrf.mxu0  ;;  %v7182_v42 = vpop.eup %7181  ;;  %v4693_v40 = vmul.f32 0.5, %v10792_v61  ;;  %v4368_v61 = vadd.f32 %v10818_v3, %v10863_v22 }
 0x75b   : > { %7185 = vtanh.f32 %v4548_v57  ;;  %v4230_v47 = vadd.f32 %v4229_v17, %v10675_v2  ;;  %v4318_v8 = vpop.f32.mrf.mxu1  ;;  %4490 = vmatmul.bf16.gmra.mxu3 %v9447_v35  ;;  %v5120_v56 = vadd.f32 1.0, %v7182_v42  ;;  %v10913_v19 = vpop.f32.mrf.mxu2 }
 0x75c   : > { %v5499_v51 = vpack.c.bf16 %v5338_v16, %v5337_v46  ;;  %v5213_v30 = vmul.f32 0.5, %v4989_v55  ;;  %7187 = vtanh.f32 %v4679_v1 }
 0x75d   : > { %v4319_v33 = vadd.f32 %v4318_v8, %v4230_v47  ;;  %v5344_v5 = vmul.f32 0.5, %v5120_v56 }
 0x75e   : > { %5628 = vst [vmem:[%s9620_s22 + $0x240] sm:$0xff] %v5499_v51  ;;  %v5428_v59 = vpack.c.bf16 %v5213_v30, %v5213_v30  ;;  %v4451_v58 = vpop.f32.mrf.mxu3 }
 0x75f   : > { %v7184_v15 = vpop.eup %7183  ;;  %v4680_v10 = vmul.f32 0.5, %v4319_v33  ;;  %v4452_v7 = vadd.f32 %v4451_v58, %v4363_v50 }
 0x760   : > { %5557 = vst.msk [vmem:[%s9620_s22 + $0x50] sm:$0xf] %vm5548_vm1, %v5428_v59  ;;  %v5121_v60 = vadd.f32 1.0, %v7184_v15 }
 0x761   : > { %v7186_v35 = vpop.eup %7185  ;;  %7189 = vtanh.f32 %v4680_v10  ;;  %v4555_v25 = vmul.f32 0.5, %v4452_v7 }
 0x762   : > { %v5345_v44 = vmul.f32 0.5, %v5121_v60  ;;  %v4996_v27 = vadd.f32 1.0, %v7186_v35  ;;  %v4231_v29 = vpop.f32.mrf.mxu0  ;;  %v7188_v23 = vpop.eup %7187 }
 0x763   : > { %7191 = vtanh.f32 %v4555_v25  ;;  %v4232_v12 = vadd.f32 %v4231_v29, %v10675_v2  ;;  %v4320_v20 = vpop.f32.mrf.mxu1  ;;  %v5127_v11 = vadd.f32 1.0, %v7188_v23  ;;  %v10924_v29 = vpop.f32.mrf.mxu2 }
 0x764   : > { %v5503_v48 = vpack.c.bf16 %v5345_v44, %v5344_v5  ;;  %v5220_v54 = vmul.f32 0.5, %v4996_v27  ;;  %7193 = vtanh.f32 %v4686_v28 }
 0x765   : > { %v4321_v41 = vadd.f32 %v4320_v20, %v4232_v12  ;;  %v5351_v57 = vmul.f32 0.5, %v5127_v11 }
 0x766   : > { %5632 = vst [vmem:[%s9620_s22 + $0x25c] sm:$0xff] %v5503_v48  ;;  %v5432_v14 = vpack.c.bf16 %v5220_v54, %v5220_v54  ;;  %v4453_v37 = vpop.f32.mrf.mxu3 }
 0x767   : > { %v7190_v39 = vpop.eup %7189  ;;  %v4687_v26 = vmul.f32 0.5, %v4321_v41  ;;  %v4454_v36 = vadd.f32 %v4453_v37, %v4365_v13 }
 0x768   : > { %5561 = vst.msk [vmem:[%s9620_s22 + $0x6c] sm:$0xf] %vm5548_vm1, %v5432_v14  ;;  %v5128_v21 = vadd.f32 1.0, %v7190_v39 }
 0x769   : > { %v7192_v53 = vpop.eup %7191  ;;  %7195 = vtanh.f32 %v4687_v26  ;;  %v4562_v1 = vmul.f32 0.5, %v4454_v36  ;;  %v4707_v26 = vmul.f32 0.5, %v10814_v43  ;;  %v4373_v43 = vadd.f32 %v10879_v45, %v10863_v22 }
 0x76a   : > { %v5352_v46 = vmul.f32 0.5, %v5128_v21  ;;  %v5003_v16 = vadd.f32 1.0, %v7192_v53  ;;  %v4234_v55 = vpop.f32.mrf.mxu0  ;;  %v7194_v17 = vpop.eup %7193 }
 0x76b   : > { %7197 = vtanh.f32 %v4562_v1  ;;  %v4235_v42 = vadd.f32 %v4234_v55, %v10675_v2  ;;  %v4323_v47 = vpop.f32.mrf.mxu1  ;;  %4495 = vmatmul.bf16.gmra.mxu3 %v9474_v31  ;;  %v5134_v50 = vadd.f32 1.0, %v7194_v17  ;;  %v4700_v31 = vmul.f32 0.5, %v10801_v63 }
 0x76c   : > { %v5507_v8 = vpack.c.bf16 %v5352_v46, %v5351_v57  ;;  %v5227_v51 = vmul.f32 0.5, %v5003_v16  ;;  %7199 = vtanh.f32 %v4693_v40  ;;  %v4370_v63 = vadd.f32 %v10831_v34, %v10863_v22 }
 0x76d   : > { %v4324_v30 = vadd.f32 %v4323_v47, %v4235_v42  ;;  %v5358_v35 = vmul.f32 0.5, %v5134_v50  ;;  %v10936_v47 = vpop.f32.mrf.mxu2 }
 0x76e   : > { %5636 = vst [vmem:[%s9620_s22 + $0x278] sm:$0xff] %v5507_v8  ;;  %v5436_v33 = vpack.c.bf16 %v5227_v51, %v5227_v51  ;;  %v4456_v56 = vpop.f32.mrf.mxu3 }
 0x76f   : > { %v7196_v59 = vpop.eup %7195  ;;  %v4694_v58 = vmul.f32 0.5, %v4324_v30  ;;  %v4457_v15 = vadd.f32 %v4456_v56, %v4368_v61  ;;  %v4714_v56 = vmul.f32 0.5, %v10823_v62 }
 0x770   : > { %5565 = vst.msk [vmem:[%s9620_s22 + $0x88] sm:$0xf] %vm5548_vm1, %v5436_v33  ;;  %v5135_v10 = vadd.f32 1.0, %v7196_v59 }
 0x771   : > { %v7198_v7 = vpop.eup %7197  ;;  %7201 = vtanh.f32 %v4694_v58  ;;  %v4569_v60 = vmul.f32 0.5, %v4457_v15 }
 0x772   : > { %v5359_v3 = vmul.f32 0.5, %v5135_v10  ;;  %v5010_v28 = vadd.f32 1.0, %v7198_v7  ;;  %v4236_v25 = vpop.f32.mrf.mxu0  ;;  %v7200_v5 = vpop.eup %7199 }
 0x773   : > { %7203 = vtanh.f32 %v4569_v60  ;;  %v4237_v44 = vadd.f32 %v4236_v25, %v10675_v2  ;;  %v4325_v27 = vpop.f32.mrf.mxu1  ;;  %v5141_v48 = vadd.f32 1.0, %v7200_v5 }
 0x774   : > { %v5511_v23 = vpack.c.bf16 %v5359_v3, %v5358_v35  ;;  %v5234_v12 = vmul.f32 0.5, %v5010_v28  ;;  %7205 = vtanh.f32 %v4700_v31  ;;  %v4375_v28 = vadd.f32 %v10890_v6, %v10863_v22 }
 0x775   : > { %v4326_v20 = vadd.f32 %v4325_v27, %v4237_v44  ;;  %v5365_v21 = vmul.f32 0.5, %v5141_v48 }
 0x776   : > { %5640 = vst [vmem:[%s9620_s22 + $0x294] sm:$0xff] %v5511_v23  ;;  %v5440_v54 = vpack.c.bf16 %v5234_v12, %v5234_v12  ;;  %v4458_v13 = vpop.f32.mrf.mxu3 }
 0x777   : > { %v7202_v41 = vpop.eup %7201  ;;  %v4701_v11 = vmul.f32 0.5, %v4326_v20  ;;  %v4459_v14 = vadd.f32 %v4458_v13, %v4370_v63  ;;  %v10946_v63 = vpop.f32.mrf.mxu2 }
 0x778   : > { %5569 = vst.msk [vmem:[%s9620_s22 + $0xa4] sm:$0xf] %vm5548_vm1, %v5440_v54  ;;  %v5142_v37 = vadd.f32 1.0, %v7202_v41  ;;  %v4721_v54 = vmul.f32 0.5, %v10836_v24  ;;  %v4378_v24 = vadd.f32 %v10901_v9, %v10863_v22 }
 0x779   : > { %v7204_v39 = vpop.eup %7203  ;;  %7207 = vtanh.f32 %v4701_v11  ;;  %v4576_v36 = vmul.f32 0.5, %v4459_v14 }
 0x77a   : > { %v5366_v34 = vmul.f32 0.5, %v5142_v37  ;;  %v5017_v53 = vadd.f32 1.0, %v7204_v39  ;;  %v4239_v40 = vpop.f32.mrf.mxu0  ;;  %v7206_v1 = vpop.eup %7205 }
 0x77b   : > { %7209 = vtanh.f32 %v4576_v36  ;;  %v4240_v57 = vadd.f32 %v4239_v40, %v10675_v2  ;;  %v4328_v46 = vpop.f32.mrf.mxu1  ;;  %4500 = vmatmul.bf16.gmra.mxu3 %v11436_v0  ;;  %v5148_v42 = vadd.f32 1.0, %v7206_v1 }
 0x77c   : > { %v5515_v16 = vpack.c.bf16 %v5366_v34, %v5365_v21  ;;  %v5241_v55 = vmul.f32 0.5, %v5017_v53  ;;  %7211 = vtanh.f32 %v4707_v26 }
 0x77d   : > { %v4329_v17 = vadd.f32 %v4328_v46, %v4240_v57  ;;  %v5372_v59 = vmul.f32 0.5, %v5148_v42 }
 0x77e   : > { %5644 = vst [vmem:[%s9620_s22 + $0x2b0] sm:$0xff] %v5515_v16  ;;  %v5444_v8 = vpack.c.bf16 %v5241_v55, %v5241_v55  ;;  %v4461_v51 = vpop.f32.mrf.mxu3 }
 0x77f   : > { %v7208_v61 = vpop.eup %7207  ;;  %v4708_v30 = vmul.f32 0.5, %v4329_v17  ;;  %v4462_v50 = vadd.f32 %v4461_v51, %v4373_v43  ;;  %v10959_v9 = vpop.f32.mrf.mxu2 }
 0x780   : > { %5573 = vst.msk [vmem:[%s9620_s22 + $0xc0] sm:$0xf] %vm5548_vm1, %v5444_v8  ;;  %v5149_v33 = vadd.f32 1.0, %v7208_v61 }
 0x781   : > { %v7210_v0 = vpop.eup %7209  ;;  %7213 = vtanh.f32 %v4708_v30  ;;  %v4583_v45 = vmul.f32 0.5, %v4462_v50 }
 0x782   : > { %v5373_v58 = vmul.f32 0.5, %v5149_v33  ;;  %v5024_v15 = vadd.f32 1.0, %v7210_v0  ;;  %v4241_v10 = vpop.f32.mrf.mxu0  ;;  %v7212_v7 = vpop.eup %7211 }
 0x783   : > { %7215 = vtanh.f32 %v4583_v45  ;;  %v4242_v31 = vadd.f32 %v4241_v10, %v10675_v2  ;;  %v4330_v60 = vpop.f32.mrf.mxu1  ;;  %v5155_v25 = vadd.f32 1.0, %v7212_v7 }
 0x784   : > { %v5519_v35 = vpack.c.bf16 %v5373_v58, %v5372_v59  ;;  %v5248_v3 = vmul.f32 0.5, %v5024_v15  ;;  %7217 = vtanh.f32 %v4714_v56 }
 0x785   : > { %v4331_v62 = vadd.f32 %v4330_v60, %v4242_v31  ;;  %v5379_v6 = vmul.f32 0.5, %v5155_v25 }
 0x786   : > { %5648 = vst [vmem:[%s9620_s22 + $0x2cc] sm:$0xff] %v5519_v35  ;;  %v5448_v5 = vpack.c.bf16 %v5248_v3, %v5248_v3  ;;  %v4463_v44 = vpop.f32.mrf.mxu3  ;;  %v4735_v3 = vmul.f32 0.5, %v10851_v18  ;;  %v4383_v18 = vadd.f32 %v10924_v29, %v10863_v22 }
 0x787   : > { %v7214_v27 = vpop.eup %7213  ;;  %v4715_v23 = vmul.f32 0.5, %v4331_v62  ;;  %v4464_v12 = vadd.f32 %v4463_v44, %v4375_v28 }
 0x788   : > { %5577 = vst.msk [vmem:[%s9620_s22 + $0xdc] sm:$0xf] %vm5548_vm1, %v5448_v5  ;;  %v5156_v20 = vadd.f32 1.0, %v7214_v27 }
 0x789   : > { %v7216_v48 = vpop.eup %7215  ;;  %7219 = vtanh.f32 %v4715_v23  ;;  %v4590_v13 = vmul.f32 0.5, %v4464_v12  ;;  %v10970_v12 = vpop.f32.mrf.mxu2 }
 0x78a   : > { %v5380_v41 = vmul.f32 0.5, %v5156_v20  ;;  %v5031_v11 = vadd.f32 1.0, %v7216_v48  ;;  %v4244_v14 = vpop.f32.mrf.mxu0  ;;  %v7218_v37 = vpop.eup %7217 }
 0x78b   : > { %7221 = vtanh.f32 %v4590_v13  ;;  %v4245_v39 = vadd.f32 %v4244_v14, %v10675_v2  ;;  %v4333_v26 = vpop.f32.mrf.mxu1  ;;  %4505 = vmatmul.bf16.gmra.mxu3 %v9522_v52  ;;  %v5162_v53 = vadd.f32 1.0, %v7218_v37  ;;  %v4728_v52 = vmul.f32 0.5, %v10843_v32 }
 0x78c   : > { %v5523_v36 = vpack.c.bf16 %v5380_v41, %v5379_v6  ;;  %v5255_v21 = vmul.f32 0.5, %v5031_v11  ;;  %7223 = vtanh.f32 %v4721_v54  ;;  %v4380_v32 = vadd.f32 %v10913_v19, %v10863_v22 }
 0x78d   : > { %v4334_v34 = vadd.f32 %v4333_v26, %v4245_v39  ;;  %v5386_v42 = vmul.f32 0.5, %v5162_v53  ;;  %v4742_v26 = vmul.f32 0.5, %v10858_v38 }
 0x78e   : > { %5652 = vst [vmem:[%s9620_s22 + $0x2e8] sm:$0xff] %v5523_v36  ;;  %v5452_v40 = vpack.c.bf16 %v5255_v21, %v5255_v21  ;;  %v4466_v1 = vpop.f32.mrf.mxu3 }
 0x78f   : > { %v7220_v57 = vpop.eup %7219  ;;  %v4722_v46 = vmul.f32 0.5, %v4334_v34  ;;  %v4467_v16 = vadd.f32 %v4466_v1, %v4378_v24 }
 0x790   : > { %5581 = vst.msk [vmem:[%s9620_s22 + $0xf8] sm:$0xf] %vm5548_vm1, %v5452_v40  ;;  %v5163_v55 = vadd.f32 1.0, %v7220_v57 }
 0x791   : > { %v7222_v43 = vpop.eup %7221  ;;  %7225 = vtanh.f32 %v4722_v46  ;;  %v4597_v17 = vmul.f32 0.5, %v4467_v16  ;;  %v4385_v16 = vadd.f32 %v10936_v47, %v10863_v22 }
 0x792   : > { %v5387_v8 = vmul.f32 0.5, %v5163_v55  ;;  %v5038_v51 = vadd.f32 1.0, %v7222_v43  ;;  %v4246_v61 = vpop.f32.mrf.mxu0  ;;  %v7224_v30 = vpop.eup %7223 }
 0x793   : > { %7227 = vtanh.f32 %v4597_v17  ;;  %v4247_v50 = vadd.f32 %v4246_v61, %v10675_v2  ;;  %v4335_v33 = vpop.f32.mrf.mxu1  ;;  %v5169_v59 = vadd.f32 1.0, %v7224_v30  ;;  %v4394_v43 = vpop.f32.mrf.mxu2 }
 0x794   : > { %v5527_v0 = vpack.c.bf16 %v5387_v8, %v5386_v42  ;;  %v5262_v56 = vmul.f32 0.5, %v5038_v51  ;;  %7229 = vtanh.f32 %v4728_v52 }
 0x795   : > { %v4336_v45 = vadd.f32 %v4335_v33, %v4247_v50  ;;  %v5393_v62 = vmul.f32 0.5, %v5169_v59 }
 0x796   : > { %5656 = vst [vmem:[%s9620_s22 + $0x304] sm:$0xff] %v5527_v0  ;;  %v5456_v58 = vpack.c.bf16 %v5262_v56, %v5262_v56  ;;  %v4468_v15 = vpop.f32.mrf.mxu3 }
 0x797   : > { %v7226_v10 = vpop.eup %7225  ;;  %v4729_v7 = vmul.f32 0.5, %v4336_v45  ;;  %v4469_v31 = vadd.f32 %v4468_v15, %v4380_v32  ;;  %v4388_v45 = vadd.f32 %v10946_v63, %v10863_v22 }
 0x798   : > { %5585 = vst.msk [vmem:[%s9620_s22 + $0x114] sm:$0xf] %vm5548_vm1, %v5456_v58  ;;  %v5170_v60 = vadd.f32 1.0, %v7226_v10 }
 0x799   : > { %v7228_v35 = vpop.eup %7227  ;;  %7231 = vtanh.f32 %v4729_v7  ;;  %v4604_v28 = vmul.f32 0.5, %v4469_v31 }
 0x79a   : > { %v5394_v19 = vmul.f32 0.5, %v5170_v60  ;;  %v5045_v25 = vadd.f32 1.0, %v7228_v35  ;;  %v4249_v5 = vpop.f32.mrf.mxu0  ;;  %v7230_v44 = vpop.eup %7229 }
 0x79b   : > { %7233 = vtanh.f32 %v4604_v28  ;;  %v4250_v27 = vadd.f32 %v4249_v5, %v10675_v2  ;;  %v4338_v23 = vpop.f32.mrf.mxu1  ;;  %4510 = vmatmul.bf16.gmra.mxu3 %v11466_v4  ;;  %v5176_v13 = vadd.f32 1.0, %v7230_v44  ;;  %v4397_v31 = vpop.f32.mrf.mxu2 }
 0x79c   : > { %v5531_v20 = vpack.c.bf16 %v5394_v19, %v5393_v62  ;;  %v5269_v48 = vmul.f32 0.5, %v5045_v25  ;;  %7235 = vtanh.f32 %v4735_v3  ;;  %v4390_v25 = vadd.f32 %v10959_v9, %v10863_v22 }
 0x79d   : > { %v4339_v54 = vadd.f32 %v4338_v23, %v4250_v27  ;;  %v5400_v21 = vmul.f32 0.5, %v5176_v13  ;;  %v4393_v13 = vadd.f32 %v10970_v12, %v10863_v22 }
 0x79e   : > { %5660 = vst [vmem:[%s9620_s22 + $0x320] sm:$0xff] %v5531_v20  ;;  %v5460_v6 = vpack.c.bf16 %v5269_v48, %v5269_v48  ;;  %v4471_v41 = vpop.f32.mrf.mxu3 }
 0x79f   : > { %v7232_v11 = vpop.eup %7231  ;;  %v4736_v14 = vmul.f32 0.5, %v4339_v54  ;;  %v4472_v37 = vadd.f32 %v4471_v41, %v4383_v18 }
 0x7a0   : > { %5589 = vst.msk [vmem:[%s9620_s22 + $0x130] sm:$0xf] %vm5548_vm1, %v5460_v6  ;;  %v5177_v39 = vadd.f32 1.0, %v7232_v11 }
 0x7a1   : > { %v7234_v4 = vpop.eup %7233  ;;  %7237 = vtanh.f32 %v4736_v14  ;;  %v4611_v36 = vmul.f32 0.5, %v4472_v37 }
 0x7a2   : > { %v5401_v29 = vmul.f32 0.5, %v5177_v39  ;;  %v5052_v24 = vadd.f32 1.0, %v7234_v4  ;;  %v4251_v34 = vpop.f32.mrf.mxu0  ;;  %v7236_v53 = vpop.eup %7235 }
 0x7a3   : > { %7239 = vtanh.f32 %v4611_v36  ;;  %v4252_v40 = vadd.f32 %v4251_v34, %v10675_v2  ;;  %v4340_v46 = vpop.f32.mrf.mxu1  ;;  %v5183_v55 = vadd.f32 1.0, %v7236_v53  ;;  %v4399_v48 = vpop.f32.mrf.mxu2 }
 0x7a4   : > { %v5535_v1 = vpack.c.bf16 %v5401_v29, %v5400_v21  ;;  %v5276_v57 = vmul.f32 0.5, %v5052_v24  ;;  %7241 = vtanh.f32 %v4742_v26  ;;  %v4395_v26 = vadd.f32 %v4394_v43, %v10863_v22 }
 0x7a5   : > { %v4341_v38 = vadd.f32 %v4340_v46, %v4252_v40  ;;  %v5407_v50 = vmul.f32 0.5, %v5183_v55  ;;  %v4398_v40 = vadd.f32 %v4397_v31, %v10863_v22 }
 0x7a6   : > { %5664 = vst [vmem:[%s9620_s22 + $0x33c] sm:$0xff] %v5535_v1  ;;  %v5464_v52 = vpack.c.bf16 %v5276_v57, %v5276_v57  ;;  %v4473_v17 = vpop.f32.mrf.mxu3 }
 0x7a7   : > { %v7238_v42 = vpop.eup %7237  ;;  %v4743_v8 = vmul.f32 0.5, %v4341_v38  ;;  %v4474_v51 = vadd.f32 %v4473_v17, %v4385_v16  ;;  %v4400_v17 = vadd.f32 %v4399_v48, %v10863_v22 }
 0x7a8   : > { %5593 = vst.msk [vmem:[%s9620_s22 + $0x14c] sm:$0xf] %vm5548_vm1, %v5464_v52  ;;  %v5184_v2 = vadd.f32 1.0, %v7238_v42 }
 0x7a9   : > { %v7240_v61 = vpop.eup %7239  ;;  %7243 = vtanh.f32 %v4743_v8  ;;  %v4618_v30 = vmul.f32 0.5, %v4474_v51 }
 0x7aa   : > { %v5408_v47 = vmul.f32 0.5, %v5184_v2  ;;  %v5059_v33 = vadd.f32 1.0, %v7240_v61  ;;  %v7242_v0 = vpop.eup %7241 }
 0x7ab   : > { %7245 = vtanh.f32 %v4618_v30  ;;  %4515 = vmatmul.bf16.gmra.mxu3 %v9574_v49  ;;  %v5190_v59 = vadd.f32 1.0, %v7242_v0  ;;  %v4402_v39 = vpop.f32.mrf.mxu2 }
 0x7ac   : > { %v5539_v56 = vpack.c.bf16 %v5408_v47, %v5407_v50  ;;  %v5283_v32 = vmul.f32 0.5, %v5059_v33  ;;  %v4403_v33 = vadd.f32 %v4402_v39, %v10863_v22 }
 0x7ad   : > { %v5414_v49 = vmul.f32 0.5, %v5190_v59 }
 0x7ae   : > { %5668 = vst [vmem:[%s9620_s22 + $0x358] sm:$0xff] %v5539_v56  ;;  %v5468_v58 = vpack.c.bf16 %v5283_v32, %v5283_v32  ;;  %v4476_v15 = vpop.f32.mrf.mxu3 }
 0x7af   : > { %v7244_v10 = vpop.eup %7243  ;;  %v4477_v7 = vadd.f32 %v4476_v15, %v4388_v45 }
 0x7b0   : > { %5597 = vst.msk [vmem:[%s9620_s22 + $0x168] sm:$0xf] %vm5548_vm1, %v5468_v58  ;;  %v5191_v60 = vadd.f32 1.0, %v7244_v10 }
 0x7b1   : > { %v7246_v35 = vpop.eup %7245  ;;  %v4625_v3 = vmul.f32 0.5, %v4477_v7 }
 0x7b2   : > { %v5415_v28 = vmul.f32 0.5, %v5191_v60  ;;  %v5066_v62 = vadd.f32 1.0, %v7246_v35 }
 0x7b3   : > { %7247 = vtanh.f32 %v4625_v3  ;;  %v4404_v1 = vpop.f32.mrf.mxu2 }
 0x7b4   : > { %v5543_v19 = vpack.c.bf16 %v5415_v28, %v5414_v49  ;;  %v5290_v63 = vmul.f32 0.5, %v5066_v62  ;;  %v4405_v7 = vadd.f32 %v4404_v1, %v10863_v22 }
 0x7b6   : > { %5672 = vst [vmem:[%s9620_s22 + $0x374] sm:$0xff] %v5543_v19  ;;  %v5472_v5 = vpack.c.bf16 %v5290_v63, %v5290_v63  ;;  %v4478_v44 = vpop.f32.mrf.mxu3 }
 0x7b7   : > { %v4479_v27 = vadd.f32 %v4478_v44, %v4390_v25 }
 0x7b8   : > { %5601 = vst.msk [vmem:[%s9620_s22 + $0x184] sm:$0xf] %vm5548_vm1, %v5472_v5 }
 0x7b9   : > { %v7248_v23 = vpop.eup %7247  ;;  %v4632_v20 = vmul.f32 0.5, %v4479_v27 }
 0x7ba   : > { %v5073_v18 = vadd.f32 1.0, %v7248_v23 }
 0x7bb   : > { %7249 = vtanh.f32 %v4632_v20  ;;  %v4407_v2 = vpop.f32.mrf.mxu2 }
 0x7bc   : > { %v5297_v54 = vmul.f32 0.5, %v5073_v18  ;;  %v4408_v63 = vadd.f32 %v4407_v2, %v10863_v22 }
 0x7be   : > { %v5476_v6 = vpack.c.bf16 %v5297_v54, %v5297_v54  ;;  %v4481_v41 = vpop.f32.mrf.mxu3 }
 0x7bf   : > { %v4482_v9 = vadd.f32 %v4481_v41, %v4393_v13 }
 0x7c0   : > { %5605 = vst.msk [vmem:[%s9620_s22 + $0x1a0] sm:$0xf] %vm5548_vm1, %v5476_v6 }
 0x7c1   : > { %v7250_v11 = vpop.eup %7249  ;;  %v4639_v14 = vmul.f32 0.5, %v4482_v9 }
 0x7c2   : > { %v5080_v37 = vadd.f32 1.0, %v7250_v11 }
 0x7c3   : > { %7251 = vtanh.f32 %v4639_v14  ;;  %v4409_v58 = vpop.f32.mrf.mxu2 }
 0x7c4   : > { %v5304_v4 = vmul.f32 0.5, %v5080_v37  ;;  %v4410_v18 = vadd.f32 %v4409_v58, %v10863_v22 }
 0x7c6   : > { %v5480_v36 = vpack.c.bf16 %v5304_v4, %v5304_v4  ;;  %v4483_v21 = vpop.f32.mrf.mxu3 }
 0x7c7   : > { %v4484_v29 = vadd.f32 %v4483_v21, %v4395_v26 }
 0x7c8   : > { %5609 = vst.msk [vmem:[%s9620_s22 + $0x1bc] sm:$0xf] %vm5548_vm1, %v5480_v36 }
 0x7c9   : > { %v7252_v12 = vpop.eup %7251  ;;  %v4646_v24 = vmul.f32 0.5, %v4484_v29 }
 0x7ca   : > { %v5087_v34 = vadd.f32 1.0, %v7252_v12 }
 0x7cb   : > { %7253 = vtanh.f32 %v4646_v24  ;;  %v4412_v62 = vpop.f32.mrf.mxu2 }
 0x7cc   : > { %v5311_v53 = vmul.f32 0.5, %v5087_v34  ;;  %v4413_v39 = vadd.f32 %v4412_v62, %v10863_v22 }
 0x7ce   : > { %v5484_v57 = vpack.c.bf16 %v5311_v53, %v5311_v53  ;;  %v4486_v46 = vpop.f32.mrf.mxu3 }
 0x7cf   : > { %v4487_v16 = vadd.f32 %v4486_v46, %v4398_v40 }
 0x7d0   : > { %5613 = vst.msk [vmem:[%s9620_s22 + $0x1d8] sm:$0xf] %vm5548_vm1, %v5484_v57 }
 0x7d1   : > { %v7254_v38 = vpop.eup %7253  ;;  %v4653_v55 = vmul.f32 0.5, %v4487_v16 }
 0x7d2   : > { %v5094_v43 = vadd.f32 1.0, %v7254_v38 }
 0x7d3   : > { %7255 = vtanh.f32 %v4653_v55  ;;  %v4414_v54 = vpop.f32.mrf.mxu2 }
 0x7d4   : > { %v5318_v52 = vmul.f32 0.5, %v5094_v43  ;;  %v4415_v53 = vadd.f32 %v4414_v54, %v10863_v22 }
 0x7d6   : > { %v5488_v42 = vpack.c.bf16 %v5318_v52, %v5318_v52  ;;  %v4488_v8 = vpop.f32.mrf.mxu3 }
 0x7d7   : > { %v4489_v51 = vadd.f32 %v4488_v8, %v4400_v17 }
 0x7d8   : > { %5617 = vst.msk [vmem:[%s9620_s22 + $0x1f4] sm:$0xf] %vm5548_vm1, %v5488_v42 }
 0x7d9   : > { %v7256_v61 = vpop.eup %7255  ;;  %v4660_v30 = vmul.f32 0.5, %v4489_v51 }
 0x7da   : > { %v5101_v50 = vadd.f32 1.0, %v7256_v61 }
 0x7db   : > { %7257 = vtanh.f32 %v4660_v30  ;;  %v4417_v21 = vpop.f32.mrf.mxu2 }
 0x7dc   : > { %v5325_v47 = vmul.f32 0.5, %v5101_v50  ;;  %v4418_v52 = vadd.f32 %v4417_v21, %v10863_v22 }
 0x7de   : > { %v5492_v0 = vpack.c.bf16 %v5325_v47, %v5325_v47  ;;  %v4491_v56 = vpop.f32.mrf.mxu3 }
 0x7df   : > { %v4492_v32 = vadd.f32 %v4491_v56, %v4403_v33 }
 0x7e0   : > { %5621 = vst.msk [vmem:[%s9620_s22 + $0x210] sm:$0xf] %vm5548_vm1, %v5492_v0 }
 0x7e1   : > { %v7258_v45 = vpop.eup %7257  ;;  %v4667_v59 = vmul.f32 0.5, %v4492_v32 }
 0x7e2   : > { %v5108_v15 = vadd.f32 1.0, %v7258_v45 }
 0x7e3   : > { %7259 = vtanh.f32 %v4667_v59  ;;  %v4419_v38 = vpop.f32.mrf.mxu2 }
 0x7e4   : > { %v5332_v10 = vmul.f32 0.5, %v5108_v15  ;;  %v4420_v47 = vadd.f32 %v4419_v38, %v10863_v22 }
 0x7e6   : > { %v5496_v31 = vpack.c.bf16 %v5332_v10, %v5332_v10  ;;  %v4493_v60 = vpop.f32.mrf.mxu3 }
 0x7e7   : > { %v4494_v35 = vadd.f32 %v4493_v60, %v4405_v7 }
 0x7e8   : > { %5625 = vst.msk [vmem:[%s9620_s22 + $0x22c] sm:$0xf] %vm5548_vm1, %v5496_v31 }
 0x7e9   : > { %v7260_v3 = vpop.eup %7259  ;;  %v4674_v49 = vmul.f32 0.5, %v4494_v35 }
 0x7ea   : > { %v5115_v28 = vadd.f32 1.0, %v7260_v3 }
 0x7eb   : > { %7261 = vtanh.f32 %v4674_v49  ;;  %v4422_v30 = vpop.f32.mrf.mxu2 }
 0x7ec   : > { %v5339_v19 = vmul.f32 0.5, %v5115_v28  ;;  %v4423_v15 = vadd.f32 %v4422_v30, %v10863_v22 }
 0x7ee   : > { %v5500_v25 = vpack.c.bf16 %v5339_v19, %v5339_v19  ;;  %v4496_v5 = vpop.f32.mrf.mxu3 }
 0x7ef   : > { %v4497_v44 = vadd.f32 %v4496_v5, %v4408_v63 }
 0x7f0   : > { %5629 = vst.msk [vmem:[%s9620_s22 + $0x248] sm:$0xf] %vm5548_vm1, %v5500_v25 }
 0x7f1   : > { %v7262_v27 = vpop.eup %7261  ;;  %v4681_v23 = vmul.f32 0.5, %v4497_v44 }
 0x7f2   : > { %v5122_v20 = vadd.f32 1.0, %v7262_v27 }
 0x7f3   : > { %7263 = vtanh.f32 %v4681_v23  ;;  %v4424_v10 = vpop.f32.mrf.mxu2 }
 0x7f4   : > { %v5346_v48 = vmul.f32 0.5, %v5122_v20  ;;  %v4425_v62 = vadd.f32 %v4424_v10, %v10863_v22 }
 0x7f6   : > { %v5504_v13 = vpack.c.bf16 %v5346_v48, %v5346_v48  ;;  %v4498_v6 = vpop.f32.mrf.mxu3 }
 0x7f7   : > { %v4499_v41 = vadd.f32 %v4498_v6, %v4410_v18 }
 0x7f8   : > { %5633 = vst.msk [vmem:[%s9620_s22 + $0x264] sm:$0xf] %vm5548_vm1, %v5504_v13 }
 0x7f9   : > { %v7264_v9 = vpop.eup %7263  ;;  %v4688_v11 = vmul.f32 0.5, %v4499_v41 }
 0x7fa   : > { %v5129_v14 = vadd.f32 1.0, %v7264_v9 }
 0x7fb   : > { %7265 = vtanh.f32 %v4688_v11  ;;  %v4427_v5 = vpop.f32.mrf.mxu2 }
 0x7fc   : > { %v5353_v37 = vmul.f32 0.5, %v5129_v14  ;;  %v4428_v48 = vadd.f32 %v4427_v5, %v10863_v22 }
 0x7fe   : > { %v5508_v4 = vpack.c.bf16 %v5353_v37, %v5353_v37  ;;  %v4501_v26 = vpop.f32.mrf.mxu3 }
 0x7ff   : > { %v4502_v36 = vadd.f32 %v4501_v26, %v4413_v39 }
 0x800   : > { %5637 = vst.msk [vmem:[%s9620_s22 + $0x280] sm:$0xf] %vm5548_vm1, %v5508_v4 }
 0x801   : > { %v7266_v29 = vpop.eup %7265  ;;  %v4695_v12 = vmul.f32 0.5, %v4502_v36 }
 0x802   : > { %v5136_v24 = vadd.f32 1.0, %v7266_v29 }
 0x803   : > { %7267 = vtanh.f32 %v4695_v12  ;;  %v4429_v9 = vpop.f32.mrf.mxu2 }
 0x804   : > { %v5360_v34 = vmul.f32 0.5, %v5136_v24  ;;  %v4430_v37 = vadd.f32 %v4429_v9, %v10863_v22 }
 0x806   : > { %v5512_v40 = vpack.c.bf16 %v5360_v34, %v5360_v34  ;;  %v4503_v1 = vpop.f32.mrf.mxu3 }
 0x807   : > { %v4504_v57 = vadd.f32 %v4503_v1, %v4415_v53 }
 0x808   : > { %5641 = vst.msk [vmem:[%s9620_s22 + $0x29c] sm:$0xf] %vm5548_vm1, %v5512_v40 }
 0x809   : > { %v7268_v46 = vpop.eup %7267  ;;  %v4702_v16 = vmul.f32 0.5, %v4504_v57 }
 0x80a   : > { %v5143_v55 = vadd.f32 1.0, %v7268_v46 }
 0x80b   : > { %7269 = vtanh.f32 %v4702_v16 }
 0x80c   : > { %v5367_v43 = vmul.f32 0.5, %v5143_v55 }
 0x80e   : > { %v5516_v17 = vpack.c.bf16 %v5367_v43, %v5367_v43  ;;  %v4506_v42 = vpop.f32.mrf.mxu3 }
 0x80f   : > { %v4507_v8 = vadd.f32 %v4506_v42, %v4418_v52 }
 0x810   : > { %5645 = vst.msk [vmem:[%s9620_s22 + $0x2b8] sm:$0xf] %vm5548_vm1, %v5516_v17 }
 0x811   : > { %v7270_v51 = vpop.eup %7269  ;;  %v4709_v2 = vmul.f32 0.5, %v4507_v8 }
 0x812   : > { %v5150_v61 = vadd.f32 1.0, %v7270_v51 }
 0x813   : > { %7271 = vtanh.f32 %v4709_v2 }
 0x814   : > { %v5374_v50 = vmul.f32 0.5, %v5150_v61 }
 0x816   : > { %v5520_v33 = vpack.c.bf16 %v5374_v50, %v5374_v50  ;;  %v4508_v0 = vpop.f32.mrf.mxu3 }
 0x817   : > { %v4509_v56 = vadd.f32 %v4508_v0, %v4420_v47 }
 0x818   : > { %5649 = vst.msk [vmem:[%s9620_s22 + $0x2d4] sm:$0xf] %vm5548_vm1, %v5520_v33 }
 0x819   : > { %v7272_v32 = vpop.eup %7271  ;;  %v4716_v45 = vmul.f32 0.5, %v4509_v56 }
 0x81a   : > { %v5157_v59 = vadd.f32 1.0, %v7272_v32 }
 0x81b   : > { %7273 = vtanh.f32 %v4716_v45 }
 0x81c   : > { %v5381_v58 = vmul.f32 0.5, %v5157_v59 }
 0x81e   : > { %v5524_v7 = vpack.c.bf16 %v5381_v58, %v5381_v58  ;;  %v4511_v31 = vpop.f32.mrf.mxu3 }
 0x81f   : > { %v4512_v60 = vadd.f32 %v4511_v31, %v4423_v15 }
 0x820   : > { %5653 = vst.msk [vmem:[%s9620_s22 + $0x2f0] sm:$0xf] %vm5548_vm1, %v5524_v7 }
 0x821   : > { %v7274_v35 = vpop.eup %7273  ;;  %v4723_v3 = vmul.f32 0.5, %v4512_v60 }
 0x822   : > { %v5164_v49 = vadd.f32 1.0, %v7274_v35 }
 0x823   : > { %7275 = vtanh.f32 %v4723_v3 }
 0x824   : > { %v5388_v28 = vmul.f32 0.5, %v5164_v49 }
 0x826   : > { %v5528_v19 = vpack.c.bf16 %v5388_v28, %v5388_v28  ;;  %v4513_v63 = vpop.f32.mrf.mxu3 }
 0x827   : > { %v4514_v25 = vadd.f32 %v4513_v63, %v4425_v62 }
 0x828   : > { %5657 = vst.msk [vmem:[%s9620_s22 + $0x30c] sm:$0xf] %vm5548_vm1, %v5528_v19 }
 0x829   : > { %v7276_v44 = vpop.eup %7275  ;;  %v4730_v27 = vmul.f32 0.5, %v4514_v25 }
 0x82a   : > { %v5171_v23 = vadd.f32 1.0, %v7276_v44 }
 0x82b   : > { %7277 = vtanh.f32 %v4730_v27 }
 0x82c   : > { %v5395_v20 = vmul.f32 0.5, %v5171_v23 }
 0x82e   : > { %v5532_v18 = vpack.c.bf16 %v5395_v20, %v5395_v20  ;;  %v4516_v54 = vpop.f32.mrf.mxu3 }
 0x82f   : > { %v4517_v13 = vadd.f32 %v4516_v54, %v4428_v48 }
 0x830   : > { %5661 = vst.msk [vmem:[%s9620_s22 + $0x328] sm:$0xf] %vm5548_vm1, %v5532_v18 }
 0x831   : > { %v7278_v6 = vpop.eup %7277  ;;  %v4737_v41 = vmul.f32 0.5, %v4517_v13 }
 0x832   : > { %v5178_v11 = vadd.f32 1.0, %v7278_v6 }
 0x833   : > { %7279 = vtanh.f32 %v4737_v41 }
 0x834   : > { %v5402_v14 = vmul.f32 0.5, %v5178_v11 }
 0x836   : > { %v5536_v39 = vpack.c.bf16 %v5402_v14, %v5402_v14  ;;  %v4518_v4 = vpop.f32.mrf.mxu3 }
 0x837   : > { %v4519_v26 = vadd.f32 %v4518_v4, %v4430_v37 }
 0x838   : > { %5665 = vst.msk [vmem:[%s9620_s22 + $0x344] sm:$0xf] %vm5548_vm1, %v5536_v39 }
 0x839   : > { %v7280_v36 = vpop.eup %7279  ;;  %v4744_v21 = vmul.f32 0.5, %v4519_v26 }
 0x83a   : > { %v5185_v29 = vadd.f32 1.0, %v7280_v36 }
 0x83b   : > { %7281 = vtanh.f32 %v4744_v21 }
 0x83c   : > { %v5409_v12 = vmul.f32 0.5, %v5185_v29 }
 0x83e   : > { %v5540_v24 = vpack.c.bf16 %v5409_v12, %v5409_v12 }
 0x840   : > { %5669 = vst.msk [vmem:[%s9620_s22 + $0x360] sm:$0xf] %vm5548_vm1, %v5540_v24 }
 0x841   : > { %v7282_v34 = vpop.eup %7281 }
 0x842   : > { %v5192_v53 = vadd.f32 1.0, %v7282_v34 }
 0x844   : > { %v5416_v40 = vmul.f32 0.5, %v5192_v53 }
 0x846   : > { %v5544_v1 = vpack.c.bf16 %v5416_v40, %v5416_v40 }
 0x848   : > { %5673 = vst.msk [vmem:[%s9620_s22 + $0x37c] sm:$0xf] %vm5548_vm1, %v5544_v1 }
 0x849 PF: > { %s15_s18 = sadd.s32 1, %s7293_s18  }
 0x84a   : > { %p12_p4 = scmp.ge.s32.totalorder %s15_s18, 4  }
 0x84c   :  { %14 = sbr.rel (!%p12_p4) target bundleno = 1 (0x1), region = 70 }

</bundles_post_ra>
